<compile_context>
chip_gen: v7x
topology: tpu7x:2x2x1
jax: 0.10.0
libtpu: 0.0.40
codegen_flags: <defaults>
</compile_context>

<pallas_src>
import math

import jax
import jax.numpy as jnp
from jax.experimental import pallas as pl
from jax.experimental.pallas import tpu as pltpu

_MXU_M = 256          # MXU M width on v6e/v7x; also a multiple of v5e's 128.
_LN_EPS = 1e-5


def _round_up(n: int, m: int) -> int:
    return ((n + m - 1) // m) * m


def _vmem_limit_bytes() -> int:
    """Per-generation VMEM budget with headroom for Mosaic internal scratch."""
    try:
        cap = int(pltpu.get_tpu_info().vmem_capacity_bytes)
    except Exception:
        cap = 128 * 1024 * 1024
    # v7x (64 MiB/TC) -> 48 MiB; v5e/v6e (128 MiB) -> capped at ~96-100 MiB.
    return min(cap * 3 // 4, 100 * 1024 * 1024)


def _choose_tile_b(B: int, tile_b_hint: int) -> int:
    """MXU-M-aligned batch tile; >= 2 grid steps when the batch permits."""
    if B <= _MXU_M:
        return _round_up(B, 8)                 # tiny batch: single 8-aligned tile
    Bp = _round_up(B, _MXU_M)
    tb = min(_round_up(tile_b_hint, _MXU_M), Bp)
    # Cap so the "parallel" grid has at least 2 steps (v7x has 2 TensorCores).
    half = _round_up(pl.cdiv(Bp, 2), _MXU_M)
    return max(min(tb, half), _MXU_M)


# -----------------------------------------------------------------------------
# Kernel: fused  W2( relu( layernorm( W1(x) ) ) )  for one batch tile.
# -----------------------------------------------------------------------------
def projector_kernel(x_ref, w1_ref, gamma_ref, beta_ref, w2_ref, out_ref):
    # ---- GEMM1 on the MXU: (tb, D) @ (D, H), bf16 inputs, f32 accumulation.
    x = x_ref[...].astype(jnp.bfloat16)
    h = jnp.dot(x, w1_ref[...], preferred_element_type=jnp.float32)    # (tb, H)

    # ---- LayerNorm over the hidden dim: f32, two-pass variance, eps = 1e-5.
    inv_h = jnp.float32(1.0 / h.shape[-1])
    mean = jnp.sum(h, axis=-1, keepdims=True) * inv_h
    centered = h - mean
    var = jnp.sum(centered * centered, axis=-1, keepdims=True) * inv_h
    h_norm = centered * jax.lax.rsqrt(var + jnp.float32(_LN_EPS))
    h_aff = h_norm * gamma_ref[...] + beta_ref[...]

    # ---- ReLU + GEMM2: (tb, H) @ (H, D) back to model_dim.
    h_act = jnp.maximum(h_aff, 0.0).astype(jnp.bfloat16)
    out_ref[...] = jnp.dot(
        h_act, w2_ref[...], preferred_element_type=jnp.float32
    ).astype(out_ref.dtype)


# -----------------------------------------------------------------------------
# pallas_call builder + wrapper
# -----------------------------------------------------------------------------
def _build_projector_call(Bp, tb, D, H, out_dtype, single_buffer_weights):
    resident = {}
    if single_buffer_weights:
        # Grid-invariant operands: a single VMEM buffer.  Default double
        # buffering would just duplicate the weights for zero overlap benefit.
        resident = dict(pipeline_mode=pl.Buffered(1))
    return pl.pallas_call(
        projector_kernel,
        out_shape=jax.ShapeDtypeStruct((Bp, D), out_dtype),
        grid_spec=pltpu.PrefetchScalarGridSpec(
            num_scalar_prefetch=0,
            grid=(Bp // tb,),
            in_specs=[
                pl.BlockSpec((tb, D), lambda i: (i, 0)),              # x tile
                pl.BlockSpec((D, H), lambda i: (0, 0), **resident),   # W1^T
                pl.BlockSpec((1, H), lambda i: (0, 0), **resident),   # gamma
                pl.BlockSpec((1, H), lambda i: (0, 0), **resident),   # beta
                pl.BlockSpec((H, D), lambda i: (0, 0), **resident),   # W2^T
            ],
            out_specs=pl.BlockSpec((tb, D), lambda i: (i, 0)),
        ),
        compiler_params=pltpu.CompilerParams(
            dimension_semantics=("parallel",),      # megacore sharding on v7x
            vmem_limit_bytes=_vmem_limit_bytes(),
        ),
    )


def projector_forward(x, params, *, tile_b: int = 512, out_dtype=jnp.float32):
    """x: (B, model_dim) -> (B, model_dim) via fused W2(relu(LN(W1 x)))."""
    w1_t, gamma, beta, w2_t = params
    B, D = x.shape
    H = w1_t.shape[1]

    tb = _choose_tile_b(B, tile_b)
    Bp = _round_up(B, tb)
    if Bp != B:
        # Padded rows are all zero -> LN output is exactly 0 -> sliced off.
        x = jnp.pad(x, ((0, Bp - B), (0, 0)))

    # Rough VMEM footprint of the resident-weight design: bf16 weights (single
    # buffered), gamma/beta, double-buffered f32 x/out tiles, f32 hidden.
    footprint = (2 * D * H * 2) + (2 * H * 4) + (2 * 2 * tb * D * 4) + (tb * H * 4)
    if footprint > _vmem_limit_bytes():
        # TODO(synk): H-chunk streaming pipeline for production D/H on v7x.
        raise NotImplementedError(
            "Resident-weight Projector kernel exceeds the VMEM budget for "
            f"D={D}, H={H}, tile_b={tb}; needs the H-streaming variant."
        )

    args = (x, w1_t, gamma, beta, w2_t)
    try:
        out = _build_projector_call(Bp, tb, D, H, out_dtype, True)(*args)
    except Exception:
        # Fallback if this JAX build rejects pipeline_mode=pl.Buffered(1) on
        # auto-pipelined BlockSpecs; a real kernel bug will still re-raise here.
        out = _build_projector_call(Bp, tb, D, H, out_dtype, False)(*args)

    return out[:B] if Bp != B else out


# -----------------------------------------------------------------------------
# Parameter init mirroring Projector.init / PyTorch defaults.
# -----------------------------------------------------------------------------
def init_params(key, model_dim: int, hidden_dim: int):
    gain = math.sqrt(2.0)                       # nn.init.calculate_gain('relu')
    k1, k2 = jax.random.split(key)
    std1 = gain * math.sqrt(2.0 / (model_dim + hidden_dim))
    std2 = gain * math.sqrt(2.0 / (hidden_dim + model_dim))
    # PyTorch Linear weight is (out, in); y = x @ W.T -> store transposed.
    w1 = jax.random.normal(k1, (hidden_dim, model_dim), jnp.float32) * std1
    w2 = jax.random.normal(k2, (model_dim, hidden_dim), jnp.float32) * std2
    w1_t = w1.T.astype(jnp.bfloat16)            # (D, H) bf16 for the MXU
    w2_t = w2.T.astype(jnp.bfloat16)            # (H, D) bf16 for the MXU
    gamma = jnp.ones((1, hidden_dim), jnp.float32)   # LayerNorm affine defaults
    beta = jnp.zeros((1, hidden_dim), jnp.float32)
    return w1_t, gamma, beta, w2_t


def _reference(x, params):
    """Pure-JAX reference with the same bf16 GEMM / f32 LayerNorm recipe."""
    w1_t, gamma, beta, w2_t = params
    h = jnp.dot(x.astype(jnp.bfloat16), w1_t, preferred_element_type=jnp.float32)
    mean = jnp.mean(h, axis=-1, keepdims=True)
    var = jnp.mean((h - mean) ** 2, axis=-1, keepdims=True)
    hn = (h - mean) * jax.lax.rsqrt(var + _LN_EPS) * gamma + beta
    ha = jnp.maximum(hn, 0.0).astype(jnp.bfloat16)
    return jnp.dot(ha, w2_t, preferred_element_type=jnp.float32)


# -----------------------------------------------------------------------------
if __name__ == "__main__":
    key = jax.random.PRNGKey(0)
    k_p, k_x1, k_x2 = jax.random.split(key, 3)

    D = 128     # model_dim (lane-dense 128-wide output stores)
    H = 512     # hidden_dim (SimSiam-style 4 * model_dim)
    params = init_params(k_p, D, H)

    # Larger batch: exercises the MXU-aligned, 2-step "parallel" grid path.
    xb = jax.random.normal(k_x1, (512, D), jnp.float32)
    pb = projector_forward(xb, params)
    jax.block_until_ready(pb)
    assert pb.shape == (512, D), pb.shape
    assert bool(jnp.all(jnp.isfinite(pb)))
    pb_ref = _reference(xb, params)
    assert bool(jnp.allclose(pb, pb_ref, rtol=2e-2, atol=2e-2)), \
        float(jnp.max(jnp.abs(pb - pb_ref)))

    # Tiny batch: exercises the padded single-tile path.
    xs = jax.random.normal(k_x2, (16, D), jnp.float32)
    ps = projector_forward(xs, params)
    jax.block_until_ready(ps)
    assert ps.shape == (16, D), ps.shape
    ps_ref = _reference(xs, params)
    assert bool(jnp.allclose(ps, ps_ref, rtol=2e-2, atol=2e-2)), \
        float(jnp.max(jnp.abs(ps - ps_ref)))

    print("KERNEL_OK")
</pallas_src>

<mosaic_0001>
module attributes {stable_mosaic.version = 11 : i64} {
  func.func @projector_kernel(%arg0: i32, %arg1: memref<256x128xf32, #tpu.memory_space<vmem>>, %arg2: memref<128x512xbf16, #tpu.memory_space<vmem>>, %arg3: memref<1x512xf32, #tpu.memory_space<vmem>>, %arg4: memref<1x512xf32, #tpu.memory_space<vmem>>, %arg5: memref<512x128xbf16, #tpu.memory_space<vmem>>, %arg6: memref<256x128xf32, #tpu.memory_space<vmem>>) attributes {dimension_semantics = [#tpu.dimension_semantics<parallel>], iteration_bounds = array<i64: 2>, scalar_prefetch = 0 : i64, scratch_operands = 0 : i64, tpu.core_type = #tpu.core_type<tc>, window_params = [{transform_indices = @transform_0, window_bounds = array<i64: 256, 128>}, {pipeline_mode = #tpu.pipeline_mode<synchronous>, transform_indices = @transform_1, window_bounds = array<i64: 128, 512>}, {pipeline_mode = #tpu.pipeline_mode<synchronous>, transform_indices = @transform_2, window_bounds = array<i64: 1, 512>}, {pipeline_mode = #tpu.pipeline_mode<synchronous>, transform_indices = @transform_3, window_bounds = array<i64: 1, 512>}, {pipeline_mode = #tpu.pipeline_mode<synchronous>, transform_indices = @transform_4, window_bounds = array<i64: 512, 128>}, {transform_indices = @transform_5, window_bounds = array<i64: 256, 128>}]} {
    %c0 = arith.constant 0 : index
    %c0_0 = arith.constant 0 : index
    %0 = vector.load %arg1[%c0, %c0_0] : memref<256x128xf32, #tpu.memory_space<vmem>>, vector<256x128xf32>
    %1 = arith.truncf %0 : vector<256x128xf32> to vector<256x128xbf16>
    %c0_1 = arith.constant 0 : index
    %c0_2 = arith.constant 0 : index
    %2 = vector.load %arg2[%c0_1, %c0_2] : memref<128x512xbf16, #tpu.memory_space<vmem>>, vector<128x512xbf16>
    %cst = arith.constant dense<0.000000e+00> : vector<256x512xf32>
    %3 = tpu.matmul %1, %2, %cst {dimension_numbers = #tpu.dot_dimension_numbers<[1], [0], [0], [1], [0, 0, 1, 1], [], []>} : vector<256x128xbf16>, vector<128x512xbf16>, vector<256x512xf32> -> vector<256x512xf32>
    %cst_3 = arith.constant dense<0.000000e+00> : vector<256xf32>
    %4 = vector.multi_reduction <add>, %3, %cst_3 [1] : vector<256x512xf32> to vector<256xf32>
    %5 = vector.shape_cast %4 : vector<256xf32> to vector<256x1xf32>
    %cst_4 = arith.constant 0.001953125 : f32
    %6 = vector.broadcast %cst_4 : f32 to vector<256x1xf32>
    %7 = arith.mulf %5, %6 : vector<256x1xf32>
    %8 = vector.broadcast %7 : vector<256x1xf32> to vector<256x512xf32>
    %9 = arith.subf %3, %8 : vector<256x512xf32>
    %10 = arith.mulf %9, %9 : vector<256x512xf32>
    %cst_5 = arith.constant dense<0.000000e+00> : vector<256xf32>
    %11 = vector.multi_reduction <add>, %10, %cst_5 [1] : vector<256x512xf32> to vector<256xf32>
    %12 = vector.shape_cast %11 : vector<256xf32> to vector<256x1xf32>
    %cst_6 = arith.constant 0.001953125 : f32
    %13 = vector.broadcast %cst_6 : f32 to vector<256x1xf32>
    %14 = arith.mulf %12, %13 : vector<256x1xf32>
    %cst_7 = arith.constant 9.99999974E-6 : f32
    %15 = vector.broadcast %cst_7 : f32 to vector<256x1xf32>
    %16 = arith.addf %14, %15 : vector<256x1xf32>
    %17 = math.rsqrt %16 : vector<256x1xf32>
    %18 = vector.broadcast %17 : vector<256x1xf32> to vector<256x512xf32>
    %19 = arith.mulf %9, %18 : vector<256x512xf32>
    %c0_8 = arith.constant 0 : index
    %c0_9 = arith.constant 0 : index
    %20 = vector.load %arg3[%c0_8, %c0_9] : memref<1x512xf32, #tpu.memory_space<vmem>>, vector<1x512xf32>
    %21 = vector.broadcast %20 : vector<1x512xf32> to vector<256x512xf32>
    %22 = arith.mulf %19, %21 : vector<256x512xf32>
    %c0_10 = arith.constant 0 : index
    %c0_11 = arith.constant 0 : index
    %23 = vector.load %arg4[%c0_10, %c0_11] : memref<1x512xf32, #tpu.memory_space<vmem>>, vector<1x512xf32>
    %24 = vector.broadcast %23 : vector<1x512xf32> to vector<256x512xf32>
    %25 = arith.addf %22, %24 : vector<256x512xf32>
    %cst_12 = arith.constant 0.000000e+00 : f32
    %26 = vector.broadcast %cst_12 : f32 to vector<256x512xf32>
    %27 = arith.maximumf %25, %26 : vector<256x512xf32>
    %28 = arith.truncf %27 : vector<256x512xf32> to vector<256x512xbf16>
    %c0_13 = arith.constant 0 : index
    %c0_14 = arith.constant 0 : index
    %29 = vector.load %arg5[%c0_13, %c0_14] : memref<512x128xbf16, #tpu.memory_space<vmem>>, vector<512x128xbf16>
    %cst_15 = arith.constant dense<0.000000e+00> : vector<256x128xf32>
    %30 = tpu.matmul %28, %29, %cst_15 {dimension_numbers = #tpu.dot_dimension_numbers<[1], [0], [0], [1], [0, 0, 1, 1], [], []>} : vector<256x512xbf16>, vector<512x128xbf16>, vector<256x128xf32> -> vector<256x128xf32>
    %c0_16 = arith.constant 0 : index
    %c0_17 = arith.constant 0 : index
    %31 = vector.load %arg6[%c0_16, %c0_17] : memref<256x128xf32, #tpu.memory_space<vmem>>, vector<256x128xf32>
    tpu.vector_store %arg6[%c0_16, %c0_17], %30 {strides = array<i32>} : memref<256x128xf32, #tpu.memory_space<vmem>>, vector<256x128xf32>,
    return
  }
  func.func @transform_0(%arg0: i32) -> (i32, i32) {
    %c0_i32 = arith.constant 0 : i32
    %c0_i32_0 = arith.constant 0 : i32
    return %arg0, %c0_i32 : i32, i32
  }
  func.func @transform_1(%arg0: i32) -> (i32, i32) {
    %c0_i32 = arith.constant 0 : i32
    %c0_i32_0 = arith.constant 0 : i32
    %c0_i32_1 = arith.constant 0 : i32
    return %c0_i32, %c0_i32_0 : i32, i32
  }
  func.func @transform_2(%arg0: i32) -> (i32, i32) {
    %c0_i32 = arith.constant 0 : i32
    %c0_i32_0 = arith.constant 0 : i32
    %c0_i32_1 = arith.constant 0 : i32
    return %c0_i32, %c0_i32_0 : i32, i32
  }
  func.func @transform_3(%arg0: i32) -> (i32, i32) {
    %c0_i32 = arith.constant 0 : i32
    %c0_i32_0 = arith.constant 0 : i32
    %c0_i32_1 = arith.constant 0 : i32
    return %c0_i32, %c0_i32_0 : i32, i32
  }
  func.func @transform_4(%arg0: i32) -> (i32, i32) {
    %c0_i32 = arith.constant 0 : i32
    %c0_i32_0 = arith.constant 0 : i32
    %c0_i32_1 = arith.constant 0 : i32
    return %c0_i32, %c0_i32_0 : i32, i32
  }
  func.func @transform_5(%arg0: i32) -> (i32, i32) {
    %c0_i32 = arith.constant 0 : i32
    %c0_i32_0 = arith.constant 0 : i32
    return %arg0, %c0_i32 : i32, i32
  }
}

module attributes {stable_mosaic.version = 11 : i64} {
  func.func @projector_kernel(%arg0: i32, %arg1: memref<256x128xf32, #tpu.memory_space<vmem>>, %arg2: memref<128x512xbf16, #tpu.memory_space<vmem>>, %arg3: memref<1x512xf32, #tpu.memory_space<vmem>>, %arg4: memref<1x512xf32, #tpu.memory_space<vmem>>, %arg5: memref<512x128xbf16, #tpu.memory_space<vmem>>, %arg6: memref<256x128xf32, #tpu.memory_space<vmem>>) attributes {dimension_semantics = [#tpu.dimension_semantics<parallel>], iteration_bounds = array<i64: 2>, scalar_prefetch = 0 : i64, scratch_operands = 0 : i64, tpu.core_type = #tpu.core_type<tc>, window_params = [{transform_indices = @transform_0, window_bounds = array<i64: 256, 128>}, {pipeline_mode = #tpu.pipeline_mode<synchronous>, transform_indices = @transform_1, window_bounds = array<i64: 128, 512>}, {pipeline_mode = #tpu.pipeline_mode<synchronous>, transform_indices = @transform_2, window_bounds = array<i64: 1, 512>}, {pipeline_mode = #tpu.pipeline_mode<synchronous>, transform_indices = @transform_3, window_bounds = array<i64: 1, 512>}, {pipeline_mode = #tpu.pipeline_mode<synchronous>, transform_indices = @transform_4, window_bounds = array<i64: 512, 128>}, {transform_indices = @transform_5, window_bounds = array<i64: 256, 128>}]} {
    %c0 = arith.constant 0 : index
    %c0_0 = arith.constant 0 : index
    %0 = vector.load %arg1[%c0, %c0_0] : memref<256x128xf32, #tpu.memory_space<vmem>>, vector<256x128xf32>
    %1 = arith.truncf %0 : vector<256x128xf32> to vector<256x128xbf16>
    %c0_1 = arith.constant 0 : index
    %c0_2 = arith.constant 0 : index
    %2 = vector.load %arg2[%c0_1, %c0_2] : memref<128x512xbf16, #tpu.memory_space<vmem>>, vector<128x512xbf16>
    %cst = arith.constant dense<0.000000e+00> : vector<256x512xf32>
    %3 = tpu.matmul %1, %2, %cst {dimension_numbers = #tpu.dot_dimension_numbers<[1], [0], [0], [1], [0, 0, 1, 1], [], []>} : vector<256x128xbf16>, vector<128x512xbf16>, vector<256x512xf32> -> vector<256x512xf32>
    %cst_3 = arith.constant dense<0.000000e+00> : vector<256xf32>
    %4 = vector.multi_reduction <add>, %3, %cst_3 [1] : vector<256x512xf32> to vector<256xf32>
    %5 = vector.shape_cast %4 : vector<256xf32> to vector<256x1xf32>
    %cst_4 = arith.constant 0.001953125 : f32
    %6 = vector.broadcast %cst_4 : f32 to vector<256x1xf32>
    %7 = arith.mulf %5, %6 : vector<256x1xf32>
    %8 = vector.broadcast %7 : vector<256x1xf32> to vector<256x512xf32>
    %9 = arith.subf %3, %8 : vector<256x512xf32>
    %10 = arith.mulf %9, %9 : vector<256x512xf32>
    %cst_5 = arith.constant dense<0.000000e+00> : vector<256xf32>
    %11 = vector.multi_reduction <add>, %10, %cst_5 [1] : vector<256x512xf32> to vector<256xf32>
    %12 = vector.shape_cast %11 : vector<256xf32> to vector<256x1xf32>
    %cst_6 = arith.constant 0.001953125 : f32
    %13 = vector.broadcast %cst_6 : f32 to vector<256x1xf32>
    %14 = arith.mulf %12, %13 : vector<256x1xf32>
    %cst_7 = arith.constant 9.99999974E-6 : f32
    %15 = vector.broadcast %cst_7 : f32 to vector<256x1xf32>
    %16 = arith.addf %14, %15 : vector<256x1xf32>
    %17 = math.rsqrt %16 : vector<256x1xf32>
    %18 = vector.broadcast %17 : vector<256x1xf32> to vector<256x512xf32>
    %19 = arith.mulf %9, %18 : vector<256x512xf32>
    %c0_8 = arith.constant 0 : index
    %c0_9 = arith.constant 0 : index
    %20 = vector.load %arg3[%c0_8, %c0_9] : memref<1x512xf32, #tpu.memory_space<vmem>>, vector<1x512xf32>
    %21 = vector.broadcast %20 : vector<1x512xf32> to vector<256x512xf32>
    %22 = arith.mulf %19, %21 : vector<256x512xf32>
    %c0_10 = arith.constant 0 : index
    %c0_11 = arith.constant 0 : index
    %23 = vector.load %arg4[%c0_10, %c0_11] : memref<1x512xf32, #tpu.memory_space<vmem>>, vector<1x512xf32>
    %24 = vector.broadcast %23 : vector<1x512xf32> to vector<256x512xf32>
    %25 = arith.addf %22, %24 : vector<256x512xf32>
    %cst_12 = arith.constant 0.000000e+00 : f32
    %26 = vector.broadcast %cst_12 : f32 to vector<256x512xf32>
    %27 = arith.maximumf %25, %26 : vector<256x512xf32>
    %28 = arith.truncf %27 : vector<256x512xf32> to vector<256x512xbf16>
    %c0_13 = arith.constant 0 : index
    %c0_14 = arith.constant 0 : index
    %29 = vector.load %arg5[%c0_13, %c0_14] : memref<512x128xbf16, #tpu.memory_space<vmem>>, vector<512x128xbf16>
    %cst_15 = arith.constant dense<0.000000e+00> : vector<256x128xf32>
    %30 = tpu.matmul %28, %29, %cst_15 {dimension_numbers = #tpu.dot_dimension_numbers<[1], [0], [0], [1], [0, 0, 1, 1], [], []>} : vector<256x512xbf16>, vector<512x128xbf16>, vector<256x128xf32> -> vector<256x128xf32>
    %c0_16 = arith.constant 0 : index
    %c0_17 = arith.constant 0 : index
    %31 = vector.load %arg6[%c0_16, %c0_17] : memref<256x128xf32, #tpu.memory_space<vmem>>, vector<256x128xf32>
    tpu.vector_store %arg6[%c0_16, %c0_17], %30 {strides = array<i32>} : memref<256x128xf32, #tpu.memory_space<vmem>>, vector<256x128xf32>,
    return
  }
  func.func @transform_0(%arg0: i32) -> (i32, i32) {
    %c0_i32 = arith.constant 0 : i32
    %c0_i32_0 = arith.constant 0 : i32
    return %arg0, %c0_i32 : i32, i32
  }
  func.func @transform_1(%arg0: i32) -> (i32, i32) {
    %c0_i32 = arith.constant 0 : i32
    %c0_i32_0 = arith.constant 0 : i32
    %c0_i32_1 = arith.constant 0 : i32
    return %c0_i32, %c0_i32_0 : i32, i32
  }
  func.func @transform_2(%arg0: i32) -> (i32, i32) {
    %c0_i32 = arith.constant 0 : i32
    %c0_i32_0 = arith.constant 0 : i32
    %c0_i32_1 = arith.constant 0 : i32
    return %c0_i32, %c0_i32_0 : i32, i32
  }
  func.func @transform_3(%arg0: i32) -> (i32, i32) {
    %c0_i32 = arith.constant 0 : i32
    %c0_i32_0 = arith.constant 0 : i32
    %c0_i32_1 = arith.constant 0 : i32
    return %c0_i32, %c0_i32_0 : i32, i32
  }
  func.func @transform_4(%arg0: i32) -> (i32, i32) {
    %c0_i32 = arith.constant 0 : i32
    %c0_i32_0 = arith.constant 0 : i32
    %c0_i32_1 = arith.constant 0 : i32
    return %c0_i32, %c0_i32_0 : i32, i32
  }
  func.func @transform_5(%arg0: i32) -> (i32, i32) {
    %c0_i32 = arith.constant 0 : i32
    %c0_i32_0 = arith.constant 0 : i32
    return %arg0, %c0_i32 : i32, i32
  }
}

</mosaic_0001>

<bundles_post_ra>
// kernel: tpu_custom_call.1
= control target key start
LH: loop header
LB: loop body
LE: loop exit
PB: predicated region body
PF: predicated region fallthrough
CT: control target
= control target key end

     0   :  { %10 = vsyncpa [#allocation3], 0  ;;  %s5804_s0 = inlined_call_operand.hbm [shape: f32[512,128], index: 0, kind: input, shape index: {}]   ;;  %s5805_s1 = inlined_call_operand.hbm [shape: bf16[128,512], index: 1, kind: input, shape index: {}]   ;;  %s5806_s2 = inlined_call_operand.hbm [shape: f32[1,512], index: 2, kind: input, shape index: {}]   ;;  %s5807_s3 = inlined_call_operand.hbm [shape: f32[1,512], index: 3, kind: input, shape index: {}]   ;;  %s5808_s4 = inlined_call_operand.hbm [shape: bf16[512,128], index: 4, kind: input, shape index: {}]   ;;  %s5809_s5 = inlined_call_operand.hbm [shape: f32[512,128], index: 5, kind: output, shape index: {}]  }
   0x1   :  { %12 = vsyncpa [#allocation3 + $0x1], 0 }
   0x2   :  { %13 = vsyncpa [#allocation6], 0 }
   0x3   :  { %14 = vsyncpa [#allocation9], 0 }
   0x4   :  { %15 = vsyncpa [#allocation4], 0 }
   0x5   :  { %17 = vsyncpa [#allocation4 + $0x1], 0  ;;  %s3800_s18 = smov 0   ;;  %s3802_s19 = smov 0  }
   0x6   :  { %s3804_s20 = smov 0   ;;  %s3806_s21 = smov 0  }
   0x7 LB: > { %s3821_s22 = sadd.s32 4294967295, %s3753_s21   ;;  %s2985_s23 = sadd.s32 4294967294, %s3753_s21   ;;  %s3753_s21 = sphi %s3806_s21, %s6342_s21   ;;  %s3749_s20 = sphi %s3804_s20, %s6341_s20   ;;  %s3745_s19 = sphi %s3802_s19, %s6340_s19   ;;  %s3741_s18 = sphi %s3800_s18, %s6339_s18  }
   0x8   : > { %p43_p0 = scmp.ne.s32.totalorder %s3745_s19, %s3741_s18  ;;  %p5810_p1 = scmp.eq.s32.totalorder %s3821_s22, 0 }
   0x9   : > { %p157_p3 = scmp.eq.s32.totalorder %s2985_s23, 1  ;;  %p2986_p5 = scmp.ge.s32.totalorder %s3753_s21, 1 }
   0xa   : > { %p3830_p4 = por %p5810_p1, %p43_p0  ;;  %p164_p7 = scmp.lt.s32.totalorder %s3753_s21, 3 }
   0xb   : > { %p3835_p6 = por %p157_p3, %p43_p0  ;;  %s3755_s27 = smov [#allocation5]  }
   0xc   : > { %s5983_s24 = scalar_select %p3830_p4, 1, 0 }
   0xd   : > { %s5984_s25 = scalar_select %p3835_p6, 1, 0 }
   0xe   : > { %p3840_p8 = pnand %p2986_p5, %p164_p7  ;;  %s176_s28 = sshll.u32 %s3755_s27, 4  ;;  %s3844_s28 = int_to_ptr.vmem [resolvable:$true] %s176_s28 }
   0xf   : > { %s3756_s30 = smov [#allocation8]   ;;  %s3757_s7 = smov [#allocation7]  }
  0x10   : > { %s5985_s26 = scalar_select %p3840_p8, 1, 0 }
  0x11   : > { %p3317_p9 = pneg %p3840_p8  ;;  %s201_s6 = sshll.u32 %s3756_s30, 4  ;;  %s3855_s6 = int_to_ptr.vmem [resolvable:$true] %s201_s6 }
  0x12   : > { %s3857_s8 = sshll.u32 %s3757_s7, 4  ;;  %s3537_s11 = scalar_lea.hbm %s5805_s1, 4096  ;;  %s191_s8 = int_to_ptr.vmem [resolvable:$true] %s3857_s8 }
  0x13   : > { %p3851_p11 = pnand %p3317_p9, %p5810_p1  ;;  %p3538_p12 = scmp.ne.s32.totalorder %s5805_s1, %s3537_s11 }
  0x14   : > { %p3544_p5 = scmp.lt.u32.totalorder %s3537_s11, %s5805_s1 }
  0x15   : > { %p3867_p13 = pneg %p3851_p11 }
  0x17   : > { %p3540_p0 = pnand %p3867_p13, %p3538_p12 }
  0x19   : > { %p3541_p3 = pneg %p3540_p0 }
  0x1b   : > { %p3546_p7 = pnand %p3544_p5, %p3541_p3 }
  0x1d   : > { %3549 = shalt.err (!%p3546_p7)
}
  0x1e   : > { %s3550_s17 = scalar_lea.vmem %s3844_s28, 4096  ;;  %p3558_p2 = scmp.lt.s32.totalorder %s3844_s28, %s3844_s28 }
  0x1f   : > { %p3551_p9 = scmp.ne.s32.totalorder %s3844_s28, %s3550_s17  ;;  %p3559_p6 = scmp.lt.s32.totalorder %s3550_s17, %s3550_s17 }
  0x21   : > { %p3553_p10 = pnand %p3551_p9, %p3867_p13  ;;  %p3560_p12 = por %p3559_p6, %p3558_p2 }
  0x23   : > { %p3554_p1 = pneg %p3553_p10 }
  0x25   : > { %p3561_p0 = pnand %p3560_p12, %p3554_p1 }
  0x27   : > { %3564 = shalt.err (!%p3561_p0)
}
  0x28   : > { %s3758_s23 = smov 256   ;;  %s3759_s27 = smov 16  }
  0x29   : > { %3320 = dma.hbm_to_vmem [thread:$0]  (!%p3851_p11), %s5805_s1, 4096, %s3844_s28, [#allocation6], %s3758_s23, %s3758_s23, %s3759_s27  }
  0x2a   : > { %s3565_s11 = scalar_lea.hbm %s5807_s3, 64 }
  0x2b   : > { %p3566_p2 = scmp.ne.s32.totalorder %s5807_s3, %s3565_s11  ;;  %p3572_p10 = scmp.lt.u32.totalorder %s3565_s11, %s5807_s3 }
  0x2d   : > { %p3568_p1 = pnand %p3566_p2, %p3867_p13 }
  0x2f   : > { %p3569_p6 = pneg %p3568_p1 }
  0x31   : > { %p3574_p3 = pnand %p3572_p10, %p3569_p6 }
  0x33   : > { %3577 = shalt.err (!%p3574_p3)
}
  0x34   : > { %s3578_s28 = scalar_lea.vmem %s3855_s6, 64  ;;  %p3586_p12 = scmp.lt.s32.totalorder %s3855_s6, %s3855_s6 }
  0x35   : > { %p3579_p5 = scmp.ne.s32.totalorder %s3855_s6, %s3578_s28  ;;  %p3587_p0 = scmp.lt.s32.totalorder %s3578_s28, %s3578_s28 }
  0x37   : > { %p3581_p7 = pnand %p3579_p5, %p3867_p13  ;;  %p3588_p2 = por %p3587_p0, %p3586_p12 }
  0x39   : > { %p3582_p9 = pneg %p3581_p7 }
  0x3b   : > { %p3589_p1 = pnand %p3588_p2, %p3582_p9 }
  0x3d   : > { %3592 = shalt.err (!%p3589_p1)
}
  0x3e   : > { %3326 = dma.hbm_to_vmem [thread:$0]  (!%p3851_p11), %s5807_s3, 64, %s3855_s6, [#allocation9]  }
  0x3f   : > { %s3593_s7 = scalar_lea.hbm %s5806_s2, 64 }
  0x40   : > { %p3594_p6 = scmp.ne.s32.totalorder %s5806_s2, %s3593_s7  ;;  %p3600_p5 = scmp.lt.u32.totalorder %s3593_s7, %s5806_s2 }
  0x42   : > { %p3596_p10 = pnand %p3594_p6, %p3867_p13 }
  0x44   : > { %p3597_p3 = pneg %p3596_p10 }
  0x46   : > { %p3602_p7 = pnand %p3600_p5, %p3597_p3 }
  0x48   : > { %3605 = shalt.err (!%p3602_p7)
}
  0x49   : > { %s3606_s13 = scalar_lea.vmem %s191_s8, 64  ;;  %p3614_p2 = scmp.lt.s32.totalorder %s191_s8, %s191_s8 }
  0x4a   : > { %p3607_p9 = scmp.ne.s32.totalorder %s191_s8, %s3606_s13  ;;  %p3615_p1 = scmp.lt.s32.totalorder %s3606_s13, %s3606_s13 }
  0x4c   : > { %p3609_p12 = pnand %p3607_p9, %p3867_p13  ;;  %p3616_p4 = por %p3615_p1, %p3614_p2 }
  0x4e   : > { %p3610_p0 = pneg %p3609_p12 }
  0x50   : > { %p3617_p8 = pnand %p3616_p4, %p3610_p0 }
  0x52   : > { %3620 = shalt.err (!%p3617_p8)
}
  0x53   : > { %3323 = dma.hbm_to_vmem [thread:$0]  (!%p3851_p11), %s5806_s2, 64, %s191_s8, [#allocation6]  }
  0x54   : > { %s3760_s16 = smov [#allocation10]   ;;  %s3621_s27 = scalar_lea.hbm %s5808_s4, 4096 }
  0x55   : > { %s211_s28 = sshll.u32 %s3760_s16, 4  ;;  %p3622_p6 = scmp.ne.s32.totalorder %s5808_s4, %s3621_s27  ;;  %s212_s28 = int_to_ptr.vmem [resolvable:$true] %s211_s28 }
  0x56   : > { %p3628_p10 = scmp.lt.u32.totalorder %s3621_s27, %s5808_s4 }
  0x57   : > { %p3624_p4 = pnand %p3622_p6, %p3867_p13 }
  0x59   : > { %p3625_p8 = pneg %p3624_p4 }
  0x5b   : > { %p3630_p3 = pnand %p3628_p10, %p3625_p8 }
  0x5d   : > { %3633 = shalt.err (!%p3630_p3)
}
  0x5e   : > { %s3634_s8 = scalar_lea.vmem %s212_s28, 4096  ;;  %p3642_p12 = scmp.lt.s32.totalorder %s212_s28, %s212_s28 }
  0x5f   : > { %p3635_p5 = scmp.ne.s32.totalorder %s212_s28, %s3634_s8  ;;  %p3643_p0 = scmp.lt.s32.totalorder %s3634_s8, %s3634_s8 }
  0x61   : > { %p3637_p7 = pnand %p3635_p5, %p3867_p13  ;;  %p3644_p2 = por %p3643_p0, %p3642_p12 }
  0x63   : > { %p3638_p9 = pneg %p3637_p7 }
  0x65   : > { %p3645_p1 = pnand %p3644_p2, %p3638_p9 }
  0x67   : > { %3648 = shalt.err (!%p3645_p1)
}
  0x68   : > { %s3761_s11 = smov 64   ;;  %s3762_s14 = smov 4  }
  0x69   : > { %3329 = dma.hbm_to_vmem [thread:$0]  (!%p3851_p11), %s5808_s4, 4096, %s212_s28, [#allocation9], %s3761_s11, %s3761_s11, %s3762_s14  }
  0x6a   : > { %s3949_s6 = sadd.s32 1, %s3753_s21   ;;  %s30_s16 = sadd.s32 1, %s3749_s20 }
  0x6b   : > { %s27_s15 = ssub.s32 %s3753_s21, %s3949_s6  ;;  %p37_p6 = scmp.ne.s32.totalorder %s3749_s20, %s3745_s19 }
  0x6c   : > { %p28_p13 = scmp.eq.s32.totalorder %s27_s15, 0  ;;  %p38_p4 = scmp.eq.s32.totalorder %s3753_s21, 0 }
  0x6d   : > { %p5988_p10 = scmp.eq.s32.totalorder %s3821_s22, 1  ;;  %p3342_p5 = scmp.lt.s32.totalorder %s3753_s21, 2 }
  0x6e   : > { %s3958_s17 = scalar_select %p28_p13, %s3749_s20, %s30_s16  }
  0x6f   : > { %p39_p8 = por %p38_p4, %p37_p6  ;;  %p3962_p3 = por %p5988_p10, %p37_p6 }
  0x70   : > { %s225_s29 = sand.u32 1, %s3749_s20   ;;  %s3071_s28 = sshll.u32 %s3753_s21, 12 }
  0x71   : > { %s2992_s27 = sshll.u32 %s225_s29, 8  ;;  %s3972_s9 = scalar_lea.hbm %s5804_s0, %s3071_s28 }
  0x72   : > { %s229_s10 = scalar_lea.vmem [#allocation2], %s2992_s27  ;;  %p3976_p11 = pnand %p3342_p5, %p39_p8 }
  0x73   : > { %s236_s8 = sshll.u32 %s229_s10, 4  ;;  %s3980_s14 = scalar_lea.sflag [#allocation3], %s225_s29  ;;  %s3974_s8 = int_to_ptr.vmem [resolvable:$true] %s236_s8 }
  0x74   : > { %s3649_s12 = scalar_lea.hbm %s3972_s9, 4096  ;;  %p3651_p9 = pneg %p3976_p11 }
  0x75   : > { %p3650_p7 = scmp.ne.s32.totalorder %s3972_s9, %s3649_s12  ;;  %s3654_s16 = scalar_lea.hbm %s5804_s0, 8192 }
  0x76   : > { %p3655_p2 = scmp.lt.u32.totalorder %s3972_s9, %s5804_s0  ;;  %p3656_p1 = scmp.lt.u32.totalorder %s3654_s16, %s3649_s12 }
  0x77   : > { %p3652_p12 = pnand %p3651_p9, %p3650_p7  ;;  %p3658_p6 = scmp.lt.u32.totalorder %s3649_s12, %s3972_s9 }
  0x78   : > { %p3657_p13 = por %p3656_p1, %p3655_p2 }
  0x79   : > { %p3653_p0 = pneg %p3652_p12 }
  0x7a   : > { %p3659_p4 = por %p3658_p6, %p3657_p13 }
  0x7c   : > { %p3660_p8 = pnand %p3659_p4, %p3653_p0 }
  0x7e   : > { %3663 = shalt.err (!%p3660_p8)
}
  0x7f   : > { %s3664_s29 = scalar_lea.vmem %s3974_s8, 4096  ;;  %s3763_s30 = smov [#allocation2]  }
  0x80   : > { %p3665_p10 = scmp.ne.s32.totalorder %s3974_s8, %s3664_s29  ;;  %s3669_s7 = sshll.u32 %s3763_s30, 4  ;;  %s3670_s7 = int_to_ptr.vmem [resolvable:$false] %s3669_s7 }
  0x81   : > { %s3671_s10 = scalar_lea.vmem %s3670_s7, 8192  ;;  %p3672_p12 = scmp.lt.s32.totalorder %s3974_s8, %s3670_s7 }
  0x82   : > { %p3667_p5 = pnand %p3665_p10, %p3651_p9  ;;  %p3673_p2 = scmp.lt.s32.totalorder %s3671_s10, %s3664_s29 }
  0x84   : > { %p3668_p7 = pneg %p3667_p5  ;;  %p3674_p1 = por %p3673_p2, %p3672_p12 }
  0x86   : > { %p3675_p13 = pnand %p3674_p1, %p3668_p7 }
  0x88   : > { %3678 = shalt.err (!%p3675_p13)
}
  0x89   : > { %s3764_s12 = smov 128   ;;  %s3765_s13 = smov 8  }
  0x8a   : > { %3333 = dma.hbm_to_vmem [thread:$0]  (!%p3976_p11), %s3972_s9, 4096, %s3974_s8, %s3980_s14, %s3764_s12, %s3764_s12, %s3765_s13  }
  0x8b   : > { %p5991_p9 = scmp.ne.s32.totalorder %s5985_s26, 0 }
  0x8d   : > { %248 = sbr.rel (%p5991_p9) target bundleno = 1189 (0x4a5), region = 40 }
  0x94   : > { %s4011_s15 = sand.u32 1, %s3745_s19   ;;  %p5992_p0 = scmp.ne.s32.totalorder %s5983_s24, 0 }
  0x95   : > { %s2996_s16 = sshll.u32 %s4011_s15, 8  ;;  %s251_s27 = scalar_lea.sflag [#allocation3], %s4011_s15 }
  0x96   : > { %s4017_s28 = scalar_lea.vmem [#allocation2], %s2996_s16 }
  0x97   : > { %3724 = dma.done.wait (%p5992_p0), %s251_s27, 4096  }
  0x98   : > { %3726 = vsyncadd (%p5992_p0), %s251_s27, 4294963200  ;;  %p5993_p11 = scmp.eq.s32.totalorder %s3821_s22, 0 }
  0x9a   : > { %3728 = dma.done.wait (%p5993_p11), [#allocation6], 4160   ;;  %p5994_p6 = pmov %p5993_p11 }
  0x9c   : > { %3730 = vsyncadd (%p5994_p6), [#allocation6], 4294963136  ;;  %p5995_p4 = pmov %p5994_p6 }
  0x9e   : > { %3732 = dma.done.wait (%p5995_p4), [#allocation9], 4160   ;;  %p5996_p8 = pmov %p5995_p4 }
  0x9f   : > { %v3766_v0 = vmov 0   ;;  %v3393_v1 = vld [vmem:[#allocation5 + $0x4] ss:$16 sps:$4 sm:$0xff]   ;;  %v3395_v2 = vld [vmem:[#allocation5 + $0xc] ss:$16 sps:$4 sm:$0xff]   ;;  %s5719_s24 = scalar_lea.vmem [#allocation11], %s2996_s16 }
  0xa0   : > { %3734 = vsyncadd (%p5996_p8), [#allocation9], 4294963136  ;;  %572 = vmatprep.mubr.bf16.mxu0 %v3766_v0  ;;  %765 = vmatprep.mubr.bf16.mxu1 %v3766_v0  ;;  %v3397_v3 = vld [vmem:[#allocation5] ss:$16 sps:$4 sm:$0xff]   ;;  %v3398_v4 = vld [vmem:[#allocation5 + $0x8] ss:$16 sps:$4 sm:$0xff]  }
  0xa1   : > { %540 = vmatprep.subr.bf16.mxu0 %v3393_v1  ;;  %733 = vmatprep.subr.bf16.mxu1 %v3395_v2  ;;  %v3399_v5 = vld [vmem:[#allocation5 + $0x24] ss:$16 sps:$4 sm:$0xff]   ;;  %v3401_v6 = vld [vmem:[#allocation5 + $0x2c] ss:$16 sps:$4 sm:$0xff]   ;;  %v3403_v7 = vld [vmem:[#allocation5 + $0x20] ss:$16 sps:$4 sm:$0xff]  }
  0xa2   : > { %541 = vmatpush1.bf16.msra.mxu0 %v3397_v3  ;;  %734 = vmatpush1.bf16.msra.mxu1 %v3398_v4  ;;  %v3404_v8 = vld [vmem:[#allocation5 + $0x28] ss:$16 sps:$4 sm:$0xff]   ;;  %v3405_v9 = vld [vmem:[#allocation5 + $0x44] ss:$16 sps:$4 sm:$0xff]   ;;  %v3407_v10 = vld [vmem:[#allocation5 + $0x4c] ss:$16 sps:$4 sm:$0xff]  }
  0xa3   : > { %542 = vmatprep.subr.bf16.mxu0 %v3399_v5  ;;  %735 = vmatprep.subr.bf16.mxu1 %v3401_v6  ;;  %v3409_v11 = vld [vmem:[#allocation5 + $0x40] ss:$16 sps:$4 sm:$0xff]   ;;  %v3410_v12 = vld [vmem:[#allocation5 + $0x48] ss:$16 sps:$4 sm:$0xff]   ;;  %v3411_v13 = vld [vmem:[#allocation5 + $0x64] ss:$16 sps:$4 sm:$0xff]  }
  0xa4   : > { %v3413_v14 = vld [vmem:[#allocation5 + $0x6c] ss:$16 sps:$4 sm:$0xff]   ;;  %v3415_v15 = vld [vmem:[#allocation5 + $0x60] ss:$16 sps:$4 sm:$0xff]   ;;  %v3416_v16 = vld [vmem:[#allocation5 + $0x68] ss:$16 sps:$4 sm:$0xff]  }
  0xa5   : > { %v3417_v17 = vld [vmem:[#allocation5 + $0x84] ss:$16 sps:$4 sm:$0xff]   ;;  %v3419_v18 = vld [vmem:[#allocation5 + $0x8c] ss:$16 sps:$4 sm:$0xff]   ;;  %v3421_v19 = vld [vmem:[#allocation5 + $0x80] ss:$16 sps:$4 sm:$0xff]  }
  0xa6   : > { %543 = vmatpush1.bf16.msra.mxu0 %v3403_v7  ;;  %736 = vmatpush1.bf16.msra.mxu1 %v3404_v8  ;;  %v3422_v20 = vld [vmem:[#allocation5 + $0x88] ss:$16 sps:$4 sm:$0xff]   ;;  %v3423_v21 = vld [vmem:[#allocation5 + $0xa4] ss:$16 sps:$4 sm:$0xff]   ;;  %v3425_v22 = vld [vmem:[#allocation5 + $0xac] ss:$16 sps:$4 sm:$0xff]  }
  0xa7   : > { %544 = vmatprep.subr.bf16.mxu0 %v3405_v9  ;;  %737 = vmatprep.subr.bf16.mxu1 %v3407_v10  ;;  %v3427_v23 = vld [vmem:[#allocation5 + $0xa0] ss:$16 sps:$4 sm:$0xff]   ;;  %v3428_v24 = vld [vmem:[#allocation5 + $0xa8] ss:$16 sps:$4 sm:$0xff]   ;;  %v3429_v25 = vld [vmem:[#allocation5 + $0xc4] ss:$16 sps:$4 sm:$0xff]  }
  0xa8   : > { %v3431_v26 = vld [vmem:[#allocation5 + $0xcc] ss:$16 sps:$4 sm:$0xff]   ;;  %v3433_v27 = vld [vmem:[#allocation5 + $0xc0] ss:$16 sps:$4 sm:$0xff]   ;;  %v3434_v28 = vld [vmem:[#allocation5 + $0xc8] ss:$16 sps:$4 sm:$0xff]  }
  0xa9   : > { %v3435_v29 = vld [vmem:[#allocation5 + $0xe4] ss:$16 sps:$4 sm:$0xff]   ;;  %v3437_v30 = vld [vmem:[#allocation5 + $0xec] ss:$16 sps:$4 sm:$0xff]   ;;  %v3439_v31 = vld [vmem:[#allocation5 + $0xe0] ss:$16 sps:$4 sm:$0xff]  }
  0xaa   : > { %545 = vmatpush1.bf16.msra.mxu0 %v3409_v11  ;;  %738 = vmatpush1.bf16.msra.mxu1 %v3410_v12  ;;  %v3440_v32 = vld [vmem:[#allocation5 + $0xe8] ss:$16 sps:$4 sm:$0xff]   ;;  %v300_v33 = vld [vmem:[%s4017_s28] sm:$0xff]  ;;  %v302_v36 = vld [vmem:[%s4017_s28 + $0x10] sm:$0xff]  ;;  %s3072_s26 = sshll.u32 %s3821_s22, 12  ;;  %s2874_s9 = sshll.u32 %s5719_s24, 4  ;;  %s5758_s9 = int_to_ptr.vmem [resolvable:$true] %s2874_s9 }
  0xab   : > { %546 = vmatprep.subr.bf16.mxu0 %v3411_v13  ;;  %739 = vmatprep.subr.bf16.mxu1 %v3413_v14  ;;  %v301_v34 = vld [vmem:[%s4017_s28 + $0x8] sm:$0xff]  ;;  %v303_v37 = vld [vmem:[%s4017_s28 + $0x18] sm:$0xff]  ;;  %v304_v39 = vld [vmem:[%s4017_s28 + $0x20] sm:$0xff]  ;;  %s5756_s14 = scalar_lea.hbm %s5809_s5, %s3072_s26  ;;  %s2861_s22 = scalar_lea.sflag [#allocation4], %s4011_s15 }
  0xac   : > { %v332_v35 = vpack.c.bf16 %v301_v34, %v300_v33  ;;  %v333_v38 = vpack.c.bf16 %v303_v37, %v302_v36  ;;  %v305_v40 = vld [vmem:[%s4017_s28 + $0x28] sm:$0xff]  ;;  %v306_v42 = vld [vmem:[%s4017_s28 + $0x30] sm:$0xff]  ;;  %v307_v43 = vld [vmem:[%s4017_s28 + $0x38] sm:$0xff]  ;;  %s3679_s29 = scalar_lea.vmem %s5758_s9, 4096  ;;  %s3767_s30 = smov [#allocation11]  }
  0xad   : > { %v334_v41 = vpack.c.bf16 %v305_v40, %v304_v39  ;;  %v335_v44 = vpack.c.bf16 %v307_v43, %v306_v42  ;;  %v308_v45 = vld [vmem:[%s4017_s28 + $0x40] sm:$0xff]  ;;  %v309_v46 = vld [vmem:[%s4017_s28 + $0x48] sm:$0xff]  ;;  %v310_v48 = vld [vmem:[%s4017_s28 + $0x50] sm:$0xff]  ;;  %p3680_p10 = scmp.ne.s32.totalorder %s5758_s9, %s3679_s29  ;;  %s3683_s7 = sshll.u32 %s3767_s30, 4  ;;  %s3684_s7 = int_to_ptr.vmem [resolvable:$false] %s3683_s7 }
  0xae   : > { %547 = vmatpush1.bf16.msra.mxu0 %v3415_v15  ;;  %740 = vmatpush1.bf16.msra.mxu1 %v3416_v16  ;;  %v336_v47 = vpack.c.bf16 %v309_v46, %v308_v45  ;;  %v311_v49 = vld [vmem:[%s4017_s28 + $0x58] sm:$0xff]  ;;  %v312_v51 = vld [vmem:[%s4017_s28 + $0x60] sm:$0xff]  ;;  %v313_v52 = vld [vmem:[%s4017_s28 + $0x68] sm:$0xff]  ;;  %s3685_s10 = scalar_lea.vmem %s3684_s7, 8192  ;;  %p3686_p12 = scmp.lt.s32.totalorder %s5758_s9, %s3684_s7 }
  0xaf   : > { %548 = vmatprep.subr.bf16.mxu0 %v3417_v17  ;;  %741 = vmatprep.subr.bf16.mxu1 %v3419_v18  ;;  %v337_v50 = vpack.c.bf16 %v311_v49, %v310_v48  ;;  %v338_v53 = vpack.c.bf16 %v313_v52, %v312_v51  ;;  %v314_v54 = vld [vmem:[%s4017_s28 + $0x70] sm:$0xff]  ;;  %v315_v55 = vld [vmem:[%s4017_s28 + $0x78] sm:$0xff]  ;;  %v316_v57 = vld [vmem:[%s4017_s28 + $0x80] sm:$0xff]  ;;  %p3681_p5 = pnand %p3680_p10, %p3962_p3  ;;  %p3687_p2 = scmp.lt.s32.totalorder %s3685_s10, %s3679_s29 }
  0xb0   : > { %v339_v56 = vpack.c.bf16 %v315_v55, %v314_v54  ;;  %v317_v58 = vld [vmem:[%s4017_s28 + $0x88] sm:$0xff]  ;;  %v318_v60 = vld [vmem:[%s4017_s28 + $0x90] sm:$0xff]  ;;  %v319_v61 = vld [vmem:[%s4017_s28 + $0x98] sm:$0xff] }
  0xb1   : > { %v340_v59 = vpack.c.bf16 %v317_v58, %v316_v57  ;;  %v341_v62 = vpack.c.bf16 %v319_v61, %v318_v60  ;;  %v320_v63 = vld [vmem:[%s4017_s28 + $0xa0] sm:$0xff]  ;;  %v321_v1 = vld [vmem:[%s4017_s28 + $0xa8] sm:$0xff]  ;;  %v322_v3 = vld [vmem:[%s4017_s28 + $0xb0] sm:$0xff]  ;;  %p3682_p7 = pneg %p3681_p5  ;;  %p3688_p1 = por %p3687_p2, %p3686_p12 }
  0xb2   : > { %549 = vmatpush1.bf16.msra.mxu0 %v3421_v19  ;;  %742 = vmatpush1.bf16.msra.mxu1 %v3422_v20  ;;  %v342_v2 = vpack.c.bf16 %v321_v1, %v320_v63  ;;  %v323_v4 = vld [vmem:[%s4017_s28 + $0xb8] sm:$0xff]  ;;  %v324_v6 = vld [vmem:[%s4017_s28 + $0xc0] sm:$0xff]  ;;  %v325_v7 = vld [vmem:[%s4017_s28 + $0xc8] sm:$0xff] }
  0xb3   : > { %550 = vmatprep.subr.bf16.mxu0 %v3423_v21  ;;  %743 = vmatprep.subr.bf16.mxu1 %v3425_v22  ;;  %v343_v5 = vpack.c.bf16 %v323_v4, %v322_v3  ;;  %v344_v8 = vpack.c.bf16 %v325_v7, %v324_v6  ;;  %v326_v9 = vld [vmem:[%s4017_s28 + $0xd0] sm:$0xff]  ;;  %v327_v10 = vld [vmem:[%s4017_s28 + $0xd8] sm:$0xff]  ;;  %v328_v12 = vld [vmem:[%s4017_s28 + $0xe0] sm:$0xff]  ;;  %p3689_p13 = pnand %p3688_p1, %p3682_p7 }
  0xb4   : > { %v345_v11 = vpack.c.bf16 %v327_v10, %v326_v9  ;;  %v329_v13 = vld [vmem:[%s4017_s28 + $0xe8] sm:$0xff]  ;;  %v330_v15 = vld [vmem:[%s4017_s28 + $0xf0] sm:$0xff]  ;;  %v331_v16 = vld [vmem:[%s4017_s28 + $0xf8] sm:$0xff] }
  0xb5   : > { %v346_v14 = vpack.c.bf16 %v329_v13, %v328_v12  ;;  %v347_v17 = vpack.c.bf16 %v331_v16, %v330_v15 }
  0xb6   : > { %551 = vmatpush1.bf16.msra.mxu0 %v3427_v23  ;;  %744 = vmatpush1.bf16.msra.mxu1 %v3428_v24 }
  0xb7   : > { %552 = vmatprep.subr.bf16.mxu0 %v3429_v25  ;;  %745 = vmatprep.subr.bf16.mxu1 %v3431_v26 }
  0xba   : > { %553 = vmatpush1.bf16.msra.mxu0 %v3433_v27  ;;  %746 = vmatpush1.bf16.msra.mxu1 %v3434_v28 }
  0xbb   : > { %554 = vmatprep.subr.bf16.mxu0 %v3435_v29  ;;  %747 = vmatprep.subr.bf16.mxu1 %v3437_v30 }
  0xbe   : > { %555 = vmatpush1.bf16.msra.mxu0 %v3439_v31  ;;  %748 = vmatpush1.bf16.msra.mxu1 %v3440_v32 }
  0xc1   : > { %573 = vmatmul.mubr.bf16.vlgmr.msra.gmra.mrb[0].mxu0 %v332_v35  ;;  %766 = vmatmul.mubr.bf16.vlgmr.msra.gmra.mrb[0].mxu1 %v332_v35 }
  0xc2   : > { %582 = vmatprep.mubr.bf16.mxu0 %v3766_v0  ;;  %775 = vmatprep.mubr.bf16.mxu1 %v3766_v0 }
  0xc9   : > { %583 = vmatmul.mubr.bf16.gmra.mrb[4].mxu0 %v333_v38  ;;  %776 = vmatmul.mubr.bf16.gmra.mrb[4].mxu1 %v333_v38 }
  0xca   : > { %592 = vmatprep.mubr.bf16.mxu0 %v3766_v0  ;;  %785 = vmatprep.mubr.bf16.mxu1 %v3766_v0 }
  0xd1   : > { %593 = vmatmul.mubr.bf16.gmra.mrb[8].mxu0 %v334_v41  ;;  %786 = vmatmul.mubr.bf16.gmra.mrb[8].mxu1 %v334_v41 }
  0xd2   : > { %602 = vmatprep.mubr.bf16.mxu0 %v3766_v0  ;;  %795 = vmatprep.mubr.bf16.mxu1 %v3766_v0 }
  0xd9   : > { %603 = vmatmul.mubr.bf16.gmra.mrb[12].mxu0 %v335_v44  ;;  %796 = vmatmul.mubr.bf16.gmra.mrb[12].mxu1 %v335_v44 }
  0xda   : > { %612 = vmatprep.mubr.bf16.mxu0 %v3766_v0  ;;  %805 = vmatprep.mubr.bf16.mxu1 %v3766_v0 }
  0xe1   : > { %613 = vmatmul.mubr.bf16.gmra.mrb[16].mxu0 %v336_v47  ;;  %806 = vmatmul.mubr.bf16.gmra.mrb[16].mxu1 %v336_v47 }
  0xe2   : > { %622 = vmatprep.mubr.bf16.mxu0 %v3766_v0  ;;  %815 = vmatprep.mubr.bf16.mxu1 %v3766_v0 }
  0xe9   : > { %623 = vmatmul.mubr.bf16.gmra.mrb[20].mxu0 %v337_v50  ;;  %816 = vmatmul.mubr.bf16.gmra.mrb[20].mxu1 %v337_v50 }
  0xea   : > { %632 = vmatprep.mubr.bf16.mxu0 %v3766_v0  ;;  %825 = vmatprep.mubr.bf16.mxu1 %v3766_v0 }
  0xf1   : > { %633 = vmatmul.mubr.bf16.gmra.mrb[24].mxu0 %v338_v53  ;;  %826 = vmatmul.mubr.bf16.gmra.mrb[24].mxu1 %v338_v53 }
  0xf2   : > { %642 = vmatprep.mubr.bf16.mxu0 %v3766_v0  ;;  %835 = vmatprep.mubr.bf16.mxu1 %v3766_v0 }
  0xf9   : > { %643 = vmatmul.mubr.bf16.gmra.mrb[28].mxu0 %v339_v56  ;;  %836 = vmatmul.mubr.bf16.gmra.mrb[28].mxu1 %v339_v56 }
  0xfa   : > { %652 = vmatprep.mubr.bf16.mxu0 %v3766_v0  ;;  %845 = vmatprep.mubr.bf16.mxu1 %v3766_v0 }
 0x101   : > { %653 = vmatmul.mubr.bf16.gmra.mrb[32].mxu0 %v340_v59  ;;  %846 = vmatmul.mubr.bf16.gmra.mrb[32].mxu1 %v340_v59 }
 0x102   : > { %662 = vmatprep.mubr.bf16.mxu0 %v3766_v0  ;;  %855 = vmatprep.mubr.bf16.mxu1 %v3766_v0 }
 0x109   : > { %663 = vmatmul.mubr.bf16.gmra.mrb[36].mxu0 %v341_v62  ;;  %856 = vmatmul.mubr.bf16.gmra.mrb[36].mxu1 %v341_v62 }
 0x10a   : > { %672 = vmatprep.mubr.bf16.mxu0 %v3766_v0  ;;  %865 = vmatprep.mubr.bf16.mxu1 %v3766_v0 }
 0x111   : > { %673 = vmatmul.mubr.bf16.gmra.mrb[40].mxu0 %v342_v2  ;;  %866 = vmatmul.mubr.bf16.gmra.mrb[40].mxu1 %v342_v2 }
 0x112   : > { %682 = vmatprep.mubr.bf16.mxu0 %v3766_v0  ;;  %875 = vmatprep.mubr.bf16.mxu1 %v3766_v0 }
 0x119   : > { %683 = vmatmul.mubr.bf16.gmra.mrb[44].mxu0 %v343_v5  ;;  %876 = vmatmul.mubr.bf16.gmra.mrb[44].mxu1 %v343_v5 }
 0x11a   : > { %692 = vmatprep.mubr.bf16.mxu0 %v3766_v0  ;;  %885 = vmatprep.mubr.bf16.mxu1 %v3766_v0 }
 0x121   : > { %693 = vmatmul.mubr.bf16.gmra.mrb[48].mxu0 %v344_v8  ;;  %886 = vmatmul.mubr.bf16.gmra.mrb[48].mxu1 %v344_v8 }
 0x122   : > { %702 = vmatprep.mubr.bf16.mxu0 %v3766_v0  ;;  %895 = vmatprep.mubr.bf16.mxu1 %v3766_v0 }
 0x129   : > { %703 = vmatmul.mubr.bf16.gmra.mrb[52].mxu0 %v345_v11  ;;  %896 = vmatmul.mubr.bf16.gmra.mrb[52].mxu1 %v345_v11 }
 0x12a   : > { %712 = vmatprep.mubr.bf16.mxu0 %v3766_v0  ;;  %905 = vmatprep.mubr.bf16.mxu1 %v3766_v0 }
 0x131   : > { %713 = vmatmul.mubr.bf16.gmra.mrb[56].mxu0 %v346_v14  ;;  %906 = vmatmul.mubr.bf16.gmra.mrb[56].mxu1 %v346_v14 }
 0x132   : > { %722 = vmatprep.mubr.bf16.mxu0 %v3766_v0  ;;  %915 = vmatprep.mubr.bf16.mxu1 %v3766_v0 }
 0x139   : > { %723 = vmatmul.mubr.bf16.gmra.mrb[60].mxu0 %v347_v17  ;;  %916 = vmatmul.mubr.bf16.gmra.mrb[60].mxu1 %v347_v17 }
 0x194   : > { %v4095_v18 = vpop.f32.mrb[0].mxu0  ;;  %v4097_v19 = vpop.f32.mrb[0].mxu1 }
 0x195   : > { %v4099_v20 = vpop.f32.mrb[1].mxu0  ;;  %v4101_v21 = vpop.f32.mrb[1].mxu1 }
 0x196   : > { %v926_v22 = vadd.f32 %v4099_v20, %v4095_v18  ;;  %v4105_v23 = vpop.f32.mrb[2].mxu0  ;;  %v4107_v24 = vpop.f32.mrb[2].mxu1 }
 0x197   : > { %v4109_v25 = vpop.f32.mrb[3].mxu0  ;;  %v4111_v0 = vpop.f32.mrb[3].mxu1 }
 0x198   : > { %v931_v26 = vadd.f32 %v4109_v25, %v4105_v23  ;;  %v927_v27 = vadd.f32 %v926_v22, %v4097_v19 }
 0x19a   : > { %v928_v28 = vadd.f32 %v927_v27, %v4101_v21  ;;  %v932_v29 = vadd.f32 %v931_v26, %v4107_v24 }
 0x19c   : > { %v4118_v30 = vpop.f32.mrb[4].mxu1  ;;  %929 = vadd.xlane.f32.xlu0 %v928_v28  ;;  %v4120_v31 = vpop.f32.mrb[4].mxu0  ;;  %v933_v32 = vadd.f32 %v932_v29, %v4111_v0 }
 0x19d   : > { %v4123_v33 = vpop.f32.mrb[5].mxu0  ;;  %v4125_v34 = vpop.f32.mrb[5].mxu1 }
 0x19e   : > { %v936_v35 = vadd.f32 %v4123_v33, %v4120_v31  ;;  %v4129_v36 = vpop.f32.mrb[6].mxu0  ;;  %v4131_v37 = vpop.f32.mrb[6].mxu1 }
 0x19f   : > { %v4133_v38 = vpop.f32.mrb[7].mxu0  ;;  %v4135_v39 = vpop.f32.mrb[7].mxu1 }
 0x1a0   : > { %v941_v40 = vadd.f32 %v4133_v38, %v4129_v36  ;;  %934 = vadd.xlane.f32.xlu0 %v933_v32  ;;  %v937_v41 = vadd.f32 %v936_v35, %v4118_v30 }
 0x1a2   : > { %v938_v42 = vadd.f32 %v937_v41, %v4125_v34  ;;  %v942_v43 = vadd.f32 %v941_v40, %v4131_v37 }
 0x1a4   : > { %939 = vadd.xlane.f32.xlu1 %v938_v42  ;;  %v4142_v44 = vpop.f32.mrb[8].mxu0  ;;  %v4144_v45 = vpop.f32.mrb[8].mxu1  ;;  %v943_v46 = vadd.f32 %v942_v43, %v4135_v39 }
 0x1a5   : > { %v4147_v47 = vpop.f32.mrb[9].mxu0  ;;  %v4149_v48 = vpop.f32.mrb[9].mxu1 }
 0x1a6   : > { %v946_v49 = vadd.f32 %v4147_v47, %v4142_v44  ;;  %v4153_v50 = vpop.f32.mrb[10].mxu0  ;;  %v4155_v51 = vpop.f32.mrb[10].mxu1 }
 0x1a7   : > { %v4157_v52 = vpop.f32.mrb[11].mxu0  ;;  %v4159_v53 = vpop.f32.mrb[11].mxu1 }
 0x1a8   : > { %v947_v54 = vadd.f32 %v946_v49, %v4144_v45  ;;  %v951_v55 = vadd.f32 %v4157_v52, %v4153_v50  ;;  %944 = vadd.xlane.f32.xlu1 %v943_v46 }
 0x1aa   : > { %v952_v56 = vadd.f32 %v951_v55, %v4155_v51  ;;  %v948_v57 = vadd.f32 %v947_v54, %v4149_v48 }
 0x1ac   : > { %949 = vadd.xlane.f32.xlu0 %v948_v57  ;;  %v4166_v58 = vpop.f32.mrb[12].mxu0  ;;  %v4168_v59 = vpop.f32.mrb[12].mxu1  ;;  %v953_v60 = vadd.f32 %v952_v56, %v4159_v53 }
 0x1ad   : > { %v4171_v61 = vpop.f32.mrb[13].mxu0  ;;  %v4173_v62 = vpop.f32.mrb[13].mxu1 }
 0x1ae   : > { %v956_v63 = vadd.f32 %v4171_v61, %v4166_v58  ;;  %954 = vadd.xlane.f32.xlu1 %v953_v60  ;;  %v4177_v1 = vpop.f32.mrb[14].mxu0  ;;  %v4179_v2 = vpop.f32.mrb[14].mxu1 }
 0x1af   : > { %v4181_v3 = vpop.f32.mrb[15].mxu0  ;;  %v4183_v4 = vpop.f32.mrb[15].mxu1 }
 0x1b0   : > { %v957_v5 = vadd.f32 %v956_v63, %v4168_v59  ;;  %v961_v6 = vadd.f32 %v4181_v3, %v4177_v1 }
 0x1b2   : > { %v962_v7 = vadd.f32 %v961_v6, %v4179_v2  ;;  %v958_v8 = vadd.f32 %v957_v5, %v4173_v62 }
 0x1b4   : > { %959 = vadd.xlane.f32.xlu0 %v958_v8  ;;  %v4190_v9 = vpop.f32.mrb[16].mxu0  ;;  %v4192_v10 = vpop.f32.mrb[16].mxu1  ;;  %v963_v11 = vadd.f32 %v962_v7, %v4183_v4 }
 0x1b5   : > { %v4195_v12 = vpop.f32.mrb[17].mxu0  ;;  %v4197_v13 = vpop.f32.mrb[17].mxu1 }
 0x1b6   : > { %v966_v14 = vadd.f32 %v4195_v12, %v4190_v9  ;;  %964 = vadd.xlane.f32.xlu1 %v963_v11  ;;  %v4201_v15 = vpop.f32.mrb[18].mxu0  ;;  %v4203_v16 = vpop.f32.mrb[18].mxu1 }
 0x1b7   : > { %v4205_v17 = vpop.f32.mrb[19].mxu0  ;;  %v4207_v22 = vpop.f32.mrb[19].mxu1 }
 0x1b8   : > { %5997 = vst [vmem:[#allocation16_spill] sm:$0xff] %v4207_v22  ;;  %v967_v26 = vadd.f32 %v966_v14, %v4192_v10  ;;  %v971_v27 = vadd.f32 %v4205_v17, %v4201_v15 }
 0x1ba   : > { %v972_v28 = vadd.f32 %v971_v27, %v4203_v16  ;;  %v968_v29 = vadd.f32 %v967_v26, %v4197_v13 }
 0x1bc   : > { %969 = vadd.xlane.f32.xlu0 %v968_v29  ;;  %v4214_v32 = vpop.f32.mrb[20].mxu0  ;;  %v973_v35 = vadd.f32 %v972_v28, %v4207_v22  ;;  %v4217_v40 = vpop.f32.mrb[20].mxu1 }
 0x1bd   : > { %5998 = vst [vmem:[#allocation17_spill] sm:$0xff] %v4214_v32  ;;  %5999 = vst [vmem:[#allocation18_spill] sm:$0xff] %v4217_v40  ;;  %v4219_v41 = vpop.f32.mrb[21].mxu0  ;;  %v4221_v42 = vpop.f32.mrb[21].mxu1 }
 0x1be   : > { %6000 = vst [vmem:[#allocation19_spill] sm:$0xff] %v4219_v41  ;;  %6001 = vst [vmem:[#allocation20_spill] sm:$0xff] %v4221_v42  ;;  %v976_v43 = vadd.f32 %v4219_v41, %v4214_v32  ;;  %974 = vadd.xlane.f32.xlu1 %v973_v35  ;;  %v4225_v46 = vpop.f32.mrb[22].mxu0  ;;  %v4227_v49 = vpop.f32.mrb[22].mxu1  ;;  %v3446_v41 = vld [vmem:[#allocation10 + $0xc8] sm:$0xff]  }
 0x1bf   : > { %6002 = vst [vmem:[#allocation21_spill] sm:$0xff] %v4225_v46  ;;  %6003 = vst [vmem:[#allocation22_spill] sm:$0xff] %v4227_v49  ;;  %v4229_v54 = vpop.f32.mrb[23].mxu0  ;;  %v4231_v55 = vpop.f32.mrb[23].mxu1  ;;  %v3447_v32 = vld [vmem:[#allocation10 + $0x8] sm:$0xff]  }
 0x1c0   : > { %6004 = vst [vmem:[#allocation23_spill] sm:$0xff] %v4229_v54  ;;  %6005 = vst [vmem:[#allocation24_spill] sm:$0xff] %v4231_v55  ;;  %v981_v56 = vadd.f32 %v4229_v54, %v4225_v46  ;;  %v977_v57 = vadd.f32 %v976_v43, %v4217_v40  ;;  %v3444_v46 = vld [vmem:[#allocation10 + $0x80] sm:$0xff]   ;;  %v3445_v40 = vld [vmem:[#allocation10 + $0x48] sm:$0xff]  }
 0x1c2   : > { %v982_v60 = vadd.f32 %v981_v56, %v4227_v49  ;;  %v978_v63 = vadd.f32 %v977_v57, %v4221_v42 }
 0x1c4   : > { %979 = vadd.xlane.f32.xlu0 %v978_v63  ;;  %v4238_v5 = vpop.f32.mrb[24].mxu0  ;;  %v983_v6 = vadd.f32 %v982_v60, %v4231_v55  ;;  %v4241_v7 = vpop.f32.mrb[24].mxu1 }
 0x1c5   : > { %6006 = vst [vmem:[#allocation25_spill] sm:$0xff] %v4238_v5  ;;  %6007 = vst [vmem:[#allocation26_spill] sm:$0xff] %v4241_v7  ;;  %v4243_v8 = vpop.f32.mrb[25].mxu0  ;;  %v4245_v11 = vpop.f32.mrb[25].mxu1 }
 0x1c6   : > { %6008 = vst [vmem:[#allocation27_spill] sm:$0xff] %v4243_v8  ;;  %6009 = vst [vmem:[#allocation28_spill] sm:$0xff] %v4245_v11  ;;  %v986_v14 = vadd.f32 %v4243_v8, %v4238_v5  ;;  %984 = vadd.xlane.f32.xlu1 %v983_v6  ;;  %v4249_v26 = vpop.f32.mrb[26].mxu0  ;;  %v4251_v27 = vpop.f32.mrb[26].mxu1 }
 0x1c7   : > { %6010 = vst [vmem:[#allocation29_spill] sm:$0xff] %v4249_v26  ;;  %6011 = vst [vmem:[#allocation30_spill] sm:$0xff] %v4251_v27  ;;  %v4253_v28 = vpop.f32.mrb[27].mxu0  ;;  %v4255_v29 = vpop.f32.mrb[27].mxu1 }
 0x1c8   : > { %6012 = vst [vmem:[#allocation31_spill] sm:$0xff] %v4253_v28  ;;  %6013 = vst [vmem:[#allocation32_spill] sm:$0xff] %v4255_v29  ;;  %v991_v35 = vadd.f32 %v4253_v28, %v4249_v26  ;;  %v987_v43 = vadd.f32 %v986_v14, %v4241_v7 }
 0x1ca   : > { %v992_v56 = vadd.f32 %v991_v35, %v4251_v27  ;;  %v988_v57 = vadd.f32 %v987_v43, %v4245_v11 }
 0x1cc   : > { %989 = vadd.xlane.f32.xlu0 %v988_v57  ;;  %v4262_v60 = vpop.f32.mrb[28].mxu0  ;;  %v993_v63 = vadd.f32 %v992_v56, %v4255_v29  ;;  %v4265_v6 = vpop.f32.mrb[28].mxu1 }
 0x1cd   : > { %6014 = vst [vmem:[#allocation33_spill] sm:$0xff] %v4262_v60  ;;  %6015 = vst [vmem:[#allocation34_spill] sm:$0xff] %v4265_v6  ;;  %v4267_v8 = vpop.f32.mrb[29].mxu0  ;;  %v4269_v5 = vpop.f32.mrb[29].mxu1 }
 0x1ce   : > { %6016 = vst [vmem:[#allocation35_spill] sm:$0xff] %v4267_v8  ;;  %6017 = vst [vmem:[#allocation36_spill] sm:$0xff] %v4269_v5  ;;  %v996_v28 = vadd.f32 %v4267_v8, %v4262_v60  ;;  %994 = vadd.xlane.f32.xlu1 %v993_v63  ;;  %v4273_v14 = vpop.f32.mrb[30].mxu0  ;;  %v4275_v35 = vpop.f32.mrb[30].mxu1 }
 0x1cf   : > { %6018 = vst [vmem:[#allocation37_spill] sm:$0xff] %v4273_v14  ;;  %6019 = vst [vmem:[#allocation38_spill] sm:$0xff] %v4275_v35  ;;  %v4277_v43 = vpop.f32.mrb[31].mxu0  ;;  %v4279_v57 = vpop.f32.mrb[31].mxu1 }
 0x1d0   : > { %6020 = vst [vmem:[#allocation39_spill] sm:$0xff] %v4277_v43  ;;  %6021 = vst [vmem:[#allocation40_spill] sm:$0xff] %v4279_v57  ;;  %v1001_v56 = vadd.f32 %v4277_v43, %v4273_v14  ;;  %v997_v29 = vadd.f32 %v996_v28, %v4265_v6 }
 0x1d2   : > { %v1002_v27 = vadd.f32 %v1001_v56, %v4275_v35  ;;  %v998_v11 = vadd.f32 %v997_v29, %v4269_v5 }
 0x1d4   : > { %999 = vadd.xlane.f32.xlu0 %v998_v11  ;;  %v4286_v8 = vpop.f32.mrb[32].mxu0  ;;  %v1003_v63 = vadd.f32 %v1002_v27, %v4279_v57  ;;  %v4289_v60 = vpop.f32.mrb[32].mxu1 }
 0x1d5   : > { %6022 = vst [vmem:[#allocation41_spill] sm:$0xff] %v4286_v8  ;;  %6023 = vst [vmem:[#allocation42_spill] sm:$0xff] %v4289_v60  ;;  %v4291_v26 = vpop.f32.mrb[33].mxu0  ;;  %v4293_v7 = vpop.f32.mrb[33].mxu1 }
 0x1d6   : > { %6024 = vst [vmem:[#allocation43_spill] sm:$0xff] %v4291_v26  ;;  %6025 = vst [vmem:[#allocation44_spill] sm:$0xff] %v4293_v7  ;;  %v1006_v43 = vadd.f32 %v4291_v26, %v4286_v8  ;;  %1004 = vadd.xlane.f32.xlu1 %v1003_v63  ;;  %v4297_v28 = vpop.f32.mrb[34].mxu0  ;;  %v4299_v56 = vpop.f32.mrb[34].mxu1 }
 0x1d7   : > { %6026 = vst [vmem:[#allocation45_spill] sm:$0xff] %v4297_v28  ;;  %6027 = vst [vmem:[#allocation46_spill] sm:$0xff] %v4299_v56  ;;  %v4301_v29 = vpop.f32.mrb[35].mxu0  ;;  %v4303_v11 = vpop.f32.mrb[35].mxu1 }
 0x1d8   : > { %6028 = vst [vmem:[#allocation47_spill] sm:$0xff] %v4301_v29  ;;  %6029 = vst [vmem:[#allocation48_spill] sm:$0xff] %v4303_v11  ;;  %v1011_v27 = vadd.f32 %v4301_v29, %v4297_v28  ;;  %v1007_v57 = vadd.f32 %v1006_v43, %v4289_v60 }
 0x1da   : > { %v1012_v35 = vadd.f32 %v1011_v27, %v4299_v56  ;;  %v1008_v5 = vadd.f32 %v1007_v57, %v4293_v7 }
 0x1dc   : > { %1009 = vadd.xlane.f32.xlu0 %v1008_v5  ;;  %v4310_v26 = vpop.f32.mrb[36].mxu0  ;;  %v1013_v63 = vadd.f32 %v1012_v35, %v4303_v11  ;;  %v4313_v8 = vpop.f32.mrb[36].mxu1 }
 0x1dd   : > { %6030 = vst [vmem:[#allocation49_spill] sm:$0xff] %v4310_v26  ;;  %6031 = vst [vmem:[#allocation50_spill] sm:$0xff] %v4313_v8  ;;  %v4315_v14 = vpop.f32.mrb[37].mxu0  ;;  %v4317_v6 = vpop.f32.mrb[37].mxu1 }
 0x1de   : > { %6032 = vst [vmem:[#allocation51_spill] sm:$0xff] %v4315_v14  ;;  %6033 = vst [vmem:[#allocation52_spill] sm:$0xff] %v4317_v6  ;;  %v1016_v29 = vadd.f32 %v4315_v14, %v4310_v26  ;;  %1014 = vadd.xlane.f32.xlu1 %v1013_v63  ;;  %v4321_v43 = vpop.f32.mrb[38].mxu0  ;;  %v4323_v27 = vpop.f32.mrb[38].mxu1 }
 0x1df   : > { %6034 = vst [vmem:[#allocation53_spill] sm:$0xff] %v4321_v43  ;;  %6035 = vst [vmem:[#allocation54_spill] sm:$0xff] %v4323_v27  ;;  %v4325_v57 = vpop.f32.mrb[39].mxu0  ;;  %v4327_v5 = vpop.f32.mrb[39].mxu1 }
 0x1e0   : > { %6036 = vst [vmem:[#allocation55_spill] sm:$0xff] %v4325_v57  ;;  %6037 = vst [vmem:[#allocation56_spill] sm:$0xff] %v4327_v5  ;;  %v1021_v35 = vadd.f32 %v4325_v57, %v4321_v43  ;;  %v1017_v11 = vadd.f32 %v1016_v29, %v4313_v8 }
 0x1e2   : > { %v1022_v56 = vadd.f32 %v1021_v35, %v4323_v27  ;;  %v1018_v7 = vadd.f32 %v1017_v11, %v4317_v6 }
 0x1e4   : > { %1019 = vadd.xlane.f32.xlu0 %v1018_v7  ;;  %v4334_v14 = vpop.f32.mrb[40].mxu0  ;;  %v1023_v63 = vadd.f32 %v1022_v56, %v4327_v5  ;;  %v4337_v26 = vpop.f32.mrb[40].mxu1 }
 0x1e5   : > { %6038 = vst [vmem:[#allocation57_spill] sm:$0xff] %v4334_v14  ;;  %6039 = vst [vmem:[#allocation58_spill] sm:$0xff] %v4337_v26  ;;  %v4339_v28 = vpop.f32.mrb[41].mxu0  ;;  %v4341_v60 = vpop.f32.mrb[41].mxu1 }
 0x1e6   : > { %6040 = vst [vmem:[#allocation59_spill] sm:$0xff] %v4339_v28  ;;  %6041 = vst [vmem:[#allocation60_spill] sm:$0xff] %v4341_v60  ;;  %v1026_v57 = vadd.f32 %v4339_v28, %v4334_v14  ;;  %1024 = vadd.xlane.f32.xlu1 %v1023_v63  ;;  %v4345_v29 = vpop.f32.mrb[42].mxu0  ;;  %v4347_v35 = vpop.f32.mrb[42].mxu1 }
 0x1e7   : > { %6042 = vst [vmem:[#allocation61_spill] sm:$0xff] %v4345_v29  ;;  %6043 = vst [vmem:[#allocation62_spill] sm:$0xff] %v4347_v35  ;;  %v4349_v11 = vpop.f32.mrb[43].mxu0  ;;  %v4351_v7 = vpop.f32.mrb[43].mxu1 }
 0x1e8   : > { %6044 = vst [vmem:[#allocation63_spill] sm:$0xff] %v4349_v11  ;;  %6045 = vst [vmem:[#allocation64_spill] sm:$0xff] %v4351_v7  ;;  %v1031_v56 = vadd.f32 %v4349_v11, %v4345_v29  ;;  %v1027_v5 = vadd.f32 %v1026_v57, %v4337_v26 }
 0x1ea   : > { %v1032_v27 = vadd.f32 %v1031_v56, %v4347_v35  ;;  %v1028_v6 = vadd.f32 %v1027_v5, %v4341_v60 }
 0x1ec   : > { %1029 = vadd.xlane.f32.xlu0 %v1028_v6  ;;  %v1033_v63 = vadd.f32 %v1032_v27, %v4351_v7  ;;  %v4359_v28 = vpop.f32.mrb[44].mxu0  ;;  %v4361_v14 = vpop.f32.mrb[44].mxu1 }
 0x1ed   : > { %6046 = vst [vmem:[#allocation65_spill] sm:$0xff] %v4359_v28  ;;  %6047 = vst [vmem:[#allocation66_spill] sm:$0xff] %v4361_v14  ;;  %v4363_v43 = vpop.f32.mrb[45].mxu0  ;;  %v4365_v8 = vpop.f32.mrb[45].mxu1 }
 0x1ee   : > { %6048 = vst [vmem:[#allocation67_spill] sm:$0xff] %v4363_v43  ;;  %6049 = vst [vmem:[#allocation68_spill] sm:$0xff] %v4365_v8  ;;  %1034 = vadd.xlane.f32.xlu1 %v1033_v63  ;;  %v1036_v11 = vadd.f32 %v4363_v43, %v4359_v28  ;;  %v4369_v57 = vpop.f32.mrb[46].mxu0  ;;  %v4371_v56 = vpop.f32.mrb[46].mxu1 }
 0x1ef   : > { %6050 = vst [vmem:[#allocation69_spill] sm:$0xff] %v4369_v57  ;;  %6051 = vst [vmem:[#allocation70_spill] sm:$0xff] %v4371_v56  ;;  %v4373_v5 = vpop.f32.mrb[47].mxu0  ;;  %v4375_v6 = vpop.f32.mrb[47].mxu1 }
 0x1f0   : > { %6052 = vst [vmem:[#allocation71_spill] sm:$0xff] %v4373_v5  ;;  %6053 = vst [vmem:[#allocation72_spill] sm:$0xff] %v4375_v6  ;;  %v1041_v27 = vadd.f32 %v4373_v5, %v4369_v57  ;;  %v1037_v7 = vadd.f32 %v1036_v11, %v4361_v14 }
 0x1f2   : > { %v1042_v35 = vadd.f32 %v1041_v27, %v4371_v56  ;;  %v4382_v63 = vadd.f32 %v1037_v7, %v4365_v8 }
 0x1f4   : > { %v4384_v60 = vpop.f32.mrb[48].mxu0  ;;  %v4386_v43 = vpop.f32.mrb[48].mxu1  ;;  %v4389_v28 = vadd.f32 %v1042_v35, %v4375_v6 }
 0x1f5   : > { %6054 = vst [vmem:[#allocation73_spill] sm:$0xff] %v4384_v60  ;;  %6055 = vst [vmem:[#allocation74_spill] sm:$0xff] %v4386_v43  ;;  %v4391_v29 = vpop.f32.mrb[49].mxu0  ;;  %v4393_v26 = vpop.f32.mrb[49].mxu1 }
 0x1f6   : > { %6056 = vst [vmem:[#allocation75_spill] sm:$0xff] %v4391_v29  ;;  %6057 = vst [vmem:[#allocation76_spill] sm:$0xff] %v4393_v26  ;;  %v1046_v5 = vadd.f32 %v4391_v29, %v4384_v60  ;;  %v4397_v11 = vpop.f32.mrb[50].mxu0  ;;  %v4399_v27 = vpop.f32.mrb[50].mxu1 }
 0x1f7   : > { %6058 = vst [vmem:[#allocation77_spill] sm:$0xff] %v4397_v11  ;;  %6059 = vst [vmem:[#allocation78_spill] sm:$0xff] %v4399_v27  ;;  %v4401_v7 = vpop.f32.mrb[51].mxu0  ;;  %v4403_v56 = vpop.f32.mrb[51].mxu1 }
 0x1f8   : > { %6060 = vst [vmem:[#allocation79_spill] sm:$0xff] %v4401_v7  ;;  %6061 = vst [vmem:[#allocation80_spill] sm:$0xff] %v4403_v56  ;;  %v1047_v57 = vadd.f32 %v1046_v5, %v4386_v43  ;;  %v1051_v35 = vadd.f32 %v4401_v7, %v4397_v11 }
 0x1fa   : > { %v1052_v6 = vadd.f32 %v1051_v35, %v4399_v27  ;;  %v4410_v8 = vadd.f32 %v1047_v57, %v4393_v26 }
 0x1fc   : > { %v4412_v14 = vpop.f32.mrb[52].mxu0  ;;  %v4414_v29 = vpop.f32.mrb[52].mxu1  ;;  %v4417_v60 = vadd.f32 %v1052_v6, %v4403_v56 }
 0x1fd   : > { %6062 = vst [vmem:[#allocation81_spill] sm:$0xff] %v4412_v14  ;;  %6063 = vst [vmem:[#allocation82_spill] sm:$0xff] %v4414_v29  ;;  %v4419_v55 = vpop.f32.mrb[53].mxu0  ;;  %v4421_v49 = vpop.f32.mrb[53].mxu1 }
 0x1fe   : > { %6064 = vst [vmem:[#allocation83_spill] sm:$0xff] %v4419_v55  ;;  %6065 = vst [vmem:[#allocation84_spill] sm:$0xff] %v4421_v49  ;;  %v1056_v5 = vadd.f32 %v4419_v55, %v4412_v14  ;;  %v4425_v7 = vpop.f32.mrb[54].mxu0  ;;  %v4427_v35 = vpop.f32.mrb[54].mxu1 }
 0x1ff   : > { %6066 = vst [vmem:[#allocation85_spill] sm:$0xff] %v4425_v7  ;;  %6067 = vst [vmem:[#allocation86_spill] sm:$0xff] %v4427_v35  ;;  %v4429_v57 = vpop.f32.mrb[55].mxu0  ;;  %v4431_v27 = vpop.f32.mrb[55].mxu1 }
 0x200   : > { %6068 = vst [vmem:[#allocation87_spill] sm:$0xff] %v4429_v57  ;;  %6069 = vst [vmem:[#allocation88_spill] sm:$0xff] %v4431_v27  ;;  %v1057_v11 = vadd.f32 %v1056_v5, %v4414_v29  ;;  %v1061_v6 = vadd.f32 %v4429_v57, %v4425_v7  ;;  %v3442_v57 = vld [vmem:[#allocation10 + $0xc0] sm:$0xff]  }
 0x201   : > { %v3443_v7 = vld [vmem:[#allocation10] sm:$0xff]   ;;  %3185 = vmatprep.subr.bf16.mxu1 %v3442_v57 }
 0x202   : > { %v1062_v56 = vadd.f32 %v1061_v6, %v4427_v35  ;;  %v4438_v26 = vadd.f32 %v1057_v11, %v4421_v49  ;;  %3186 = vmatpush3.bf16.msra.mxu1 %v3444_v46 }
 0x203   : > { %3187 = vmatprep.subr.bf16.mxu1 %v3446_v41 }
 0x204   : > { %v4440_v43 = vpop.f32.mrb[56].mxu0  ;;  %v4442_v55 = vpop.f32.mrb[56].mxu1  ;;  %v4445_v14 = vadd.f32 %v1062_v56, %v4431_v27  ;;  %v3441_v27 = vld [vmem:[#allocation10 + $0x40] sm:$0xff]  }
 0x205   : > { %6070 = vst [vmem:[#allocation89_spill] sm:$0xff] %v4440_v43  ;;  %6071 = vst [vmem:[#allocation90_spill] sm:$0xff] %v4442_v55  ;;  %v4447_v42 = vpop.f32.mrb[57].mxu0  ;;  %v4449_v54 = vpop.f32.mrb[57].mxu1  ;;  %3073 = vmatprep.subr.bf16.mxu0 %v3441_v27 }
 0x206   : > { %6072 = vst [vmem:[#allocation91_spill] sm:$0xff] %v4447_v42  ;;  %6073 = vst [vmem:[#allocation92_spill] sm:$0xff] %v4449_v54  ;;  %v1066_v5 = vadd.f32 %v4447_v42, %v4440_v43  ;;  %v4453_v29 = vpop.f32.mrb[58].mxu0  ;;  %v4455_v6 = vpop.f32.mrb[58].mxu1  ;;  %3074 = vmatpush3.bf16.msra.mxu0 %v3443_v7 }
 0x207   : > { %6074 = vst [vmem:[#allocation93_spill] sm:$0xff] %v4453_v29  ;;  %6075 = vst [vmem:[#allocation94_spill] sm:$0xff] %v4455_v6  ;;  %v4457_v11 = vpop.f32.mrb[59].mxu0  ;;  %v4459_v35 = vpop.f32.mrb[59].mxu1  ;;  %3075 = vmatprep.subr.bf16.mxu0 %v3445_v40 }
 0x208   : > { %6076 = vst [vmem:[#allocation95_spill] sm:$0xff] %v4457_v11  ;;  %6077 = vst [vmem:[#allocation96_spill] sm:$0xff] %v4459_v35  ;;  %v1067_v49 = vadd.f32 %v1066_v5, %v4442_v55  ;;  %v1071_v56 = vadd.f32 %v4457_v11, %v4453_v29  ;;  %v3448_v5 = vld [vmem:[#allocation10 + $0x88] sm:$0xff]  }
 0x209   : > { %3188 = vmatpush3.bf16.msra.mxu1 %v3448_v5 }
 0x20a   : > { %v1072_v42 = vadd.f32 %v1071_v56, %v4455_v6  ;;  %v4466_v43 = vadd.f32 %v1067_v49, %v4449_v54  ;;  %3076 = vmatpush3.bf16.msra.mxu0 %v3447_v32 }
 0x20c   : > { %v4468_v55 = vpop.f32.mrb[60].mxu0  ;;  %v4470_v11 = vpop.f32.mrb[60].mxu1  ;;  %v4473_v29 = vadd.f32 %v1072_v42, %v4459_v35 }
 0x20d   : > { %6078 = vst [vmem:[#allocation97_spill] sm:$0xff] %v4468_v55  ;;  %6079 = vst [vmem:[#allocation98_spill] sm:$0xff] %v4470_v11  ;;  %v4475_v22 = vpop.f32.mrb[61].mxu0  ;;  %v4477_v56 = vpop.f32.mrb[61].mxu1 }
 0x20e   : > { %6080 = vst [vmem:[#allocation99_spill] sm:$0xff] %v4475_v22  ;;  %6081 = vst [vmem:[#allocation100_spill] sm:$0xff] %v4477_v56  ;;  %v1076_v49 = vadd.f32 %v4475_v22, %v4468_v55  ;;  %v4481_v27 = vpop.f32.mrb[62].mxu0  ;;  %v4483_v46 = vpop.f32.mrb[62].mxu1 }
 0x20f   : > { %6082 = vst [vmem:[#allocation101_spill] sm:$0xff] %v4481_v27  ;;  %6083 = vst [vmem:[#allocation102_spill] sm:$0xff] %v4483_v46  ;;  %v4485_v7 = vpop.f32.mrb[63].mxu0  ;;  %v4487_v57 = vpop.f32.mrb[63].mxu1 }
 0x210   : > { %6084 = vst [vmem:[#allocation103_spill] sm:$0xff] %v4485_v7  ;;  %6085 = vst [vmem:[#allocation104_spill] sm:$0xff] %v4487_v57  ;;  %v1077_v40 = vadd.f32 %v1076_v49, %v4470_v11  ;;  %v1081_v41 = vadd.f32 %v4485_v7, %v4481_v27 }
 0x212   : > { %v1082_v42 = vadd.f32 %v1081_v41, %v4483_v46  ;;  %v4494_v35 = vadd.f32 %v1077_v40, %v4477_v56 }
 0x214   : > { %v4497_v6 = vadd.f32 %v1082_v42, %v4487_v57 }
 0x229   : > { %v930_v54 = vpop.xlane.xlu0 %929 }
 0x22a   : > { %v1086_v22 = vmul.f32 0.001953125, %v930_v54 }
 0x22c   : > { %v4500_v55 = vsub.f32 %v4095_v18, %v1086_v22  ;;  %v4503_v32 = vsub.f32 %v4099_v20, %v1086_v22  ;;  %v4506_v5 = vsub.f32 %v4097_v19, %v1086_v22  ;;  %v4509_v41 = vsub.f32 %v4101_v21, %v1086_v22 }
 0x22d   : > { %v935_v49 = vpop.xlane.xlu0 %934 }
 0x22e   : > { %v1087_v40 = vmul.f32 0.001953125, %v935_v49  ;;  %v1246_v42 = vmul.f32 %v4500_v55, %v4500_v55  ;;  %v1247_v54 = vmul.f32 %v4503_v32, %v4503_v32  ;;  %v1248_v18 = vmul.f32 %v4506_v5, %v4506_v5 }
 0x22f   : > { %v1249_v49 = vmul.f32 %v4509_v41, %v4509_v41 }
 0x230   : > { %v4518_v20 = vsub.f32 %v4105_v23, %v1087_v40  ;;  %v4521_v19 = vsub.f32 %v4109_v25, %v1087_v40  ;;  %v1374_v57 = vadd.f32 %v1247_v54, %v1246_v42  ;;  %v4524_v21 = vsub.f32 %v4107_v24, %v1087_v40 }
 0x231   : > { %v940_v22 = vpop.xlane.xlu1 %939  ;;  %v4529_v46 = vsub.f32 %v4111_v0, %v1087_v40 }
 0x232   : > { %6086 = vst [vmem:[#allocation105_spill] sm:$0xff] %v4524_v21  ;;  %v1088_v56 = vmul.f32 0.001953125, %v940_v22  ;;  %v1375_v11 = vadd.f32 %v1374_v57, %v1248_v18  ;;  %v1250_v23 = vmul.f32 %v4518_v20, %v4518_v20  ;;  %v1251_v25 = vmul.f32 %v4521_v19, %v4521_v19 }
 0x233   : > { %v1252_v42 = vmul.f32 %v4524_v21, %v4524_v21  ;;  %v1253_v57 = vmul.f32 %v4529_v46, %v4529_v46 }
 0x234   : > { %v4538_v24 = vsub.f32 %v4120_v31, %v1088_v56  ;;  %v4541_v54 = vsub.f32 %v4123_v33, %v1088_v56  ;;  %v1376_v7 = vadd.f32 %v1375_v11, %v1249_v49  ;;  %v1379_v0 = vadd.f32 %v1251_v25, %v1250_v23 }
 0x235   : > { %v945_v40 = vpop.xlane.xlu1 %944  ;;  %v4546_v18 = vsub.f32 %v4118_v30, %v1088_v56  ;;  %v4549_v22 = vsub.f32 %v4125_v34, %v1088_v56 }
 0x236   : > { %v1089_v27 = vmul.f32 0.001953125, %v945_v40  ;;  %1377 = vadd.xlane.f32.xlu0 %v1376_v7  ;;  %v1380_v21 = vadd.f32 %v1379_v0, %v1252_v42  ;;  %v1254_v31 = vmul.f32 %v4538_v24, %v4538_v24  ;;  %v1255_v33 = vmul.f32 %v4541_v54, %v4541_v54 }
 0x237   : > { %v1256_v11 = vmul.f32 %v4546_v18, %v4546_v18  ;;  %v1257_v7 = vmul.f32 %v4549_v22, %v4549_v22 }
 0x238   : > { %v4558_v49 = vsub.f32 %v4129_v36, %v1089_v27  ;;  %v4561_v30 = vsub.f32 %v4133_v38, %v1089_v27  ;;  %v1381_v34 = vadd.f32 %v1380_v21, %v1253_v57  ;;  %v1384_v56 = vadd.f32 %v1255_v33, %v1254_v31 }
 0x239   : > { %v950_v23 = vpop.xlane.xlu0 %949  ;;  %v4566_v25 = vsub.f32 %v4131_v37, %v1089_v27  ;;  %v4574_v40 = vsub.f32 %v4135_v39, %v1089_v27 }
 0x23a   : > { %v1090_v42 = vmul.f32 0.001953125, %v950_v23  ;;  %1382 = vadd.xlane.f32.xlu1 %v1381_v34  ;;  %1039 = vadd.xlane.f32.xlu0 %v4382_v63  ;;  %v1385_v0 = vadd.f32 %v1384_v56, %v1256_v11  ;;  %v1258_v36 = vmul.f32 %v4558_v49, %v4558_v49  ;;  %v1259_v38 = vmul.f32 %v4561_v30, %v4561_v30 }
 0x23b   : > { %v955_v21 = vpop.xlane.xlu1 %954  ;;  %v1260_v63 = vmul.f32 %v4566_v25, %v4566_v25 }
 0x23c   : > { %v4577_v57 = vsub.f32 %v4142_v44, %v1090_v42  ;;  %v4580_v37 = vsub.f32 %v4147_v47, %v1090_v42  ;;  %v1091_v31 = vmul.f32 0.001953125, %v955_v21  ;;  %v1386_v33 = vadd.f32 %v1385_v0, %v1257_v7 }
 0x23d   : > { %v1389_v11 = vadd.f32 %v1259_v38, %v1258_v36  ;;  %v4585_v34 = vsub.f32 %v4144_v45, %v1090_v42  ;;  %v1261_v47 = vmul.f32 %v4574_v40, %v4574_v40  ;;  %v4599_v23 = vsub.f32 %v4149_v48, %v1090_v42 }
 0x23e   : > { %v4588_v56 = vsub.f32 %v4153_v50, %v1091_v31  ;;  %v4591_v39 = vsub.f32 %v4157_v52, %v1091_v31  ;;  %1387 = vadd.xlane.f32.xlu0 %v1386_v33  ;;  %1044 = vadd.xlane.f32.xlu1 %v4389_v28  ;;  %v1262_v44 = vmul.f32 %v4577_v57, %v4577_v57 }
 0x23f   : > { %v1390_v27 = vadd.f32 %v1389_v11, %v1260_v63  ;;  %v1263_v45 = vmul.f32 %v4580_v37, %v4580_v37  ;;  %v4604_v50 = vsub.f32 %v4155_v51, %v1091_v31  ;;  %v1264_v36 = vmul.f32 %v4585_v34, %v4585_v34 }
 0x240   : > { %v1266_v52 = vmul.f32 %v4588_v56, %v4588_v56  ;;  %v1267_v28 = vmul.f32 %v4591_v39, %v4591_v39  ;;  %v1265_v51 = vmul.f32 %v4599_v23, %v4599_v23  ;;  %v4616_v63 = vsub.f32 %v4159_v53, %v1091_v31 }
 0x241   : > { %v960_v7 = vpop.xlane.xlu0 %959  ;;  %v1391_v0 = vadd.f32 %v1390_v27, %v1261_v47  ;;  %v1394_v38 = vadd.f32 %v1263_v45, %v1262_v44  ;;  %v1268_v11 = vmul.f32 %v4604_v50, %v4604_v50 }
 0x242   : > { %v1092_v48 = vmul.f32 0.001953125, %v960_v7  ;;  %1049 = vadd.xlane.f32.xlu0 %v4410_v8  ;;  %v1399_v42 = vadd.f32 %v1267_v28, %v1266_v52  ;;  %v3449_v7 = vld [vmem:[#allocation10 + $0x50] sm:$0xff]  }
 0x243   : > { %1392 = vadd.xlane.f32.xlu1 %v1391_v0  ;;  %v965_v21 = vpop.xlane.xlu1 %964  ;;  %v1395_v33 = vadd.f32 %v1394_v38, %v1264_v36  ;;  %v3450_v0 = vld [vmem:[#allocation10 + $0xd0] sm:$0xff]   ;;  %3077 = vmatprep.subr.bf16.mxu0 %v3449_v7 }
 0x244   : > { %v4621_v47 = vsub.f32 %v4166_v58, %v1092_v48  ;;  %v4624_v44 = vsub.f32 %v4171_v61, %v1092_v48  ;;  %v1093_v8 = vmul.f32 0.001953125, %v965_v21  ;;  %v1400_v45 = vadd.f32 %v1399_v42, %v1268_v11  ;;  %3189 = vmatprep.subr.bf16.mxu1 %v3450_v0  ;;  %v3453_v0 = vld [vmem:[#allocation10 + $0x58] sm:$0xff]  }
 0x245   : > { %v1396_v27 = vadd.f32 %v1395_v33, %v1265_v51  ;;  %v4627_v52 = vsub.f32 %v4168_v59, %v1092_v48  ;;  %v4636_v31 = vsub.f32 %v4173_v62, %v1092_v48  ;;  %v1269_v61 = vmul.f32 %v4616_v63, %v4616_v63 }
 0x246   : > { %v4630_v28 = vsub.f32 %v4177_v1, %v1093_v8  ;;  %v4633_v53 = vsub.f32 %v4181_v3, %v1093_v8  ;;  %v1270_v58 = vmul.f32 %v4621_v47, %v4621_v47  ;;  %v1271_v59 = vmul.f32 %v4624_v44, %v4624_v44 }
 0x247   : > { %1397 = vadd.xlane.f32.xlu0 %v1396_v27  ;;  %1054 = vadd.xlane.f32.xlu1 %v4417_v60  ;;  %v4646_v1 = vsub.f32 %v4179_v2, %v1093_v8  ;;  %v1401_v38 = vadd.f32 %v1400_v45, %v1269_v61  ;;  %v1272_v60 = vmul.f32 %v4627_v52, %v4627_v52  ;;  %v3451_v45 = vld [vmem:[#allocation10 + $0x10] sm:$0xff]  }
 0x248   : > { %v1274_v3 = vmul.f32 %v4630_v28, %v4630_v28  ;;  %v1275_v62 = vmul.f32 %v4633_v53, %v4633_v53  ;;  %v1404_v48 = vadd.f32 %v1271_v59, %v1270_v58  ;;  %v1273_v21 = vmul.f32 %v4636_v31, %v4636_v31  ;;  %v3452_v58 = vld [vmem:[#allocation10 + $0x90] sm:$0xff]   ;;  %3078 = vmatpush3.bf16.msra.mxu0 %v3451_v45  ;;  %v3458_v45 = vld [vmem:[#allocation10 + $0xe0] sm:$0xff]  }
 0x249   : > { %6087 = vst [vmem:[#allocation106_spill] sm:$0xff] %v4646_v1  ;;  %v970_v36 = vpop.xlane.xlu0 %969  ;;  %v4658_v11 = vsub.f32 %v4183_v4, %v1093_v8  ;;  %v1276_v27 = vmul.f32 %v4646_v1, %v4646_v1  ;;  %3190 = vmatpush3.bf16.msra.mxu1 %v3452_v58  ;;  %3079 = vmatprep.subr.bf16.mxu0 %v3453_v0 }
 0x24a   : > { %v1094_v42 = vmul.f32 0.001953125, %v970_v36  ;;  %v1409_v2 = vadd.f32 %v1275_v62, %v1274_v3  ;;  %v1405_v33 = vadd.f32 %v1404_v48, %v1272_v60  ;;  %v3454_v36 = vld [vmem:[#allocation10 + $0xd8] sm:$0xff]  }
 0x24b   : > { %1402 = vadd.xlane.f32.xlu1 %v1401_v38  ;;  %1059 = vadd.xlane.f32.xlu0 %v4438_v26  ;;  %v975_v51 = vpop.xlane.xlu1 %974  ;;  %v3455_v38 = vld [vmem:[#allocation10 + $0x18] sm:$0xff]  }
 0x24c   : > { %v4663_v61 = vsub.f32 %v4190_v9, %v1094_v42  ;;  %v4666_v59 = vsub.f32 %v4195_v12, %v1094_v42  ;;  %v1095_v3 = vmul.f32 0.001953125, %v975_v51  ;;  %v1406_v62 = vadd.f32 %v1405_v33, %v1273_v21  ;;  %3191 = vmatprep.subr.bf16.mxu1 %v3454_v36  ;;  %3080 = vmatpush3.bf16.msra.mxu0 %v3455_v38  ;;  %v3459_v36 = vld [vmem:[#allocation10 + $0x20] sm:$0xff]  }
 0x24d   : > { %v1410_v7 = vadd.f32 %v1409_v2, %v1276_v27  ;;  %v4669_v26 = vsub.f32 %v4192_v10, %v1094_v42  ;;  %v4678_v9 = vsub.f32 %v4197_v13, %v1094_v42  ;;  %v1277_v10 = vmul.f32 %v4658_v11, %v4658_v11  ;;  %v3457_v27 = vld [vmem:[#allocation10 + $0x60] sm:$0xff]  }
 0x24e   : > { %6088 = vst [vmem:[#allocation107_spill] sm:$0xff] %v4663_v61  ;;  %6089 = vst [vmem:[#allocation108_spill] sm:$0xff] %v4666_v59  ;;  %v4672_v4 = vsub.f32 %v4201_v15, %v1095_v3  ;;  %v4675_v8 = vsub.f32 %v4205_v17, %v1095_v3  ;;  %v1278_v12 = vmul.f32 %v4663_v61, %v4663_v61  ;;  %v3456_v17 = vld [vmem:[#allocation10 + $0x98] sm:$0xff]   ;;  %3081 = vmatprep.subr.bf16.mxu0 %v3457_v27  ;;  %v3461_v27 = vld [vmem:[#allocation10 + $0x68] sm:$0xff]  }
 0x24f   : > { %6090 = vst [vmem:[#allocation109_spill] sm:$0xff] %v4669_v26  ;;  %6093 = vst [vmem:[#allocation112_spill] sm:$0xff] %v4678_v9  ;;  %1407 = vadd.xlane.f32.xlu0 %v1406_v62  ;;  %1064 = vadd.xlane.f32.xlu1 %v4445_v14  ;;  %v1279_v15 = vmul.f32 %v4666_v59, %v4666_v59  ;;  %v4688_v60 = vsub.f32 %v4203_v16, %v1095_v3 }
 0x250   : > { %6091 = vst [vmem:[#allocation110_spill] sm:$0xff] %v4672_v4  ;;  %6092 = vst [vmem:[#allocation111_spill] sm:$0xff] %v4675_v8  ;;  %v1282_v13 = vmul.f32 %v4672_v4, %v4672_v4  ;;  %v1283_v48 = vmul.f32 %v4675_v8, %v4675_v8  ;;  %v1411_v14 = vadd.f32 %v1410_v7, %v1277_v10  ;;  %3192 = vmatpush3.bf16.msra.mxu1 %v3456_v17  ;;  %v6095_v7 = vld [vmem:[#allocation16_spill] sm:$0xff] }
 0x251   : > { %6094 = vst [vmem:[#allocation113_spill] sm:$0xff] %v4688_v60  ;;  %v980_v42 = vpop.xlane.xlu0 %979  ;;  %v1280_v21 = vmul.f32 %v4669_v26, %v4669_v26  ;;  %v1414_v2 = vadd.f32 %v1279_v15, %v1278_v12  ;;  %v1281_v16 = vmul.f32 %v4678_v9, %v4678_v9  ;;  %v4700_v0 = vsub.f32 %v6095_v7, %v1095_v3  ;;  %v3460_v10 = vld [vmem:[#allocation10 + $0xa0] sm:$0xff]   ;;  %v6097_v15 = vld [vmem:[#allocation17_spill] sm:$0xff]  ;;  %v6105_v7 = vld [vmem:[#allocation23_spill] sm:$0xff] }
 0x252   : > { %v1096_v51 = vmul.f32 0.001953125, %v980_v42  ;;  %v1419_v33 = vadd.f32 %v1283_v48, %v1282_v13  ;;  %v1284_v12 = vmul.f32 %v4688_v60, %v4688_v60  ;;  %v6099_v13 = vld [vmem:[#allocation19_spill] sm:$0xff]  ;;  %3193 = vmatprep.subr.bf16.mxu1 %v3458_v45  ;;  %3082 = vmatpush3.bf16.msra.mxu0 %v3459_v36  ;;  %v6103_v3 = vld [vmem:[#allocation21_spill] sm:$0xff]  ;;  %v6109_v36 = vld [vmem:[#allocation22_spill] sm:$0xff] }
 0x253   : > { %1412 = vadd.xlane.f32.xlu1 %v1411_v14  ;;  %1069 = vadd.xlane.f32.xlu0 %v4466_v43  ;;  %v985_v58 = vpop.xlane.xlu1 %984  ;;  %v1415_v62 = vadd.f32 %v1414_v2, %v1280_v21  ;;  %6096 = vst [vmem:[#allocation16_spill] sm:$0xff] %v4700_v0  ;;  %v6101_v14 = vld [vmem:[#allocation18_spill] sm:$0xff] }
 0x254   : > { %v4705_v38 = vsub.f32 %v6097_v15, %v1096_v51  ;;  %v4708_v17 = vsub.f32 %v6099_v13, %v1096_v51  ;;  %v1097_v48 = vmul.f32 0.001953125, %v985_v58  ;;  %v1420_v42 = vadd.f32 %v1419_v33, %v1284_v12  ;;  %v6107_v15 = vld [vmem:[#allocation20_spill] sm:$0xff]  ;;  %3194 = vmatpush3.bf16.msra.mxu1 %v3460_v10  ;;  %v3464_v12 = vld [vmem:[#allocation10 + $0xa8] sm:$0xff]   ;;  %3083 = vmatprep.subr.bf16.mxu0 %v3461_v27 }
 0x255   : > { %v1416_v43 = vadd.f32 %v1415_v62, %v1281_v16  ;;  %v4711_v21 = vsub.f32 %v6101_v14, %v1096_v51  ;;  %v4720_v26 = vsub.f32 %v6107_v15, %v1096_v51  ;;  %v3462_v16 = vld [vmem:[#allocation10 + $0xe8] sm:$0xff]   ;;  %v1285_v33 = vmul.f32 %v4700_v0, %v4700_v0 }
 0x256   : > { %6098 = vst [vmem:[#allocation17_spill] sm:$0xff] %v4705_v38  ;;  %6100 = vst [vmem:[#allocation19_spill] sm:$0xff] %v4708_v17  ;;  %v4714_v2 = vsub.f32 %v6103_v3, %v1097_v48  ;;  %v4717_v60 = vsub.f32 %v6105_v7, %v1097_v48  ;;  %v1286_v58 = vmul.f32 %v4705_v38, %v4705_v38  ;;  %v3463_v62 = vld [vmem:[#allocation10 + $0x28] sm:$0xff]   ;;  %3195 = vmatprep.subr.bf16.mxu1 %v3462_v16  ;;  %v3465_v38 = vld [vmem:[#allocation10 + $0x70] sm:$0xff]  }
 0x257   : > { %6102 = vst [vmem:[#allocation18_spill] sm:$0xff] %v4711_v21  ;;  %6108 = vst [vmem:[#allocation20_spill] sm:$0xff] %v4720_v26  ;;  %1417 = vadd.xlane.f32.xlu0 %v1416_v43  ;;  %1074 = vadd.xlane.f32.xlu1 %v4473_v29  ;;  %v1287_v45 = vmul.f32 %v4708_v17, %v4708_v17  ;;  %v4730_v51 = vsub.f32 %v6109_v36, %v1097_v48  ;;  %v3467_v16 = vld [vmem:[#allocation10 + $0x30] sm:$0xff]   ;;  %v6203_v17 = vld [vmem:[#allocation71_spill] sm:$0xff] }
 0x258   : > { %6104 = vst [vmem:[#allocation21_spill] sm:$0xff] %v4714_v2  ;;  %6106 = vst [vmem:[#allocation23_spill] sm:$0xff] %v4717_v60  ;;  %v1290_v13 = vmul.f32 %v4714_v2, %v4714_v2  ;;  %v1291_v10 = vmul.f32 %v4717_v60, %v4717_v60  ;;  %v1421_v29 = vadd.f32 %v1420_v42, %v1285_v33  ;;  %3084 = vmatpush3.bf16.msra.mxu0 %v3463_v62  ;;  %v3466_v2 = vld [vmem:[#allocation10 + $0xf0] sm:$0xff]   ;;  %v6111_v42 = vld [vmem:[#allocation24_spill] sm:$0xff] }
 0x259   : > { %6110 = vst [vmem:[#allocation22_spill] sm:$0xff] %v4730_v51  ;;  %v990_v43 = vpop.xlane.xlu0 %989  ;;  %v1288_v14 = vmul.f32 %v4711_v21, %v4711_v21  ;;  %v1424_v3 = vadd.f32 %v1287_v45, %v1286_v58  ;;  %v1289_v15 = vmul.f32 %v4720_v26, %v4720_v26  ;;  %3196 = vmatpush3.bf16.msra.mxu1 %v3464_v12  ;;  %v3468_v45 = vld [vmem:[#allocation10 + $0xb0] sm:$0xff]   ;;  %v6113_v62 = vld [vmem:[#allocation25_spill] sm:$0xff] }
 0x25a   : > { %v1098_v7 = vmul.f32 0.001953125, %v990_v43  ;;  %v1429_v36 = vadd.f32 %v1291_v10, %v1290_v13  ;;  %v4742_v33 = vsub.f32 %v6111_v42, %v1097_v48  ;;  %v1292_v58 = vmul.f32 %v4730_v51, %v4730_v51  ;;  %v6115_v13 = vld [vmem:[#allocation27_spill] sm:$0xff]  ;;  %3085 = vmatprep.subr.bf16.mxu0 %v3465_v38  ;;  %3197 = vmatprep.subr.bf16.mxu1 %v3466_v2  ;;  %v6119_v48 = vld [vmem:[#allocation29_spill] sm:$0xff]  ;;  %v6123_v38 = vld [vmem:[#allocation28_spill] sm:$0xff] }
 0x25b   : > { %1422 = vadd.xlane.f32.xlu1 %v1421_v29  ;;  %1079 = vadd.xlane.f32.xlu0 %v4494_v35  ;;  %v995_v27 = vpop.xlane.xlu1 %994  ;;  %v1425_v60 = vadd.f32 %v1424_v3, %v1288_v14  ;;  %v6117_v14 = vld [vmem:[#allocation26_spill] sm:$0xff]  ;;  %v6121_v51 = vld [vmem:[#allocation31_spill] sm:$0xff] }
 0x25c   : > { %6112 = vst [vmem:[#allocation24_spill] sm:$0xff] %v4742_v33  ;;  %v4747_v43 = vsub.f32 %v6113_v62, %v1098_v7  ;;  %v4750_v12 = vsub.f32 %v6115_v13, %v1098_v7  ;;  %v1099_v10 = vmul.f32 0.001953125, %v995_v27  ;;  %v1430_v29 = vadd.f32 %v1429_v36, %v1292_v58  ;;  %3086 = vmatpush3.bf16.msra.mxu0 %v3467_v16  ;;  %v3469_v13 = vld [vmem:[#allocation10 + $0x78] sm:$0xff]   ;;  %v6125_v58 = vld [vmem:[#allocation30_spill] sm:$0xff] }
 0x25d   : > { %v1426_v35 = vadd.f32 %v1425_v60, %v1289_v15  ;;  %v4753_v3 = vsub.f32 %v6117_v14, %v1098_v7  ;;  %3198 = vmatpush3.bf16.msra.mxu1 %v3468_v45  ;;  %v3470_v27 = vld [vmem:[#allocation10 + $0xf8] sm:$0xff]   ;;  %v1293_v60 = vmul.f32 %v4742_v33, %v4742_v33  ;;  %v4767_v2 = vsub.f32 %v6123_v38, %v1098_v7  ;;  %v6127_v45 = vld [vmem:[#allocation32_spill] sm:$0xff] }
 0x25e   : > { %6114 = vst [vmem:[#allocation25_spill] sm:$0xff] %v4747_v43  ;;  %6116 = vst [vmem:[#allocation27_spill] sm:$0xff] %v4750_v12  ;;  %v4756_v42 = vsub.f32 %v6119_v48, %v1099_v10  ;;  %v4759_v21 = vsub.f32 %v6121_v51, %v1099_v10  ;;  %v1294_v62 = vmul.f32 %v4747_v43, %v4747_v43  ;;  %v3471_v51 = vld [vmem:[#allocation10 + $0x38] sm:$0xff]   ;;  %3087 = vmatprep.subr.bf16.mxu0 %v3469_v13 }
 0x25f   : > { %6118 = vst [vmem:[#allocation26_spill] sm:$0xff] %v4753_v3  ;;  %1427 = vadd.xlane.f32.xlu0 %v1426_v35  ;;  %1084 = vadd.xlane.f32.xlu1 %v4497_v6  ;;  %6124 = vst [vmem:[#allocation28_spill] sm:$0xff] %v4767_v2  ;;  %v1295_v15 = vmul.f32 %v4750_v12, %v4750_v12  ;;  %v3472_v36 = vld [vmem:[#allocation10 + $0xb8] sm:$0xff]   ;;  %v4772_v16 = vsub.f32 %v6125_v58, %v1099_v10 }
 0x260   : > { %6120 = vst [vmem:[#allocation29_spill] sm:$0xff] %v4756_v42  ;;  %6122 = vst [vmem:[#allocation31_spill] sm:$0xff] %v4759_v21  ;;  %v4775_v14 = vsub.f32 %v6127_v45, %v1099_v10  ;;  %v1298_v6 = vmul.f32 %v4756_v42, %v4756_v42  ;;  %v1299_v35 = vmul.f32 %v4759_v21, %v4759_v21  ;;  %3199 = vmatprep.subr.bf16.mxu1 %v3470_v27 }
 0x261   : > { %6126 = vst [vmem:[#allocation30_spill] sm:$0xff] %v4772_v16  ;;  %v1000_v7 = vpop.xlane.xlu0 %999  ;;  %v1431_v48 = vadd.f32 %v1430_v29, %v1293_v60  ;;  %v1296_v38 = vmul.f32 %v4753_v3, %v4753_v3  ;;  %v1434_v43 = vadd.f32 %v1295_v15, %v1294_v62  ;;  %3088 = vmatpush3.bf16.msra.mxu0 %v3471_v51  ;;  %v6129_v60 = vld [vmem:[#allocation33_spill] sm:$0xff]  ;;  %v6131_v62 = vld [vmem:[#allocation35_spill] sm:$0xff] }
 0x262   : > { %6128 = vst [vmem:[#allocation32_spill] sm:$0xff] %v4775_v14  ;;  %v1100_v58 = vmul.f32 0.001953125, %v1000_v7  ;;  %v1300_v10 = vmul.f32 %v4772_v16, %v4772_v16  ;;  %v1439_v45 = vadd.f32 %v1299_v35, %v1298_v6  ;;  %3200 = vmatpush3.bf16.msra.mxu1 %v3472_v36  ;;  %v1297_v21 = vmul.f32 %v4767_v2, %v4767_v2  ;;  %v6133_v6 = vld [vmem:[#allocation34_spill] sm:$0xff]  ;;  %v6135_v35 = vld [vmem:[#allocation37_spill] sm:$0xff]  ;;  %v6137_v16 = vld [vmem:[#allocation39_spill] sm:$0xff] }
 0x263   : > { %1432 = vadd.xlane.f32.xlu1 %v1431_v48  ;;  %v1005_v42 = vpop.xlane.xlu1 %1004  ;;  %v1435_v13 = vadd.f32 %v1434_v43, %v1296_v38  ;;  %v1301_v29 = vmul.f32 %v4775_v14, %v4775_v14  ;;  %v6139_v14 = vld [vmem:[#allocation36_spill] sm:$0xff]  ;;  %v6197_v2 = vld [vmem:[#allocation66_spill] sm:$0xff] }
 0x264   : > { %v4790_v3 = vsub.f32 %v6129_v60, %v1100_v58  ;;  %v4793_v27 = vsub.f32 %v6131_v62, %v1100_v58  ;;  %v1101_v15 = vmul.f32 0.001953125, %v1005_v42  ;;  %v1440_v51 = vadd.f32 %v1439_v45, %v1300_v10  ;;  %v6141_v42 = vld [vmem:[#allocation38_spill] sm:$0xff]  ;;  %v6143_v45 = vld [vmem:[#allocation40_spill] sm:$0xff] }
 0x265   : > { %v1436_v7 = vadd.f32 %v1435_v13, %v1297_v21  ;;  %v4796_v36 = vsub.f32 %v6133_v6, %v1100_v58  ;;  %v4807_v62 = vsub.f32 %v6139_v14, %v1100_v58 }
 0x266   : > { %6130 = vst [vmem:[#allocation33_spill] sm:$0xff] %v4790_v3  ;;  %6132 = vst [vmem:[#allocation35_spill] sm:$0xff] %v4793_v27  ;;  %v4799_v48 = vsub.f32 %v6135_v35, %v1101_v15  ;;  %v4802_v43 = vsub.f32 %v6137_v16, %v1101_v15  ;;  %v1441_v38 = vadd.f32 %v1440_v51, %v1301_v29 }
 0x267   : > { %6134 = vst [vmem:[#allocation34_spill] sm:$0xff] %v4796_v36  ;;  %v1302_v60 = vmul.f32 %v4790_v3, %v4790_v3  ;;  %1437 = vadd.xlane.f32.xlu0 %v1436_v7  ;;  %6140 = vst [vmem:[#allocation36_spill] sm:$0xff] %v4807_v62  ;;  %v1303_v21 = vmul.f32 %v4793_v27, %v4793_v27  ;;  %v4812_v10 = vsub.f32 %v6141_v42, %v1101_v15 }
 0x268   : > { %6136 = vst [vmem:[#allocation37_spill] sm:$0xff] %v4799_v48  ;;  %6138 = vst [vmem:[#allocation39_spill] sm:$0xff] %v4802_v43  ;;  %1442 = vadd.xlane.f32.xlu1 %v1441_v38  ;;  %v4815_v13 = vsub.f32 %v6143_v45, %v1101_v15  ;;  %v1306_v16 = vmul.f32 %v4799_v48, %v4799_v48  ;;  %v1307_v29 = vmul.f32 %v4802_v43, %v4802_v43  ;;  %v6145_v48 = vld [vmem:[#allocation41_spill] sm:$0xff]  ;;  %v6147_v43 = vld [vmem:[#allocation43_spill] sm:$0xff] }
 0x269   : > { %6142 = vst [vmem:[#allocation38_spill] sm:$0xff] %v4812_v10  ;;  %v1010_v51 = vpop.xlane.xlu0 %1009  ;;  %v1304_v14 = vmul.f32 %v4796_v36, %v4796_v36  ;;  %v1444_v58 = vadd.f32 %v1303_v21, %v1302_v60  ;;  %v1308_v6 = vmul.f32 %v4812_v10, %v4812_v10  ;;  %v1305_v15 = vmul.f32 %v4807_v62, %v4807_v62  ;;  %v6149_v36 = vld [vmem:[#allocation42_spill] sm:$0xff]  ;;  %v6153_v62 = vld [vmem:[#allocation47_spill] sm:$0xff] }
 0x26a   : > { %6144 = vst [vmem:[#allocation40_spill] sm:$0xff] %v4815_v13  ;;  %v1102_v7 = vmul.f32 0.001953125, %v1010_v51  ;;  %v1449_v35 = vadd.f32 %v1307_v29, %v1306_v16  ;;  %v1309_v45 = vmul.f32 %v4815_v13, %v4815_v13  ;;  %v6151_v16 = vld [vmem:[#allocation45_spill] sm:$0xff]  ;;  %v6155_v13 = vld [vmem:[#allocation44_spill] sm:$0xff] }
 0x26b   : > { %v1015_v38 = vpop.xlane.xlu1 %1014  ;;  %v1445_v42 = vadd.f32 %v1444_v58, %v1304_v14 }
 0x26c   : > { %v4830_v3 = vsub.f32 %v6145_v48, %v1102_v7  ;;  %v4833_v27 = vsub.f32 %v6147_v43, %v1102_v7  ;;  %v1103_v60 = vmul.f32 0.001953125, %v1015_v38  ;;  %v1450_v21 = vadd.f32 %v1449_v35, %v1308_v6  ;;  %v6157_v35 = vld [vmem:[#allocation46_spill] sm:$0xff]  ;;  %v6159_v38 = vld [vmem:[#allocation48_spill] sm:$0xff] }
 0x26d   : > { %v1446_v51 = vadd.f32 %v1445_v42, %v1305_v15  ;;  %v4836_v10 = vsub.f32 %v6149_v36, %v1102_v7  ;;  %v4847_v43 = vsub.f32 %v6155_v13, %v1102_v7 }
 0x26e   : > { %6146 = vst [vmem:[#allocation41_spill] sm:$0xff] %v4830_v3  ;;  %6148 = vst [vmem:[#allocation43_spill] sm:$0xff] %v4833_v27  ;;  %v4839_v29 = vsub.f32 %v6151_v16, %v1103_v60  ;;  %v4842_v14 = vsub.f32 %v6153_v62, %v1103_v60  ;;  %v1451_v58 = vadd.f32 %v1450_v21, %v1309_v45 }
 0x26f   : > { %6150 = vst [vmem:[#allocation42_spill] sm:$0xff] %v4836_v10  ;;  %v1310_v48 = vmul.f32 %v4830_v3, %v4830_v3  ;;  %1447 = vadd.xlane.f32.xlu0 %v1446_v51  ;;  %6156 = vst [vmem:[#allocation44_spill] sm:$0xff] %v4847_v43  ;;  %v1311_v6 = vmul.f32 %v4833_v27, %v4833_v27  ;;  %v4852_v36 = vsub.f32 %v6157_v35, %v1103_v60 }
 0x270   : > { %6152 = vst [vmem:[#allocation45_spill] sm:$0xff] %v4839_v29  ;;  %6154 = vst [vmem:[#allocation47_spill] sm:$0xff] %v4842_v14  ;;  %1452 = vadd.xlane.f32.xlu1 %v1451_v58  ;;  %v4855_v15 = vsub.f32 %v6159_v38, %v1103_v60  ;;  %v1314_v62 = vmul.f32 %v4839_v29, %v4839_v29  ;;  %v1315_v42 = vmul.f32 %v4842_v14, %v4842_v14  ;;  %v6161_v29 = vld [vmem:[#allocation49_spill] sm:$0xff]  ;;  %v6163_v14 = vld [vmem:[#allocation51_spill] sm:$0xff] }
 0x271   : > { %6158 = vst [vmem:[#allocation46_spill] sm:$0xff] %v4852_v36  ;;  %v1020_v45 = vpop.xlane.xlu0 %1019  ;;  %v1312_v13 = vmul.f32 %v4836_v10, %v4836_v10  ;;  %v1454_v7 = vadd.f32 %v1311_v6, %v1310_v48  ;;  %v1316_v51 = vmul.f32 %v4852_v36, %v4852_v36  ;;  %v1313_v60 = vmul.f32 %v4847_v43, %v4847_v43  ;;  %v6165_v10 = vld [vmem:[#allocation50_spill] sm:$0xff]  ;;  %v6169_v43 = vld [vmem:[#allocation55_spill] sm:$0xff] }
 0x272   : > { %6160 = vst [vmem:[#allocation48_spill] sm:$0xff] %v4855_v15  ;;  %v1104_v21 = vmul.f32 0.001953125, %v1020_v45  ;;  %v1459_v16 = vadd.f32 %v1315_v42, %v1314_v62  ;;  %v1317_v38 = vmul.f32 %v4855_v15, %v4855_v15  ;;  %v6167_v62 = vld [vmem:[#allocation53_spill] sm:$0xff]  ;;  %v6171_v15 = vld [vmem:[#allocation52_spill] sm:$0xff] }
 0x273   : > { %v1025_v58 = vpop.xlane.xlu1 %1024  ;;  %v1455_v35 = vadd.f32 %v1454_v7, %v1312_v13 }
 0x274   : > { %v4870_v3 = vsub.f32 %v6161_v29, %v1104_v21  ;;  %v4873_v27 = vsub.f32 %v6163_v14, %v1104_v21  ;;  %v1105_v48 = vmul.f32 0.001953125, %v1025_v58  ;;  %v1460_v6 = vadd.f32 %v1459_v16, %v1316_v51  ;;  %v6173_v16 = vld [vmem:[#allocation54_spill] sm:$0xff]  ;;  %v6175_v58 = vld [vmem:[#allocation56_spill] sm:$0xff] }
 0x275   : > { %v1456_v45 = vadd.f32 %v1455_v35, %v1313_v60  ;;  %v4876_v36 = vsub.f32 %v6165_v10, %v1104_v21  ;;  %v4887_v14 = vsub.f32 %v6171_v15, %v1104_v21 }
 0x276   : > { %6162 = vst [vmem:[#allocation49_spill] sm:$0xff] %v4870_v3  ;;  %6164 = vst [vmem:[#allocation51_spill] sm:$0xff] %v4873_v27  ;;  %v4879_v42 = vsub.f32 %v6167_v62, %v1105_v48  ;;  %v4882_v13 = vsub.f32 %v6169_v43, %v1105_v48  ;;  %v1461_v7 = vadd.f32 %v1460_v6, %v1317_v38 }
 0x277   : > { %6166 = vst [vmem:[#allocation50_spill] sm:$0xff] %v4876_v36  ;;  %v1318_v29 = vmul.f32 %v4870_v3, %v4870_v3  ;;  %1457 = vadd.xlane.f32.xlu0 %v1456_v45  ;;  %6172 = vst [vmem:[#allocation52_spill] sm:$0xff] %v4887_v14  ;;  %v1319_v51 = vmul.f32 %v4873_v27, %v4873_v27  ;;  %v4892_v10 = vsub.f32 %v6173_v16, %v1105_v48 }
 0x278   : > { %6168 = vst [vmem:[#allocation53_spill] sm:$0xff] %v4879_v42  ;;  %6170 = vst [vmem:[#allocation55_spill] sm:$0xff] %v4882_v13  ;;  %1462 = vadd.xlane.f32.xlu1 %v1461_v7  ;;  %v4895_v60 = vsub.f32 %v6175_v58, %v1105_v48  ;;  %v1322_v43 = vmul.f32 %v4879_v42, %v4879_v42  ;;  %v1323_v35 = vmul.f32 %v4882_v13, %v4882_v13  ;;  %v6177_v42 = vld [vmem:[#allocation57_spill] sm:$0xff]  ;;  %v6179_v13 = vld [vmem:[#allocation59_spill] sm:$0xff] }
 0x279   : > { %6174 = vst [vmem:[#allocation54_spill] sm:$0xff] %v4892_v10  ;;  %v1030_v38 = vpop.xlane.xlu0 %1029  ;;  %v1320_v15 = vmul.f32 %v4876_v36, %v4876_v36  ;;  %v1464_v21 = vadd.f32 %v1319_v51, %v1318_v29  ;;  %v1324_v45 = vmul.f32 %v4892_v10, %v4892_v10  ;;  %v1321_v48 = vmul.f32 %v4887_v14, %v4887_v14  ;;  %v6181_v36 = vld [vmem:[#allocation58_spill] sm:$0xff]  ;;  %v6185_v14 = vld [vmem:[#allocation63_spill] sm:$0xff] }
 0x27a   : > { %6176 = vst [vmem:[#allocation56_spill] sm:$0xff] %v4895_v60  ;;  %v1106_v6 = vmul.f32 0.001953125, %v1030_v38  ;;  %v1469_v62 = vadd.f32 %v1323_v35, %v1322_v43  ;;  %v1325_v58 = vmul.f32 %v4895_v60, %v4895_v60  ;;  %v6183_v43 = vld [vmem:[#allocation61_spill] sm:$0xff]  ;;  %v6187_v60 = vld [vmem:[#allocation60_spill] sm:$0xff] }
 0x27b   : > { %v1035_v7 = vpop.xlane.xlu1 %1034  ;;  %v1465_v16 = vadd.f32 %v1464_v21, %v1320_v15 }
 0x27c   : > { %v4910_v3 = vsub.f32 %v6177_v42, %v1106_v6  ;;  %v4913_v27 = vsub.f32 %v6179_v13, %v1106_v6  ;;  %v1107_v29 = vmul.f32 0.001953125, %v1035_v7  ;;  %v1470_v51 = vadd.f32 %v1469_v62, %v1324_v45  ;;  %v6189_v62 = vld [vmem:[#allocation62_spill] sm:$0xff]  ;;  %v6191_v7 = vld [vmem:[#allocation64_spill] sm:$0xff] }
 0x27d   : > { %v1466_v38 = vadd.f32 %v1465_v16, %v1321_v48  ;;  %v4916_v10 = vsub.f32 %v6181_v36, %v1106_v6  ;;  %v4927_v13 = vsub.f32 %v6187_v60, %v1106_v6 }
 0x27e   : > { %6178 = vst [vmem:[#allocation57_spill] sm:$0xff] %v4910_v3  ;;  %6180 = vst [vmem:[#allocation59_spill] sm:$0xff] %v4913_v27  ;;  %v4919_v35 = vsub.f32 %v6183_v43, %v1107_v29  ;;  %v4922_v15 = vsub.f32 %v6185_v14, %v1107_v29  ;;  %v1471_v21 = vadd.f32 %v1470_v51, %v1325_v58 }
 0x27f   : > { %6182 = vst [vmem:[#allocation58_spill] sm:$0xff] %v4916_v10  ;;  %v1326_v42 = vmul.f32 %v4910_v3, %v4910_v3  ;;  %1467 = vadd.xlane.f32.xlu0 %v1466_v38  ;;  %6188 = vst [vmem:[#allocation60_spill] sm:$0xff] %v4927_v13  ;;  %v1327_v45 = vmul.f32 %v4913_v27, %v4913_v27  ;;  %v4932_v36 = vsub.f32 %v6189_v62, %v1107_v29 }
 0x280   : > { %6184 = vst [vmem:[#allocation61_spill] sm:$0xff] %v4919_v35  ;;  %6186 = vst [vmem:[#allocation63_spill] sm:$0xff] %v4922_v15  ;;  %1472 = vadd.xlane.f32.xlu1 %v1471_v21  ;;  %v4935_v48 = vsub.f32 %v6191_v7, %v1107_v29  ;;  %v1330_v14 = vmul.f32 %v4919_v35, %v4919_v35  ;;  %v1331_v16 = vmul.f32 %v4922_v15, %v4922_v15  ;;  %v1760_v35 = vlaneseq }
 0x281   : > { %6190 = vst [vmem:[#allocation62_spill] sm:$0xff] %v4932_v36  ;;  %v1328_v60 = vmul.f32 %v4916_v10, %v4916_v10  ;;  %v1474_v6 = vadd.f32 %v1327_v45, %v1326_v42  ;;  %v1332_v58 = vmul.f32 %v4932_v36, %v4932_v36  ;;  %v1329_v38 = vmul.f32 %v4927_v13, %v4927_v13  ;;  %v1758_v45 = vld [vmem:[#allocation7] sm:$0xf] }
 0x282   : > { %6192 = vst [vmem:[#allocation64_spill] sm:$0xff] %v4935_v48  ;;  %v1479_v51 = vadd.f32 %v1331_v16, %v1330_v14  ;;  %v1333_v29 = vmul.f32 %v4935_v48, %v4935_v48  ;;  %v1761_v3 = vshrl.u32 %v1760_v35, 7  ;;  %v1908_v14 = vld [vmem:[#allocation8] sm:$0xf]  ;;  %v6193_v35 = vld [vmem:[#allocation65_spill] sm:$0xff] }
 0x283   : > { %v1475_v43 = vadd.f32 %v1474_v6, %v1328_v60 }
 0x284   : > { %v1480_v21 = vadd.f32 %v1479_v51, %v1332_v58  ;;  %v1766_v15 = vsub.s32 1, %v1761_v3  ;;  %v1774_v16 = vsub.s32 3, %v1761_v3  ;;  %v1762_v60 = vsub.s32 0, %v1761_v3 }
 0x285   : > { %v1476_v62 = vadd.f32 %v1475_v43, %v1329_v38  ;;  %v1770_v38 = vsub.s32 2, %v1761_v3 }
 0x286   : > { %v1481_v7 = vadd.f32 %v1480_v21, %v1333_v29  ;;  %v4949_v58 = vrot.slane %v1758_v45, %v1766_v15  ;;  %v4951_v51 = vrot.slane %v1908_v14, %v1766_v15  ;;  %v4967_v15 = vrot.slane %v1908_v14, %v1774_v16 }
 0x287   : > { %1477 = vadd.xlane.f32.xlu0 %v1476_v62  ;;  %v4959_v62 = vrot.slane %v1758_v45, %v1774_v16  ;;  %v4969_v3 = vrot.slane %v1758_v45, %v1762_v60  ;;  %v4975_v33 = vrot.slane %v1908_v14, %v1762_v60  ;;  %v4979_v26 = vrot.slane %v1908_v14, %v1770_v38  ;;  %v6201_v16 = vld [vmem:[#allocation69_spill] sm:$0xff]  ;;  %v6207_v14 = vld [vmem:[#allocation72_spill] sm:$0xff] }
 0x288   : > { %1482 = vadd.xlane.f32.xlu1 %v1481_v7 }
 0x2c3   : > { %v1378_v10 = vpop.xlane.xlu0 %1377 }
 0x2c4   : > { %v1534_v42 = vmul.f32 0.001953125, %v1378_v10  ;;  %v6195_v10 = vld [vmem:[#allocation67_spill] sm:$0xff] }
 0x2c6   : > { %v1566_v36 = vadd.f32 1e-05, %v1534_v42 }
 0x2c7   : > { %v1383_v27 = vpop.xlane.xlu1 %1382  ;;  %v1040_v13 = vpop.xlane.xlu0 %1039 }
 0x2c8   : > { %3473 = vrsqrt.f32 %v1566_v36  ;;  %v1535_v6 = vmul.f32 0.001953125, %v1383_v27  ;;  %v1108_v48 = vmul.f32 0.001953125, %v1040_v13  ;;  %v6199_v27 = vld [vmem:[#allocation68_spill] sm:$0xff] }
 0x2ca   : > { %v1567_v43 = vadd.f32 1e-05, %v1535_v6  ;;  %v4954_v29 = vsub.f32 %v6193_v35, %v1108_v48  ;;  %v4957_v21 = vsub.f32 %v6195_v10, %v1108_v48  ;;  %v4962_v36 = vsub.f32 %v6197_v2, %v1108_v48 }
 0x2cb   : > { %v1388_v7 = vpop.xlane.xlu0 %1387  ;;  %v1045_v42 = vpop.xlane.xlu1 %1044  ;;  %v4965_v13 = vsub.f32 %v6199_v27, %v1108_v48  ;;  %v4977_v2 = vrot.slane %v1758_v45, %v1770_v38 }
 0x2cc   : > { %6194 = vst [vmem:[#allocation65_spill] sm:$0xff] %v4954_v29  ;;  %6196 = vst [vmem:[#allocation67_spill] sm:$0xff] %v4957_v21  ;;  %3475 = vrsqrt.f32 %v1567_v43  ;;  %v1536_v6 = vmul.f32 0.001953125, %v1388_v7  ;;  %v1109_v35 = vmul.f32 0.001953125, %v1045_v42  ;;  %v1334_v10 = vmul.f32 %v4954_v29, %v4954_v29  ;;  %v6205_v7 = vld [vmem:[#allocation70_spill] sm:$0xff] }
 0x2cd   : > { %6198 = vst [vmem:[#allocation66_spill] sm:$0xff] %v4962_v36  ;;  %6200 = vst [vmem:[#allocation68_spill] sm:$0xff] %v4965_v13  ;;  %v1335_v12 = vmul.f32 %v4957_v21, %v4957_v21  ;;  %v1336_v21 = vmul.f32 %v4962_v36, %v4962_v36  ;;  %v1337_v45 = vmul.f32 %v4965_v13, %v4965_v13  ;;  %v6213_v13 = vld [vmem:[#allocation74_spill] sm:$0xff] }
 0x2ce   : > { %v1568_v48 = vadd.f32 1e-05, %v1536_v6  ;;  %v4982_v27 = vsub.f32 %v6201_v16, %v1109_v35  ;;  %v4985_v43 = vsub.f32 %v6203_v17, %v1109_v35  ;;  %v4988_v42 = vsub.f32 %v6205_v7, %v1109_v35 }
 0x2cf   : > { %v1050_v29 = vpop.xlane.xlu0 %1049  ;;  %v1484_v60 = vadd.f32 %v1335_v12, %v1334_v10  ;;  %v4995_v38 = vsub.f32 %v6207_v14, %v1109_v35  ;;  %v6209_v35 = vld [vmem:[#allocation73_spill] sm:$0xff] }
 0x2d0   : > { %6202 = vst [vmem:[#allocation69_spill] sm:$0xff] %v4982_v27  ;;  %6204 = vst [vmem:[#allocation71_spill] sm:$0xff] %v4985_v43  ;;  %3477 = vrsqrt.f32 %v1568_v48  ;;  %v1393_v6 = vpop.xlane.xlu1 %1392  ;;  %v1110_v16 = vmul.f32 0.001953125, %v1050_v29  ;;  %v1338_v17 = vmul.f32 %v4982_v27, %v4982_v27  ;;  %v1339_v7 = vmul.f32 %v4985_v43, %v4985_v43  ;;  %v6211_v29 = vld [vmem:[#allocation75_spill] sm:$0xff] }
 0x2d1   : > { %6206 = vst [vmem:[#allocation70_spill] sm:$0xff] %v4988_v42  ;;  %6208 = vst [vmem:[#allocation72_spill] sm:$0xff] %v4995_v38  ;;  %v1537_v4 = vmul.f32 0.001953125, %v1393_v6  ;;  %v1485_v61 = vadd.f32 %v1484_v60, %v1336_v21  ;;  %v1340_v36 = vmul.f32 %v4988_v42, %v4988_v42  ;;  %v1341_v12 = vmul.f32 %v4995_v38, %v4995_v38  ;;  %v6215_v60 = vld [vmem:[#allocation76_spill] sm:$0xff] }
 0x2d2   : > { %v5005_v10 = vpop.eup %3473  ;;  %v5008_v48 = vsub.f32 %v6209_v35, %v1110_v16  ;;  %v5011_v14 = vsub.f32 %v6211_v29, %v1110_v16  ;;  %v1489_v27 = vadd.f32 %v1339_v7, %v1338_v17  ;;  %v5014_v0 = vsub.f32 %v6213_v13, %v1110_v16 }
 0x2d3   : > { %v1569_v6 = vadd.f32 1e-05, %v1537_v4  ;;  %v1486_v21 = vadd.f32 %v1485_v61, %v1337_v45  ;;  %v5017_v43 = vsub.f32 %v6215_v60, %v1110_v16  ;;  %v1631_v42 = vmul.f32 %v5005_v10, %v4503_v32  ;;  %v6217_v60 = vld [vmem:[#allocation77_spill] sm:$0xff] }
 0x2d4   : > { %6210 = vst [vmem:[#allocation73_spill] sm:$0xff] %v5008_v48  ;;  %6212 = vst [vmem:[#allocation75_spill] sm:$0xff] %v5011_v14  ;;  %v1398_v38 = vpop.xlane.xlu0 %1397  ;;  %v1055_v9 = vpop.xlane.xlu1 %1054  ;;  %v1490_v8 = vadd.f32 %v1489_v27, %v1340_v36  ;;  %v1342_v35 = vmul.f32 %v5008_v48, %v5008_v48  ;;  %v1343_v17 = vmul.f32 %v5011_v14, %v5011_v14 }
 0x2d5   : > { %6214 = vst [vmem:[#allocation74_spill] sm:$0xff] %v5014_v0  ;;  %6216 = vst [vmem:[#allocation76_spill] sm:$0xff] %v5017_v43  ;;  %v1344_v13 = vmul.f32 %v5014_v0, %v5014_v0  ;;  %3479 = vrsqrt.f32 %v1569_v6  ;;  %v1538_v61 = vmul.f32 0.001953125, %v1398_v38  ;;  %v1111_v4 = vmul.f32 0.001953125, %v1055_v9  ;;  %1487 = vadd.xlane.f32.xlu0 %v1486_v21  ;;  %v6219_v6 = vld [vmem:[#allocation79_spill] sm:$0xff]  ;;  %v6221_v9 = vld [vmem:[#allocation78_spill] sm:$0xff] }
 0x2d6   : > { %v1345_v45 = vmul.f32 %v5017_v43, %v5017_v43  ;;  %v5029_v32 = vpop.eup %3475  ;;  %v1491_v16 = vadd.f32 %v1490_v8, %v1341_v12  ;;  %v1494_v36 = vadd.f32 %v1343_v17, %v1342_v35  ;;  %v1781_v27 = vmul.f32 %v4949_v58, %v1631_v42  ;;  %v6223_v12 = vld [vmem:[#allocation80_spill] sm:$0xff] }
 0x2d7   : > { %v1633_v7 = vmul.f32 %v5005_v10, %v4509_v41  ;;  %v1570_v29 = vadd.f32 1e-05, %v1538_v61  ;;  %v5035_v48 = vsub.f32 %v6217_v60, %v1111_v4  ;;  %v5038_v38 = vsub.f32 %v6219_v6, %v1111_v4 }
 0x2d8   : > { %v5041_v21 = vsub.f32 %v6221_v9, %v1111_v4  ;;  %v1403_v0 = vpop.xlane.xlu1 %1402  ;;  %v1060_v43 = vpop.xlane.xlu0 %1059  ;;  %1492 = vadd.xlane.f32.xlu1 %v1491_v16  ;;  %v1495_v8 = vadd.f32 %v1494_v36, %v1344_v13  ;;  %v5044_v35 = vsub.f32 %v6223_v12, %v1111_v4  ;;  %v1635_v41 = vmul.f32 %v5029_v32, %v4521_v19  ;;  %v6227_v36 = vld [vmem:[#allocation83_spill] sm:$0xff] }
 0x2d9   : > { %6218 = vst [vmem:[#allocation77_spill] sm:$0xff] %v5035_v48  ;;  %6220 = vst [vmem:[#allocation79_spill] sm:$0xff] %v5038_v38  ;;  %v1931_v42 = vadd.f32 %v4951_v51, %v1781_v27  ;;  %3481 = vrsqrt.f32 %v1570_v29  ;;  %v1539_v17 = vmul.f32 0.001953125, %v1403_v0  ;;  %v5049_v61 = vmul.f32 0.001953125, %v1060_v43  ;;  %v6225_v0 = vld [vmem:[#allocation81_spill] sm:$0xff] }
 0x2da   : > { %6222 = vst [vmem:[#allocation78_spill] sm:$0xff] %v5041_v21  ;;  %6224 = vst [vmem:[#allocation80_spill] sm:$0xff] %v5044_v35  ;;  %v1346_v60 = vmul.f32 %v5035_v48, %v5035_v48  ;;  %v5053_v6 = vpop.eup %3477  ;;  %v1496_v9 = vadd.f32 %v1495_v8, %v1345_v45  ;;  %v1347_v13 = vmul.f32 %v5038_v38, %v5038_v38 }
 0x2db   : > { %v1348_v4 = vmul.f32 %v5041_v21, %v5041_v21  ;;  %v1349_v19 = vmul.f32 %v5044_v35, %v5044_v35  ;;  %v1571_v16 = vadd.f32 1e-05, %v1539_v17  ;;  %v5063_v43 = vsub.f32 %v6225_v0, %v5049_v61 }
 0x2dc   : > { %v5067_v27 = vsub.f32 %v6227_v36, %v5049_v61  ;;  %v1785_v45 = vmul.f32 %v4949_v58, %v1635_v41  ;;  %v1408_v29 = vpop.xlane.xlu0 %1407  ;;  %v1065_v8 = vpop.xlane.xlu1 %1064  ;;  %1497 = vadd.xlane.f32.xlu0 %v1496_v9  ;;  %v1499_v12 = vadd.f32 %v1347_v13, %v1346_v60  ;;  %v2059_v48 = vmax.f32 %v1931_v42, 0.0  ;;  %v6231_v13 = vld [vmem:[#allocation87_spill] sm:$0xff] }
 0x2dd   : > { %6226 = vst [vmem:[#allocation81_spill] sm:$0xff] %v5063_v43  ;;  %v1637_v21 = vmul.f32 %v5029_v32, %v4529_v46  ;;  %v1783_v17 = vmul.f32 %v4959_v62, %v1633_v7  ;;  %3483 = vrsqrt.f32 %v1571_v16  ;;  %v1540_v35 = vmul.f32 0.001953125, %v1408_v29  ;;  %v6229_v46 = vld [vmem:[#allocation85_spill] sm:$0xff] }
 0x2de   : > { %6228 = vst [vmem:[#allocation83_spill] sm:$0xff] %v5067_v27  ;;  %v5073_v0 = vmul.f32 0.001953125, %v1065_v8  ;;  %v1935_v38 = vadd.f32 %v4951_v51, %v1785_v45  ;;  %v1500_v36 = vadd.f32 %v1499_v12, %v1348_v4  ;;  %v1630_v60 = vmul.f32 %v5005_v10, %v4500_v55 }
 0x2df   : > { %v1787_v14 = vmul.f32 %v4959_v62, %v1637_v21  ;;  %v1933_v41 = vadd.f32 %v4967_v15, %v1783_v17  ;;  %v5080_v42 = vpop.eup %3479  ;;  %v1572_v9 = vadd.f32 1e-05, %v1540_v35  ;;  %v1634_v55 = vmul.f32 %v5029_v32, %v4518_v20 }
 0x2e0   : > { %v5084_v7 = vsub.f32 %v6229_v46, %v5073_v0  ;;  %v5088_v16 = vsub.f32 %v6231_v13, %v5073_v0  ;;  %v2063_v45 = vmax.f32 %v1935_v38, 0.0  ;;  %v1413_v4 = vpop.xlane.xlu1 %1412  ;;  %v1070_v29 = vpop.xlane.xlu0 %1069  ;;  %v1501_v21 = vadd.f32 %v1500_v36, %v1349_v19 }
 0x2e1   : > { %v1937_v8 = vadd.f32 %v4967_v15, %v1787_v14  ;;  %v2061_v12 = vmax.f32 %v1933_v41, 0.0  ;;  %3485 = vrsqrt.f32 %v1572_v9  ;;  %v1541_v35 = vmul.f32 0.001953125, %v1413_v4  ;;  %v6232_v41 = vld [vmem:[#allocation89_spill] sm:$0xff]  ;;  %v6233_v9 = vld [vmem:[#allocation91_spill] sm:$0xff] }
 0x2e2   : > { %6230 = vst [vmem:[#allocation85_spill] sm:$0xff] %v5084_v7  ;;  %v5093_v17 = vmul.f32 0.001953125, %v1070_v29  ;;  %v2187_v46 = vpack.c.bf16 %v2063_v45, %v2059_v48  ;;  %1502 = vadd.xlane.f32.xlu1 %v1501_v21  ;;  %v1780_v13 = vmul.f32 %v4969_v3, %v1630_v60  ;;  %v1784_v38 = vmul.f32 %v4969_v3, %v1634_v55  ;;  %v6234_v48 = vld [vmem:[#allocation105_spill] sm:$0xff] }
 0x2e3   : > { %v2065_v59 = vmax.f32 %v1937_v8, 0.0  ;;  %v1632_v19 = vmul.f32 %v5005_v10, %v4506_v5  ;;  %v5099_v36 = vpop.eup %3481  ;;  %v1573_v14 = vadd.f32 1e-05, %v1541_v35  ;;  %v1636_v60 = vmul.f32 %v5029_v32, %v6234_v48 }
 0x2e4   : > { %v5103_v20 = vsub.f32 %v6232_v41, %v5093_v17  ;;  %v5107_v4 = vsub.f32 %v6233_v9, %v5093_v17  ;;  %2538 = vmatprep.mubr.bf16.mxu0 %v2187_v46  ;;  %v1930_v29 = vadd.f32 %v4975_v33, %v1780_v13  ;;  %v1934_v5 = vadd.f32 %v4975_v33, %v1784_v38  ;;  %v1418_v21 = vpop.xlane.xlu0 %1417  ;;  %v1075_v8 = vpop.xlane.xlu1 %1074 }
 0x2e5   : > { %v2189_v45 = vpack.c.bf16 %v2065_v59, %v2061_v12  ;;  %v1782_v10 = vmul.f32 %v4977_v2, %v1632_v19  ;;  %3487 = vrsqrt.f32 %v1573_v14  ;;  %v1786_v55 = vmul.f32 %v4977_v2, %v1636_v60  ;;  %v6235_v59 = vld [vmem:[#allocation82_spill] sm:$0xff]  ;;  %v6237_v14 = vld [vmem:[#allocation93_spill] sm:$0xff]  ;;  %v6238_v60 = vld [vmem:[#allocation95_spill] sm:$0xff] }
 0x2e6   : > { %v1542_v35 = vmul.f32 0.001953125, %v1418_v21  ;;  %v5115_v41 = vmul.f32 0.001953125, %v1075_v8  ;;  %v2058_v46 = vmax.f32 %v1930_v29, 0.0  ;;  %v2062_v9 = vmax.f32 %v1934_v5, 0.0 }
 0x2e7   : > { %2699 = vmatprep.mubr.bf16.mxu1 %v2189_v45  ;;  %v1932_v32 = vadd.f32 %v4979_v26, %v1782_v10  ;;  %v5120_v12 = vsub.f32 %v6235_v59, %v5049_v61  ;;  %v5122_v13 = vpop.eup %3483  ;;  %v1936_v38 = vadd.f32 %v4979_v26, %v1786_v55  ;;  %v6239_v10 = vld [vmem:[#allocation84_spill] sm:$0xff]  ;;  %v1350_v8 = vmul.f32 %v5063_v43, %v5063_v43 }
 0x2e8   : > { %v1574_v19 = vadd.f32 1e-05, %v1542_v35  ;;  %v5127_v48 = vsub.f32 %v6237_v14, %v5115_v41  ;;  %v5131_v45 = vsub.f32 %v6238_v60, %v5115_v41  ;;  %v2186_v29 = vpack.c.bf16 %v2062_v9, %v2058_v46  ;;  %v1423_v59 = vpop.xlane.xlu1 %1422  ;;  %v1080_v55 = vpop.xlane.xlu0 %1079 }
 0x2e9   : > { %6236 = vst [vmem:[#allocation87_spill] sm:$0xff] %v5120_v12  ;;  %v2060_v5 = vmax.f32 %v1932_v32, 0.0  ;;  %v5135_v21 = vsub.f32 %v6239_v10, %v5049_v61  ;;  %v2064_v35 = vmax.f32 %v1936_v38, 0.0  ;;  %v1351_v14 = vmul.f32 %v5067_v27, %v5067_v27  ;;  %v6241_v32 = vld [vmem:[#allocation86_spill] sm:$0xff]  ;;  %v6243_v27 = vld [vmem:[#allocation88_spill] sm:$0xff] }
 0x2ea   : > { %3489 = vrsqrt.f32 %v1574_v19  ;;  %v1352_v60 = vmul.f32 %v5120_v12, %v5120_v12  ;;  %2539 = vmatmul.mubr.bf16.vlgmr.msra.gmra.mrb[64].mxu0 %v2186_v29  ;;  %v1543_v9 = vmul.f32 0.001953125, %v1423_v59  ;;  %v5145_v61 = vmul.f32 0.001953125, %v1080_v55  ;;  %v6245_v59 = vld [vmem:[#allocation97_spill] sm:$0xff] }
 0x2eb   : > { %6240 = vst [vmem:[#allocation89_spill] sm:$0xff] %v5135_v21  ;;  %v1353_v46 = vmul.f32 %v5135_v21, %v5135_v21  ;;  %v5149_v10 = vsub.f32 %v6241_v32, %v5073_v0  ;;  %v5151_v43 = vpop.eup %3485  ;;  %v2188_v38 = vpack.c.bf16 %v2064_v35, %v2060_v5  ;;  %v1504_v19 = vadd.f32 %v1351_v14, %v1350_v8  ;;  %v6246_v21 = vld [vmem:[#allocation99_spill] sm:$0xff] }
 0x2ec   : > { %v5155_v1 = vsub.f32 %v6243_v27, %v5073_v0  ;;  %v1354_v29 = vmul.f32 %v5084_v7, %v5084_v7  ;;  %v1575_v12 = vadd.f32 1e-05, %v1543_v9  ;;  %v5161_v55 = vsub.f32 %v6245_v59, %v5145_v61 }
 0x2ed   : > { %6242 = vst [vmem:[#allocation91_spill] sm:$0xff] %v5149_v10  ;;  %v5165_v32 = vsub.f32 %v6246_v21, %v5145_v61  ;;  %v1355_v5 = vmul.f32 %v5088_v16, %v5088_v16  ;;  %2700 = vmatmul.mubr.bf16.vlgmr.msra.gmra.mrb[64].mxu1 %v2188_v38  ;;  %v1505_v8 = vadd.f32 %v1504_v19, %v1352_v60 }
 0x2ee   : > { %6244 = vst [vmem:[#allocation105_spill] sm:$0xff] %v5155_v1  ;;  %v1356_v27 = vmul.f32 %v5149_v10, %v5149_v10  ;;  %v1357_v0 = vmul.f32 %v5155_v1, %v5155_v1  ;;  %v1639_v35 = vmul.f32 %v5053_v6, %v4541_v54  ;;  %3491 = vrsqrt.f32 %v1575_v12 }
 0x2ef   : > { %v1509_v14 = vadd.f32 %v1355_v5, %v1354_v29  ;;  %v1643_v21 = vmul.f32 %v5080_v42, %v4561_v30  ;;  %v1641_v9 = vmul.f32 %v5053_v6, %v4549_v22  ;;  %v5179_v59 = vpop.eup %3487  ;;  %v1506_v60 = vadd.f32 %v1505_v8, %v1353_v46  ;;  %v1085_v8 = vpop.xlane.xlu1 %1084 }
 0x2f0   : > { %v1789_v38 = vmul.f32 %v4949_v58, %v1639_v35  ;;  %v1645_v19 = vmul.f32 %v5080_v42, %v4574_v40  ;;  %v1638_v10 = vmul.f32 %v5053_v6, %v4538_v24  ;;  %v1642_v30 = vmul.f32 %v5080_v42, %v4558_v49 }
 0x2f1   : > { %v1510_v54 = vadd.f32 %v1509_v14, %v1356_v27  ;;  %v1793_v12 = vmul.f32 %v4949_v58, %v1643_v21  ;;  %v1791_v29 = vmul.f32 %v4959_v62, %v1641_v9  ;;  %1507 = vadd.xlane.f32.xlu0 %v1506_v60  ;;  %v1640_v40 = vmul.f32 %v5053_v6, %v4546_v18  ;;  %v1428_v21 = vpop.xlane.xlu0 %1427 }
 0x2f2   : > { %v1939_v22 = vadd.f32 %v4951_v51, %v1789_v38  ;;  %v1795_v46 = vmul.f32 %v4959_v62, %v1645_v19  ;;  %v1788_v5 = vmul.f32 %v4969_v3, %v1638_v10  ;;  %v1792_v14 = vmul.f32 %v4969_v3, %v1642_v30 }
 0x2f3   : > { %v1511_v24 = vadd.f32 %v1510_v54, %v1357_v0  ;;  %v1943_v27 = vadd.f32 %v4951_v51, %v1793_v12  ;;  %v1941_v35 = vadd.f32 %v4967_v15, %v1791_v29  ;;  %v1644_v10 = vmul.f32 %v5080_v42, %v4566_v25 }
 0x2f4   : > { %v5198_v49 = vpop.eup %3489  ;;  %v2067_v9 = vmax.f32 %v1939_v22, 0.0  ;;  %v1945_v60 = vadd.f32 %v4967_v15, %v1795_v46  ;;  %v1938_v38 = vadd.f32 %v4975_v33, %v1788_v5  ;;  %v1942_v0 = vadd.f32 %v4975_v33, %v1792_v14 }
 0x2f5   : > { %1512 = vadd.xlane.f32.xlu1 %v1511_v24  ;;  %v2071_v18 = vmax.f32 %v1943_v27, 0.0  ;;  %v2069_v6 = vmax.f32 %v1941_v35, 0.0  ;;  %v1790_v19 = vmul.f32 %v4977_v2, %v1640_v40  ;;  %v1794_v29 = vmul.f32 %v4977_v2, %v1644_v10  ;;  %v6247_v24 = vld [vmem:[#allocation90_spill] sm:$0xff]  ;;  %v1433_v40 = vpop.xlane.xlu1 %1432 }
 0x2f6   : > { %v2073_v54 = vmax.f32 %v1945_v60, 0.0  ;;  %v2066_v12 = vmax.f32 %v1938_v38, 0.0  ;;  %v1544_v30 = vmul.f32 0.001953125, %v1428_v21  ;;  %v2070_v7 = vmax.f32 %v1942_v0, 0.0 }
 0x2f7   : > { %v2191_v22 = vpack.c.bf16 %v2071_v18, %v2067_v9  ;;  %v1940_v46 = vadd.f32 %v4979_v26, %v1790_v19  ;;  %v5208_v5 = vmul.f32 0.001953125, %v1085_v8  ;;  %v1944_v25 = vadd.f32 %v4979_v26, %v1794_v29  ;;  %v6248_v9 = vld [vmem:[#allocation101_spill] sm:$0xff]  ;;  %v6249_v8 = vld [vmem:[#allocation103_spill] sm:$0xff]  ;;  %v6250_v18 = vld [vmem:[#allocation92_spill] sm:$0xff] }
 0x2f8   : > { %v2193_v1 = vpack.c.bf16 %v2073_v54, %v2069_v6  ;;  %v1576_v42 = vadd.f32 1e-05, %v1544_v30  ;;  %v5213_v27 = vsub.f32 %v6247_v24, %v5093_v17  ;;  %v5215_v35 = vpop.eup %3491  ;;  %v2190_v14 = vpack.c.bf16 %v2070_v7, %v2066_v12  ;;  %v6251_v12 = vld [vmem:[#allocation94_spill] sm:$0xff]  ;;  %v6252_v30 = vld [vmem:[#allocation96_spill] sm:$0xff] }
 0x2f9   : > { %2546 = vmatprep.mubr.bf16.mxu0 %v2191_v22  ;;  %v2068_v21 = vmax.f32 %v1940_v46, 0.0  ;;  %v5219_v60 = vsub.f32 %v6248_v9, %v5208_v5  ;;  %v5223_v38 = vsub.f32 %v6249_v8, %v5208_v5  ;;  %v2072_v10 = vmax.f32 %v1944_v25, 0.0 }
 0x2fa   : > { %2707 = vmatprep.mubr.bf16.mxu1 %v2193_v1  ;;  %3493 = vrsqrt.f32 %v1576_v42  ;;  %v5227_v6 = vsub.f32 %v6250_v18, %v5093_v17  ;;  %v1358_v0 = vmul.f32 %v5103_v20, %v5103_v20  ;;  %2547 = vmatmul.mubr.bf16.gmra.mrb[68].mxu0 %v2190_v14  ;;  %v1359_v7 = vmul.f32 %v5107_v4, %v5107_v4 }
 0x2fb   : > { %v1360_v19 = vmul.f32 %v5213_v27, %v5213_v27  ;;  %v1545_v54 = vmul.f32 0.001953125, %v1433_v40  ;;  %v5237_v1 = vsub.f32 %v6251_v12, %v5115_v41  ;;  %v2192_v29 = vpack.c.bf16 %v2072_v10, %v2068_v21 }
 0x2fc   : > { %v1361_v17 = vmul.f32 %v5227_v6, %v5227_v6  ;;  %v5243_v22 = vsub.f32 %v6252_v30, %v5115_v41  ;;  %v1362_v46 = vmul.f32 %v5127_v48, %v5127_v48  ;;  %v1514_v25 = vadd.f32 %v1359_v7, %v1358_v0 }
 0x2fd   : > { %v1577_v42 = vadd.f32 1e-05, %v1545_v54  ;;  %v1363_v24 = vmul.f32 %v5131_v45, %v5131_v45  ;;  %v1364_v40 = vmul.f32 %v5237_v1, %v5237_v1  ;;  %2708 = vmatmul.mubr.bf16.gmra.mrb[68].mxu1 %v2192_v29  ;;  %v1647_v21 = vmul.f32 %v5099_v36, %v4580_v37 }
 0x2fe   : > { %v1365_v14 = vmul.f32 %v5243_v22, %v5243_v22  ;;  %v1651_v41 = vmul.f32 %v5122_v13, %v4591_v39  ;;  %v1649_v9 = vmul.f32 %v5099_v36, %v4599_v23  ;;  %v1515_v8 = vadd.f32 %v1514_v25, %v1360_v19 }
 0x2ff   : > { %3495 = vrsqrt.f32 %v1577_v42  ;;  %v1519_v10 = vadd.f32 %v1363_v24, %v1362_v46  ;;  %v1653_v18 = vmul.f32 %v5122_v13, %v4616_v63  ;;  %v1797_v0 = vmul.f32 %v4949_v58, %v1647_v21  ;;  %v1438_v24 = vpop.xlane.xlu0 %1437 }
 0x300   : > { %v1801_v7 = vmul.f32 %v4949_v58, %v1651_v41  ;;  %v1799_v54 = vmul.f32 %v4959_v62, %v1649_v9  ;;  %v1646_v37 = vmul.f32 %v5099_v36, %v4577_v57  ;;  %v1516_v12 = vadd.f32 %v1515_v8, %v1361_v17 }
 0x301   : > { %v1520_v39 = vadd.f32 %v1519_v10, %v1364_v40  ;;  %v1803_v29 = vmul.f32 %v4959_v62, %v1653_v18  ;;  %v1650_v23 = vmul.f32 %v5122_v13, %v4588_v56  ;;  %v1947_v19 = vadd.f32 %v4951_v51, %v1797_v0 }
 0x302   : > { %v1951_v63 = vadd.f32 %v4951_v51, %v1801_v7  ;;  %v1949_v30 = vadd.f32 %v4967_v15, %v1799_v54  ;;  %v1796_v46 = vmul.f32 %v4969_v3, %v1646_v37  ;;  %1517 = vadd.xlane.f32.xlu0 %v1516_v12  ;;  %v1648_v17 = vmul.f32 %v5099_v36, %v4585_v34  ;;  %v6253_v36 = vld [vmem:[#allocation98_spill] sm:$0xff] }
 0x303   : > { %v1521_v25 = vadd.f32 %v1520_v39, %v1365_v14  ;;  %v1953_v42 = vadd.f32 %v4967_v15, %v1803_v29  ;;  %v1800_v57 = vmul.f32 %v4969_v3, %v1650_v23  ;;  %v2075_v56 = vmax.f32 %v1947_v19, 0.0  ;;  %v1443_v23 = vpop.xlane.xlu1 %1442 }
 0x304   : > { %v5277_v40 = vpop.eup %3493  ;;  %v2079_v21 = vmax.f32 %v1951_v63, 0.0  ;;  %v2077_v41 = vmax.f32 %v1949_v30, 0.0  ;;  %v1946_v9 = vadd.f32 %v4975_v33, %v1796_v46  ;;  %v1652_v14 = vmul.f32 %v5122_v13, %v4604_v50  ;;  %v6254_v50 = vld [vmem:[#allocation100_spill] sm:$0xff] }
 0x305   : > { %1522 = vadd.xlane.f32.xlu1 %v1521_v25  ;;  %v2081_v8 = vmax.f32 %v1953_v42, 0.0  ;;  %v1950_v10 = vadd.f32 %v4975_v33, %v1800_v57  ;;  %v1798_v18 = vmul.f32 %v4977_v2, %v1648_v17  ;;  %v1546_v34 = vmul.f32 0.001953125, %v1438_v24 }
 0x306   : > { %v2195_v0 = vpack.c.bf16 %v2079_v21, %v2075_v56  ;;  %v2074_v7 = vmax.f32 %v1946_v9, 0.0  ;;  %v5286_v54 = vsub.f32 %v6253_v36, %v5145_v61  ;;  %v1802_v39 = vmul.f32 %v4977_v2, %v1652_v14 }
 0x307   : > { %v2197_v37 = vpack.c.bf16 %v2081_v8, %v2077_v41  ;;  %v2078_v12 = vmax.f32 %v1950_v10, 0.0  ;;  %v1948_v29 = vadd.f32 %v4979_v26, %v1798_v18  ;;  %v1578_v19 = vadd.f32 1e-05, %v1546_v34  ;;  %v6255_v41 = vld [vmem:[#allocation102_spill] sm:$0xff]  ;;  %v6256_v8 = vld [vmem:[#allocation104_spill] sm:$0xff] }
 0x308   : > { %2554 = vmatprep.mubr.bf16.mxu0 %v2195_v0  ;;  %v5292_v13 = vsub.f32 %v6254_v50, %v5145_v61  ;;  %v1366_v63 = vmul.f32 %v5161_v55, %v5161_v55  ;;  %v1367_v30 = vmul.f32 %v5165_v32, %v5165_v32  ;;  %v1952_v42 = vadd.f32 %v4979_v26, %v1802_v39 }
 0x309   : > { %v5298_v46 = vpop.eup %3495  ;;  %2715 = vmatprep.mubr.bf16.mxu1 %v2197_v37  ;;  %v2194_v25 = vpack.c.bf16 %v2078_v12, %v2074_v7  ;;  %v2076_v57 = vmax.f32 %v1948_v29, 0.0  ;;  %v1368_v17 = vmul.f32 %v5286_v54, %v5286_v54  ;;  %3497 = vrsqrt.f32 %v1578_v19 }
 0x30a   : > { %v1369_v61 = vmul.f32 %v5292_v13, %v5292_v13  ;;  %v1524_v24 = vadd.f32 %v1367_v30, %v1366_v63  ;;  %v1547_v56 = vmul.f32 0.001953125, %v1443_v23  ;;  %v2080_v21 = vmax.f32 %v1952_v42, 0.0 }
 0x30b   : > { %2555 = vmatmul.mubr.bf16.gmra.mrb[72].mxu0 %v2194_v25  ;;  %v5307_v9 = vsub.f32 %v6255_v41, %v5208_v5  ;;  %v5311_v10 = vsub.f32 %v6256_v8, %v5208_v5  ;;  %v1370_v14 = vmul.f32 %v5219_v60, %v5219_v60  ;;  %v1371_v7 = vmul.f32 %v5223_v38, %v5223_v38 }
 0x30c   : > { %v1525_v18 = vadd.f32 %v1524_v24, %v1368_v17  ;;  %v1579_v0 = vadd.f32 1e-05, %v1547_v56  ;;  %v1655_v34 = vmul.f32 %v5151_v43, %v4624_v44  ;;  %v2196_v36 = vpack.c.bf16 %v2080_v21, %v2076_v57  ;;  %v6257_v21 = vld [vmem:[#allocation106_spill] sm:$0xff] }
 0x30d   : > { %v1372_v37 = vmul.f32 %v5307_v9, %v5307_v9  ;;  %v1373_v12 = vmul.f32 %v5311_v10, %v5311_v10  ;;  %v1659_v5 = vmul.f32 %v5179_v59, %v4633_v53  ;;  %v1529_v29 = vadd.f32 %v1371_v7, %v1370_v14 }
 0x30e   : > { %v1526_v39 = vadd.f32 %v1525_v18, %v1369_v61  ;;  %3499 = vrsqrt.f32 %v1579_v0  ;;  %v1805_v23 = vmul.f32 %v4949_v58, %v1655_v34  ;;  %2716 = vmatmul.mubr.bf16.gmra.mrb[72].mxu1 %v2196_v36  ;;  %v1657_v44 = vmul.f32 %v5151_v43, %v4636_v31  ;;  %v1448_v61 = vpop.xlane.xlu0 %1447  ;;  %v1453_v36 = vpop.xlane.xlu1 %1452 }
 0x30f   : > { %v1809_v19 = vmul.f32 %v4949_v58, %v1659_v5  ;;  %v1661_v50 = vmul.f32 %v5179_v59, %v4658_v11  ;;  %v1654_v63 = vmul.f32 %v5151_v43, %v4621_v47  ;;  %v1530_v30 = vadd.f32 %v1529_v29, %v1372_v37 }
 0x310   : > { %1527 = vadd.xlane.f32.xlu0 %v1526_v39  ;;  %v1955_v53 = vadd.f32 %v4951_v51, %v1805_v23  ;;  %v1658_v25 = vmul.f32 %v5179_v59, %v4630_v28  ;;  %v1656_v42 = vmul.f32 %v5151_v43, %v4627_v52  ;;  %v1807_v31 = vmul.f32 %v4959_v62, %v1657_v44 }
 0x311   : > { %v1959_v57 = vadd.f32 %v4951_v51, %v1809_v19  ;;  %v1811_v17 = vmul.f32 %v4959_v62, %v1661_v50  ;;  %v1804_v11 = vmul.f32 %v4969_v3, %v1654_v63  ;;  %v1531_v47 = vadd.f32 %v1530_v30, %v1373_v12  ;;  %v6258_v63 = vld [vmem:[#allocation108_spill] sm:$0xff] }
 0x312   : > { %v2083_v24 = vmax.f32 %v1955_v53, 0.0  ;;  %v1808_v56 = vmul.f32 %v4969_v3, %v1658_v25  ;;  %v1660_v41 = vmul.f32 %v5179_v59, %v6257_v21  ;;  %v1957_v8 = vadd.f32 %v4967_v15, %v1807_v31  ;;  %v6259_v53 = vld [vmem:[#allocation111_spill] sm:$0xff] }
 0x313   : > { %v2087_v28 = vmax.f32 %v1959_v57, 0.0  ;;  %v1961_v52 = vadd.f32 %v4967_v15, %v1811_v17  ;;  %v1954_v43 = vadd.f32 %v4975_v33, %v1804_v11  ;;  %v5348_v14 = vpop.eup %3497  ;;  %1532 = vadd.xlane.f32.xlu1 %v1531_v47  ;;  %v1806_v0 = vmul.f32 %v4977_v2, %v1656_v42 }
 0x314   : > { %v1958_v18 = vadd.f32 %v4975_v33, %v1808_v56  ;;  %v1810_v7 = vmul.f32 %v4977_v2, %v1660_v41  ;;  %v1548_v34 = vmul.f32 0.001953125, %v1448_v61  ;;  %v2085_v59 = vmax.f32 %v1957_v8, 0.0  ;;  %v6261_v41 = vld [vmem:[#allocation16_spill] sm:$0xff]  ;;  %v6262_v8 = vld [vmem:[#allocation107_spill] sm:$0xff] }
 0x315   : > { %v2199_v37 = vpack.c.bf16 %v2087_v28, %v2083_v24  ;;  %v2089_v12 = vmax.f32 %v1961_v52, 0.0  ;;  %v2082_v5 = vmax.f32 %v1954_v43, 0.0  ;;  %v1956_v29 = vadd.f32 %v4979_v26, %v1806_v0  ;;  %v6260_v24 = vld [vmem:[#allocation112_spill] sm:$0xff]  ;;  %v6263_v43 = vld [vmem:[#allocation110_spill] sm:$0xff] }
 0x316   : > { %v2086_v39 = vmax.f32 %v1958_v18, 0.0  ;;  %v1960_v23 = vadd.f32 %v4979_v26, %v1810_v7  ;;  %v1580_v19 = vadd.f32 1e-05, %v1548_v34  ;;  %v1549_v50 = vmul.f32 0.001953125, %v1453_v36 }
 0x317   : > { %2562 = vmatprep.mubr.bf16.mxu0 %v2199_v37  ;;  %v2201_v44 = vpack.c.bf16 %v2089_v12, %v2085_v59  ;;  %v1663_v30 = vmul.f32 %v5198_v49, %v6258_v63  ;;  %v1667_v25 = vmul.f32 %v5215_v35, %v6259_v53  ;;  %v2084_v31 = vmax.f32 %v1956_v29, 0.0  ;;  %v6264_v12 = vld [vmem:[#allocation109_spill] sm:$0xff] }
 0x318   : > { %v5359_v42 = vpop.eup %3499  ;;  %v2198_v57 = vpack.c.bf16 %v2086_v39, %v2082_v5  ;;  %v2088_v17 = vmax.f32 %v1960_v23, 0.0  ;;  %3501 = vrsqrt.f32 %v1580_v19  ;;  %v1581_v11 = vadd.f32 1e-05, %v1549_v50  ;;  %v1458_v39 = vpop.xlane.xlu0 %1457 }
 0x319   : > { %2723 = vmatprep.mubr.bf16.mxu1 %v2201_v44  ;;  %v1813_v61 = vmul.f32 %v4949_v58, %v1663_v30  ;;  %v1817_v47 = vmul.f32 %v4949_v58, %v1667_v25  ;;  %v1665_v56 = vmul.f32 %v5198_v49, %v6260_v24  ;;  %v1669_v28 = vmul.f32 %v5215_v35, %v6261_v41  ;;  %v6265_v44 = vld [vmem:[#allocation113_spill] sm:$0xff] }
 0x31a   : > { %2563 = vmatmul.mubr.bf16.gmra.mrb[76].mxu0 %v2198_v57  ;;  %v2200_v21 = vpack.c.bf16 %v2088_v17, %v2084_v31  ;;  %v1662_v52 = vmul.f32 %v5198_v49, %v6262_v8  ;;  %v1666_v18 = vmul.f32 %v5215_v35, %v6263_v43  ;;  %3503 = vrsqrt.f32 %v1581_v11  ;;  %v1463_v57 = vpop.xlane.xlu1 %1462 }
 0x31b   : > { %v1963_v0 = vadd.f32 %v4951_v51, %v1813_v61  ;;  %v1967_v7 = vadd.f32 %v4951_v51, %v1817_v47  ;;  %v1815_v34 = vmul.f32 %v4959_v62, %v1665_v56  ;;  %v1819_v36 = vmul.f32 %v4959_v62, %v1669_v28  ;;  %v6266_v28 = vld [vmem:[#allocation19_spill] sm:$0xff] }
 0x31c   : > { %2724 = vmatmul.mubr.bf16.gmra.mrb[76].mxu1 %v2200_v21  ;;  %v1812_v37 = vmul.f32 %v4969_v3, %v1662_v52  ;;  %v1816_v59 = vmul.f32 %v4969_v3, %v1666_v18  ;;  %v1664_v5 = vmul.f32 %v5198_v49, %v6264_v12  ;;  %v1668_v50 = vmul.f32 %v5215_v35, %v6265_v44  ;;  %v1468_v52 = vpop.xlane.xlu0 %1467 }
 0x31d   : > { %v2091_v29 = vmax.f32 %v1963_v0, 0.0  ;;  %v2095_v23 = vmax.f32 %v1967_v7, 0.0  ;;  %v1965_v19 = vadd.f32 %v4967_v15, %v1815_v34  ;;  %v1969_v63 = vadd.f32 %v4967_v15, %v1819_v36  ;;  %v6267_v34 = vld [vmem:[#allocation23_spill] sm:$0xff] }
 0x31e   : > { %v1962_v30 = vadd.f32 %v4975_v33, %v1812_v37  ;;  %v1966_v53 = vadd.f32 %v4975_v33, %v1816_v59  ;;  %v1814_v25 = vmul.f32 %v4977_v2, %v1664_v5  ;;  %v1818_v49 = vmul.f32 %v4977_v2, %v1668_v50 }
 0x31f   : > { %v2203_v31 = vpack.c.bf16 %v2095_v23, %v2091_v29  ;;  %v2093_v17 = vmax.f32 %v1965_v19, 0.0  ;;  %v1550_v11 = vmul.f32 0.001953125, %v1458_v39  ;;  %v2097_v61 = vmax.f32 %v1969_v63, 0.0  ;;  %v6268_v39 = vld [vmem:[#allocation20_spill] sm:$0xff] }
 0x320   : > { %v2090_v47 = vmax.f32 %v1962_v30, 0.0  ;;  %v2094_v24 = vmax.f32 %v1966_v53, 0.0  ;;  %v1964_v56 = vadd.f32 %v4979_v26, %v1814_v25  ;;  %v1968_v35 = vadd.f32 %v4979_v26, %v1818_v49  ;;  %v6269_v23 = vld [vmem:[#allocation24_spill] sm:$0xff]  ;;  %v6270_v53 = vld [vmem:[#allocation17_spill] sm:$0xff] }
 0x321   : > { %2570 = vmatprep.mubr.bf16.mxu0 %v2203_v31  ;;  %v1582_v21 = vadd.f32 1e-05, %v1550_v11  ;;  %v1551_v41 = vmul.f32 0.001953125, %v1463_v57  ;;  %v1671_v8 = vmul.f32 %v5277_v40, %v6266_v28  ;;  %v2205_v18 = vpack.c.bf16 %v2097_v61, %v2093_v17  ;;  %v6271_v49 = vld [vmem:[#allocation21_spill] sm:$0xff] }
 0x322   : > { %v5391_v43 = vpop.eup %3501  ;;  %v2202_v0 = vpack.c.bf16 %v2094_v24, %v2090_v47  ;;  %v2092_v7 = vmax.f32 %v1964_v56, 0.0  ;;  %v1675_v36 = vmul.f32 %v5298_v46, %v6267_v34  ;;  %v2096_v37 = vmax.f32 %v1968_v35, 0.0  ;;  %v6272_v24 = vld [vmem:[#allocation18_spill] sm:$0xff] }
 0x323   : > { %3505 = vrsqrt.f32 %v1582_v21  ;;  %v1583_v59 = vadd.f32 1e-05, %v1551_v41  ;;  %v1821_v12 = vmul.f32 %v4949_v58, %v1671_v8  ;;  %2731 = vmatprep.mubr.bf16.mxu1 %v2205_v18  ;;  %v1673_v29 = vmul.f32 %v5277_v40, %v6268_v39  ;;  %v6273_v35 = vld [vmem:[#allocation22_spill] sm:$0xff] }
 0x324   : > { %2571 = vmatmul.mubr.bf16.gmra.mrb[80].mxu0 %v2202_v0  ;;  %v1825_v5 = vmul.f32 %v4949_v58, %v1675_v36  ;;  %v1677_v19 = vmul.f32 %v5298_v46, %v6269_v23  ;;  %v1552_v44 = vmul.f32 0.001953125, %v1468_v52  ;;  %v5401_v50 = vpop.eup %3503  ;;  %v2204_v63 = vpack.c.bf16 %v2096_v37, %v2092_v7  ;;  %v1473_v36 = vpop.xlane.xlu1 %1472 }
 0x325   : > { %3507 = vrsqrt.f32 %v1583_v59  ;;  %v1971_v30 = vadd.f32 %v4951_v51, %v1821_v12  ;;  %v1670_v25 = vmul.f32 %v5277_v40, %v6270_v53  ;;  %v1823_v31 = vmul.f32 %v4959_v62, %v1673_v29 }
 0x326   : > { %v1975_v57 = vadd.f32 %v4951_v51, %v1825_v5  ;;  %v1827_v17 = vmul.f32 %v4959_v62, %v1677_v19  ;;  %v1674_v11 = vmul.f32 %v5298_v46, %v6271_v49  ;;  %2732 = vmatmul.mubr.bf16.gmra.mrb[80].mxu1 %v2204_v63  ;;  %v1672_v56 = vmul.f32 %v5277_v40, %v6272_v24  ;;  %v6274_v63 = vld [vmem:[#allocation27_spill] sm:$0xff]  ;;  %v6277_v24 = vld [vmem:[#allocation32_spill] sm:$0xff] }
 0x327   : > { %v2099_v61 = vmax.f32 %v1971_v30, 0.0  ;;  %v1820_v47 = vmul.f32 %v4969_v3, %v1670_v25  ;;  %v1676_v21 = vmul.f32 %v5298_v46, %v6273_v35  ;;  %v1973_v28 = vadd.f32 %v4967_v15, %v1823_v31 }
 0x328   : > { %v2103_v41 = vmax.f32 %v1975_v57, 0.0  ;;  %v1977_v8 = vadd.f32 %v4967_v15, %v1827_v17  ;;  %v1824_v52 = vmul.f32 %v4969_v3, %v1674_v11  ;;  %v1822_v0 = vmul.f32 %v4977_v2, %v1672_v56  ;;  %v6275_v57 = vld [vmem:[#allocation31_spill] sm:$0xff]  ;;  %v6276_v17 = vld [vmem:[#allocation28_spill] sm:$0xff] }
 0x329   : > { %v1970_v18 = vadd.f32 %v4975_v33, %v1820_v47  ;;  %v1826_v7 = vmul.f32 %v4977_v2, %v1676_v21  ;;  %v1584_v34 = vadd.f32 1e-05, %v1552_v44  ;;  %v2101_v40 = vmax.f32 %v1973_v28, 0.0 }
 0x32a   : > { %v2207_v37 = vpack.c.bf16 %v2103_v41, %v2099_v61  ;;  %v2105_v59 = vmax.f32 %v1977_v8, 0.0  ;;  %v1974_v46 = vadd.f32 %v4975_v33, %v1824_v52  ;;  %v1972_v5 = vadd.f32 %v4979_v26, %v1822_v0  ;;  %v6278_v8 = vld [vmem:[#allocation25_spill] sm:$0xff] }
 0x32b   : > { %v2098_v12 = vmax.f32 %v1970_v18, 0.0  ;;  %v1976_v39 = vadd.f32 %v4979_v26, %v1826_v7  ;;  %3509 = vrsqrt.f32 %v1584_v34  ;;  %v1553_v19 = vmul.f32 0.001953125, %v1473_v36  ;;  %v6279_v7 = vld [vmem:[#allocation29_spill] sm:$0xff] }
 0x32c   : > { %2578 = vmatprep.mubr.bf16.mxu0 %v2207_v37  ;;  %v2209_v29 = vpack.c.bf16 %v2105_v59, %v2101_v40  ;;  %v2102_v23 = vmax.f32 %v1974_v46, 0.0  ;;  %v1679_v30 = vmul.f32 %v5348_v14, %v6274_v63  ;;  %v2100_v53 = vmax.f32 %v1972_v5, 0.0  ;;  %v6280_v59 = vld [vmem:[#allocation26_spill] sm:$0xff]  ;;  %v1483_v63 = vpop.xlane.xlu1 %1482 }
 0x32d   : > { %v5427_v44 = vpop.eup %3505  ;;  %v2104_v25 = vmax.f32 %v1976_v39, 0.0  ;;  %v1683_v31 = vmul.f32 %v5359_v42, %v6275_v57  ;;  %v1681_v49 = vmul.f32 %v5348_v14, %v6276_v17  ;;  %v1585_v61 = vadd.f32 1e-05, %v1553_v19 }
 0x32e   : > { %2739 = vmatprep.mubr.bf16.mxu1 %v2209_v29  ;;  %v2206_v11 = vpack.c.bf16 %v2102_v23, %v2098_v12  ;;  %v1829_v47 = vmul.f32 %v4949_v58, %v1679_v30  ;;  %v1685_v56 = vmul.f32 %v5359_v42, %v6277_v24  ;;  %v1678_v52 = vmul.f32 %v5348_v14, %v6278_v8  ;;  %v1478_v12 = vpop.xlane.xlu0 %1477  ;;  %v6281_v23 = vld [vmem:[#allocation30_spill] sm:$0xff] }
 0x32f   : > { %v5436_v35 = vpop.eup %3507  ;;  %v2208_v21 = vpack.c.bf16 %v2104_v25, %v2100_v53  ;;  %v1833_v41 = vmul.f32 %v4949_v58, %v1683_v31  ;;  %v1831_v28 = vmul.f32 %v4959_v62, %v1681_v49  ;;  %3511 = vrsqrt.f32 %v1585_v61 }
 0x330   : > { %2579 = vmatmul.mubr.bf16.gmra.mrb[84].mxu0 %v2206_v11  ;;  %v1979_v18 = vadd.f32 %v4951_v51, %v1829_v47  ;;  %v1835_v0 = vmul.f32 %v4959_v62, %v1685_v56  ;;  %v1682_v34 = vmul.f32 %v5359_v42, %v6279_v7  ;;  %v1828_v40 = vmul.f32 %v4969_v3, %v1678_v52  ;;  %v6283_v7 = vld [vmem:[#allocation39_spill] sm:$0xff] }
 0x331   : > { %2740 = vmatmul.mubr.bf16.gmra.mrb[84].mxu1 %v2208_v21  ;;  %v1983_v36 = vadd.f32 %v4951_v51, %v1833_v41  ;;  %v1981_v37 = vadd.f32 %v4967_v15, %v1831_v28  ;;  %v1680_v46 = vmul.f32 %v5348_v14, %v6280_v59  ;;  %v1684_v19 = vmul.f32 %v5359_v42, %v6281_v23 }
 0x332   : > { %v2107_v5 = vmax.f32 %v1979_v18, 0.0  ;;  %v1985_v39 = vadd.f32 %v4967_v15, %v1835_v0  ;;  %v1832_v29 = vmul.f32 %v4969_v3, %v1682_v34  ;;  %v1978_v25 = vadd.f32 %v4975_v33, %v1828_v40  ;;  %v6282_v18 = vld [vmem:[#allocation35_spill] sm:$0xff]  ;;  %v6284_v40 = vld [vmem:[#allocation36_spill] sm:$0xff] }
 0x333   : > { %v2111_v30 = vmax.f32 %v1983_v36, 0.0  ;;  %v2109_v53 = vmax.f32 %v1981_v37, 0.0  ;;  %v1830_v57 = vmul.f32 %v4977_v2, %v1680_v46  ;;  %v1834_v14 = vmul.f32 %v4977_v2, %v1684_v19 }
 0x334   : > { %v2113_v31 = vmax.f32 %v1985_v39, 0.0  ;;  %v1982_v17 = vadd.f32 %v4975_v33, %v1832_v29  ;;  %v1554_v49 = vmul.f32 0.001953125, %v1478_v12  ;;  %v2106_v47 = vmax.f32 %v1978_v25, 0.0 }
 0x335   : > { %v5459_v11 = vpop.eup %3509  ;;  %v2211_v61 = vpack.c.bf16 %v2111_v30, %v2107_v5  ;;  %v1980_v24 = vadd.f32 %v4979_v26, %v1830_v57  ;;  %v1555_v42 = vmul.f32 0.001953125, %v1483_v63  ;;  %v1984_v41 = vadd.f32 %v4979_v26, %v1834_v14  ;;  %v6285_v5 = vld [vmem:[#allocation40_spill] sm:$0xff]  ;;  %v6286_v63 = vld [vmem:[#allocation33_spill] sm:$0xff]  ;;  %v6288_v14 = vld [vmem:[#allocation34_spill] sm:$0xff] }
 0x336   : > { %v2213_v56 = vpack.c.bf16 %v2113_v31, %v2109_v53  ;;  %v2110_v21 = vmax.f32 %v1982_v17, 0.0  ;;  %v1586_v28 = vadd.f32 1e-05, %v1554_v49  ;;  %v1687_v0 = vmul.f32 %v5391_v43, %v6282_v18  ;;  %v6287_v53 = vld [vmem:[#allocation37_spill] sm:$0xff] }
 0x337   : > { %2586 = vmatprep.mubr.bf16.mxu0 %v2211_v61  ;;  %v2108_v8 = vmax.f32 %v1980_v24, 0.0  ;;  %v1587_v52 = vadd.f32 1e-05, %v1555_v42  ;;  %v1691_v34 = vmul.f32 %v5401_v50, %v6283_v7  ;;  %v2112_v37 = vmax.f32 %v1984_v41, 0.0  ;;  %v6289_v42 = vld [vmem:[#allocation38_spill] sm:$0xff] }
 0x338   : > { %2747 = vmatprep.mubr.bf16.mxu1 %v2213_v56  ;;  %v2210_v36 = vpack.c.bf16 %v2110_v21, %v2106_v47  ;;  %3513 = vrsqrt.f32 %v1586_v28  ;;  %v1689_v59 = vmul.f32 %v5391_v43, %v6284_v40  ;;  %v1837_v46 = vmul.f32 %v4949_v58, %v1687_v0 }
 0x339   : > { %3515 = vrsqrt.f32 %v1587_v52  ;;  %v1841_v12 = vmul.f32 %v4949_v58, %v1691_v34  ;;  %v1693_v39 = vmul.f32 %v5401_v50, %v6285_v5  ;;  %v5473_v29 = vpop.eup %3511  ;;  %v2212_v23 = vpack.c.bf16 %v2112_v37, %v2108_v8  ;;  %v6290_v37 = vld [vmem:[#allocation43_spill] sm:$0xff] }
 0x33a   : > { %2587 = vmatmul.mubr.bf16.gmra.mrb[88].mxu0 %v2210_v36  ;;  %v1839_v19 = vmul.f32 %v4959_v62, %v1689_v59  ;;  %v1686_v30 = vmul.f32 %v5391_v43, %v6286_v63  ;;  %v1690_v25 = vmul.f32 %v5401_v50, %v6287_v53  ;;  %v1987_v57 = vadd.f32 %v4951_v51, %v1837_v46  ;;  %v6292_v63 = vld [vmem:[#allocation44_spill] sm:$0xff] }
 0x33b   : > { %v1991_v31 = vadd.f32 %v4951_v51, %v1841_v12  ;;  %v1843_v17 = vmul.f32 %v4959_v62, %v1693_v39  ;;  %v1688_v49 = vmul.f32 %v5391_v43, %v6288_v14  ;;  %2748 = vmatmul.mubr.bf16.gmra.mrb[88].mxu1 %v2212_v23  ;;  %v1692_v56 = vmul.f32 %v5401_v50, %v6289_v42  ;;  %v6291_v12 = vld [vmem:[#allocation47_spill] sm:$0xff] }
 0x33c   : > { %v1989_v61 = vadd.f32 %v4967_v15, %v1839_v19  ;;  %v1836_v47 = vmul.f32 %v4969_v3, %v1686_v30  ;;  %v1840_v24 = vmul.f32 %v4969_v3, %v1690_v25  ;;  %v2115_v21 = vmax.f32 %v1987_v57, 0.0 }
 0x33d   : > { %v2119_v41 = vmax.f32 %v1991_v31, 0.0  ;;  %v1993_v28 = vadd.f32 %v4967_v15, %v1843_v17  ;;  %v1838_v8 = vmul.f32 %v4977_v2, %v1688_v49  ;;  %v1842_v0 = vmul.f32 %v4977_v2, %v1692_v56  ;;  %v6293_v17 = vld [vmem:[#allocation48_spill] sm:$0xff]  ;;  %v6295_v56 = vld [vmem:[#allocation45_spill] sm:$0xff] }
 0x33e   : > { %v2117_v52 = vmax.f32 %v1989_v61, 0.0  ;;  %v1986_v18 = vadd.f32 %v4975_v33, %v1836_v47  ;;  %v1990_v43 = vadd.f32 %v4975_v33, %v1840_v24  ;;  %v1695_v50 = vmul.f32 %v5427_v44, %v6290_v37  ;;  %v6294_v24 = vld [vmem:[#allocation41_spill] sm:$0xff] }
 0x33f   : > { %v2215_v7 = vpack.c.bf16 %v2119_v41, %v2115_v21  ;;  %v2121_v34 = vmax.f32 %v1993_v28, 0.0  ;;  %v1988_v36 = vadd.f32 %v4979_v26, %v1838_v8  ;;  %v1992_v46 = vadd.f32 %v4979_v26, %v1842_v0 }
 0x340   : > { %v2114_v40 = vmax.f32 %v1986_v18, 0.0  ;;  %v2118_v59 = vmax.f32 %v1990_v43, 0.0  ;;  %v1699_v5 = vmul.f32 %v5436_v35, %v6291_v12  ;;  %v1845_v19 = vmul.f32 %v4949_v58, %v1695_v50  ;;  %v6297_v50 = vld [vmem:[#allocation46_spill] sm:$0xff] }
 0x341   : > { %2594 = vmatprep.mubr.bf16.mxu0 %v2215_v7  ;;  %v2217_v39 = vpack.c.bf16 %v2121_v34, %v2117_v52  ;;  %v2116_v23 = vmax.f32 %v1988_v36, 0.0  ;;  %v1697_v30 = vmul.f32 %v5427_v44, %v6292_v63  ;;  %v2120_v57 = vmax.f32 %v1992_v46, 0.0  ;;  %v6296_v52 = vld [vmem:[#allocation42_spill] sm:$0xff] }
 0x342   : > { %v5504_v53 = vpop.eup %3513  ;;  %v2214_v25 = vpack.c.bf16 %v2118_v59, %v2114_v40  ;;  %v1849_v31 = vmul.f32 %v4949_v58, %v1699_v5  ;;  %v1701_v14 = vmul.f32 %v5436_v35, %v6293_v17  ;;  %v1995_v61 = vadd.f32 %v4951_v51, %v1845_v19  ;;  %v6298_v5 = vld [vmem:[#allocation51_spill] sm:$0xff] }
 0x343   : > { %v5509_v49 = vpop.eup %3515  ;;  %2755 = vmatprep.mubr.bf16.mxu1 %v2217_v39  ;;  %v1847_v47 = vmul.f32 %v4959_v62, %v1697_v30  ;;  %v1694_v42 = vmul.f32 %v5427_v44, %v6294_v24  ;;  %v1698_v21 = vmul.f32 %v5436_v35, %v6295_v56  ;;  %v2216_v41 = vpack.c.bf16 %v2120_v57, %v2116_v23  ;;  %v6300_v24 = vld [vmem:[#allocation52_spill] sm:$0xff] }
 0x344   : > { %2595 = vmatmul.mubr.bf16.gmra.mrb[92].mxu0 %v2214_v25  ;;  %v1999_v28 = vadd.f32 %v4951_v51, %v1849_v31  ;;  %v1851_v8 = vmul.f32 %v4959_v62, %v1701_v14  ;;  %v1696_v18 = vmul.f32 %v5427_v44, %v6296_v52  ;;  %v2123_v43 = vmax.f32 %v1995_v61, 0.0  ;;  %v6299_v31 = vld [vmem:[#allocation55_spill] sm:$0xff] }
 0x345   : > { %v1997_v0 = vadd.f32 %v4967_v15, %v1847_v47  ;;  %v1844_v7 = vmul.f32 %v4969_v3, %v1694_v42  ;;  %v1848_v34 = vmul.f32 %v4969_v3, %v1698_v21  ;;  %2756 = vmatmul.mubr.bf16.gmra.mrb[92].mxu1 %v2216_v41  ;;  %v1700_v40 = vmul.f32 %v5436_v35, %v6297_v50 }
 0x346   : > { %v2127_v36 = vmax.f32 %v1999_v28, 0.0  ;;  %v2001_v37 = vadd.f32 %v4967_v15, %v1851_v8  ;;  %v1846_v59 = vmul.f32 %v4977_v2, %v1696_v18  ;;  %v1703_v39 = vmul.f32 %v5459_v11, %v6298_v5  ;;  %v6301_v28 = vld [vmem:[#allocation56_spill] sm:$0xff] }
 0x347   : > { %v2125_v46 = vmax.f32 %v1997_v0, 0.0  ;;  %v1994_v12 = vadd.f32 %v4975_v33, %v1844_v7  ;;  %v1998_v44 = vadd.f32 %v4975_v33, %v1848_v34  ;;  %v1850_v63 = vmul.f32 %v4977_v2, %v1700_v40  ;;  %v6303_v7 = vld [vmem:[#allocation53_spill] sm:$0xff]  ;;  %v6304_v40 = vld [vmem:[#allocation50_spill] sm:$0xff] }
 0x348   : > { %v2219_v23 = vpack.c.bf16 %v2127_v36, %v2123_v43  ;;  %v2129_v19 = vmax.f32 %v2001_v37, 0.0  ;;  %v1996_v30 = vadd.f32 %v4979_v26, %v1846_v59  ;;  %v1707_v35 = vmul.f32 %v5473_v29, %v6299_v31  ;;  %v6302_v43 = vld [vmem:[#allocation49_spill] sm:$0xff]  ;;  %v6306_v31 = vld [vmem:[#allocation59_spill] sm:$0xff] }
 0x349   : > { %v2122_v25 = vmax.f32 %v1994_v12, 0.0  ;;  %v2126_v57 = vmax.f32 %v1998_v44, 0.0  ;;  %v1853_v17 = vmul.f32 %v4949_v58, %v1703_v39  ;;  %v2000_v61 = vadd.f32 %v4979_v26, %v1850_v63 }
 0x34a   : > { %2602 = vmatprep.mubr.bf16.mxu0 %v2219_v23  ;;  %v2221_v14 = vpack.c.bf16 %v2129_v19, %v2125_v46  ;;  %v2124_v47 = vmax.f32 %v1996_v30, 0.0  ;;  %v1705_v42 = vmul.f32 %v5459_v11, %v6300_v24  ;;  %v1857_v21 = vmul.f32 %v4949_v58, %v1707_v35  ;;  %v6305_v19 = vld [vmem:[#allocation54_spill] sm:$0xff] }
 0x34b   : > { %v2218_v56 = vpack.c.bf16 %v2126_v57, %v2122_v25  ;;  %v2003_v41 = vadd.f32 %v4951_v51, %v1853_v17  ;;  %v1709_v8 = vmul.f32 %v5473_v29, %v6301_v28  ;;  %v2128_v52 = vmax.f32 %v2000_v61, 0.0 }
 0x34c   : > { %2763 = vmatprep.mubr.bf16.mxu1 %v2221_v14  ;;  %v1855_v18 = vmul.f32 %v4959_v62, %v1705_v42  ;;  %v1702_v0 = vmul.f32 %v5459_v11, %v6302_v43  ;;  %v1706_v34 = vmul.f32 %v5473_v29, %v6303_v7  ;;  %v2007_v36 = vadd.f32 %v4951_v51, %v1857_v21 }
 0x34d   : > { %2603 = vmatmul.mubr.bf16.gmra.mrb[96].mxu0 %v2218_v56  ;;  %v2131_v37 = vmax.f32 %v2003_v41, 0.0  ;;  %v1859_v50 = vmul.f32 %v4959_v62, %v1709_v8  ;;  %v1704_v59 = vmul.f32 %v5459_v11, %v6304_v40  ;;  %v2220_v46 = vpack.c.bf16 %v2128_v52, %v2124_v47  ;;  %v6308_v52 = vld [vmem:[#allocation60_spill] sm:$0xff]  ;;  %v6310_v40 = vld [vmem:[#allocation57_spill] sm:$0xff] }
 0x34e   : > { %v2005_v12 = vadd.f32 %v4967_v15, %v1855_v18  ;;  %v1852_v44 = vmul.f32 %v4969_v3, %v1702_v0  ;;  %v1856_v5 = vmul.f32 %v4969_v3, %v1706_v34  ;;  %v2135_v39 = vmax.f32 %v2007_v36, 0.0  ;;  %v6309_v34 = vld [vmem:[#allocation64_spill] sm:$0xff] }
 0x34f   : > { %v2009_v23 = vadd.f32 %v4967_v15, %v1859_v50  ;;  %v1708_v63 = vmul.f32 %v5473_v29, %v6305_v19  ;;  %v1854_v30 = vmul.f32 %v4977_v2, %v1704_v59  ;;  %2764 = vmatmul.mubr.bf16.gmra.mrb[96].mxu1 %v2220_v46  ;;  %v1711_v35 = vmul.f32 %v5504_v53, %v6306_v31  ;;  %v6307_v29 = vld [vmem:[#allocation63_spill] sm:$0xff]  ;;  %v6311_v46 = vld [vmem:[#allocation61_spill] sm:$0xff] }
 0x350   : > { %v2133_v25 = vmax.f32 %v2005_v12, 0.0  ;;  %v2002_v57 = vadd.f32 %v4975_v33, %v1852_v44  ;;  %v2006_v11 = vadd.f32 %v4975_v33, %v1856_v5  ;;  %v2223_v17 = vpack.c.bf16 %v2135_v39, %v2131_v37 }
 0x351   : > { %v2137_v14 = vmax.f32 %v2009_v23, 0.0  ;;  %v1858_v61 = vmul.f32 %v4977_v2, %v1708_v63  ;;  %v2004_v47 = vadd.f32 %v4979_v26, %v1854_v30  ;;  %v1715_v56 = vmul.f32 %v5509_v49, %v6307_v29  ;;  %v6312_v23 = vld [vmem:[#allocation58_spill] sm:$0xff] }
 0x352   : > { %v2130_v24 = vmax.f32 %v2002_v57, 0.0  ;;  %v2134_v42 = vmax.f32 %v2006_v11, 0.0  ;;  %v1861_v21 = vmul.f32 %v4949_v58, %v1711_v35  ;;  %2610 = vmatprep.mubr.bf16.mxu0 %v2223_v17  ;;  %v1713_v18 = vmul.f32 %v5504_v53, %v6308_v52  ;;  %v6313_v35 = vld [vmem:[#allocation62_spill] sm:$0xff] }
 0x353   : > { %v2225_v41 = vpack.c.bf16 %v2137_v14, %v2133_v25  ;;  %v2008_v28 = vadd.f32 %v4979_v26, %v1858_v61  ;;  %v2132_v8 = vmax.f32 %v2004_v47, 0.0  ;;  %v1865_v0 = vmul.f32 %v4949_v58, %v1715_v56 }
 0x354   : > { %v2222_v43 = vpack.c.bf16 %v2134_v42, %v2130_v24  ;;  %v2011_v7 = vadd.f32 %v4951_v51, %v1861_v21  ;;  %v1717_v36 = vmul.f32 %v5509_v49, %v6309_v34  ;;  %v1863_v50 = vmul.f32 %v4959_v62, %v1713_v18 }
 0x355   : > { %2771 = vmatprep.mubr.bf16.mxu1 %v2225_v41  ;;  %v2136_v37 = vmax.f32 %v2008_v28, 0.0  ;;  %v1710_v59 = vmul.f32 %v5504_v53, %v6310_v40  ;;  %v1714_v12 = vmul.f32 %v5509_v49, %v6311_v46  ;;  %v2015_v44 = vadd.f32 %v4951_v51, %v1865_v0 }
 0x356   : > { %2611 = vmatmul.mubr.bf16.gmra.mrb[100].mxu0 %v2222_v43  ;;  %v2139_v5 = vmax.f32 %v2011_v7, 0.0  ;;  %v1867_v39 = vmul.f32 %v4959_v62, %v1717_v36  ;;  %v1712_v19 = vmul.f32 %v5504_v53, %v6312_v23  ;;  %v2013_v30 = vadd.f32 %v4967_v15, %v1863_v50  ;;  %v6314_v23 = vld [vmem:[#allocation67_spill] sm:$0xff] }
 0x357   : > { %v2224_v63 = vpack.c.bf16 %v2136_v37, %v2132_v8  ;;  %v1860_v25 = vmul.f32 %v4969_v3, %v1710_v59  ;;  %v1864_v57 = vmul.f32 %v4969_v3, %v1714_v12  ;;  %v2143_v11 = vmax.f32 %v2015_v44, 0.0 }
 0x358   : > { %v2017_v31 = vadd.f32 %v4967_v15, %v1867_v39  ;;  %v1716_v17 = vmul.f32 %v5509_v49, %v6313_v35  ;;  %v1862_v14 = vmul.f32 %v4977_v2, %v1712_v19  ;;  %v2141_v61 = vmax.f32 %v2013_v30, 0.0 }
 0x359   : > { %2772 = vmatmul.mubr.bf16.gmra.mrb[100].mxu1 %v2224_v63  ;;  %v2010_v47 = vadd.f32 %v4975_v33, %v1860_v25  ;;  %v2014_v53 = vadd.f32 %v4975_v33, %v1864_v57  ;;  %v2227_v24 = vpack.c.bf16 %v2143_v11, %v2139_v5  ;;  %v6315_v63 = vld [vmem:[#allocation68_spill] sm:$0xff]  ;;  %v6316_v25 = vld [vmem:[#allocation65_spill] sm:$0xff]  ;;  %v6317_v11 = vld [vmem:[#allocation66_spill] sm:$0xff] }
 0x35a   : > { %v2145_v42 = vmax.f32 %v2017_v31, 0.0  ;;  %v1866_v29 = vmul.f32 %v4977_v2, %v1716_v17  ;;  %v2012_v56 = vadd.f32 %v4979_v26, %v1862_v14 }
 0x35b   : > { %v2138_v21 = vmax.f32 %v2010_v47, 0.0  ;;  %v2142_v41 = vmax.f32 %v2014_v53, 0.0  ;;  %2618 = vmatprep.mubr.bf16.mxu0 %v2227_v24  ;;  %v6318_v47 = vld [vmem:[#allocation71_spill] sm:$0xff]  ;;  %v6319_v24 = vld [vmem:[#allocation72_spill] sm:$0xff] }
 0x35c   : > { %v2229_v28 = vpack.c.bf16 %v2145_v42, %v2141_v61  ;;  %v2016_v49 = vadd.f32 %v4979_v26, %v1866_v29  ;;  %v2140_v52 = vmax.f32 %v2012_v56, 0.0  ;;  %v6320_v29 = vld [vmem:[#allocation69_spill] sm:$0xff] }
 0x35d   : > { %v2226_v8 = vpack.c.bf16 %v2142_v41, %v2138_v21  ;;  %v6321_v21 = vld [vmem:[#allocation70_spill] sm:$0xff] }
 0x35e   : > { %2779 = vmatprep.mubr.bf16.mxu1 %v2229_v28  ;;  %v2144_v18 = vmax.f32 %v2016_v49, 0.0 }
 0x35f   : > { %2619 = vmatmul.mubr.bf16.gmra.mrb[104].mxu0 %v2226_v8 }
 0x360   : > { %v2228_v43 = vpack.c.bf16 %v2144_v18, %v2140_v52 }
 0x362   : > { %2780 = vmatmul.mubr.bf16.gmra.mrb[104].mxu1 %v2228_v43  ;;  %v1488_v0 = vpop.xlane.xlu0 %1487 }
 0x363   : > { %v1556_v7 = vmul.f32 0.001953125, %v1488_v0 }
 0x365   : > { %v1588_v34 = vadd.f32 1e-05, %v1556_v7  ;;  %v1493_v36 = vpop.xlane.xlu1 %1492 }
 0x366   : > { %v1557_v37 = vmul.f32 0.001953125, %v1493_v36 }
 0x367   : > { %3517 = vrsqrt.f32 %v1588_v34 }
 0x368   : > { %v1589_v50 = vadd.f32 1e-05, %v1557_v37 }
 0x369   : > { %v1498_v40 = vpop.xlane.xlu0 %1497 }
 0x36a   : > { %3519 = vrsqrt.f32 %v1589_v50  ;;  %v1558_v59 = vmul.f32 0.001953125, %v1498_v40 }
 0x36c   : > { %v1590_v46 = vadd.f32 1e-05, %v1558_v59 }
 0x36e   : > { %3521 = vrsqrt.f32 %v1590_v46 }
 0x36f   : > { %v1503_v12 = vpop.xlane.xlu1 %1502 }
 0x370   : > { %v1559_v44 = vmul.f32 0.001953125, %v1503_v12 }
 0x371   : > { %v3518_v5 = vpop.eup %3517 }
 0x372   : > { %v1591_v39 = vadd.f32 1e-05, %v1559_v44  ;;  %v1719_v19 = vmul.f32 %v3518_v5, %v6314_v23  ;;  %v1721_v30 = vmul.f32 %v3518_v5, %v6315_v63  ;;  %v1718_v57 = vmul.f32 %v3518_v5, %v6316_v25 }
 0x373   : > { %v1720_v31 = vmul.f32 %v3518_v5, %v6317_v11 }
 0x374   : > { %v3520_v35 = vpop.eup %3519  ;;  %3523 = vrsqrt.f32 %v1591_v39  ;;  %v1869_v17 = vmul.f32 %v4949_v58, %v1719_v19  ;;  %v1871_v14 = vmul.f32 %v4959_v62, %v1721_v30  ;;  %v1868_v61 = vmul.f32 %v4969_v3, %v1718_v57  ;;  %v6322_v39 = vld [vmem:[#allocation75_spill] sm:$0xff]  ;;  %v6323_v19 = vld [vmem:[#allocation76_spill] sm:$0xff]  ;;  %v6324_v30 = vld [vmem:[#allocation73_spill] sm:$0xff] }
 0x375   : > { %v1723_v53 = vmul.f32 %v3520_v35, %v6318_v47  ;;  %v1725_v42 = vmul.f32 %v3520_v35, %v6319_v24  ;;  %v1722_v56 = vmul.f32 %v3520_v35, %v6320_v29  ;;  %v1724_v41 = vmul.f32 %v3520_v35, %v6321_v21  ;;  %v6325_v47 = vld [vmem:[#allocation74_spill] sm:$0xff] }
 0x376   : > { %v2019_v28 = vadd.f32 %v4951_v51, %v1869_v17  ;;  %v2021_v49 = vadd.f32 %v4967_v15, %v1871_v14  ;;  %v2018_v8 = vadd.f32 %v4975_v33, %v1868_v61  ;;  %v1870_v52 = vmul.f32 %v4977_v2, %v1720_v31 }
 0x377   : > { %v1873_v18 = vmul.f32 %v4949_v58, %v1723_v53  ;;  %v1875_v43 = vmul.f32 %v4959_v62, %v1725_v42  ;;  %v1872_v0 = vmul.f32 %v4969_v3, %v1722_v56  ;;  %v1874_v7 = vmul.f32 %v4977_v2, %v1724_v41 }
 0x378   : > { %v3522_v34 = vpop.eup %3521  ;;  %v2147_v36 = vmax.f32 %v2019_v28, 0.0  ;;  %v2149_v37 = vmax.f32 %v2021_v49, 0.0  ;;  %v2146_v50 = vmax.f32 %v2018_v8, 0.0  ;;  %v2020_v40 = vadd.f32 %v4979_v26, %v1870_v52  ;;  %v6326_v52 = vld [vmem:[#allocation79_spill] sm:$0xff] }
 0x379   : > { %v2023_v59 = vadd.f32 %v4951_v51, %v1873_v18  ;;  %v2025_v46 = vadd.f32 %v4967_v15, %v1875_v43  ;;  %v2022_v12 = vadd.f32 %v4975_v33, %v1872_v0  ;;  %v2024_v44 = vadd.f32 %v4979_v26, %v1874_v7  ;;  %v6327_v43 = vld [vmem:[#allocation80_spill] sm:$0xff]  ;;  %v6328_v7 = vld [vmem:[#allocation77_spill] sm:$0xff] }
 0x37a   : > { %v2148_v5 = vmax.f32 %v2020_v40, 0.0  ;;  %v1727_v23 = vmul.f32 %v3522_v34, %v6322_v39  ;;  %v1729_v63 = vmul.f32 %v3522_v34, %v6323_v19  ;;  %v1726_v25 = vmul.f32 %v3522_v34, %v6324_v30 }
 0x37b   : > { %v2151_v57 = vmax.f32 %v2023_v59, 0.0  ;;  %v2153_v11 = vmax.f32 %v2025_v46, 0.0  ;;  %v2150_v31 = vmax.f32 %v2022_v12, 0.0  ;;  %v2152_v35 = vmax.f32 %v2024_v44, 0.0 }
 0x37c   : > { %v1877_v17 = vmul.f32 %v4949_v58, %v1727_v23  ;;  %v1879_v14 = vmul.f32 %v4959_v62, %v1729_v63  ;;  %v1876_v61 = vmul.f32 %v4969_v3, %v1726_v25  ;;  %v1728_v53 = vmul.f32 %v3522_v34, %v6325_v47 }
 0x37d   : > { %v2231_v24 = vpack.c.bf16 %v2151_v57, %v2147_v36  ;;  %v2233_v42 = vpack.c.bf16 %v2153_v11, %v2149_v37  ;;  %v2230_v29 = vpack.c.bf16 %v2150_v31, %v2146_v50  ;;  %v2232_v56 = vpack.c.bf16 %v2152_v35, %v2148_v5  ;;  %v6329_v37 = vld [vmem:[#allocation78_spill] sm:$0xff] }
 0x37e   : > { %v3524_v21 = vpop.eup %3523  ;;  %v1508_v41 = vpop.xlane.xlu0 %1507  ;;  %v2027_v28 = vadd.f32 %v4951_v51, %v1877_v17  ;;  %v1878_v49 = vmul.f32 %v4977_v2, %v1728_v53  ;;  %v2029_v34 = vadd.f32 %v4967_v15, %v1879_v14  ;;  %v2026_v36 = vadd.f32 %v4975_v33, %v1876_v61 }
 0x37f   : > { %v1560_v8 = vmul.f32 0.001953125, %v1508_v41  ;;  %2626 = vmatprep.mubr.bf16.mxu0 %v2231_v24  ;;  %2787 = vmatprep.mubr.bf16.mxu1 %v2233_v42  ;;  %v1731_v18 = vmul.f32 %v3524_v21, %v6326_v52  ;;  %v1733_v0 = vmul.f32 %v3524_v21, %v6327_v43  ;;  %v1730_v40 = vmul.f32 %v3524_v21, %v6328_v7  ;;  %v6333_v7 = vld [vmem:[#allocation87_spill] sm:$0xff] }
 0x380   : > { %2627 = vmatmul.mubr.bf16.gmra.mrb[108].mxu0 %v2230_v29  ;;  %2788 = vmatmul.mubr.bf16.gmra.mrb[108].mxu1 %v2232_v56  ;;  %v1732_v50 = vmul.f32 %v3524_v21, %v6329_v37  ;;  %v2028_v19 = vadd.f32 %v4979_v26, %v1878_v49  ;;  %v2155_v11 = vmax.f32 %v2027_v28, 0.0  ;;  %v2157_v31 = vmax.f32 %v2029_v34, 0.0  ;;  %v6330_v28 = vld [vmem:[#allocation83_spill] sm:$0xff] }
 0x381   : > { %v1592_v59 = vadd.f32 1e-05, %v1560_v8  ;;  %v1881_v12 = vmul.f32 %v4949_v58, %v1731_v18  ;;  %v1883_v44 = vmul.f32 %v4959_v62, %v1733_v0  ;;  %v1880_v5 = vmul.f32 %v4969_v3, %v1730_v40  ;;  %v6331_v8 = vld [vmem:[#allocation89_spill] sm:$0xff] }
 0x382   : > { %v1513_v46 = vpop.xlane.xlu1 %1512  ;;  %v1882_v23 = vmul.f32 %v4977_v2, %v1732_v50  ;;  %v2154_v61 = vmax.f32 %v2026_v36, 0.0  ;;  %v2156_v53 = vmax.f32 %v2028_v19, 0.0  ;;  %v6332_v18 = vld [vmem:[#allocation81_spill] sm:$0xff]  ;;  %v6336_v19 = vld [vmem:[#allocation91_spill] sm:$0xff] }
 0x383   : > { %v1561_v39 = vmul.f32 0.001953125, %v1513_v46  ;;  %3525 = vrsqrt.f32 %v1592_v59  ;;  %v2031_v63 = vadd.f32 %v4951_v51, %v1881_v12  ;;  %v2033_v30 = vadd.f32 %v4967_v15, %v1883_v44  ;;  %v6334_v44 = vld [vmem:[#allocation105_spill] sm:$0xff] }
 0x384   : > { %v2030_v25 = vadd.f32 %v4975_v33, %v1880_v5  ;;  %v2032_v35 = vadd.f32 %v4979_v26, %v1882_v23 }
 0x385   : > { %v1593_v57 = vadd.f32 1e-05, %v1561_v39  ;;  %v2159_v17 = vmax.f32 %v2031_v63, 0.0  ;;  %v2161_v14 = vmax.f32 %v2033_v30, 0.0  ;;  %v6335_v39 = vld [vmem:[#allocation85_spill] sm:$0xff] }
 0x386   : > { %v2158_v47 = vmax.f32 %v2030_v25, 0.0  ;;  %v2160_v24 = vmax.f32 %v2032_v35, 0.0 }
 0x387   : > { %3527 = vrsqrt.f32 %v1593_v57  ;;  %v2235_v42 = vpack.c.bf16 %v2159_v17, %v2155_v11  ;;  %v2237_v29 = vpack.c.bf16 %v2161_v14, %v2157_v31 }
 0x388   : > { %v2234_v56 = vpack.c.bf16 %v2158_v47, %v2154_v61  ;;  %v2236_v21 = vpack.c.bf16 %v2160_v24, %v2156_v53 }
 0x389   : > { %2634 = vmatprep.mubr.bf16.mxu0 %v2235_v42  ;;  %2795 = vmatprep.mubr.bf16.mxu1 %v2237_v29 }
 0x38a   : > { %2635 = vmatmul.mubr.bf16.gmra.mrb[112].mxu0 %v2234_v56  ;;  %2796 = vmatmul.mubr.bf16.gmra.mrb[112].mxu1 %v2236_v21 }
 0x38d   : > { %v3526_v41 = vpop.eup %3525 }
 0x38e   : > { %v1735_v49 = vmul.f32 %v3526_v41, %v6330_v28  ;;  %v1737_v52 = vmul.f32 %v3526_v41, %v6331_v8  ;;  %v1734_v43 = vmul.f32 %v3526_v41, %v6332_v18  ;;  %v1736_v40 = vmul.f32 %v3526_v41, %v6333_v7 }
 0x38f   : > { %v1518_v0 = vpop.xlane.xlu0 %1517 }
 0x390   : > { %v1562_v36 = vmul.f32 0.001953125, %v1518_v0  ;;  %v1885_v37 = vmul.f32 %v4949_v58, %v1735_v49  ;;  %v1887_v50 = vmul.f32 %v4959_v62, %v1737_v52  ;;  %v1884_v59 = vmul.f32 %v4969_v3, %v1734_v43 }
 0x391   : > { %v3528_v34 = vpop.eup %3527  ;;  %v1886_v29 = vmul.f32 %v4977_v2, %v1736_v40 }
 0x392   : > { %v1523_v46 = vpop.xlane.xlu1 %1522  ;;  %v1739_v12 = vmul.f32 %v3528_v34, %v5088_v16  ;;  %v1741_v5 = vmul.f32 %v3528_v34, %v6334_v44  ;;  %v1738_v23 = vmul.f32 %v3528_v34, %v6335_v39  ;;  %v1740_v63 = vmul.f32 %v3528_v34, %v6336_v19 }
 0x393   : > { %v1594_v30 = vadd.f32 1e-05, %v1562_v36  ;;  %v1563_v25 = vmul.f32 0.001953125, %v1523_v46  ;;  %v2035_v57 = vadd.f32 %v4951_v51, %v1885_v37  ;;  %v2037_v11 = vadd.f32 %v4967_v15, %v1887_v50 }
 0x394   : > { %v1889_v31 = vmul.f32 %v4949_v58, %v1739_v12  ;;  %v1891_v35 = vmul.f32 %v4959_v62, %v1741_v5  ;;  %v1888_v17 = vmul.f32 %v4969_v3, %v1738_v23  ;;  %v2034_v16 = vadd.f32 %v4975_v33, %v1884_v59 }
 0x395   : > { %3529 = vrsqrt.f32 %v1594_v30  ;;  %v1595_v14 = vadd.f32 1e-05, %v1563_v25  ;;  %v2163_v47 = vmax.f32 %v2035_v57, 0.0  ;;  %v2165_v42 = vmax.f32 %v2037_v11, 0.0 }
 0x396   : > { %v2039_v61 = vadd.f32 %v4951_v51, %v1889_v31  ;;  %v2041_v53 = vadd.f32 %v4967_v15, %v1891_v35  ;;  %v2038_v24 = vadd.f32 %v4975_v33, %v1888_v17  ;;  %v1890_v56 = vmul.f32 %v4977_v2, %v1740_v63 }
 0x397   : > { %3531 = vrsqrt.f32 %v1595_v14  ;;  %v2162_v28 = vmax.f32 %v2034_v16, 0.0  ;;  %v2036_v8 = vadd.f32 %v4979_v26, %v1886_v29 }
 0x398   : > { %v2167_v21 = vmax.f32 %v2039_v61, 0.0  ;;  %v2169_v41 = vmax.f32 %v2041_v53, 0.0  ;;  %v2166_v49 = vmax.f32 %v2038_v24, 0.0  ;;  %v2040_v52 = vadd.f32 %v4979_v26, %v1890_v56 }
 0x399   : > { %v2164_v7 = vmax.f32 %v2036_v8, 0.0 }
 0x39a   : > { %v2239_v18 = vpack.c.bf16 %v2167_v21, %v2163_v47  ;;  %v2241_v43 = vpack.c.bf16 %v2169_v41, %v2165_v42  ;;  %v2238_v0 = vpack.c.bf16 %v2166_v49, %v2162_v28  ;;  %v2168_v34 = vmax.f32 %v2040_v52, 0.0 }
 0x39c   : > { %2642 = vmatprep.mubr.bf16.mxu0 %v2239_v18  ;;  %2803 = vmatprep.mubr.bf16.mxu1 %v2241_v43  ;;  %v2240_v40 = vpack.c.bf16 %v2168_v34, %v2164_v7 }
 0x39d   : > { %v1528_v36 = vpop.xlane.xlu0 %1527  ;;  %2643 = vmatmul.mubr.bf16.gmra.mrb[116].mxu0 %v2238_v0 }
 0x39e   : > { %v1564_v37 = vmul.f32 0.001953125, %v1528_v36  ;;  %2804 = vmatmul.mubr.bf16.gmra.mrb[116].mxu1 %v2240_v40 }
 0x39f   : > { %v3530_v50 = vpop.eup %3529 }
 0x3a0   : > { %v1596_v59 = vadd.f32 1e-05, %v1564_v37  ;;  %v1743_v46 = vmul.f32 %v3530_v50, %v5107_v4  ;;  %v1745_v12 = vmul.f32 %v3530_v50, %v5227_v6  ;;  %v1742_v44 = vmul.f32 %v3530_v50, %v5103_v20  ;;  %v1533_v39 = vpop.xlane.xlu1 %1532 }
 0x3a1   : > { %v3532_v5 = vpop.eup %3531  ;;  %v1744_v23 = vmul.f32 %v3530_v50, %v5213_v27  ;;  %v1565_v19 = vmul.f32 0.001953125, %v1533_v39 }
 0x3a2   : > { %3533 = vrsqrt.f32 %v1596_v59  ;;  %v1747_v63 = vmul.f32 %v3532_v5, %v5131_v45  ;;  %v1893_v30 = vmul.f32 %v4949_v58, %v1743_v46  ;;  %v1749_v25 = vmul.f32 %v3532_v5, %v5243_v22 }
 0x3a3   : > { %v1895_v57 = vmul.f32 %v4959_v62, %v1745_v12  ;;  %v1746_v4 = vmul.f32 %v3532_v5, %v5127_v48  ;;  %v1892_v6 = vmul.f32 %v4969_v3, %v1742_v44  ;;  %v1597_v11 = vadd.f32 1e-05, %v1565_v19 }
 0x3a4   : > { %v1897_v20 = vmul.f32 %v4949_v58, %v1747_v63  ;;  %v2043_v31 = vadd.f32 %v4951_v51, %v1893_v30  ;;  %v1748_v27 = vmul.f32 %v3532_v5, %v5237_v1  ;;  %v1899_v35 = vmul.f32 %v4959_v62, %v1749_v25 }
 0x3a5   : > { %v2045_v45 = vadd.f32 %v4967_v15, %v1895_v57  ;;  %v1896_v17 = vmul.f32 %v4969_v3, %v1746_v4  ;;  %v2042_v22 = vadd.f32 %v4975_v33, %v1892_v6  ;;  %3535 = vrsqrt.f32 %v1597_v11 }
 0x3a6   : > { %v2047_v48 = vadd.f32 %v4951_v51, %v1897_v20  ;;  %v1894_v16 = vmul.f32 %v4977_v2, %v1744_v23  ;;  %v2049_v14 = vadd.f32 %v4967_v15, %v1899_v35  ;;  %v2171_v47 = vmax.f32 %v2043_v31, 0.0 }
 0x3a7   : > { %v2046_v61 = vadd.f32 %v4975_v33, %v1896_v17  ;;  %v1898_v1 = vmul.f32 %v4977_v2, %v1748_v27  ;;  %v2173_v42 = vmax.f32 %v2045_v45, 0.0  ;;  %v2170_v56 = vmax.f32 %v2042_v22, 0.0 }
 0x3a8   : > { %v2175_v53 = vmax.f32 %v2047_v48, 0.0  ;;  %v2044_v24 = vadd.f32 %v4979_v26, %v1894_v16  ;;  %v2177_v29 = vmax.f32 %v2049_v14, 0.0 }
 0x3a9   : > { %v2174_v21 = vmax.f32 %v2046_v61, 0.0  ;;  %v2048_v28 = vadd.f32 %v4979_v26, %v1898_v1 }
 0x3aa   : > { %v2243_v41 = vpack.c.bf16 %v2175_v53, %v2171_v47  ;;  %v2245_v49 = vpack.c.bf16 %v2177_v29, %v2173_v42  ;;  %v2172_v18 = vmax.f32 %v2044_v24, 0.0 }
 0x3ab   : > { %v2242_v8 = vpack.c.bf16 %v2174_v21, %v2170_v56  ;;  %v2176_v43 = vmax.f32 %v2048_v28, 0.0 }
 0x3ac   : > { %v3534_v52 = vpop.eup %3533  ;;  %2650 = vmatprep.mubr.bf16.mxu0 %v2243_v41  ;;  %2811 = vmatprep.mubr.bf16.mxu1 %v2245_v49 }
 0x3ad   : > { %2651 = vmatmul.mubr.bf16.gmra.mrb[120].mxu0 %v2242_v8  ;;  %v1751_v0 = vmul.f32 %v3534_v52, %v5165_v32  ;;  %v1753_v7 = vmul.f32 %v3534_v52, %v5292_v13  ;;  %v1750_v34 = vmul.f32 %v3534_v52, %v5161_v55  ;;  %v2244_v36 = vpack.c.bf16 %v2176_v43, %v2172_v18 }
 0x3ae   : > { %v1752_v40 = vmul.f32 %v3534_v52, %v5286_v54 }
 0x3af   : > { %v1901_v37 = vmul.f32 %v4949_v58, %v1751_v0  ;;  %v1903_v50 = vmul.f32 %v4959_v62, %v1753_v7  ;;  %v3536_v59 = vpop.eup %3535  ;;  %2812 = vmatmul.mubr.bf16.gmra.mrb[120].mxu1 %v2244_v36  ;;  %v1900_v46 = vmul.f32 %v4969_v3, %v1750_v34 }
 0x3b0   : > { %v1902_v12 = vmul.f32 %v4977_v2, %v1752_v40  ;;  %v1755_v44 = vmul.f32 %v3536_v59, %v5223_v38  ;;  %v1757_v32 = vmul.f32 %v3536_v59, %v5311_v10  ;;  %v1754_v13 = vmul.f32 %v3536_v59, %v5219_v60 }
 0x3b1   : > { %v1756_v55 = vmul.f32 %v3536_v59, %v5307_v9  ;;  %v2051_v5 = vadd.f32 %v4951_v51, %v1901_v37  ;;  %v2053_v23 = vadd.f32 %v4967_v15, %v1903_v50  ;;  %v2050_v63 = vadd.f32 %v4975_v33, %v1900_v46 }
 0x3b2   : > { %v1905_v54 = vmul.f32 %v4949_v58, %v1755_v44  ;;  %v1907_v39 = vmul.f32 %v4959_v62, %v1757_v32  ;;  %v1904_v19 = vmul.f32 %v4969_v3, %v1754_v13  ;;  %v2052_v10 = vadd.f32 %v4979_v26, %v1902_v12 }
 0x3b3   : > { %v1906_v38 = vmul.f32 %v4977_v2, %v1756_v55  ;;  %v2179_v25 = vmax.f32 %v2051_v5, 0.0  ;;  %v2181_v57 = vmax.f32 %v2053_v23, 0.0  ;;  %v2178_v6 = vmax.f32 %v2050_v63, 0.0 }
 0x3b4   : > { %v2055_v60 = vadd.f32 %v4951_v51, %v1905_v54  ;;  %v2057_v9 = vadd.f32 %v4967_v15, %v1907_v39  ;;  %v2054_v58 = vadd.f32 %v4975_v33, %v1904_v19  ;;  %v2180_v11 = vmax.f32 %v2052_v10, 0.0 }
 0x3b5   : > { %v2056_v30 = vadd.f32 %v4979_v26, %v1906_v38 }
 0x3b6   : > { %v2183_v62 = vmax.f32 %v2055_v60, 0.0  ;;  %v2185_v4 = vmax.f32 %v2057_v9, 0.0  ;;  %v2182_v3 = vmax.f32 %v2054_v58, 0.0 }
 0x3b7   : > { %v2184_v20 = vmax.f32 %v2056_v30, 0.0 }
 0x3b8   : > { %v2247_v31 = vpack.c.bf16 %v2183_v62, %v2179_v25  ;;  %v2249_v2 = vpack.c.bf16 %v2185_v4, %v2181_v57  ;;  %v2246_v27 = vpack.c.bf16 %v2182_v3, %v2178_v6 }
 0x3b9   : > { %v2248_v35 = vpack.c.bf16 %v2184_v20, %v2180_v11 }
 0x3ba   : > { %2658 = vmatprep.mubr.bf16.mxu0 %v2247_v31  ;;  %2819 = vmatprep.mubr.bf16.mxu1 %v2249_v2 }
 0x3bb   : > { %2659 = vmatmul.mubr.bf16.gmra.mrb[124].mxu0 %v2246_v27  ;;  %2820 = vmatmul.mubr.bf16.gmra.mrb[124].mxu1 %v2248_v35 }
 0x3bd   : > { %v3089_v33 = vpop.f32.mrb[64].mxu0 }
 0x3be   : > { %v3090_v51 = vpop.f32.mrb[65].mxu0 }
 0x3bf   : > { %v3091_v26 = vadd.f32 %v3090_v51, %v3089_v33  ;;  %v3092_v15 = vpop.f32.mrb[66].mxu0 }
 0x3c0   : > { %v3201_v45 = vpop.f32.mrb[64].mxu1  ;;  %v3093_v17 = vpop.f32.mrb[67].mxu0 }
 0x3c1   : > { %v3202_v22 = vpop.f32.mrb[65].mxu1  ;;  %v3094_v48 = vadd.f32 %v3093_v17, %v3092_v15 }
 0x3c2   : > { %v3203_v16 = vadd.f32 %v3202_v22, %v3201_v45  ;;  %v3204_v14 = vpop.f32.mrb[66].mxu1 }
 0x3c3   : > { %v3205_v61 = vpop.f32.mrb[67].mxu1 }
 0x3c4   : > { %v2702_v47 = vadd.f32 %v3203_v16, %v3091_v26  ;;  %v3206_v53 = vadd.f32 %v3205_v61, %v3204_v14 }
 0x3c6   : > { %2828 = vst [vmem:[%s5719_s24] sm:$0xff] %v2702_v47  ;;  %v2705_v1 = vadd.f32 %v3206_v53, %v3094_v48 }
 0x3c8   : > { %2829 = vst [vmem:[%s5719_s24 + $0x8] sm:$0xff] %v2705_v1 }
 0x3cd   : > { %v3095_v24 = vpop.f32.mrb[68].mxu0 }
 0x3ce   : > { %v3096_v42 = vpop.f32.mrb[69].mxu0 }
 0x3cf   : > { %v3097_v29 = vadd.f32 %v3096_v42, %v3095_v24  ;;  %v3098_v56 = vpop.f32.mrb[70].mxu0 }
 0x3d0   : > { %v3207_v21 = vpop.f32.mrb[68].mxu1  ;;  %v3099_v41 = vpop.f32.mrb[71].mxu0 }
 0x3d1   : > { %v3208_v28 = vpop.f32.mrb[69].mxu1  ;;  %v3100_v49 = vadd.f32 %v3099_v41, %v3098_v56 }
 0x3d2   : > { %v3209_v8 = vadd.f32 %v3208_v28, %v3207_v21  ;;  %v3210_v52 = vpop.f32.mrb[70].mxu1 }
 0x3d3   : > { %v3211_v18 = vpop.f32.mrb[71].mxu1 }
 0x3d4   : > { %v2710_v43 = vadd.f32 %v3209_v8, %v3097_v29  ;;  %v3212_v0 = vadd.f32 %v3211_v18, %v3210_v52 }
 0x3d6   : > { %2830 = vst [vmem:[%s5719_s24 + $0x10] sm:$0xff] %v2710_v43  ;;  %v2713_v7 = vadd.f32 %v3212_v0, %v3100_v49 }
 0x3d8   : > { %2831 = vst [vmem:[%s5719_s24 + $0x18] sm:$0xff] %v2713_v7 }
 0x3de   : > { %v3101_v34 = vpop.f32.mrb[72].mxu0 }
 0x3df   : > { %v3102_v36 = vpop.f32.mrb[73].mxu0 }
 0x3e0   : > { %v3103_v40 = vadd.f32 %v3102_v36, %v3101_v34  ;;  %v3104_v37 = vpop.f32.mrb[74].mxu0 }
 0x3e1   : > { %v3105_v50 = vpop.f32.mrb[75].mxu0  ;;  %v3213_v59 = vpop.f32.mrb[72].mxu1 }
 0x3e2   : > { %v3106_v46 = vadd.f32 %v3105_v50, %v3104_v37  ;;  %v3214_v12 = vpop.f32.mrb[73].mxu1 }
 0x3e3   : > { %v3215_v44 = vadd.f32 %v3214_v12, %v3213_v59  ;;  %v3216_v32 = vpop.f32.mrb[74].mxu1 }
 0x3e4   : > { %v3217_v13 = vpop.f32.mrb[75].mxu1 }
 0x3e5   : > { %v2718_v55 = vadd.f32 %v3215_v44, %v3103_v40  ;;  %v3218_v54 = vadd.f32 %v3217_v13, %v3216_v32 }
 0x3e7   : > { %2832 = vst [vmem:[%s5719_s24 + $0x20] sm:$0xff] %v2718_v55  ;;  %v2721_v5 = vadd.f32 %v3218_v54, %v3106_v46 }
 0x3e9   : > { %2833 = vst [vmem:[%s5719_s24 + $0x28] sm:$0xff] %v2721_v5 }
 0x3ed   : > { %v3107_v39 = vpop.f32.mrb[76].mxu0 }
 0x3ee   : > { %v3108_v23 = vpop.f32.mrb[77].mxu0 }
 0x3ef   : > { %v3219_v19 = vpop.f32.mrb[76].mxu1  ;;  %v3109_v63 = vadd.f32 %v3108_v23, %v3107_v39  ;;  %v3110_v38 = vpop.f32.mrb[78].mxu0 }
 0x3f0   : > { %v3220_v10 = vpop.f32.mrb[77].mxu1  ;;  %v3111_v60 = vpop.f32.mrb[79].mxu0 }
 0x3f1   : > { %v3221_v9 = vadd.f32 %v3220_v10, %v3219_v19  ;;  %v3222_v58 = vpop.f32.mrb[78].mxu1  ;;  %v3112_v30 = vadd.f32 %v3111_v60, %v3110_v38 }
 0x3f2   : > { %v3223_v25 = vpop.f32.mrb[79].mxu1 }
 0x3f3   : > { %v2726_v62 = vadd.f32 %v3221_v9, %v3109_v63  ;;  %v3224_v57 = vadd.f32 %v3223_v25, %v3222_v58 }
 0x3f5   : > { %2834 = vst [vmem:[%s5719_s24 + $0x30] sm:$0xff] %v2726_v62  ;;  %v2729_v4 = vadd.f32 %v3224_v57, %v3112_v30 }
 0x3f7   : > { %2835 = vst [vmem:[%s5719_s24 + $0x38] sm:$0xff] %v2729_v4  ;;  %v3113_v6 = vpop.f32.mrb[80].mxu0 }
 0x3f8   : > { %v3114_v3 = vpop.f32.mrb[81].mxu0 }
 0x3f9   : > { %v3115_v11 = vadd.f32 %v3114_v3, %v3113_v6  ;;  %v3116_v20 = vpop.f32.mrb[82].mxu0  ;;  %v3225_v31 = vpop.f32.mrb[80].mxu1 }
 0x3fa   : > { %v3117_v2 = vpop.f32.mrb[83].mxu0  ;;  %v3226_v27 = vpop.f32.mrb[81].mxu1 }
 0x3fb   : > { %v3118_v35 = vadd.f32 %v3117_v2, %v3116_v20  ;;  %v3227_v33 = vadd.f32 %v3226_v27, %v3225_v31  ;;  %v3228_v51 = vpop.f32.mrb[82].mxu1 }
 0x3fc   : > { %v3229_v26 = vpop.f32.mrb[83].mxu1 }
 0x3fd   : > { %v2734_v15 = vadd.f32 %v3227_v33, %v3115_v11  ;;  %v3230_v45 = vadd.f32 %v3229_v26, %v3228_v51 }
 0x3ff   : > { %2836 = vst [vmem:[%s5719_s24 + $0x40] sm:$0xff] %v2734_v15  ;;  %v2737_v17 = vadd.f32 %v3230_v45, %v3118_v35 }
 0x401   : > { %2837 = vst [vmem:[%s5719_s24 + $0x48] sm:$0xff] %v2737_v17 }
 0x403   : > { %v3119_v22 = vpop.f32.mrb[84].mxu0 }
 0x404   : > { %v3231_v48 = vpop.f32.mrb[84].mxu1  ;;  %v3120_v16 = vpop.f32.mrb[85].mxu0 }
 0x405   : > { %v3121_v14 = vadd.f32 %v3120_v16, %v3119_v22  ;;  %v3232_v61 = vpop.f32.mrb[85].mxu1  ;;  %v3122_v47 = vpop.f32.mrb[86].mxu0 }
 0x406   : > { %v3233_v53 = vadd.f32 %v3232_v61, %v3231_v48  ;;  %v3234_v1 = vpop.f32.mrb[86].mxu1  ;;  %v3123_v24 = vpop.f32.mrb[87].mxu0 }
 0x407   : > { %v3124_v42 = vadd.f32 %v3123_v24, %v3122_v47  ;;  %v3235_v29 = vpop.f32.mrb[87].mxu1 }
 0x408   : > { %v2742_v56 = vadd.f32 %v3233_v53, %v3121_v14  ;;  %v3236_v21 = vadd.f32 %v3235_v29, %v3234_v1 }
 0x40a   : > { %2838 = vst [vmem:[%s5719_s24 + $0x50] sm:$0xff] %v2742_v56  ;;  %v2745_v41 = vadd.f32 %v3236_v21, %v3124_v42 }
 0x40c   : > { %2839 = vst [vmem:[%s5719_s24 + $0x58] sm:$0xff] %v2745_v41 }
 0x40d   : > { %v3125_v28 = vpop.f32.mrb[88].mxu0 }
 0x40e   : > { %v3126_v49 = vpop.f32.mrb[89].mxu0  ;;  %v3237_v8 = vpop.f32.mrb[88].mxu1 }
 0x40f   : > { %v3127_v52 = vadd.f32 %v3126_v49, %v3125_v28  ;;  %v3128_v18 = vpop.f32.mrb[90].mxu0  ;;  %v3238_v43 = vpop.f32.mrb[89].mxu1 }
 0x410   : > { %v3129_v0 = vpop.f32.mrb[91].mxu0  ;;  %v3239_v7 = vadd.f32 %v3238_v43, %v3237_v8  ;;  %v3240_v34 = vpop.f32.mrb[90].mxu1 }
 0x411   : > { %v3130_v36 = vadd.f32 %v3129_v0, %v3128_v18  ;;  %v3241_v40 = vpop.f32.mrb[91].mxu1 }
 0x412   : > { %v2750_v37 = vadd.f32 %v3239_v7, %v3127_v52  ;;  %v3242_v50 = vadd.f32 %v3241_v40, %v3240_v34 }
 0x414   : > { %2840 = vst [vmem:[%s5719_s24 + $0x60] sm:$0xff] %v2750_v37  ;;  %v2753_v59 = vadd.f32 %v3242_v50, %v3130_v36 }
 0x416   : > { %2841 = vst [vmem:[%s5719_s24 + $0x68] sm:$0xff] %v2753_v59 }
 0x417   : > { %v3131_v46 = vpop.f32.mrb[92].mxu0 }
 0x418   : > { %v3132_v12 = vpop.f32.mrb[93].mxu0  ;;  %v3243_v44 = vpop.f32.mrb[92].mxu1 }
 0x419   : > { %v3133_v32 = vadd.f32 %v3132_v12, %v3131_v46  ;;  %v3134_v13 = vpop.f32.mrb[94].mxu0  ;;  %v3244_v55 = vpop.f32.mrb[93].mxu1 }
 0x41a   : > { %v3135_v54 = vpop.f32.mrb[95].mxu0  ;;  %v3245_v5 = vadd.f32 %v3244_v55, %v3243_v44  ;;  %v3246_v39 = vpop.f32.mrb[94].mxu1 }
 0x41b   : > { %v3136_v23 = vadd.f32 %v3135_v54, %v3134_v13  ;;  %v3247_v19 = vpop.f32.mrb[95].mxu1 }
 0x41c   : > { %v2758_v63 = vadd.f32 %v3245_v5, %v3133_v32  ;;  %v3248_v38 = vadd.f32 %v3247_v19, %v3246_v39 }
 0x41e   : > { %2842 = vst [vmem:[%s5719_s24 + $0x70] sm:$0xff] %v2758_v63  ;;  %v2761_v10 = vadd.f32 %v3248_v38, %v3136_v23 }
 0x420   : > { %v3137_v60 = vpop.f32.mrb[96].mxu0  ;;  %2843 = vst [vmem:[%s5719_s24 + $0x78] sm:$0xff] %v2761_v10 }
 0x421   : > { %v3138_v9 = vpop.f32.mrb[97].mxu0 }
 0x422   : > { %v3139_v58 = vadd.f32 %v3138_v9, %v3137_v60  ;;  %v3140_v30 = vpop.f32.mrb[98].mxu0  ;;  %v3249_v25 = vpop.f32.mrb[96].mxu1 }
 0x423   : > { %v3141_v62 = vpop.f32.mrb[99].mxu0  ;;  %v3250_v57 = vpop.f32.mrb[97].mxu1 }
 0x424   : > { %v3142_v4 = vadd.f32 %v3141_v62, %v3140_v30  ;;  %v3251_v6 = vadd.f32 %v3250_v57, %v3249_v25  ;;  %v3252_v3 = vpop.f32.mrb[98].mxu1 }
 0x425   : > { %v3253_v11 = vpop.f32.mrb[99].mxu1 }
 0x426   : > { %v2766_v20 = vadd.f32 %v3251_v6, %v3139_v58  ;;  %v3254_v31 = vadd.f32 %v3253_v11, %v3252_v3 }
 0x428   : > { %2844 = vst [vmem:[%s5719_s24 + $0x80] sm:$0xff] %v2766_v20  ;;  %v2769_v2 = vadd.f32 %v3254_v31, %v3142_v4 }
 0x429   : > { %v3143_v27 = vpop.f32.mrb[100].mxu0 }
 0x42a   : > { %v3144_v35 = vpop.f32.mrb[101].mxu0  ;;  %2845 = vst [vmem:[%s5719_s24 + $0x88] sm:$0xff] %v2769_v2 }
 0x42b   : > { %v3145_v33 = vadd.f32 %v3144_v35, %v3143_v27  ;;  %v3146_v51 = vpop.f32.mrb[102].mxu0 }
 0x42c   : > { %v3255_v26 = vpop.f32.mrb[100].mxu1  ;;  %v3147_v15 = vpop.f32.mrb[103].mxu0 }
 0x42d   : > { %v3256_v45 = vpop.f32.mrb[101].mxu1  ;;  %v3148_v17 = vadd.f32 %v3147_v15, %v3146_v51 }
 0x42e   : > { %v3257_v22 = vadd.f32 %v3256_v45, %v3255_v26  ;;  %v3258_v48 = vpop.f32.mrb[102].mxu1 }
 0x42f   : > { %v3259_v16 = vpop.f32.mrb[103].mxu1 }
 0x430   : > { %v2774_v14 = vadd.f32 %v3257_v22, %v3145_v33  ;;  %v3260_v61 = vadd.f32 %v3259_v16, %v3258_v48 }
 0x432   : > { %2846 = vst [vmem:[%s5719_s24 + $0x90] sm:$0xff] %v2774_v14  ;;  %v2777_v47 = vadd.f32 %v3260_v61, %v3148_v17  ;;  %v3149_v53 = vpop.f32.mrb[104].mxu0 }
 0x433   : > { %v3150_v1 = vpop.f32.mrb[105].mxu0 }
 0x434   : > { %2847 = vst [vmem:[%s5719_s24 + $0x98] sm:$0xff] %v2777_v47  ;;  %v3151_v24 = vadd.f32 %v3150_v1, %v3149_v53  ;;  %v3152_v42 = vpop.f32.mrb[106].mxu0 }
 0x435   : > { %v3261_v29 = vpop.f32.mrb[104].mxu1  ;;  %v3153_v56 = vpop.f32.mrb[107].mxu0 }
 0x436   : > { %v3262_v21 = vpop.f32.mrb[105].mxu1  ;;  %v3154_v41 = vadd.f32 %v3153_v56, %v3152_v42 }
 0x437   : > { %v3263_v28 = vadd.f32 %v3262_v21, %v3261_v29  ;;  %v3264_v49 = vpop.f32.mrb[106].mxu1 }
 0x438   : > { %v3265_v8 = vpop.f32.mrb[107].mxu1 }
 0x439   : > { %v2782_v52 = vadd.f32 %v3263_v28, %v3151_v24  ;;  %v3266_v18 = vadd.f32 %v3265_v8, %v3264_v49 }
 0x43b   : > { %2848 = vst [vmem:[%s5719_s24 + $0xa0] sm:$0xff] %v2782_v52  ;;  %v2785_v43 = vadd.f32 %v3266_v18, %v3154_v41 }
 0x43d   : > { %2849 = vst [vmem:[%s5719_s24 + $0xa8] sm:$0xff] %v2785_v43 }
 0x453   : > { %v3155_v0 = vpop.f32.mrb[108].mxu0  ;;  %v3267_v7 = vpop.f32.mrb[108].mxu1 }
 0x454   : > { %v3156_v34 = vpop.f32.mrb[109].mxu0  ;;  %v3268_v36 = vpop.f32.mrb[109].mxu1 }
 0x455   : > { %v3157_v40 = vadd.f32 %v3156_v34, %v3155_v0  ;;  %v3269_v37 = vadd.f32 %v3268_v36, %v3267_v7  ;;  %v3158_v50 = vpop.f32.mrb[110].mxu0  ;;  %v3270_v59 = vpop.f32.mrb[110].mxu1 }
 0x456   : > { %v3159_v46 = vpop.f32.mrb[111].mxu0  ;;  %v3271_v12 = vpop.f32.mrb[111].mxu1 }
 0x457   : > { %v2790_v44 = vadd.f32 %v3269_v37, %v3157_v40  ;;  %v3160_v32 = vadd.f32 %v3159_v46, %v3158_v50  ;;  %v3272_v13 = vadd.f32 %v3271_v12, %v3270_v59 }
 0x459   : > { %2850 = vst [vmem:[%s5719_s24 + $0xb0] sm:$0xff] %v2790_v44  ;;  %v2793_v55 = vadd.f32 %v3272_v13, %v3160_v32 }
 0x45b   : > { %2851 = vst [vmem:[%s5719_s24 + $0xb8] sm:$0xff] %v2793_v55 }
 0x45d   : > { %v3161_v54 = vpop.f32.mrb[112].mxu0  ;;  %v3273_v5 = vpop.f32.mrb[112].mxu1 }
 0x45e   : > { %v3162_v39 = vpop.f32.mrb[113].mxu0  ;;  %v3274_v23 = vpop.f32.mrb[113].mxu1 }
 0x45f   : > { %v3163_v19 = vadd.f32 %v3162_v39, %v3161_v54  ;;  %v3275_v63 = vadd.f32 %v3274_v23, %v3273_v5  ;;  %v3164_v38 = vpop.f32.mrb[114].mxu0  ;;  %v3276_v10 = vpop.f32.mrb[114].mxu1 }
 0x460   : > { %v3165_v60 = vpop.f32.mrb[115].mxu0  ;;  %v3277_v9 = vpop.f32.mrb[115].mxu1 }
 0x461   : > { %v2798_v58 = vadd.f32 %v3275_v63, %v3163_v19  ;;  %v3166_v30 = vadd.f32 %v3165_v60, %v3164_v38  ;;  %v3278_v25 = vadd.f32 %v3277_v9, %v3276_v10 }
 0x463   : > { %2852 = vst [vmem:[%s5719_s24 + $0xc0] sm:$0xff] %v2798_v58  ;;  %v2801_v62 = vadd.f32 %v3278_v25, %v3166_v30 }
 0x465   : > { %2853 = vst [vmem:[%s5719_s24 + $0xc8] sm:$0xff] %v2801_v62 }
 0x470   : > { %v3167_v57 = vpop.f32.mrb[116].mxu0 }
 0x471   : > { %v3168_v4 = vpop.f32.mrb[117].mxu0  ;;  %v3279_v6 = vpop.f32.mrb[116].mxu1 }
 0x472   : > { %v3169_v3 = vadd.f32 %v3168_v4, %v3167_v57  ;;  %v3170_v11 = vpop.f32.mrb[118].mxu0  ;;  %v3280_v20 = vpop.f32.mrb[117].mxu1 }
 0x473   : > { %v3171_v31 = vpop.f32.mrb[119].mxu0  ;;  %v3281_v2 = vadd.f32 %v3280_v20, %v3279_v6  ;;  %v3282_v27 = vpop.f32.mrb[118].mxu1 }
 0x474   : > { %v3172_v35 = vadd.f32 %v3171_v31, %v3170_v11  ;;  %v3283_v33 = vpop.f32.mrb[119].mxu1 }
 0x475   : > { %v2806_v51 = vadd.f32 %v3281_v2, %v3169_v3  ;;  %v3284_v26 = vadd.f32 %v3283_v33, %v3282_v27 }
 0x477   : > { %2854 = vst [vmem:[%s5719_s24 + $0xd0] sm:$0xff] %v2806_v51  ;;  %v2809_v15 = vadd.f32 %v3284_v26, %v3172_v35 }
 0x479   : > { %2855 = vst [vmem:[%s5719_s24 + $0xd8] sm:$0xff] %v2809_v15 }
 0x480   : > { %v3173_v45 = vpop.f32.mrb[120].mxu0 }
 0x481   : > { %v3174_v17 = vpop.f32.mrb[121].mxu0 }
 0x482   : > { %v3175_v22 = vadd.f32 %v3174_v17, %v3173_v45  ;;  %v3176_v48 = vpop.f32.mrb[122].mxu0  ;;  %v3285_v16 = vpop.f32.mrb[120].mxu1 }
 0x483   : > { %v3177_v14 = vpop.f32.mrb[123].mxu0  ;;  %v3286_v61 = vpop.f32.mrb[121].mxu1 }
 0x484   : > { %v3178_v47 = vadd.f32 %v3177_v14, %v3176_v48  ;;  %v3287_v53 = vadd.f32 %v3286_v61, %v3285_v16  ;;  %v3288_v1 = vpop.f32.mrb[122].mxu1 }
 0x485   : > { %v3289_v24 = vpop.f32.mrb[123].mxu1 }
 0x486   : > { %v2814_v42 = vadd.f32 %v3287_v53, %v3175_v22  ;;  %v3290_v29 = vadd.f32 %v3289_v24, %v3288_v1 }
 0x488   : > { %2856 = vst [vmem:[%s5719_s24 + $0xe0] sm:$0xff] %v2814_v42  ;;  %v2817_v56 = vadd.f32 %v3290_v29, %v3178_v47 }
 0x48a   : > { %2857 = vst [vmem:[%s5719_s24 + $0xe8] sm:$0xff] %v2817_v56 }
 0x48e   : > { %v3179_v21 = vpop.f32.mrb[124].mxu0  ;;  %v3291_v41 = vpop.f32.mrb[124].mxu1 }
 0x48f   : > { %v3180_v28 = vpop.f32.mrb[125].mxu0  ;;  %v3292_v49 = vpop.f32.mrb[125].mxu1 }
 0x490   : > { %v3181_v8 = vadd.f32 %v3180_v28, %v3179_v21  ;;  %v3293_v52 = vadd.f32 %v3292_v49, %v3291_v41  ;;  %v3182_v18 = vpop.f32.mrb[126].mxu0  ;;  %v3294_v43 = vpop.f32.mrb[126].mxu1 }
 0x491   : > { %v3183_v0 = vpop.f32.mrb[127].mxu0  ;;  %v3295_v7 = vpop.f32.mrb[127].mxu1 }
 0x492   : > { %v2822_v34 = vadd.f32 %v3293_v52, %v3181_v8  ;;  %v3184_v36 = vadd.f32 %v3183_v0, %v3182_v18  ;;  %v3296_v40 = vadd.f32 %v3295_v7, %v3294_v43 }
 0x494   : > { %2858 = vst [vmem:[%s5719_s24 + $0xf0] sm:$0xff] %v2822_v34  ;;  %v2825_v37 = vadd.f32 %v3296_v40, %v3184_v36 }
 0x496   : > { %2859 = vst [vmem:[%s5719_s24 + $0xf8] sm:$0xff] %v2825_v37 }
 0x497   : > { %3692 = shalt.err (!%p3689_p13)
}
 0x498   : > { %s3693_s12 = scalar_lea.hbm %s5756_s14, 4096  ;;  %s3697_s27 = scalar_lea.hbm %s5809_s5, 8192 }
 0x499   : > { %p3694_p9 = scmp.ne.s32.totalorder %s5756_s14, %s3693_s12  ;;  %p3698_p6 = scmp.lt.u32.totalorder %s5756_s14, %s5809_s5 }
 0x49a   : > { %p3699_p4 = scmp.lt.u32.totalorder %s3697_s27, %s3693_s12  ;;  %p3701_p10 = scmp.lt.u32.totalorder %s3693_s12, %s5756_s14 }
 0x49b   : > { %p3695_p0 = pnand %p3694_p9, %p3962_p3 }
 0x49c   : > { %p3700_p8 = por %p3699_p4, %p3698_p6 }
 0x49d   : > { %p3696_p11 = pneg %p3695_p0 }
 0x49e   : > { %p3702_p5 = por %p3701_p10, %p3700_p8 }
 0x4a0   : > { %p3703_p7 = pnand %p3702_p5, %p3696_p11 }
 0x4a2   : > { %3706 = shalt.err (!%p3703_p7)
}
 0x4a3   : > { %s3768_s26 = smov 128   ;;  %s3769_s8 = smov 8  }
 0x4a4   : > { %3315 = dma.vmem_to_hbm [thread:$0]  (%p3962_p3), %s5758_s9, 4096, %s5756_s14, %s2861_s22, %s3768_s26, %s3768_s26, %s3769_s8  }
 0x4a5 PF: > { %s2889_s11 = sand.u32 1, %s3741_s18   ;;  %p6337_p12 = scmp.ne.s32.totalorder %s5984_s25, 0 }
 0x4a6   : > { %p6338_p2 = scmp.ge.s32.totalorder %s3753_s21, 2  ;;  %s2890_s29 = scalar_lea.sflag [#allocation4], %s2889_s11 }
 0x4a8   : > { %p3335_p1 = pnand %p6338_p2, %p6337_p12 }
 0x4aa   : > { %3736 = dma.done.wait (!%p3335_p1), %s2890_s29, 4096  }
 0x4ab   : > { %3738 = vsyncadd (!%p3335_p1), %s2890_s29, 4294963200  ;;  %p20_p13 = scmp.ge.s32.totalorder %s3949_s6, 4   ;;  %s6339_s18 = smov %s3745_s19 }
 0x4ac   : > { %s6340_s19 = smov %s3749_s20  ;;  %s6341_s20 = smov %s3958_s17 }
 0x4ad   : > { %s6342_s21 = smov %s3949_s6  ;;  %22 = sbr.rel (!%p20_p13) target bundleno = 7 (0x7), region = 101 }
 0x4b4   :  { %2895 = vsyncpa [#allocation3], 1 }
 0x4b5   :  { %2897 = vsyncpa [#allocation3 + $0x1], 1 }
 0x4b6   :  { %2898 = vsyncpa [#allocation6], 1 }
 0x4b7   :  { %2899 = vsyncpa [#allocation9], 1 }
 0x4b8   :  { %2900 = vsyncpa [#allocation4], 1 }
 0x4b9   :  { %2902 = vsyncpa [#allocation4 + $0x1], 1 }

// kernel: tpu_custom_call.1
= control target key start
LH: loop header
LB: loop body
LE: loop exit
PB: predicated region body
PF: predicated region fallthrough
CT: control target
= control target key end

     0   :  { %10 = vsyncpa [#allocation3], 0  ;;  %s5804_s0 = inlined_call_operand.hbm [shape: f32[512,128], index: 0, kind: input, shape index: {}]   ;;  %s5805_s1 = inlined_call_operand.hbm [shape: bf16[128,512], index: 1, kind: input, shape index: {}]   ;;  %s5806_s2 = inlined_call_operand.hbm [shape: f32[1,512], index: 2, kind: input, shape index: {}]   ;;  %s5807_s3 = inlined_call_operand.hbm [shape: f32[1,512], index: 3, kind: input, shape index: {}]   ;;  %s5808_s4 = inlined_call_operand.hbm [shape: bf16[512,128], index: 4, kind: input, shape index: {}]   ;;  %s5809_s5 = inlined_call_operand.hbm [shape: f32[512,128], index: 5, kind: output, shape index: {}]  }
   0x1   :  { %12 = vsyncpa [#allocation3 + $0x1], 0 }
   0x2   :  { %13 = vsyncpa [#allocation6], 0 }
   0x3   :  { %14 = vsyncpa [#allocation9], 0 }
   0x4   :  { %15 = vsyncpa [#allocation4], 0 }
   0x5   :  { %17 = vsyncpa [#allocation4 + $0x1], 0  ;;  %s3800_s18 = smov 0   ;;  %s3802_s19 = smov 0  }
   0x6   :  { %s3804_s20 = smov 0   ;;  %s3806_s21 = smov 0  }
   0x7 LB: > { %s3821_s22 = sadd.s32 4294967295, %s3753_s21   ;;  %s2985_s23 = sadd.s32 4294967294, %s3753_s21   ;;  %s3753_s21 = sphi %s3806_s21, %s6342_s21   ;;  %s3749_s20 = sphi %s3804_s20, %s6341_s20   ;;  %s3745_s19 = sphi %s3802_s19, %s6340_s19   ;;  %s3741_s18 = sphi %s3800_s18, %s6339_s18  }
   0x8   : > { %p43_p0 = scmp.ne.s32.totalorder %s3745_s19, %s3741_s18  ;;  %p5810_p1 = scmp.eq.s32.totalorder %s3821_s22, 0 }
   0x9   : > { %p157_p3 = scmp.eq.s32.totalorder %s2985_s23, 1  ;;  %p2986_p5 = scmp.ge.s32.totalorder %s3753_s21, 1 }
   0xa   : > { %p3830_p4 = por %p5810_p1, %p43_p0  ;;  %p164_p7 = scmp.lt.s32.totalorder %s3753_s21, 3 }
   0xb   : > { %p3835_p6 = por %p157_p3, %p43_p0  ;;  %s3755_s27 = smov [#allocation5]  }
   0xc   : > { %s5983_s24 = scalar_select %p3830_p4, 1, 0 }
   0xd   : > { %s5984_s25 = scalar_select %p3835_p6, 1, 0 }
   0xe   : > { %p3840_p8 = pnand %p2986_p5, %p164_p7  ;;  %s176_s28 = sshll.u32 %s3755_s27, 4  ;;  %s3844_s28 = int_to_ptr.vmem [resolvable:$true] %s176_s28 }
   0xf   : > { %s3756_s30 = smov [#allocation8]   ;;  %s3757_s7 = smov [#allocation7]  }
  0x10   : > { %s5985_s26 = scalar_select %p3840_p8, 1, 0 }
  0x11   : > { %p3317_p9 = pneg %p3840_p8  ;;  %s201_s6 = sshll.u32 %s3756_s30, 4  ;;  %s3855_s6 = int_to_ptr.vmem [resolvable:$true] %s201_s6 }
  0x12   : > { %s3857_s8 = sshll.u32 %s3757_s7, 4  ;;  %s3537_s11 = scalar_lea.hbm %s5805_s1, 4096  ;;  %s191_s8 = int_to_ptr.vmem [resolvable:$true] %s3857_s8 }
  0x13   : > { %p3851_p11 = pnand %p3317_p9, %p5810_p1  ;;  %p3538_p12 = scmp.ne.s32.totalorder %s5805_s1, %s3537_s11 }
  0x14   : > { %p3544_p5 = scmp.lt.u32.totalorder %s3537_s11, %s5805_s1 }
  0x15   : > { %p3867_p13 = pneg %p3851_p11 }
  0x17   : > { %p3540_p0 = pnand %p3867_p13, %p3538_p12 }
  0x19   : > { %p3541_p3 = pneg %p3540_p0 }
  0x1b   : > { %p3546_p7 = pnand %p3544_p5, %p3541_p3 }
  0x1d   : > { %3549 = shalt.err (!%p3546_p7)
}
  0x1e   : > { %s3550_s17 = scalar_lea.vmem %s3844_s28, 4096  ;;  %p3558_p2 = scmp.lt.s32.totalorder %s3844_s28, %s3844_s28 }
  0x1f   : > { %p3551_p9 = scmp.ne.s32.totalorder %s3844_s28, %s3550_s17  ;;  %p3559_p6 = scmp.lt.s32.totalorder %s3550_s17, %s3550_s17 }
  0x21   : > { %p3553_p10 = pnand %p3551_p9, %p3867_p13  ;;  %p3560_p12 = por %p3559_p6, %p3558_p2 }
  0x23   : > { %p3554_p1 = pneg %p3553_p10 }
  0x25   : > { %p3561_p0 = pnand %p3560_p12, %p3554_p1 }
  0x27   : > { %3564 = shalt.err (!%p3561_p0)
}
  0x28   : > { %s3758_s23 = smov 256   ;;  %s3759_s27 = smov 16  }
  0x29   : > { %3320 = dma.hbm_to_vmem [thread:$0]  (!%p3851_p11), %s5805_s1, 4096, %s3844_s28, [#allocation6], %s3758_s23, %s3758_s23, %s3759_s27  }
  0x2a   : > { %s3565_s11 = scalar_lea.hbm %s5807_s3, 64 }
  0x2b   : > { %p3566_p2 = scmp.ne.s32.totalorder %s5807_s3, %s3565_s11  ;;  %p3572_p10 = scmp.lt.u32.totalorder %s3565_s11, %s5807_s3 }
  0x2d   : > { %p3568_p1 = pnand %p3566_p2, %p3867_p13 }
  0x2f   : > { %p3569_p6 = pneg %p3568_p1 }
  0x31   : > { %p3574_p3 = pnand %p3572_p10, %p3569_p6 }
  0x33   : > { %3577 = shalt.err (!%p3574_p3)
}
  0x34   : > { %s3578_s28 = scalar_lea.vmem %s3855_s6, 64  ;;  %p3586_p12 = scmp.lt.s32.totalorder %s3855_s6, %s3855_s6 }
  0x35   : > { %p3579_p5 = scmp.ne.s32.totalorder %s3855_s6, %s3578_s28  ;;  %p3587_p0 = scmp.lt.s32.totalorder %s3578_s28, %s3578_s28 }
  0x37   : > { %p3581_p7 = pnand %p3579_p5, %p3867_p13  ;;  %p3588_p2 = por %p3587_p0, %p3586_p12 }
  0x39   : > { %p3582_p9 = pneg %p3581_p7 }
  0x3b   : > { %p3589_p1 = pnand %p3588_p2, %p3582_p9 }
  0x3d   : > { %3592 = shalt.err (!%p3589_p1)
}
  0x3e   : > { %3326 = dma.hbm_to_vmem [thread:$0]  (!%p3851_p11), %s5807_s3, 64, %s3855_s6, [#allocation9]  }
  0x3f   : > { %s3593_s7 = scalar_lea.hbm %s5806_s2, 64 }
  0x40   : > { %p3594_p6 = scmp.ne.s32.totalorder %s5806_s2, %s3593_s7  ;;  %p3600_p5 = scmp.lt.u32.totalorder %s3593_s7, %s5806_s2 }
  0x42   : > { %p3596_p10 = pnand %p3594_p6, %p3867_p13 }
  0x44   : > { %p3597_p3 = pneg %p3596_p10 }
  0x46   : > { %p3602_p7 = pnand %p3600_p5, %p3597_p3 }
  0x48   : > { %3605 = shalt.err (!%p3602_p7)
}
  0x49   : > { %s3606_s13 = scalar_lea.vmem %s191_s8, 64  ;;  %p3614_p2 = scmp.lt.s32.totalorder %s191_s8, %s191_s8 }
  0x4a   : > { %p3607_p9 = scmp.ne.s32.totalorder %s191_s8, %s3606_s13  ;;  %p3615_p1 = scmp.lt.s32.totalorder %s3606_s13, %s3606_s13 }
  0x4c   : > { %p3609_p12 = pnand %p3607_p9, %p3867_p13  ;;  %p3616_p4 = por %p3615_p1, %p3614_p2 }
  0x4e   : > { %p3610_p0 = pneg %p3609_p12 }
  0x50   : > { %p3617_p8 = pnand %p3616_p4, %p3610_p0 }
  0x52   : > { %3620 = shalt.err (!%p3617_p8)
}
  0x53   : > { %3323 = dma.hbm_to_vmem [thread:$0]  (!%p3851_p11), %s5806_s2, 64, %s191_s8, [#allocation6]  }
  0x54   : > { %s3760_s16 = smov [#allocation10]   ;;  %s3621_s27 = scalar_lea.hbm %s5808_s4, 4096 }
  0x55   : > { %s211_s28 = sshll.u32 %s3760_s16, 4  ;;  %p3622_p6 = scmp.ne.s32.totalorder %s5808_s4, %s3621_s27  ;;  %s212_s28 = int_to_ptr.vmem [resolvable:$true] %s211_s28 }
  0x56   : > { %p3628_p10 = scmp.lt.u32.totalorder %s3621_s27, %s5808_s4 }
  0x57   : > { %p3624_p4 = pnand %p3622_p6, %p3867_p13 }
  0x59   : > { %p3625_p8 = pneg %p3624_p4 }
  0x5b   : > { %p3630_p3 = pnand %p3628_p10, %p3625_p8 }
  0x5d   : > { %3633 = shalt.err (!%p3630_p3)
}
  0x5e   : > { %s3634_s8 = scalar_lea.vmem %s212_s28, 4096  ;;  %p3642_p12 = scmp.lt.s32.totalorder %s212_s28, %s212_s28 }
  0x5f   : > { %p3635_p5 = scmp.ne.s32.totalorder %s212_s28, %s3634_s8  ;;  %p3643_p0 = scmp.lt.s32.totalorder %s3634_s8, %s3634_s8 }
  0x61   : > { %p3637_p7 = pnand %p3635_p5, %p3867_p13  ;;  %p3644_p2 = por %p3643_p0, %p3642_p12 }
  0x63   : > { %p3638_p9 = pneg %p3637_p7 }
  0x65   : > { %p3645_p1 = pnand %p3644_p2, %p3638_p9 }
  0x67   : > { %3648 = shalt.err (!%p3645_p1)
}
  0x68   : > { %s3761_s11 = smov 64   ;;  %s3762_s14 = smov 4  }
  0x69   : > { %3329 = dma.hbm_to_vmem [thread:$0]  (!%p3851_p11), %s5808_s4, 4096, %s212_s28, [#allocation9], %s3761_s11, %s3761_s11, %s3762_s14  }
  0x6a   : > { %s3949_s6 = sadd.s32 1, %s3753_s21   ;;  %s30_s16 = sadd.s32 1, %s3749_s20 }
  0x6b   : > { %s27_s15 = ssub.s32 %s3753_s21, %s3949_s6  ;;  %p37_p6 = scmp.ne.s32.totalorder %s3749_s20, %s3745_s19 }
  0x6c   : > { %p28_p13 = scmp.eq.s32.totalorder %s27_s15, 0  ;;  %p38_p4 = scmp.eq.s32.totalorder %s3753_s21, 0 }
  0x6d   : > { %p5988_p10 = scmp.eq.s32.totalorder %s3821_s22, 1  ;;  %p3342_p5 = scmp.lt.s32.totalorder %s3753_s21, 2 }
  0x6e   : > { %s3958_s17 = scalar_select %p28_p13, %s3749_s20, %s30_s16  }
  0x6f   : > { %p39_p8 = por %p38_p4, %p37_p6  ;;  %p3962_p3 = por %p5988_p10, %p37_p6 }
  0x70   : > { %s225_s29 = sand.u32 1, %s3749_s20   ;;  %s3071_s28 = sshll.u32 %s3753_s21, 12 }
  0x71   : > { %s2992_s27 = sshll.u32 %s225_s29, 8  ;;  %s3972_s9 = scalar_lea.hbm %s5804_s0, %s3071_s28 }
  0x72   : > { %s229_s10 = scalar_lea.vmem [#allocation2], %s2992_s27  ;;  %p3976_p11 = pnand %p3342_p5, %p39_p8 }
  0x73   : > { %s236_s8 = sshll.u32 %s229_s10, 4  ;;  %s3980_s14 = scalar_lea.sflag [#allocation3], %s225_s29  ;;  %s3974_s8 = int_to_ptr.vmem [resolvable:$true] %s236_s8 }
  0x74   : > { %s3649_s12 = scalar_lea.hbm %s3972_s9, 4096  ;;  %p3651_p9 = pneg %p3976_p11 }
  0x75   : > { %p3650_p7 = scmp.ne.s32.totalorder %s3972_s9, %s3649_s12  ;;  %s3654_s16 = scalar_lea.hbm %s5804_s0, 8192 }
  0x76   : > { %p3655_p2 = scmp.lt.u32.totalorder %s3972_s9, %s5804_s0  ;;  %p3656_p1 = scmp.lt.u32.totalorder %s3654_s16, %s3649_s12 }
  0x77   : > { %p3652_p12 = pnand %p3651_p9, %p3650_p7  ;;  %p3658_p6 = scmp.lt.u32.totalorder %s3649_s12, %s3972_s9 }
  0x78   : > { %p3657_p13 = por %p3656_p1, %p3655_p2 }
  0x79   : > { %p3653_p0 = pneg %p3652_p12 }
  0x7a   : > { %p3659_p4 = por %p3658_p6, %p3657_p13 }
  0x7c   : > { %p3660_p8 = pnand %p3659_p4, %p3653_p0 }
  0x7e   : > { %3663 = shalt.err (!%p3660_p8)
}
  0x7f   : > { %s3664_s29 = scalar_lea.vmem %s3974_s8, 4096  ;;  %s3763_s30 = smov [#allocation2]  }
  0x80   : > { %p3665_p10 = scmp.ne.s32.totalorder %s3974_s8, %s3664_s29  ;;  %s3669_s7 = sshll.u32 %s3763_s30, 4  ;;  %s3670_s7 = int_to_ptr.vmem [resolvable:$false] %s3669_s7 }
  0x81   : > { %s3671_s10 = scalar_lea.vmem %s3670_s7, 8192  ;;  %p3672_p12 = scmp.lt.s32.totalorder %s3974_s8, %s3670_s7 }
  0x82   : > { %p3667_p5 = pnand %p3665_p10, %p3651_p9  ;;  %p3673_p2 = scmp.lt.s32.totalorder %s3671_s10, %s3664_s29 }
  0x84   : > { %p3668_p7 = pneg %p3667_p5  ;;  %p3674_p1 = por %p3673_p2, %p3672_p12 }
  0x86   : > { %p3675_p13 = pnand %p3674_p1, %p3668_p7 }
  0x88   : > { %3678 = shalt.err (!%p3675_p13)
}
  0x89   : > { %s3764_s12 = smov 128   ;;  %s3765_s13 = smov 8  }
  0x8a   : > { %3333 = dma.hbm_to_vmem [thread:$0]  (!%p3976_p11), %s3972_s9, 4096, %s3974_s8, %s3980_s14, %s3764_s12, %s3764_s12, %s3765_s13  }
  0x8b   : > { %p5991_p9 = scmp.ne.s32.totalorder %s5985_s26, 0 }
  0x8d   : > { %248 = sbr.rel (%p5991_p9) target bundleno = 1189 (0x4a5), region = 40 }
  0x94   : > { %s4011_s15 = sand.u32 1, %s3745_s19   ;;  %p5992_p0 = scmp.ne.s32.totalorder %s5983_s24, 0 }
  0x95   : > { %s2996_s16 = sshll.u32 %s4011_s15, 8  ;;  %s251_s27 = scalar_lea.sflag [#allocation3], %s4011_s15 }
  0x96   : > { %s4017_s28 = scalar_lea.vmem [#allocation2], %s2996_s16 }
  0x97   : > { %3724 = dma.done.wait (%p5992_p0), %s251_s27, 4096  }
  0x98   : > { %3726 = vsyncadd (%p5992_p0), %s251_s27, 4294963200  ;;  %p5993_p11 = scmp.eq.s32.totalorder %s3821_s22, 0 }
  0x9a   : > { %3728 = dma.done.wait (%p5993_p11), [#allocation6], 4160   ;;  %p5994_p6 = pmov %p5993_p11 }
  0x9c   : > { %3730 = vsyncadd (%p5994_p6), [#allocation6], 4294963136  ;;  %p5995_p4 = pmov %p5994_p6 }
  0x9e   : > { %3732 = dma.done.wait (%p5995_p4), [#allocation9], 4160   ;;  %p5996_p8 = pmov %p5995_p4 }
  0x9f   : > { %v3766_v0 = vmov 0   ;;  %v3393_v1 = vld [vmem:[#allocation5 + $0x4] ss:$16 sps:$4 sm:$0xff]   ;;  %v3395_v2 = vld [vmem:[#allocation5 + $0xc] ss:$16 sps:$4 sm:$0xff]   ;;  %s5719_s24 = scalar_lea.vmem [#allocation11], %s2996_s16 }
  0xa0   : > { %3734 = vsyncadd (%p5996_p8), [#allocation9], 4294963136  ;;  %572 = vmatprep.mubr.bf16.mxu0 %v3766_v0  ;;  %765 = vmatprep.mubr.bf16.mxu1 %v3766_v0  ;;  %v3397_v3 = vld [vmem:[#allocation5] ss:$16 sps:$4 sm:$0xff]   ;;  %v3398_v4 = vld [vmem:[#allocation5 + $0x8] ss:$16 sps:$4 sm:$0xff]  }
  0xa1   : > { %540 = vmatprep.subr.bf16.mxu0 %v3393_v1  ;;  %733 = vmatprep.subr.bf16.mxu1 %v3395_v2  ;;  %v3399_v5 = vld [vmem:[#allocation5 + $0x24] ss:$16 sps:$4 sm:$0xff]   ;;  %v3401_v6 = vld [vmem:[#allocation5 + $0x2c] ss:$16 sps:$4 sm:$0xff]   ;;  %v3403_v7 = vld [vmem:[#allocation5 + $0x20] ss:$16 sps:$4 sm:$0xff]  }
  0xa2   : > { %541 = vmatpush1.bf16.msra.mxu0 %v3397_v3  ;;  %734 = vmatpush1.bf16.msra.mxu1 %v3398_v4  ;;  %v3404_v8 = vld [vmem:[#allocation5 + $0x28] ss:$16 sps:$4 sm:$0xff]   ;;  %v3405_v9 = vld [vmem:[#allocation5 + $0x44] ss:$16 sps:$4 sm:$0xff]   ;;  %v3407_v10 = vld [vmem:[#allocation5 + $0x4c] ss:$16 sps:$4 sm:$0xff]  }
  0xa3   : > { %542 = vmatprep.subr.bf16.mxu0 %v3399_v5  ;;  %735 = vmatprep.subr.bf16.mxu1 %v3401_v6  ;;  %v3409_v11 = vld [vmem:[#allocation5 + $0x40] ss:$16 sps:$4 sm:$0xff]   ;;  %v3410_v12 = vld [vmem:[#allocation5 + $0x48] ss:$16 sps:$4 sm:$0xff]   ;;  %v3411_v13 = vld [vmem:[#allocation5 + $0x64] ss:$16 sps:$4 sm:$0xff]  }
  0xa4   : > { %v3413_v14 = vld [vmem:[#allocation5 + $0x6c] ss:$16 sps:$4 sm:$0xff]   ;;  %v3415_v15 = vld [vmem:[#allocation5 + $0x60] ss:$16 sps:$4 sm:$0xff]   ;;  %v3416_v16 = vld [vmem:[#allocation5 + $0x68] ss:$16 sps:$4 sm:$0xff]  }
  0xa5   : > { %v3417_v17 = vld [vmem:[#allocation5 + $0x84] ss:$16 sps:$4 sm:$0xff]   ;;  %v3419_v18 = vld [vmem:[#allocation5 + $0x8c] ss:$16 sps:$4 sm:$0xff]   ;;  %v3421_v19 = vld [vmem:[#allocation5 + $0x80] ss:$16 sps:$4 sm:$0xff]  }
  0xa6   : > { %543 = vmatpush1.bf16.msra.mxu0 %v3403_v7  ;;  %736 = vmatpush1.bf16.msra.mxu1 %v3404_v8  ;;  %v3422_v20 = vld [vmem:[#allocation5 + $0x88] ss:$16 sps:$4 sm:$0xff]   ;;  %v3423_v21 = vld [vmem:[#allocation5 + $0xa4] ss:$16 sps:$4 sm:$0xff]   ;;  %v3425_v22 = vld [vmem:[#allocation5 + $0xac] ss:$16 sps:$4 sm:$0xff]  }
  0xa7   : > { %544 = vmatprep.subr.bf16.mxu0 %v3405_v9  ;;  %737 = vmatprep.subr.bf16.mxu1 %v3407_v10  ;;  %v3427_v23 = vld [vmem:[#allocation5 + $0xa0] ss:$16 sps:$4 sm:$0xff]   ;;  %v3428_v24 = vld [vmem:[#allocation5 + $0xa8] ss:$16 sps:$4 sm:$0xff]   ;;  %v3429_v25 = vld [vmem:[#allocation5 + $0xc4] ss:$16 sps:$4 sm:$0xff]  }
  0xa8   : > { %v3431_v26 = vld [vmem:[#allocation5 + $0xcc] ss:$16 sps:$4 sm:$0xff]   ;;  %v3433_v27 = vld [vmem:[#allocation5 + $0xc0] ss:$16 sps:$4 sm:$0xff]   ;;  %v3434_v28 = vld [vmem:[#allocation5 + $0xc8] ss:$16 sps:$4 sm:$0xff]  }
  0xa9   : > { %v3435_v29 = vld [vmem:[#allocation5 + $0xe4] ss:$16 sps:$4 sm:$0xff]   ;;  %v3437_v30 = vld [vmem:[#allocation5 + $0xec] ss:$16 sps:$4 sm:$0xff]   ;;  %v3439_v31 = vld [vmem:[#allocation5 + $0xe0] ss:$16 sps:$4 sm:$0xff]  }
  0xaa   : > { %545 = vmatpush1.bf16.msra.mxu0 %v3409_v11  ;;  %738 = vmatpush1.bf16.msra.mxu1 %v3410_v12  ;;  %v3440_v32 = vld [vmem:[#allocation5 + $0xe8] ss:$16 sps:$4 sm:$0xff]   ;;  %v300_v33 = vld [vmem:[%s4017_s28] sm:$0xff]  ;;  %v302_v36 = vld [vmem:[%s4017_s28 + $0x10] sm:$0xff]  ;;  %s3072_s26 = sshll.u32 %s3821_s22, 12  ;;  %s2874_s9 = sshll.u32 %s5719_s24, 4  ;;  %s5758_s9 = int_to_ptr.vmem [resolvable:$true] %s2874_s9 }
  0xab   : > { %546 = vmatprep.subr.bf16.mxu0 %v3411_v13  ;;  %739 = vmatprep.subr.bf16.mxu1 %v3413_v14  ;;  %v301_v34 = vld [vmem:[%s4017_s28 + $0x8] sm:$0xff]  ;;  %v303_v37 = vld [vmem:[%s4017_s28 + $0x18] sm:$0xff]  ;;  %v304_v39 = vld [vmem:[%s4017_s28 + $0x20] sm:$0xff]  ;;  %s5756_s14 = scalar_lea.hbm %s5809_s5, %s3072_s26  ;;  %s2861_s22 = scalar_lea.sflag [#allocation4], %s4011_s15 }
  0xac   : > { %v332_v35 = vpack.c.bf16 %v301_v34, %v300_v33  ;;  %v333_v38 = vpack.c.bf16 %v303_v37, %v302_v36  ;;  %v305_v40 = vld [vmem:[%s4017_s28 + $0x28] sm:$0xff]  ;;  %v306_v42 = vld [vmem:[%s4017_s28 + $0x30] sm:$0xff]  ;;  %v307_v43 = vld [vmem:[%s4017_s28 + $0x38] sm:$0xff]  ;;  %s3679_s29 = scalar_lea.vmem %s5758_s9, 4096  ;;  %s3767_s30 = smov [#allocation11]  }
  0xad   : > { %v334_v41 = vpack.c.bf16 %v305_v40, %v304_v39  ;;  %v335_v44 = vpack.c.bf16 %v307_v43, %v306_v42  ;;  %v308_v45 = vld [vmem:[%s4017_s28 + $0x40] sm:$0xff]  ;;  %v309_v46 = vld [vmem:[%s4017_s28 + $0x48] sm:$0xff]  ;;  %v310_v48 = vld [vmem:[%s4017_s28 + $0x50] sm:$0xff]  ;;  %p3680_p10 = scmp.ne.s32.totalorder %s5758_s9, %s3679_s29  ;;  %s3683_s7 = sshll.u32 %s3767_s30, 4  ;;  %s3684_s7 = int_to_ptr.vmem [resolvable:$false] %s3683_s7 }
  0xae   : > { %547 = vmatpush1.bf16.msra.mxu0 %v3415_v15  ;;  %740 = vmatpush1.bf16.msra.mxu1 %v3416_v16  ;;  %v336_v47 = vpack.c.bf16 %v309_v46, %v308_v45  ;;  %v311_v49 = vld [vmem:[%s4017_s28 + $0x58] sm:$0xff]  ;;  %v312_v51 = vld [vmem:[%s4017_s28 + $0x60] sm:$0xff]  ;;  %v313_v52 = vld [vmem:[%s4017_s28 + $0x68] sm:$0xff]  ;;  %s3685_s10 = scalar_lea.vmem %s3684_s7, 8192  ;;  %p3686_p12 = scmp.lt.s32.totalorder %s5758_s9, %s3684_s7 }
  0xaf   : > { %548 = vmatprep.subr.bf16.mxu0 %v3417_v17  ;;  %741 = vmatprep.subr.bf16.mxu1 %v3419_v18  ;;  %v337_v50 = vpack.c.bf16 %v311_v49, %v310_v48  ;;  %v338_v53 = vpack.c.bf16 %v313_v52, %v312_v51  ;;  %v314_v54 = vld [vmem:[%s4017_s28 + $0x70] sm:$0xff]  ;;  %v315_v55 = vld [vmem:[%s4017_s28 + $0x78] sm:$0xff]  ;;  %v316_v57 = vld [vmem:[%s4017_s28 + $0x80] sm:$0xff]  ;;  %p3681_p5 = pnand %p3680_p10, %p3962_p3  ;;  %p3687_p2 = scmp.lt.s32.totalorder %s3685_s10, %s3679_s29 }
  0xb0   : > { %v339_v56 = vpack.c.bf16 %v315_v55, %v314_v54  ;;  %v317_v58 = vld [vmem:[%s4017_s28 + $0x88] sm:$0xff]  ;;  %v318_v60 = vld [vmem:[%s4017_s28 + $0x90] sm:$0xff]  ;;  %v319_v61 = vld [vmem:[%s4017_s28 + $0x98] sm:$0xff] }
  0xb1   : > { %v340_v59 = vpack.c.bf16 %v317_v58, %v316_v57  ;;  %v341_v62 = vpack.c.bf16 %v319_v61, %v318_v60  ;;  %v320_v63 = vld [vmem:[%s4017_s28 + $0xa0] sm:$0xff]  ;;  %v321_v1 = vld [vmem:[%s4017_s28 + $0xa8] sm:$0xff]  ;;  %v322_v3 = vld [vmem:[%s4017_s28 + $0xb0] sm:$0xff]  ;;  %p3682_p7 = pneg %p3681_p5  ;;  %p3688_p1 = por %p3687_p2, %p3686_p12 }
  0xb2   : > { %549 = vmatpush1.bf16.msra.mxu0 %v3421_v19  ;;  %742 = vmatpush1.bf16.msra.mxu1 %v3422_v20  ;;  %v342_v2 = vpack.c.bf16 %v321_v1, %v320_v63  ;;  %v323_v4 = vld [vmem:[%s4017_s28 + $0xb8] sm:$0xff]  ;;  %v324_v6 = vld [vmem:[%s4017_s28 + $0xc0] sm:$0xff]  ;;  %v325_v7 = vld [vmem:[%s4017_s28 + $0xc8] sm:$0xff] }
  0xb3   : > { %550 = vmatprep.subr.bf16.mxu0 %v3423_v21  ;;  %743 = vmatprep.subr.bf16.mxu1 %v3425_v22  ;;  %v343_v5 = vpack.c.bf16 %v323_v4, %v322_v3  ;;  %v344_v8 = vpack.c.bf16 %v325_v7, %v324_v6  ;;  %v326_v9 = vld [vmem:[%s4017_s28 + $0xd0] sm:$0xff]  ;;  %v327_v10 = vld [vmem:[%s4017_s28 + $0xd8] sm:$0xff]  ;;  %v328_v12 = vld [vmem:[%s4017_s28 + $0xe0] sm:$0xff]  ;;  %p3689_p13 = pnand %p3688_p1, %p3682_p7 }
  0xb4   : > { %v345_v11 = vpack.c.bf16 %v327_v10, %v326_v9  ;;  %v329_v13 = vld [vmem:[%s4017_s28 + $0xe8] sm:$0xff]  ;;  %v330_v15 = vld [vmem:[%s4017_s28 + $0xf0] sm:$0xff]  ;;  %v331_v16 = vld [vmem:[%s4017_s28 + $0xf8] sm:$0xff] }
  0xb5   : > { %v346_v14 = vpack.c.bf16 %v329_v13, %v328_v12  ;;  %v347_v17 = vpack.c.bf16 %v331_v16, %v330_v15 }
  0xb6   : > { %551 = vmatpush1.bf16.msra.mxu0 %v3427_v23  ;;  %744 = vmatpush1.bf16.msra.mxu1 %v3428_v24 }
  0xb7   : > { %552 = vmatprep.subr.bf16.mxu0 %v3429_v25  ;;  %745 = vmatprep.subr.bf16.mxu1 %v3431_v26 }
  0xba   : > { %553 = vmatpush1.bf16.msra.mxu0 %v3433_v27  ;;  %746 = vmatpush1.bf16.msra.mxu1 %v3434_v28 }
  0xbb   : > { %554 = vmatprep.subr.bf16.mxu0 %v3435_v29  ;;  %747 = vmatprep.subr.bf16.mxu1 %v3437_v30 }
  0xbe   : > { %555 = vmatpush1.bf16.msra.mxu0 %v3439_v31  ;;  %748 = vmatpush1.bf16.msra.mxu1 %v3440_v32 }
  0xc1   : > { %573 = vmatmul.mubr.bf16.vlgmr.msra.gmra.mrb[0].mxu0 %v332_v35  ;;  %766 = vmatmul.mubr.bf16.vlgmr.msra.gmra.mrb[0].mxu1 %v332_v35 }
  0xc2   : > { %582 = vmatprep.mubr.bf16.mxu0 %v3766_v0  ;;  %775 = vmatprep.mubr.bf16.mxu1 %v3766_v0 }
  0xc9   : > { %583 = vmatmul.mubr.bf16.gmra.mrb[4].mxu0 %v333_v38  ;;  %776 = vmatmul.mubr.bf16.gmra.mrb[4].mxu1 %v333_v38 }
  0xca   : > { %592 = vmatprep.mubr.bf16.mxu0 %v3766_v0  ;;  %785 = vmatprep.mubr.bf16.mxu1 %v3766_v0 }
  0xd1   : > { %593 = vmatmul.mubr.bf16.gmra.mrb[8].mxu0 %v334_v41  ;;  %786 = vmatmul.mubr.bf16.gmra.mrb[8].mxu1 %v334_v41 }
  0xd2   : > { %602 = vmatprep.mubr.bf16.mxu0 %v3766_v0  ;;  %795 = vmatprep.mubr.bf16.mxu1 %v3766_v0 }
  0xd9   : > { %603 = vmatmul.mubr.bf16.gmra.mrb[12].mxu0 %v335_v44  ;;  %796 = vmatmul.mubr.bf16.gmra.mrb[12].mxu1 %v335_v44 }
  0xda   : > { %612 = vmatprep.mubr.bf16.mxu0 %v3766_v0  ;;  %805 = vmatprep.mubr.bf16.mxu1 %v3766_v0 }
  0xe1   : > { %613 = vmatmul.mubr.bf16.gmra.mrb[16].mxu0 %v336_v47  ;;  %806 = vmatmul.mubr.bf16.gmra.mrb[16].mxu1 %v336_v47 }
  0xe2   : > { %622 = vmatprep.mubr.bf16.mxu0 %v3766_v0  ;;  %815 = vmatprep.mubr.bf16.mxu1 %v3766_v0 }
  0xe9   : > { %623 = vmatmul.mubr.bf16.gmra.mrb[20].mxu0 %v337_v50  ;;  %816 = vmatmul.mubr.bf16.gmra.mrb[20].mxu1 %v337_v50 }
  0xea   : > { %632 = vmatprep.mubr.bf16.mxu0 %v3766_v0  ;;  %825 = vmatprep.mubr.bf16.mxu1 %v3766_v0 }
  0xf1   : > { %633 = vmatmul.mubr.bf16.gmra.mrb[24].mxu0 %v338_v53  ;;  %826 = vmatmul.mubr.bf16.gmra.mrb[24].mxu1 %v338_v53 }
  0xf2   : > { %642 = vmatprep.mubr.bf16.mxu0 %v3766_v0  ;;  %835 = vmatprep.mubr.bf16.mxu1 %v3766_v0 }
  0xf9   : > { %643 = vmatmul.mubr.bf16.gmra.mrb[28].mxu0 %v339_v56  ;;  %836 = vmatmul.mubr.bf16.gmra.mrb[28].mxu1 %v339_v56 }
  0xfa   : > { %652 = vmatprep.mubr.bf16.mxu0 %v3766_v0  ;;  %845 = vmatprep.mubr.bf16.mxu1 %v3766_v0 }
 0x101   : > { %653 = vmatmul.mubr.bf16.gmra.mrb[32].mxu0 %v340_v59  ;;  %846 = vmatmul.mubr.bf16.gmra.mrb[32].mxu1 %v340_v59 }
 0x102   : > { %662 = vmatprep.mubr.bf16.mxu0 %v3766_v0  ;;  %855 = vmatprep.mubr.bf16.mxu1 %v3766_v0 }
 0x109   : > { %663 = vmatmul.mubr.bf16.gmra.mrb[36].mxu0 %v341_v62  ;;  %856 = vmatmul.mubr.bf16.gmra.mrb[36].mxu1 %v341_v62 }
 0x10a   : > { %672 = vmatprep.mubr.bf16.mxu0 %v3766_v0  ;;  %865 = vmatprep.mubr.bf16.mxu1 %v3766_v0 }
 0x111   : > { %673 = vmatmul.mubr.bf16.gmra.mrb[40].mxu0 %v342_v2  ;;  %866 = vmatmul.mubr.bf16.gmra.mrb[40].mxu1 %v342_v2 }
 0x112   : > { %682 = vmatprep.mubr.bf16.mxu0 %v3766_v0  ;;  %875 = vmatprep.mubr.bf16.mxu1 %v3766_v0 }
 0x119   : > { %683 = vmatmul.mubr.bf16.gmra.mrb[44].mxu0 %v343_v5  ;;  %876 = vmatmul.mubr.bf16.gmra.mrb[44].mxu1 %v343_v5 }
 0x11a   : > { %692 = vmatprep.mubr.bf16.mxu0 %v3766_v0  ;;  %885 = vmatprep.mubr.bf16.mxu1 %v3766_v0 }
 0x121   : > { %693 = vmatmul.mubr.bf16.gmra.mrb[48].mxu0 %v344_v8  ;;  %886 = vmatmul.mubr.bf16.gmra.mrb[48].mxu1 %v344_v8 }
 0x122   : > { %702 = vmatprep.mubr.bf16.mxu0 %v3766_v0  ;;  %895 = vmatprep.mubr.bf16.mxu1 %v3766_v0 }
 0x129   : > { %703 = vmatmul.mubr.bf16.gmra.mrb[52].mxu0 %v345_v11  ;;  %896 = vmatmul.mubr.bf16.gmra.mrb[52].mxu1 %v345_v11 }
 0x12a   : > { %712 = vmatprep.mubr.bf16.mxu0 %v3766_v0  ;;  %905 = vmatprep.mubr.bf16.mxu1 %v3766_v0 }
 0x131   : > { %713 = vmatmul.mubr.bf16.gmra.mrb[56].mxu0 %v346_v14  ;;  %906 = vmatmul.mubr.bf16.gmra.mrb[56].mxu1 %v346_v14 }
 0x132   : > { %722 = vmatprep.mubr.bf16.mxu0 %v3766_v0  ;;  %915 = vmatprep.mubr.bf16.mxu1 %v3766_v0 }
 0x139   : > { %723 = vmatmul.mubr.bf16.gmra.mrb[60].mxu0 %v347_v17  ;;  %916 = vmatmul.mubr.bf16.gmra.mrb[60].mxu1 %v347_v17 }
 0x194   : > { %v4095_v18 = vpop.f32.mrb[0].mxu0  ;;  %v4097_v19 = vpop.f32.mrb[0].mxu1 }
 0x195   : > { %v4099_v20 = vpop.f32.mrb[1].mxu0  ;;  %v4101_v21 = vpop.f32.mrb[1].mxu1 }
 0x196   : > { %v926_v22 = vadd.f32 %v4099_v20, %v4095_v18  ;;  %v4105_v23 = vpop.f32.mrb[2].mxu0  ;;  %v4107_v24 = vpop.f32.mrb[2].mxu1 }
 0x197   : > { %v4109_v25 = vpop.f32.mrb[3].mxu0  ;;  %v4111_v0 = vpop.f32.mrb[3].mxu1 }
 0x198   : > { %v931_v26 = vadd.f32 %v4109_v25, %v4105_v23  ;;  %v927_v27 = vadd.f32 %v926_v22, %v4097_v19 }
 0x19a   : > { %v928_v28 = vadd.f32 %v927_v27, %v4101_v21  ;;  %v932_v29 = vadd.f32 %v931_v26, %v4107_v24 }
 0x19c   : > { %v4118_v30 = vpop.f32.mrb[4].mxu1  ;;  %929 = vadd.xlane.f32.xlu0 %v928_v28  ;;  %v4120_v31 = vpop.f32.mrb[4].mxu0  ;;  %v933_v32 = vadd.f32 %v932_v29, %v4111_v0 }
 0x19d   : > { %v4123_v33 = vpop.f32.mrb[5].mxu0  ;;  %v4125_v34 = vpop.f32.mrb[5].mxu1 }
 0x19e   : > { %v936_v35 = vadd.f32 %v4123_v33, %v4120_v31  ;;  %v4129_v36 = vpop.f32.mrb[6].mxu0  ;;  %v4131_v37 = vpop.f32.mrb[6].mxu1 }
 0x19f   : > { %v4133_v38 = vpop.f32.mrb[7].mxu0  ;;  %v4135_v39 = vpop.f32.mrb[7].mxu1 }
 0x1a0   : > { %v941_v40 = vadd.f32 %v4133_v38, %v4129_v36  ;;  %934 = vadd.xlane.f32.xlu0 %v933_v32  ;;  %v937_v41 = vadd.f32 %v936_v35, %v4118_v30 }
 0x1a2   : > { %v938_v42 = vadd.f32 %v937_v41, %v4125_v34  ;;  %v942_v43 = vadd.f32 %v941_v40, %v4131_v37 }
 0x1a4   : > { %939 = vadd.xlane.f32.xlu1 %v938_v42  ;;  %v4142_v44 = vpop.f32.mrb[8].mxu0  ;;  %v4144_v45 = vpop.f32.mrb[8].mxu1  ;;  %v943_v46 = vadd.f32 %v942_v43, %v4135_v39 }
 0x1a5   : > { %v4147_v47 = vpop.f32.mrb[9].mxu0  ;;  %v4149_v48 = vpop.f32.mrb[9].mxu1 }
 0x1a6   : > { %v946_v49 = vadd.f32 %v4147_v47, %v4142_v44  ;;  %v4153_v50 = vpop.f32.mrb[10].mxu0  ;;  %v4155_v51 = vpop.f32.mrb[10].mxu1 }
 0x1a7   : > { %v4157_v52 = vpop.f32.mrb[11].mxu0  ;;  %v4159_v53 = vpop.f32.mrb[11].mxu1 }
 0x1a8   : > { %v947_v54 = vadd.f32 %v946_v49, %v4144_v45  ;;  %v951_v55 = vadd.f32 %v4157_v52, %v4153_v50  ;;  %944 = vadd.xlane.f32.xlu1 %v943_v46 }
 0x1aa   : > { %v952_v56 = vadd.f32 %v951_v55, %v4155_v51  ;;  %v948_v57 = vadd.f32 %v947_v54, %v4149_v48 }
 0x1ac   : > { %949 = vadd.xlane.f32.xlu0 %v948_v57  ;;  %v4166_v58 = vpop.f32.mrb[12].mxu0  ;;  %v4168_v59 = vpop.f32.mrb[12].mxu1  ;;  %v953_v60 = vadd.f32 %v952_v56, %v4159_v53 }
 0x1ad   : > { %v4171_v61 = vpop.f32.mrb[13].mxu0  ;;  %v4173_v62 = vpop.f32.mrb[13].mxu1 }
 0x1ae   : > { %v956_v63 = vadd.f32 %v4171_v61, %v4166_v58  ;;  %954 = vadd.xlane.f32.xlu1 %v953_v60  ;;  %v4177_v1 = vpop.f32.mrb[14].mxu0  ;;  %v4179_v2 = vpop.f32.mrb[14].mxu1 }
 0x1af   : > { %v4181_v3 = vpop.f32.mrb[15].mxu0  ;;  %v4183_v4 = vpop.f32.mrb[15].mxu1 }
 0x1b0   : > { %v957_v5 = vadd.f32 %v956_v63, %v4168_v59  ;;  %v961_v6 = vadd.f32 %v4181_v3, %v4177_v1 }
 0x1b2   : > { %v962_v7 = vadd.f32 %v961_v6, %v4179_v2  ;;  %v958_v8 = vadd.f32 %v957_v5, %v4173_v62 }
 0x1b4   : > { %959 = vadd.xlane.f32.xlu0 %v958_v8  ;;  %v4190_v9 = vpop.f32.mrb[16].mxu0  ;;  %v4192_v10 = vpop.f32.mrb[16].mxu1  ;;  %v963_v11 = vadd.f32 %v962_v7, %v4183_v4 }
 0x1b5   : > { %v4195_v12 = vpop.f32.mrb[17].mxu0  ;;  %v4197_v13 = vpop.f32.mrb[17].mxu1 }
 0x1b6   : > { %v966_v14 = vadd.f32 %v4195_v12, %v4190_v9  ;;  %964 = vadd.xlane.f32.xlu1 %v963_v11  ;;  %v4201_v15 = vpop.f32.mrb[18].mxu0  ;;  %v4203_v16 = vpop.f32.mrb[18].mxu1 }
 0x1b7   : > { %v4205_v17 = vpop.f32.mrb[19].mxu0  ;;  %v4207_v22 = vpop.f32.mrb[19].mxu1 }
 0x1b8   : > { %5997 = vst [vmem:[#allocation16_spill] sm:$0xff] %v4207_v22  ;;  %v967_v26 = vadd.f32 %v966_v14, %v4192_v10  ;;  %v971_v27 = vadd.f32 %v4205_v17, %v4201_v15 }
 0x1ba   : > { %v972_v28 = vadd.f32 %v971_v27, %v4203_v16  ;;  %v968_v29 = vadd.f32 %v967_v26, %v4197_v13 }
 0x1bc   : > { %969 = vadd.xlane.f32.xlu0 %v968_v29  ;;  %v4214_v32 = vpop.f32.mrb[20].mxu0  ;;  %v973_v35 = vadd.f32 %v972_v28, %v4207_v22  ;;  %v4217_v40 = vpop.f32.mrb[20].mxu1 }
 0x1bd   : > { %5998 = vst [vmem:[#allocation17_spill] sm:$0xff] %v4214_v32  ;;  %5999 = vst [vmem:[#allocation18_spill] sm:$0xff] %v4217_v40  ;;  %v4219_v41 = vpop.f32.mrb[21].mxu0  ;;  %v4221_v42 = vpop.f32.mrb[21].mxu1 }
 0x1be   : > { %6000 = vst [vmem:[#allocation19_spill] sm:$0xff] %v4219_v41  ;;  %6001 = vst [vmem:[#allocation20_spill] sm:$0xff] %v4221_v42  ;;  %v976_v43 = vadd.f32 %v4219_v41, %v4214_v32  ;;  %974 = vadd.xlane.f32.xlu1 %v973_v35  ;;  %v4225_v46 = vpop.f32.mrb[22].mxu0  ;;  %v4227_v49 = vpop.f32.mrb[22].mxu1  ;;  %v3446_v41 = vld [vmem:[#allocation10 + $0xc8] sm:$0xff]  }
 0x1bf   : > { %6002 = vst [vmem:[#allocation21_spill] sm:$0xff] %v4225_v46  ;;  %6003 = vst [vmem:[#allocation22_spill] sm:$0xff] %v4227_v49  ;;  %v4229_v54 = vpop.f32.mrb[23].mxu0  ;;  %v4231_v55 = vpop.f32.mrb[23].mxu1  ;;  %v3447_v32 = vld [vmem:[#allocation10 + $0x8] sm:$0xff]  }
 0x1c0   : > { %6004 = vst [vmem:[#allocation23_spill] sm:$0xff] %v4229_v54  ;;  %6005 = vst [vmem:[#allocation24_spill] sm:$0xff] %v4231_v55  ;;  %v981_v56 = vadd.f32 %v4229_v54, %v4225_v46  ;;  %v977_v57 = vadd.f32 %v976_v43, %v4217_v40  ;;  %v3444_v46 = vld [vmem:[#allocation10 + $0x80] sm:$0xff]   ;;  %v3445_v40 = vld [vmem:[#allocation10 + $0x48] sm:$0xff]  }
 0x1c2   : > { %v982_v60 = vadd.f32 %v981_v56, %v4227_v49  ;;  %v978_v63 = vadd.f32 %v977_v57, %v4221_v42 }
 0x1c4   : > { %979 = vadd.xlane.f32.xlu0 %v978_v63  ;;  %v4238_v5 = vpop.f32.mrb[24].mxu0  ;;  %v983_v6 = vadd.f32 %v982_v60, %v4231_v55  ;;  %v4241_v7 = vpop.f32.mrb[24].mxu1 }
 0x1c5   : > { %6006 = vst [vmem:[#allocation25_spill] sm:$0xff] %v4238_v5  ;;  %6007 = vst [vmem:[#allocation26_spill] sm:$0xff] %v4241_v7  ;;  %v4243_v8 = vpop.f32.mrb[25].mxu0  ;;  %v4245_v11 = vpop.f32.mrb[25].mxu1 }
 0x1c6   : > { %6008 = vst [vmem:[#allocation27_spill] sm:$0xff] %v4243_v8  ;;  %6009 = vst [vmem:[#allocation28_spill] sm:$0xff] %v4245_v11  ;;  %v986_v14 = vadd.f32 %v4243_v8, %v4238_v5  ;;  %984 = vadd.xlane.f32.xlu1 %v983_v6  ;;  %v4249_v26 = vpop.f32.mrb[26].mxu0  ;;  %v4251_v27 = vpop.f32.mrb[26].mxu1 }
 0x1c7   : > { %6010 = vst [vmem:[#allocation29_spill] sm:$0xff] %v4249_v26  ;;  %6011 = vst [vmem:[#allocation30_spill] sm:$0xff] %v4251_v27  ;;  %v4253_v28 = vpop.f32.mrb[27].mxu0  ;;  %v4255_v29 = vpop.f32.mrb[27].mxu1 }
 0x1c8   : > { %6012 = vst [vmem:[#allocation31_spill] sm:$0xff] %v4253_v28  ;;  %6013 = vst [vmem:[#allocation32_spill] sm:$0xff] %v4255_v29  ;;  %v991_v35 = vadd.f32 %v4253_v28, %v4249_v26  ;;  %v987_v43 = vadd.f32 %v986_v14, %v4241_v7 }
 0x1ca   : > { %v992_v56 = vadd.f32 %v991_v35, %v4251_v27  ;;  %v988_v57 = vadd.f32 %v987_v43, %v4245_v11 }
 0x1cc   : > { %989 = vadd.xlane.f32.xlu0 %v988_v57  ;;  %v4262_v60 = vpop.f32.mrb[28].mxu0  ;;  %v993_v63 = vadd.f32 %v992_v56, %v4255_v29  ;;  %v4265_v6 = vpop.f32.mrb[28].mxu1 }
 0x1cd   : > { %6014 = vst [vmem:[#allocation33_spill] sm:$0xff] %v4262_v60  ;;  %6015 = vst [vmem:[#allocation34_spill] sm:$0xff] %v4265_v6  ;;  %v4267_v8 = vpop.f32.mrb[29].mxu0  ;;  %v4269_v5 = vpop.f32.mrb[29].mxu1 }
 0x1ce   : > { %6016 = vst [vmem:[#allocation35_spill] sm:$0xff] %v4267_v8  ;;  %6017 = vst [vmem:[#allocation36_spill] sm:$0xff] %v4269_v5  ;;  %v996_v28 = vadd.f32 %v4267_v8, %v4262_v60  ;;  %994 = vadd.xlane.f32.xlu1 %v993_v63  ;;  %v4273_v14 = vpop.f32.mrb[30].mxu0  ;;  %v4275_v35 = vpop.f32.mrb[30].mxu1 }
 0x1cf   : > { %6018 = vst [vmem:[#allocation37_spill] sm:$0xff] %v4273_v14  ;;  %6019 = vst [vmem:[#allocation38_spill] sm:$0xff] %v4275_v35  ;;  %v4277_v43 = vpop.f32.mrb[31].mxu0  ;;  %v4279_v57 = vpop.f32.mrb[31].mxu1 }
 0x1d0   : > { %6020 = vst [vmem:[#allocation39_spill] sm:$0xff] %v4277_v43  ;;  %6021 = vst [vmem:[#allocation40_spill] sm:$0xff] %v4279_v57  ;;  %v1001_v56 = vadd.f32 %v4277_v43, %v4273_v14  ;;  %v997_v29 = vadd.f32 %v996_v28, %v4265_v6 }
 0x1d2   : > { %v1002_v27 = vadd.f32 %v1001_v56, %v4275_v35  ;;  %v998_v11 = vadd.f32 %v997_v29, %v4269_v5 }
 0x1d4   : > { %999 = vadd.xlane.f32.xlu0 %v998_v11  ;;  %v4286_v8 = vpop.f32.mrb[32].mxu0  ;;  %v1003_v63 = vadd.f32 %v1002_v27, %v4279_v57  ;;  %v4289_v60 = vpop.f32.mrb[32].mxu1 }
 0x1d5   : > { %6022 = vst [vmem:[#allocation41_spill] sm:$0xff] %v4286_v8  ;;  %6023 = vst [vmem:[#allocation42_spill] sm:$0xff] %v4289_v60  ;;  %v4291_v26 = vpop.f32.mrb[33].mxu0  ;;  %v4293_v7 = vpop.f32.mrb[33].mxu1 }
 0x1d6   : > { %6024 = vst [vmem:[#allocation43_spill] sm:$0xff] %v4291_v26  ;;  %6025 = vst [vmem:[#allocation44_spill] sm:$0xff] %v4293_v7  ;;  %v1006_v43 = vadd.f32 %v4291_v26, %v4286_v8  ;;  %1004 = vadd.xlane.f32.xlu1 %v1003_v63  ;;  %v4297_v28 = vpop.f32.mrb[34].mxu0  ;;  %v4299_v56 = vpop.f32.mrb[34].mxu1 }
 0x1d7   : > { %6026 = vst [vmem:[#allocation45_spill] sm:$0xff] %v4297_v28  ;;  %6027 = vst [vmem:[#allocation46_spill] sm:$0xff] %v4299_v56  ;;  %v4301_v29 = vpop.f32.mrb[35].mxu0  ;;  %v4303_v11 = vpop.f32.mrb[35].mxu1 }
 0x1d8   : > { %6028 = vst [vmem:[#allocation47_spill] sm:$0xff] %v4301_v29  ;;  %6029 = vst [vmem:[#allocation48_spill] sm:$0xff] %v4303_v11  ;;  %v1011_v27 = vadd.f32 %v4301_v29, %v4297_v28  ;;  %v1007_v57 = vadd.f32 %v1006_v43, %v4289_v60 }
 0x1da   : > { %v1012_v35 = vadd.f32 %v1011_v27, %v4299_v56  ;;  %v1008_v5 = vadd.f32 %v1007_v57, %v4293_v7 }
 0x1dc   : > { %1009 = vadd.xlane.f32.xlu0 %v1008_v5  ;;  %v4310_v26 = vpop.f32.mrb[36].mxu0  ;;  %v1013_v63 = vadd.f32 %v1012_v35, %v4303_v11  ;;  %v4313_v8 = vpop.f32.mrb[36].mxu1 }
 0x1dd   : > { %6030 = vst [vmem:[#allocation49_spill] sm:$0xff] %v4310_v26  ;;  %6031 = vst [vmem:[#allocation50_spill] sm:$0xff] %v4313_v8  ;;  %v4315_v14 = vpop.f32.mrb[37].mxu0  ;;  %v4317_v6 = vpop.f32.mrb[37].mxu1 }
 0x1de   : > { %6032 = vst [vmem:[#allocation51_spill] sm:$0xff] %v4315_v14  ;;  %6033 = vst [vmem:[#allocation52_spill] sm:$0xff] %v4317_v6  ;;  %v1016_v29 = vadd.f32 %v4315_v14, %v4310_v26  ;;  %1014 = vadd.xlane.f32.xlu1 %v1013_v63  ;;  %v4321_v43 = vpop.f32.mrb[38].mxu0  ;;  %v4323_v27 = vpop.f32.mrb[38].mxu1 }
 0x1df   : > { %6034 = vst [vmem:[#allocation53_spill] sm:$0xff] %v4321_v43  ;;  %6035 = vst [vmem:[#allocation54_spill] sm:$0xff] %v4323_v27  ;;  %v4325_v57 = vpop.f32.mrb[39].mxu0  ;;  %v4327_v5 = vpop.f32.mrb[39].mxu1 }
 0x1e0   : > { %6036 = vst [vmem:[#allocation55_spill] sm:$0xff] %v4325_v57  ;;  %6037 = vst [vmem:[#allocation56_spill] sm:$0xff] %v4327_v5  ;;  %v1021_v35 = vadd.f32 %v4325_v57, %v4321_v43  ;;  %v1017_v11 = vadd.f32 %v1016_v29, %v4313_v8 }
 0x1e2   : > { %v1022_v56 = vadd.f32 %v1021_v35, %v4323_v27  ;;  %v1018_v7 = vadd.f32 %v1017_v11, %v4317_v6 }
 0x1e4   : > { %1019 = vadd.xlane.f32.xlu0 %v1018_v7  ;;  %v4334_v14 = vpop.f32.mrb[40].mxu0  ;;  %v1023_v63 = vadd.f32 %v1022_v56, %v4327_v5  ;;  %v4337_v26 = vpop.f32.mrb[40].mxu1 }
 0x1e5   : > { %6038 = vst [vmem:[#allocation57_spill] sm:$0xff] %v4334_v14  ;;  %6039 = vst [vmem:[#allocation58_spill] sm:$0xff] %v4337_v26  ;;  %v4339_v28 = vpop.f32.mrb[41].mxu0  ;;  %v4341_v60 = vpop.f32.mrb[41].mxu1 }
 0x1e6   : > { %6040 = vst [vmem:[#allocation59_spill] sm:$0xff] %v4339_v28  ;;  %6041 = vst [vmem:[#allocation60_spill] sm:$0xff] %v4341_v60  ;;  %v1026_v57 = vadd.f32 %v4339_v28, %v4334_v14  ;;  %1024 = vadd.xlane.f32.xlu1 %v1023_v63  ;;  %v4345_v29 = vpop.f32.mrb[42].mxu0  ;;  %v4347_v35 = vpop.f32.mrb[42].mxu1 }
 0x1e7   : > { %6042 = vst [vmem:[#allocation61_spill] sm:$0xff] %v4345_v29  ;;  %6043 = vst [vmem:[#allocation62_spill] sm:$0xff] %v4347_v35  ;;  %v4349_v11 = vpop.f32.mrb[43].mxu0  ;;  %v4351_v7 = vpop.f32.mrb[43].mxu1 }
 0x1e8   : > { %6044 = vst [vmem:[#allocation63_spill] sm:$0xff] %v4349_v11  ;;  %6045 = vst [vmem:[#allocation64_spill] sm:$0xff] %v4351_v7  ;;  %v1031_v56 = vadd.f32 %v4349_v11, %v4345_v29  ;;  %v1027_v5 = vadd.f32 %v1026_v57, %v4337_v26 }
 0x1ea   : > { %v1032_v27 = vadd.f32 %v1031_v56, %v4347_v35  ;;  %v1028_v6 = vadd.f32 %v1027_v5, %v4341_v60 }
 0x1ec   : > { %1029 = vadd.xlane.f32.xlu0 %v1028_v6  ;;  %v1033_v63 = vadd.f32 %v1032_v27, %v4351_v7  ;;  %v4359_v28 = vpop.f32.mrb[44].mxu0  ;;  %v4361_v14 = vpop.f32.mrb[44].mxu1 }
 0x1ed   : > { %6046 = vst [vmem:[#allocation65_spill] sm:$0xff] %v4359_v28  ;;  %6047 = vst [vmem:[#allocation66_spill] sm:$0xff] %v4361_v14  ;;  %v4363_v43 = vpop.f32.mrb[45].mxu0  ;;  %v4365_v8 = vpop.f32.mrb[45].mxu1 }
 0x1ee   : > { %6048 = vst [vmem:[#allocation67_spill] sm:$0xff] %v4363_v43  ;;  %6049 = vst [vmem:[#allocation68_spill] sm:$0xff] %v4365_v8  ;;  %1034 = vadd.xlane.f32.xlu1 %v1033_v63  ;;  %v1036_v11 = vadd.f32 %v4363_v43, %v4359_v28  ;;  %v4369_v57 = vpop.f32.mrb[46].mxu0  ;;  %v4371_v56 = vpop.f32.mrb[46].mxu1 }
 0x1ef   : > { %6050 = vst [vmem:[#allocation69_spill] sm:$0xff] %v4369_v57  ;;  %6051 = vst [vmem:[#allocation70_spill] sm:$0xff] %v4371_v56  ;;  %v4373_v5 = vpop.f32.mrb[47].mxu0  ;;  %v4375_v6 = vpop.f32.mrb[47].mxu1 }
 0x1f0   : > { %6052 = vst [vmem:[#allocation71_spill] sm:$0xff] %v4373_v5  ;;  %6053 = vst [vmem:[#allocation72_spill] sm:$0xff] %v4375_v6  ;;  %v1041_v27 = vadd.f32 %v4373_v5, %v4369_v57  ;;  %v1037_v7 = vadd.f32 %v1036_v11, %v4361_v14 }
 0x1f2   : > { %v1042_v35 = vadd.f32 %v1041_v27, %v4371_v56  ;;  %v4382_v63 = vadd.f32 %v1037_v7, %v4365_v8 }
 0x1f4   : > { %v4384_v60 = vpop.f32.mrb[48].mxu0  ;;  %v4386_v43 = vpop.f32.mrb[48].mxu1  ;;  %v4389_v28 = vadd.f32 %v1042_v35, %v4375_v6 }
 0x1f5   : > { %6054 = vst [vmem:[#allocation73_spill] sm:$0xff] %v4384_v60  ;;  %6055 = vst [vmem:[#allocation74_spill] sm:$0xff] %v4386_v43  ;;  %v4391_v29 = vpop.f32.mrb[49].mxu0  ;;  %v4393_v26 = vpop.f32.mrb[49].mxu1 }
 0x1f6   : > { %6056 = vst [vmem:[#allocation75_spill] sm:$0xff] %v4391_v29  ;;  %6057 = vst [vmem:[#allocation76_spill] sm:$0xff] %v4393_v26  ;;  %v1046_v5 = vadd.f32 %v4391_v29, %v4384_v60  ;;  %v4397_v11 = vpop.f32.mrb[50].mxu0  ;;  %v4399_v27 = vpop.f32.mrb[50].mxu1 }
 0x1f7   : > { %6058 = vst [vmem:[#allocation77_spill] sm:$0xff] %v4397_v11  ;;  %6059 = vst [vmem:[#allocation78_spill] sm:$0xff] %v4399_v27  ;;  %v4401_v7 = vpop.f32.mrb[51].mxu0  ;;  %v4403_v56 = vpop.f32.mrb[51].mxu1 }
 0x1f8   : > { %6060 = vst [vmem:[#allocation79_spill] sm:$0xff] %v4401_v7  ;;  %6061 = vst [vmem:[#allocation80_spill] sm:$0xff] %v4403_v56  ;;  %v1047_v57 = vadd.f32 %v1046_v5, %v4386_v43  ;;  %v1051_v35 = vadd.f32 %v4401_v7, %v4397_v11 }
 0x1fa   : > { %v1052_v6 = vadd.f32 %v1051_v35, %v4399_v27  ;;  %v4410_v8 = vadd.f32 %v1047_v57, %v4393_v26 }
 0x1fc   : > { %v4412_v14 = vpop.f32.mrb[52].mxu0  ;;  %v4414_v29 = vpop.f32.mrb[52].mxu1  ;;  %v4417_v60 = vadd.f32 %v1052_v6, %v4403_v56 }
 0x1fd   : > { %6062 = vst [vmem:[#allocation81_spill] sm:$0xff] %v4412_v14  ;;  %6063 = vst [vmem:[#allocation82_spill] sm:$0xff] %v4414_v29  ;;  %v4419_v55 = vpop.f32.mrb[53].mxu0  ;;  %v4421_v49 = vpop.f32.mrb[53].mxu1 }
 0x1fe   : > { %6064 = vst [vmem:[#allocation83_spill] sm:$0xff] %v4419_v55  ;;  %6065 = vst [vmem:[#allocation84_spill] sm:$0xff] %v4421_v49  ;;  %v1056_v5 = vadd.f32 %v4419_v55, %v4412_v14  ;;  %v4425_v7 = vpop.f32.mrb[54].mxu0  ;;  %v4427_v35 = vpop.f32.mrb[54].mxu1 }
 0x1ff   : > { %6066 = vst [vmem:[#allocation85_spill] sm:$0xff] %v4425_v7  ;;  %6067 = vst [vmem:[#allocation86_spill] sm:$0xff] %v4427_v35  ;;  %v4429_v57 = vpop.f32.mrb[55].mxu0  ;;  %v4431_v27 = vpop.f32.mrb[55].mxu1 }
 0x200   : > { %6068 = vst [vmem:[#allocation87_spill] sm:$0xff] %v4429_v57  ;;  %6069 = vst [vmem:[#allocation88_spill] sm:$0xff] %v4431_v27  ;;  %v1057_v11 = vadd.f32 %v1056_v5, %v4414_v29  ;;  %v1061_v6 = vadd.f32 %v4429_v57, %v4425_v7  ;;  %v3442_v57 = vld [vmem:[#allocation10 + $0xc0] sm:$0xff]  }
 0x201   : > { %v3443_v7 = vld [vmem:[#allocation10] sm:$0xff]   ;;  %3185 = vmatprep.subr.bf16.mxu1 %v3442_v57 }
 0x202   : > { %v1062_v56 = vadd.f32 %v1061_v6, %v4427_v35  ;;  %v4438_v26 = vadd.f32 %v1057_v11, %v4421_v49  ;;  %3186 = vmatpush3.bf16.msra.mxu1 %v3444_v46 }
 0x203   : > { %3187 = vmatprep.subr.bf16.mxu1 %v3446_v41 }
 0x204   : > { %v4440_v43 = vpop.f32.mrb[56].mxu0  ;;  %v4442_v55 = vpop.f32.mrb[56].mxu1  ;;  %v4445_v14 = vadd.f32 %v1062_v56, %v4431_v27  ;;  %v3441_v27 = vld [vmem:[#allocation10 + $0x40] sm:$0xff]  }
 0x205   : > { %6070 = vst [vmem:[#allocation89_spill] sm:$0xff] %v4440_v43  ;;  %6071 = vst [vmem:[#allocation90_spill] sm:$0xff] %v4442_v55  ;;  %v4447_v42 = vpop.f32.mrb[57].mxu0  ;;  %v4449_v54 = vpop.f32.mrb[57].mxu1  ;;  %3073 = vmatprep.subr.bf16.mxu0 %v3441_v27 }
 0x206   : > { %6072 = vst [vmem:[#allocation91_spill] sm:$0xff] %v4447_v42  ;;  %6073 = vst [vmem:[#allocation92_spill] sm:$0xff] %v4449_v54  ;;  %v1066_v5 = vadd.f32 %v4447_v42, %v4440_v43  ;;  %v4453_v29 = vpop.f32.mrb[58].mxu0  ;;  %v4455_v6 = vpop.f32.mrb[58].mxu1  ;;  %3074 = vmatpush3.bf16.msra.mxu0 %v3443_v7 }
 0x207   : > { %6074 = vst [vmem:[#allocation93_spill] sm:$0xff] %v4453_v29  ;;  %6075 = vst [vmem:[#allocation94_spill] sm:$0xff] %v4455_v6  ;;  %v4457_v11 = vpop.f32.mrb[59].mxu0  ;;  %v4459_v35 = vpop.f32.mrb[59].mxu1  ;;  %3075 = vmatprep.subr.bf16.mxu0 %v3445_v40 }
 0x208   : > { %6076 = vst [vmem:[#allocation95_spill] sm:$0xff] %v4457_v11  ;;  %6077 = vst [vmem:[#allocation96_spill] sm:$0xff] %v4459_v35  ;;  %v1067_v49 = vadd.f32 %v1066_v5, %v4442_v55  ;;  %v1071_v56 = vadd.f32 %v4457_v11, %v4453_v29  ;;  %v3448_v5 = vld [vmem:[#allocation10 + $0x88] sm:$0xff]  }
 0x209   : > { %3188 = vmatpush3.bf16.msra.mxu1 %v3448_v5 }
 0x20a   : > { %v1072_v42 = vadd.f32 %v1071_v56, %v4455_v6  ;;  %v4466_v43 = vadd.f32 %v1067_v49, %v4449_v54  ;;  %3076 = vmatpush3.bf16.msra.mxu0 %v3447_v32 }
 0x20c   : > { %v4468_v55 = vpop.f32.mrb[60].mxu0  ;;  %v4470_v11 = vpop.f32.mrb[60].mxu1  ;;  %v4473_v29 = vadd.f32 %v1072_v42, %v4459_v35 }
 0x20d   : > { %6078 = vst [vmem:[#allocation97_spill] sm:$0xff] %v4468_v55  ;;  %6079 = vst [vmem:[#allocation98_spill] sm:$0xff] %v4470_v11  ;;  %v4475_v22 = vpop.f32.mrb[61].mxu0  ;;  %v4477_v56 = vpop.f32.mrb[61].mxu1 }
 0x20e   : > { %6080 = vst [vmem:[#allocation99_spill] sm:$0xff] %v4475_v22  ;;  %6081 = vst [vmem:[#allocation100_spill] sm:$0xff] %v4477_v56  ;;  %v1076_v49 = vadd.f32 %v4475_v22, %v4468_v55  ;;  %v4481_v27 = vpop.f32.mrb[62].mxu0  ;;  %v4483_v46 = vpop.f32.mrb[62].mxu1 }
 0x20f   : > { %6082 = vst [vmem:[#allocation101_spill] sm:$0xff] %v4481_v27  ;;  %6083 = vst [vmem:[#allocation102_spill] sm:$0xff] %v4483_v46  ;;  %v4485_v7 = vpop.f32.mrb[63].mxu0  ;;  %v4487_v57 = vpop.f32.mrb[63].mxu1 }
 0x210   : > { %6084 = vst [vmem:[#allocation103_spill] sm:$0xff] %v4485_v7  ;;  %6085 = vst [vmem:[#allocation104_spill] sm:$0xff] %v4487_v57  ;;  %v1077_v40 = vadd.f32 %v1076_v49, %v4470_v11  ;;  %v1081_v41 = vadd.f32 %v4485_v7, %v4481_v27 }
 0x212   : > { %v1082_v42 = vadd.f32 %v1081_v41, %v4483_v46  ;;  %v4494_v35 = vadd.f32 %v1077_v40, %v4477_v56 }
 0x214   : > { %v4497_v6 = vadd.f32 %v1082_v42, %v4487_v57 }
 0x229   : > { %v930_v54 = vpop.xlane.xlu0 %929 }
 0x22a   : > { %v1086_v22 = vmul.f32 0.001953125, %v930_v54 }
 0x22c   : > { %v4500_v55 = vsub.f32 %v4095_v18, %v1086_v22  ;;  %v4503_v32 = vsub.f32 %v4099_v20, %v1086_v22  ;;  %v4506_v5 = vsub.f32 %v4097_v19, %v1086_v22  ;;  %v4509_v41 = vsub.f32 %v4101_v21, %v1086_v22 }
 0x22d   : > { %v935_v49 = vpop.xlane.xlu0 %934 }
 0x22e   : > { %v1087_v40 = vmul.f32 0.001953125, %v935_v49  ;;  %v1246_v42 = vmul.f32 %v4500_v55, %v4500_v55  ;;  %v1247_v54 = vmul.f32 %v4503_v32, %v4503_v32  ;;  %v1248_v18 = vmul.f32 %v4506_v5, %v4506_v5 }
 0x22f   : > { %v1249_v49 = vmul.f32 %v4509_v41, %v4509_v41 }
 0x230   : > { %v4518_v20 = vsub.f32 %v4105_v23, %v1087_v40  ;;  %v4521_v19 = vsub.f32 %v4109_v25, %v1087_v40  ;;  %v1374_v57 = vadd.f32 %v1247_v54, %v1246_v42  ;;  %v4524_v21 = vsub.f32 %v4107_v24, %v1087_v40 }
 0x231   : > { %v940_v22 = vpop.xlane.xlu1 %939  ;;  %v4529_v46 = vsub.f32 %v4111_v0, %v1087_v40 }
 0x232   : > { %6086 = vst [vmem:[#allocation105_spill] sm:$0xff] %v4524_v21  ;;  %v1088_v56 = vmul.f32 0.001953125, %v940_v22  ;;  %v1375_v11 = vadd.f32 %v1374_v57, %v1248_v18  ;;  %v1250_v23 = vmul.f32 %v4518_v20, %v4518_v20  ;;  %v1251_v25 = vmul.f32 %v4521_v19, %v4521_v19 }
 0x233   : > { %v1252_v42 = vmul.f32 %v4524_v21, %v4524_v21  ;;  %v1253_v57 = vmul.f32 %v4529_v46, %v4529_v46 }
 0x234   : > { %v4538_v24 = vsub.f32 %v4120_v31, %v1088_v56  ;;  %v4541_v54 = vsub.f32 %v4123_v33, %v1088_v56  ;;  %v1376_v7 = vadd.f32 %v1375_v11, %v1249_v49  ;;  %v1379_v0 = vadd.f32 %v1251_v25, %v1250_v23 }
 0x235   : > { %v945_v40 = vpop.xlane.xlu1 %944  ;;  %v4546_v18 = vsub.f32 %v4118_v30, %v1088_v56  ;;  %v4549_v22 = vsub.f32 %v4125_v34, %v1088_v56 }
 0x236   : > { %v1089_v27 = vmul.f32 0.001953125, %v945_v40  ;;  %1377 = vadd.xlane.f32.xlu0 %v1376_v7  ;;  %v1380_v21 = vadd.f32 %v1379_v0, %v1252_v42  ;;  %v1254_v31 = vmul.f32 %v4538_v24, %v4538_v24  ;;  %v1255_v33 = vmul.f32 %v4541_v54, %v4541_v54 }
 0x237   : > { %v1256_v11 = vmul.f32 %v4546_v18, %v4546_v18  ;;  %v1257_v7 = vmul.f32 %v4549_v22, %v4549_v22 }
 0x238   : > { %v4558_v49 = vsub.f32 %v4129_v36, %v1089_v27  ;;  %v4561_v30 = vsub.f32 %v4133_v38, %v1089_v27  ;;  %v1381_v34 = vadd.f32 %v1380_v21, %v1253_v57  ;;  %v1384_v56 = vadd.f32 %v1255_v33, %v1254_v31 }
 0x239   : > { %v950_v23 = vpop.xlane.xlu0 %949  ;;  %v4566_v25 = vsub.f32 %v4131_v37, %v1089_v27  ;;  %v4574_v40 = vsub.f32 %v4135_v39, %v1089_v27 }
 0x23a   : > { %v1090_v42 = vmul.f32 0.001953125, %v950_v23  ;;  %1382 = vadd.xlane.f32.xlu1 %v1381_v34  ;;  %1039 = vadd.xlane.f32.xlu0 %v4382_v63  ;;  %v1385_v0 = vadd.f32 %v1384_v56, %v1256_v11  ;;  %v1258_v36 = vmul.f32 %v4558_v49, %v4558_v49  ;;  %v1259_v38 = vmul.f32 %v4561_v30, %v4561_v30 }
 0x23b   : > { %v955_v21 = vpop.xlane.xlu1 %954  ;;  %v1260_v63 = vmul.f32 %v4566_v25, %v4566_v25 }
 0x23c   : > { %v4577_v57 = vsub.f32 %v4142_v44, %v1090_v42  ;;  %v4580_v37 = vsub.f32 %v4147_v47, %v1090_v42  ;;  %v1091_v31 = vmul.f32 0.001953125, %v955_v21  ;;  %v1386_v33 = vadd.f32 %v1385_v0, %v1257_v7 }
 0x23d   : > { %v1389_v11 = vadd.f32 %v1259_v38, %v1258_v36  ;;  %v4585_v34 = vsub.f32 %v4144_v45, %v1090_v42  ;;  %v1261_v47 = vmul.f32 %v4574_v40, %v4574_v40  ;;  %v4599_v23 = vsub.f32 %v4149_v48, %v1090_v42 }
 0x23e   : > { %v4588_v56 = vsub.f32 %v4153_v50, %v1091_v31  ;;  %v4591_v39 = vsub.f32 %v4157_v52, %v1091_v31  ;;  %1387 = vadd.xlane.f32.xlu0 %v1386_v33  ;;  %1044 = vadd.xlane.f32.xlu1 %v4389_v28  ;;  %v1262_v44 = vmul.f32 %v4577_v57, %v4577_v57 }
 0x23f   : > { %v1390_v27 = vadd.f32 %v1389_v11, %v1260_v63  ;;  %v1263_v45 = vmul.f32 %v4580_v37, %v4580_v37  ;;  %v4604_v50 = vsub.f32 %v4155_v51, %v1091_v31  ;;  %v1264_v36 = vmul.f32 %v4585_v34, %v4585_v34 }
 0x240   : > { %v1266_v52 = vmul.f32 %v4588_v56, %v4588_v56  ;;  %v1267_v28 = vmul.f32 %v4591_v39, %v4591_v39  ;;  %v1265_v51 = vmul.f32 %v4599_v23, %v4599_v23  ;;  %v4616_v63 = vsub.f32 %v4159_v53, %v1091_v31 }
 0x241   : > { %v960_v7 = vpop.xlane.xlu0 %959  ;;  %v1391_v0 = vadd.f32 %v1390_v27, %v1261_v47  ;;  %v1394_v38 = vadd.f32 %v1263_v45, %v1262_v44  ;;  %v1268_v11 = vmul.f32 %v4604_v50, %v4604_v50 }
 0x242   : > { %v1092_v48 = vmul.f32 0.001953125, %v960_v7  ;;  %1049 = vadd.xlane.f32.xlu0 %v4410_v8  ;;  %v1399_v42 = vadd.f32 %v1267_v28, %v1266_v52  ;;  %v3449_v7 = vld [vmem:[#allocation10 + $0x50] sm:$0xff]  }
 0x243   : > { %1392 = vadd.xlane.f32.xlu1 %v1391_v0  ;;  %v965_v21 = vpop.xlane.xlu1 %964  ;;  %v1395_v33 = vadd.f32 %v1394_v38, %v1264_v36  ;;  %v3450_v0 = vld [vmem:[#allocation10 + $0xd0] sm:$0xff]   ;;  %3077 = vmatprep.subr.bf16.mxu0 %v3449_v7 }
 0x244   : > { %v4621_v47 = vsub.f32 %v4166_v58, %v1092_v48  ;;  %v4624_v44 = vsub.f32 %v4171_v61, %v1092_v48  ;;  %v1093_v8 = vmul.f32 0.001953125, %v965_v21  ;;  %v1400_v45 = vadd.f32 %v1399_v42, %v1268_v11  ;;  %3189 = vmatprep.subr.bf16.mxu1 %v3450_v0  ;;  %v3453_v0 = vld [vmem:[#allocation10 + $0x58] sm:$0xff]  }
 0x245   : > { %v1396_v27 = vadd.f32 %v1395_v33, %v1265_v51  ;;  %v4627_v52 = vsub.f32 %v4168_v59, %v1092_v48  ;;  %v4636_v31 = vsub.f32 %v4173_v62, %v1092_v48  ;;  %v1269_v61 = vmul.f32 %v4616_v63, %v4616_v63 }
 0x246   : > { %v4630_v28 = vsub.f32 %v4177_v1, %v1093_v8  ;;  %v4633_v53 = vsub.f32 %v4181_v3, %v1093_v8  ;;  %v1270_v58 = vmul.f32 %v4621_v47, %v4621_v47  ;;  %v1271_v59 = vmul.f32 %v4624_v44, %v4624_v44 }
 0x247   : > { %1397 = vadd.xlane.f32.xlu0 %v1396_v27  ;;  %1054 = vadd.xlane.f32.xlu1 %v4417_v60  ;;  %v4646_v1 = vsub.f32 %v4179_v2, %v1093_v8  ;;  %v1401_v38 = vadd.f32 %v1400_v45, %v1269_v61  ;;  %v1272_v60 = vmul.f32 %v4627_v52, %v4627_v52  ;;  %v3451_v45 = vld [vmem:[#allocation10 + $0x10] sm:$0xff]  }
 0x248   : > { %v1274_v3 = vmul.f32 %v4630_v28, %v4630_v28  ;;  %v1275_v62 = vmul.f32 %v4633_v53, %v4633_v53  ;;  %v1404_v48 = vadd.f32 %v1271_v59, %v1270_v58  ;;  %v1273_v21 = vmul.f32 %v4636_v31, %v4636_v31  ;;  %v3452_v58 = vld [vmem:[#allocation10 + $0x90] sm:$0xff]   ;;  %3078 = vmatpush3.bf16.msra.mxu0 %v3451_v45  ;;  %v3458_v45 = vld [vmem:[#allocation10 + $0xe0] sm:$0xff]  }
 0x249   : > { %6087 = vst [vmem:[#allocation106_spill] sm:$0xff] %v4646_v1  ;;  %v970_v36 = vpop.xlane.xlu0 %969  ;;  %v4658_v11 = vsub.f32 %v4183_v4, %v1093_v8  ;;  %v1276_v27 = vmul.f32 %v4646_v1, %v4646_v1  ;;  %3190 = vmatpush3.bf16.msra.mxu1 %v3452_v58  ;;  %3079 = vmatprep.subr.bf16.mxu0 %v3453_v0 }
 0x24a   : > { %v1094_v42 = vmul.f32 0.001953125, %v970_v36  ;;  %v1409_v2 = vadd.f32 %v1275_v62, %v1274_v3  ;;  %v1405_v33 = vadd.f32 %v1404_v48, %v1272_v60  ;;  %v3454_v36 = vld [vmem:[#allocation10 + $0xd8] sm:$0xff]  }
 0x24b   : > { %1402 = vadd.xlane.f32.xlu1 %v1401_v38  ;;  %1059 = vadd.xlane.f32.xlu0 %v4438_v26  ;;  %v975_v51 = vpop.xlane.xlu1 %974  ;;  %v3455_v38 = vld [vmem:[#allocation10 + $0x18] sm:$0xff]  }
 0x24c   : > { %v4663_v61 = vsub.f32 %v4190_v9, %v1094_v42  ;;  %v4666_v59 = vsub.f32 %v4195_v12, %v1094_v42  ;;  %v1095_v3 = vmul.f32 0.001953125, %v975_v51  ;;  %v1406_v62 = vadd.f32 %v1405_v33, %v1273_v21  ;;  %3191 = vmatprep.subr.bf16.mxu1 %v3454_v36  ;;  %3080 = vmatpush3.bf16.msra.mxu0 %v3455_v38  ;;  %v3459_v36 = vld [vmem:[#allocation10 + $0x20] sm:$0xff]  }
 0x24d   : > { %v1410_v7 = vadd.f32 %v1409_v2, %v1276_v27  ;;  %v4669_v26 = vsub.f32 %v4192_v10, %v1094_v42  ;;  %v4678_v9 = vsub.f32 %v4197_v13, %v1094_v42  ;;  %v1277_v10 = vmul.f32 %v4658_v11, %v4658_v11  ;;  %v3457_v27 = vld [vmem:[#allocation10 + $0x60] sm:$0xff]  }
 0x24e   : > { %6088 = vst [vmem:[#allocation107_spill] sm:$0xff] %v4663_v61  ;;  %6089 = vst [vmem:[#allocation108_spill] sm:$0xff] %v4666_v59  ;;  %v4672_v4 = vsub.f32 %v4201_v15, %v1095_v3  ;;  %v4675_v8 = vsub.f32 %v4205_v17, %v1095_v3  ;;  %v1278_v12 = vmul.f32 %v4663_v61, %v4663_v61  ;;  %v3456_v17 = vld [vmem:[#allocation10 + $0x98] sm:$0xff]   ;;  %3081 = vmatprep.subr.bf16.mxu0 %v3457_v27  ;;  %v3461_v27 = vld [vmem:[#allocation10 + $0x68] sm:$0xff]  }
 0x24f   : > { %6090 = vst [vmem:[#allocation109_spill] sm:$0xff] %v4669_v26  ;;  %6093 = vst [vmem:[#allocation112_spill] sm:$0xff] %v4678_v9  ;;  %1407 = vadd.xlane.f32.xlu0 %v1406_v62  ;;  %1064 = vadd.xlane.f32.xlu1 %v4445_v14  ;;  %v1279_v15 = vmul.f32 %v4666_v59, %v4666_v59  ;;  %v4688_v60 = vsub.f32 %v4203_v16, %v1095_v3 }
 0x250   : > { %6091 = vst [vmem:[#allocation110_spill] sm:$0xff] %v4672_v4  ;;  %6092 = vst [vmem:[#allocation111_spill] sm:$0xff] %v4675_v8  ;;  %v1282_v13 = vmul.f32 %v4672_v4, %v4672_v4  ;;  %v1283_v48 = vmul.f32 %v4675_v8, %v4675_v8  ;;  %v1411_v14 = vadd.f32 %v1410_v7, %v1277_v10  ;;  %3192 = vmatpush3.bf16.msra.mxu1 %v3456_v17  ;;  %v6095_v7 = vld [vmem:[#allocation16_spill] sm:$0xff] }
 0x251   : > { %6094 = vst [vmem:[#allocation113_spill] sm:$0xff] %v4688_v60  ;;  %v980_v42 = vpop.xlane.xlu0 %979  ;;  %v1280_v21 = vmul.f32 %v4669_v26, %v4669_v26  ;;  %v1414_v2 = vadd.f32 %v1279_v15, %v1278_v12  ;;  %v1281_v16 = vmul.f32 %v4678_v9, %v4678_v9  ;;  %v4700_v0 = vsub.f32 %v6095_v7, %v1095_v3  ;;  %v3460_v10 = vld [vmem:[#allocation10 + $0xa0] sm:$0xff]   ;;  %v6097_v15 = vld [vmem:[#allocation17_spill] sm:$0xff]  ;;  %v6105_v7 = vld [vmem:[#allocation23_spill] sm:$0xff] }
 0x252   : > { %v1096_v51 = vmul.f32 0.001953125, %v980_v42  ;;  %v1419_v33 = vadd.f32 %v1283_v48, %v1282_v13  ;;  %v1284_v12 = vmul.f32 %v4688_v60, %v4688_v60  ;;  %v6099_v13 = vld [vmem:[#allocation19_spill] sm:$0xff]  ;;  %3193 = vmatprep.subr.bf16.mxu1 %v3458_v45  ;;  %3082 = vmatpush3.bf16.msra.mxu0 %v3459_v36  ;;  %v6103_v3 = vld [vmem:[#allocation21_spill] sm:$0xff]  ;;  %v6109_v36 = vld [vmem:[#allocation22_spill] sm:$0xff] }
 0x253   : > { %1412 = vadd.xlane.f32.xlu1 %v1411_v14  ;;  %1069 = vadd.xlane.f32.xlu0 %v4466_v43  ;;  %v985_v58 = vpop.xlane.xlu1 %984  ;;  %v1415_v62 = vadd.f32 %v1414_v2, %v1280_v21  ;;  %6096 = vst [vmem:[#allocation16_spill] sm:$0xff] %v4700_v0  ;;  %v6101_v14 = vld [vmem:[#allocation18_spill] sm:$0xff] }
 0x254   : > { %v4705_v38 = vsub.f32 %v6097_v15, %v1096_v51  ;;  %v4708_v17 = vsub.f32 %v6099_v13, %v1096_v51  ;;  %v1097_v48 = vmul.f32 0.001953125, %v985_v58  ;;  %v1420_v42 = vadd.f32 %v1419_v33, %v1284_v12  ;;  %v6107_v15 = vld [vmem:[#allocation20_spill] sm:$0xff]  ;;  %3194 = vmatpush3.bf16.msra.mxu1 %v3460_v10  ;;  %v3464_v12 = vld [vmem:[#allocation10 + $0xa8] sm:$0xff]   ;;  %3083 = vmatprep.subr.bf16.mxu0 %v3461_v27 }
 0x255   : > { %v1416_v43 = vadd.f32 %v1415_v62, %v1281_v16  ;;  %v4711_v21 = vsub.f32 %v6101_v14, %v1096_v51  ;;  %v4720_v26 = vsub.f32 %v6107_v15, %v1096_v51  ;;  %v3462_v16 = vld [vmem:[#allocation10 + $0xe8] sm:$0xff]   ;;  %v1285_v33 = vmul.f32 %v4700_v0, %v4700_v0 }
 0x256   : > { %6098 = vst [vmem:[#allocation17_spill] sm:$0xff] %v4705_v38  ;;  %6100 = vst [vmem:[#allocation19_spill] sm:$0xff] %v4708_v17  ;;  %v4714_v2 = vsub.f32 %v6103_v3, %v1097_v48  ;;  %v4717_v60 = vsub.f32 %v6105_v7, %v1097_v48  ;;  %v1286_v58 = vmul.f32 %v4705_v38, %v4705_v38  ;;  %v3463_v62 = vld [vmem:[#allocation10 + $0x28] sm:$0xff]   ;;  %3195 = vmatprep.subr.bf16.mxu1 %v3462_v16  ;;  %v3465_v38 = vld [vmem:[#allocation10 + $0x70] sm:$0xff]  }
 0x257   : > { %6102 = vst [vmem:[#allocation18_spill] sm:$0xff] %v4711_v21  ;;  %6108 = vst [vmem:[#allocation20_spill] sm:$0xff] %v4720_v26  ;;  %1417 = vadd.xlane.f32.xlu0 %v1416_v43  ;;  %1074 = vadd.xlane.f32.xlu1 %v4473_v29  ;;  %v1287_v45 = vmul.f32 %v4708_v17, %v4708_v17  ;;  %v4730_v51 = vsub.f32 %v6109_v36, %v1097_v48  ;;  %v3467_v16 = vld [vmem:[#allocation10 + $0x30] sm:$0xff]   ;;  %v6203_v17 = vld [vmem:[#allocation71_spill] sm:$0xff] }
 0x258   : > { %6104 = vst [vmem:[#allocation21_spill] sm:$0xff] %v4714_v2  ;;  %6106 = vst [vmem:[#allocation23_spill] sm:$0xff] %v4717_v60  ;;  %v1290_v13 = vmul.f32 %v4714_v2, %v4714_v2  ;;  %v1291_v10 = vmul.f32 %v4717_v60, %v4717_v60  ;;  %v1421_v29 = vadd.f32 %v1420_v42, %v1285_v33  ;;  %3084 = vmatpush3.bf16.msra.mxu0 %v3463_v62  ;;  %v3466_v2 = vld [vmem:[#allocation10 + $0xf0] sm:$0xff]   ;;  %v6111_v42 = vld [vmem:[#allocation24_spill] sm:$0xff] }
 0x259   : > { %6110 = vst [vmem:[#allocation22_spill] sm:$0xff] %v4730_v51  ;;  %v990_v43 = vpop.xlane.xlu0 %989  ;;  %v1288_v14 = vmul.f32 %v4711_v21, %v4711_v21  ;;  %v1424_v3 = vadd.f32 %v1287_v45, %v1286_v58  ;;  %v1289_v15 = vmul.f32 %v4720_v26, %v4720_v26  ;;  %3196 = vmatpush3.bf16.msra.mxu1 %v3464_v12  ;;  %v3468_v45 = vld [vmem:[#allocation10 + $0xb0] sm:$0xff]   ;;  %v6113_v62 = vld [vmem:[#allocation25_spill] sm:$0xff] }
 0x25a   : > { %v1098_v7 = vmul.f32 0.001953125, %v990_v43  ;;  %v1429_v36 = vadd.f32 %v1291_v10, %v1290_v13  ;;  %v4742_v33 = vsub.f32 %v6111_v42, %v1097_v48  ;;  %v1292_v58 = vmul.f32 %v4730_v51, %v4730_v51  ;;  %v6115_v13 = vld [vmem:[#allocation27_spill] sm:$0xff]  ;;  %3085 = vmatprep.subr.bf16.mxu0 %v3465_v38  ;;  %3197 = vmatprep.subr.bf16.mxu1 %v3466_v2  ;;  %v6119_v48 = vld [vmem:[#allocation29_spill] sm:$0xff]  ;;  %v6123_v38 = vld [vmem:[#allocation28_spill] sm:$0xff] }
 0x25b   : > { %1422 = vadd.xlane.f32.xlu1 %v1421_v29  ;;  %1079 = vadd.xlane.f32.xlu0 %v4494_v35  ;;  %v995_v27 = vpop.xlane.xlu1 %994  ;;  %v1425_v60 = vadd.f32 %v1424_v3, %v1288_v14  ;;  %v6117_v14 = vld [vmem:[#allocation26_spill] sm:$0xff]  ;;  %v6121_v51 = vld [vmem:[#allocation31_spill] sm:$0xff] }
 0x25c   : > { %6112 = vst [vmem:[#allocation24_spill] sm:$0xff] %v4742_v33  ;;  %v4747_v43 = vsub.f32 %v6113_v62, %v1098_v7  ;;  %v4750_v12 = vsub.f32 %v6115_v13, %v1098_v7  ;;  %v1099_v10 = vmul.f32 0.001953125, %v995_v27  ;;  %v1430_v29 = vadd.f32 %v1429_v36, %v1292_v58  ;;  %3086 = vmatpush3.bf16.msra.mxu0 %v3467_v16  ;;  %v3469_v13 = vld [vmem:[#allocation10 + $0x78] sm:$0xff]   ;;  %v6125_v58 = vld [vmem:[#allocation30_spill] sm:$0xff] }
 0x25d   : > { %v1426_v35 = vadd.f32 %v1425_v60, %v1289_v15  ;;  %v4753_v3 = vsub.f32 %v6117_v14, %v1098_v7  ;;  %3198 = vmatpush3.bf16.msra.mxu1 %v3468_v45  ;;  %v3470_v27 = vld [vmem:[#allocation10 + $0xf8] sm:$0xff]   ;;  %v1293_v60 = vmul.f32 %v4742_v33, %v4742_v33  ;;  %v4767_v2 = vsub.f32 %v6123_v38, %v1098_v7  ;;  %v6127_v45 = vld [vmem:[#allocation32_spill] sm:$0xff] }
 0x25e   : > { %6114 = vst [vmem:[#allocation25_spill] sm:$0xff] %v4747_v43  ;;  %6116 = vst [vmem:[#allocation27_spill] sm:$0xff] %v4750_v12  ;;  %v4756_v42 = vsub.f32 %v6119_v48, %v1099_v10  ;;  %v4759_v21 = vsub.f32 %v6121_v51, %v1099_v10  ;;  %v1294_v62 = vmul.f32 %v4747_v43, %v4747_v43  ;;  %v3471_v51 = vld [vmem:[#allocation10 + $0x38] sm:$0xff]   ;;  %3087 = vmatprep.subr.bf16.mxu0 %v3469_v13 }
 0x25f   : > { %6118 = vst [vmem:[#allocation26_spill] sm:$0xff] %v4753_v3  ;;  %1427 = vadd.xlane.f32.xlu0 %v1426_v35  ;;  %1084 = vadd.xlane.f32.xlu1 %v4497_v6  ;;  %6124 = vst [vmem:[#allocation28_spill] sm:$0xff] %v4767_v2  ;;  %v1295_v15 = vmul.f32 %v4750_v12, %v4750_v12  ;;  %v3472_v36 = vld [vmem:[#allocation10 + $0xb8] sm:$0xff]   ;;  %v4772_v16 = vsub.f32 %v6125_v58, %v1099_v10 }
 0x260   : > { %6120 = vst [vmem:[#allocation29_spill] sm:$0xff] %v4756_v42  ;;  %6122 = vst [vmem:[#allocation31_spill] sm:$0xff] %v4759_v21  ;;  %v4775_v14 = vsub.f32 %v6127_v45, %v1099_v10  ;;  %v1298_v6 = vmul.f32 %v4756_v42, %v4756_v42  ;;  %v1299_v35 = vmul.f32 %v4759_v21, %v4759_v21  ;;  %3199 = vmatprep.subr.bf16.mxu1 %v3470_v27 }
 0x261   : > { %6126 = vst [vmem:[#allocation30_spill] sm:$0xff] %v4772_v16  ;;  %v1000_v7 = vpop.xlane.xlu0 %999  ;;  %v1431_v48 = vadd.f32 %v1430_v29, %v1293_v60  ;;  %v1296_v38 = vmul.f32 %v4753_v3, %v4753_v3  ;;  %v1434_v43 = vadd.f32 %v1295_v15, %v1294_v62  ;;  %3088 = vmatpush3.bf16.msra.mxu0 %v3471_v51  ;;  %v6129_v60 = vld [vmem:[#allocation33_spill] sm:$0xff]  ;;  %v6131_v62 = vld [vmem:[#allocation35_spill] sm:$0xff] }
 0x262   : > { %6128 = vst [vmem:[#allocation32_spill] sm:$0xff] %v4775_v14  ;;  %v1100_v58 = vmul.f32 0.001953125, %v1000_v7  ;;  %v1300_v10 = vmul.f32 %v4772_v16, %v4772_v16  ;;  %v1439_v45 = vadd.f32 %v1299_v35, %v1298_v6  ;;  %3200 = vmatpush3.bf16.msra.mxu1 %v3472_v36  ;;  %v1297_v21 = vmul.f32 %v4767_v2, %v4767_v2  ;;  %v6133_v6 = vld [vmem:[#allocation34_spill] sm:$0xff]  ;;  %v6135_v35 = vld [vmem:[#allocation37_spill] sm:$0xff]  ;;  %v6137_v16 = vld [vmem:[#allocation39_spill] sm:$0xff] }
 0x263   : > { %1432 = vadd.xlane.f32.xlu1 %v1431_v48  ;;  %v1005_v42 = vpop.xlane.xlu1 %1004  ;;  %v1435_v13 = vadd.f32 %v1434_v43, %v1296_v38  ;;  %v1301_v29 = vmul.f32 %v4775_v14, %v4775_v14  ;;  %v6139_v14 = vld [vmem:[#allocation36_spill] sm:$0xff]  ;;  %v6197_v2 = vld [vmem:[#allocation66_spill] sm:$0xff] }
 0x264   : > { %v4790_v3 = vsub.f32 %v6129_v60, %v1100_v58  ;;  %v4793_v27 = vsub.f32 %v6131_v62, %v1100_v58  ;;  %v1101_v15 = vmul.f32 0.001953125, %v1005_v42  ;;  %v1440_v51 = vadd.f32 %v1439_v45, %v1300_v10  ;;  %v6141_v42 = vld [vmem:[#allocation38_spill] sm:$0xff]  ;;  %v6143_v45 = vld [vmem:[#allocation40_spill] sm:$0xff] }
 0x265   : > { %v1436_v7 = vadd.f32 %v1435_v13, %v1297_v21  ;;  %v4796_v36 = vsub.f32 %v6133_v6, %v1100_v58  ;;  %v4807_v62 = vsub.f32 %v6139_v14, %v1100_v58 }
 0x266   : > { %6130 = vst [vmem:[#allocation33_spill] sm:$0xff] %v4790_v3  ;;  %6132 = vst [vmem:[#allocation35_spill] sm:$0xff] %v4793_v27  ;;  %v4799_v48 = vsub.f32 %v6135_v35, %v1101_v15  ;;  %v4802_v43 = vsub.f32 %v6137_v16, %v1101_v15  ;;  %v1441_v38 = vadd.f32 %v1440_v51, %v1301_v29 }
 0x267   : > { %6134 = vst [vmem:[#allocation34_spill] sm:$0xff] %v4796_v36  ;;  %v1302_v60 = vmul.f32 %v4790_v3, %v4790_v3  ;;  %1437 = vadd.xlane.f32.xlu0 %v1436_v7  ;;  %6140 = vst [vmem:[#allocation36_spill] sm:$0xff] %v4807_v62  ;;  %v1303_v21 = vmul.f32 %v4793_v27, %v4793_v27  ;;  %v4812_v10 = vsub.f32 %v6141_v42, %v1101_v15 }
 0x268   : > { %6136 = vst [vmem:[#allocation37_spill] sm:$0xff] %v4799_v48  ;;  %6138 = vst [vmem:[#allocation39_spill] sm:$0xff] %v4802_v43  ;;  %1442 = vadd.xlane.f32.xlu1 %v1441_v38  ;;  %v4815_v13 = vsub.f32 %v6143_v45, %v1101_v15  ;;  %v1306_v16 = vmul.f32 %v4799_v48, %v4799_v48  ;;  %v1307_v29 = vmul.f32 %v4802_v43, %v4802_v43  ;;  %v6145_v48 = vld [vmem:[#allocation41_spill] sm:$0xff]  ;;  %v6147_v43 = vld [vmem:[#allocation43_spill] sm:$0xff] }
 0x269   : > { %6142 = vst [vmem:[#allocation38_spill] sm:$0xff] %v4812_v10  ;;  %v1010_v51 = vpop.xlane.xlu0 %1009  ;;  %v1304_v14 = vmul.f32 %v4796_v36, %v4796_v36  ;;  %v1444_v58 = vadd.f32 %v1303_v21, %v1302_v60  ;;  %v1308_v6 = vmul.f32 %v4812_v10, %v4812_v10  ;;  %v1305_v15 = vmul.f32 %v4807_v62, %v4807_v62  ;;  %v6149_v36 = vld [vmem:[#allocation42_spill] sm:$0xff]  ;;  %v6153_v62 = vld [vmem:[#allocation47_spill] sm:$0xff] }
 0x26a   : > { %6144 = vst [vmem:[#allocation40_spill] sm:$0xff] %v4815_v13  ;;  %v1102_v7 = vmul.f32 0.001953125, %v1010_v51  ;;  %v1449_v35 = vadd.f32 %v1307_v29, %v1306_v16  ;;  %v1309_v45 = vmul.f32 %v4815_v13, %v4815_v13  ;;  %v6151_v16 = vld [vmem:[#allocation45_spill] sm:$0xff]  ;;  %v6155_v13 = vld [vmem:[#allocation44_spill] sm:$0xff] }
 0x26b   : > { %v1015_v38 = vpop.xlane.xlu1 %1014  ;;  %v1445_v42 = vadd.f32 %v1444_v58, %v1304_v14 }
 0x26c   : > { %v4830_v3 = vsub.f32 %v6145_v48, %v1102_v7  ;;  %v4833_v27 = vsub.f32 %v6147_v43, %v1102_v7  ;;  %v1103_v60 = vmul.f32 0.001953125, %v1015_v38  ;;  %v1450_v21 = vadd.f32 %v1449_v35, %v1308_v6  ;;  %v6157_v35 = vld [vmem:[#allocation46_spill] sm:$0xff]  ;;  %v6159_v38 = vld [vmem:[#allocation48_spill] sm:$0xff] }
 0x26d   : > { %v1446_v51 = vadd.f32 %v1445_v42, %v1305_v15  ;;  %v4836_v10 = vsub.f32 %v6149_v36, %v1102_v7  ;;  %v4847_v43 = vsub.f32 %v6155_v13, %v1102_v7 }
 0x26e   : > { %6146 = vst [vmem:[#allocation41_spill] sm:$0xff] %v4830_v3  ;;  %6148 = vst [vmem:[#allocation43_spill] sm:$0xff] %v4833_v27  ;;  %v4839_v29 = vsub.f32 %v6151_v16, %v1103_v60  ;;  %v4842_v14 = vsub.f32 %v6153_v62, %v1103_v60  ;;  %v1451_v58 = vadd.f32 %v1450_v21, %v1309_v45 }
 0x26f   : > { %6150 = vst [vmem:[#allocation42_spill] sm:$0xff] %v4836_v10  ;;  %v1310_v48 = vmul.f32 %v4830_v3, %v4830_v3  ;;  %1447 = vadd.xlane.f32.xlu0 %v1446_v51  ;;  %6156 = vst [vmem:[#allocation44_spill] sm:$0xff] %v4847_v43  ;;  %v1311_v6 = vmul.f32 %v4833_v27, %v4833_v27  ;;  %v4852_v36 = vsub.f32 %v6157_v35, %v1103_v60 }
 0x270   : > { %6152 = vst [vmem:[#allocation45_spill] sm:$0xff] %v4839_v29  ;;  %6154 = vst [vmem:[#allocation47_spill] sm:$0xff] %v4842_v14  ;;  %1452 = vadd.xlane.f32.xlu1 %v1451_v58  ;;  %v4855_v15 = vsub.f32 %v6159_v38, %v1103_v60  ;;  %v1314_v62 = vmul.f32 %v4839_v29, %v4839_v29  ;;  %v1315_v42 = vmul.f32 %v4842_v14, %v4842_v14  ;;  %v6161_v29 = vld [vmem:[#allocation49_spill] sm:$0xff]  ;;  %v6163_v14 = vld [vmem:[#allocation51_spill] sm:$0xff] }
 0x271   : > { %6158 = vst [vmem:[#allocation46_spill] sm:$0xff] %v4852_v36  ;;  %v1020_v45 = vpop.xlane.xlu0 %1019  ;;  %v1312_v13 = vmul.f32 %v4836_v10, %v4836_v10  ;;  %v1454_v7 = vadd.f32 %v1311_v6, %v1310_v48  ;;  %v1316_v51 = vmul.f32 %v4852_v36, %v4852_v36  ;;  %v1313_v60 = vmul.f32 %v4847_v43, %v4847_v43  ;;  %v6165_v10 = vld [vmem:[#allocation50_spill] sm:$0xff]  ;;  %v6169_v43 = vld [vmem:[#allocation55_spill] sm:$0xff] }
 0x272   : > { %6160 = vst [vmem:[#allocation48_spill] sm:$0xff] %v4855_v15  ;;  %v1104_v21 = vmul.f32 0.001953125, %v1020_v45  ;;  %v1459_v16 = vadd.f32 %v1315_v42, %v1314_v62  ;;  %v1317_v38 = vmul.f32 %v4855_v15, %v4855_v15  ;;  %v6167_v62 = vld [vmem:[#allocation53_spill] sm:$0xff]  ;;  %v6171_v15 = vld [vmem:[#allocation52_spill] sm:$0xff] }
 0x273   : > { %v1025_v58 = vpop.xlane.xlu1 %1024  ;;  %v1455_v35 = vadd.f32 %v1454_v7, %v1312_v13 }
 0x274   : > { %v4870_v3 = vsub.f32 %v6161_v29, %v1104_v21  ;;  %v4873_v27 = vsub.f32 %v6163_v14, %v1104_v21  ;;  %v1105_v48 = vmul.f32 0.001953125, %v1025_v58  ;;  %v1460_v6 = vadd.f32 %v1459_v16, %v1316_v51  ;;  %v6173_v16 = vld [vmem:[#allocation54_spill] sm:$0xff]  ;;  %v6175_v58 = vld [vmem:[#allocation56_spill] sm:$0xff] }
 0x275   : > { %v1456_v45 = vadd.f32 %v1455_v35, %v1313_v60  ;;  %v4876_v36 = vsub.f32 %v6165_v10, %v1104_v21  ;;  %v4887_v14 = vsub.f32 %v6171_v15, %v1104_v21 }
 0x276   : > { %6162 = vst [vmem:[#allocation49_spill] sm:$0xff] %v4870_v3  ;;  %6164 = vst [vmem:[#allocation51_spill] sm:$0xff] %v4873_v27  ;;  %v4879_v42 = vsub.f32 %v6167_v62, %v1105_v48  ;;  %v4882_v13 = vsub.f32 %v6169_v43, %v1105_v48  ;;  %v1461_v7 = vadd.f32 %v1460_v6, %v1317_v38 }
 0x277   : > { %6166 = vst [vmem:[#allocation50_spill] sm:$0xff] %v4876_v36  ;;  %v1318_v29 = vmul.f32 %v4870_v3, %v4870_v3  ;;  %1457 = vadd.xlane.f32.xlu0 %v1456_v45  ;;  %6172 = vst [vmem:[#allocation52_spill] sm:$0xff] %v4887_v14  ;;  %v1319_v51 = vmul.f32 %v4873_v27, %v4873_v27  ;;  %v4892_v10 = vsub.f32 %v6173_v16, %v1105_v48 }
 0x278   : > { %6168 = vst [vmem:[#allocation53_spill] sm:$0xff] %v4879_v42  ;;  %6170 = vst [vmem:[#allocation55_spill] sm:$0xff] %v4882_v13  ;;  %1462 = vadd.xlane.f32.xlu1 %v1461_v7  ;;  %v4895_v60 = vsub.f32 %v6175_v58, %v1105_v48  ;;  %v1322_v43 = vmul.f32 %v4879_v42, %v4879_v42  ;;  %v1323_v35 = vmul.f32 %v4882_v13, %v4882_v13  ;;  %v6177_v42 = vld [vmem:[#allocation57_spill] sm:$0xff]  ;;  %v6179_v13 = vld [vmem:[#allocation59_spill] sm:$0xff] }
 0x279   : > { %6174 = vst [vmem:[#allocation54_spill] sm:$0xff] %v4892_v10  ;;  %v1030_v38 = vpop.xlane.xlu0 %1029  ;;  %v1320_v15 = vmul.f32 %v4876_v36, %v4876_v36  ;;  %v1464_v21 = vadd.f32 %v1319_v51, %v1318_v29  ;;  %v1324_v45 = vmul.f32 %v4892_v10, %v4892_v10  ;;  %v1321_v48 = vmul.f32 %v4887_v14, %v4887_v14  ;;  %v6181_v36 = vld [vmem:[#allocation58_spill] sm:$0xff]  ;;  %v6185_v14 = vld [vmem:[#allocation63_spill] sm:$0xff] }
 0x27a   : > { %6176 = vst [vmem:[#allocation56_spill] sm:$0xff] %v4895_v60  ;;  %v1106_v6 = vmul.f32 0.001953125, %v1030_v38  ;;  %v1469_v62 = vadd.f32 %v1323_v35, %v1322_v43  ;;  %v1325_v58 = vmul.f32 %v4895_v60, %v4895_v60  ;;  %v6183_v43 = vld [vmem:[#allocation61_spill] sm:$0xff]  ;;  %v6187_v60 = vld [vmem:[#allocation60_spill] sm:$0xff] }
 0x27b   : > { %v1035_v7 = vpop.xlane.xlu1 %1034  ;;  %v1465_v16 = vadd.f32 %v1464_v21, %v1320_v15 }
 0x27c   : > { %v4910_v3 = vsub.f32 %v6177_v42, %v1106_v6  ;;  %v4913_v27 = vsub.f32 %v6179_v13, %v1106_v6  ;;  %v1107_v29 = vmul.f32 0.001953125, %v1035_v7  ;;  %v1470_v51 = vadd.f32 %v1469_v62, %v1324_v45  ;;  %v6189_v62 = vld [vmem:[#allocation62_spill] sm:$0xff]  ;;  %v6191_v7 = vld [vmem:[#allocation64_spill] sm:$0xff] }
 0x27d   : > { %v1466_v38 = vadd.f32 %v1465_v16, %v1321_v48  ;;  %v4916_v10 = vsub.f32 %v6181_v36, %v1106_v6  ;;  %v4927_v13 = vsub.f32 %v6187_v60, %v1106_v6 }
 0x27e   : > { %6178 = vst [vmem:[#allocation57_spill] sm:$0xff] %v4910_v3  ;;  %6180 = vst [vmem:[#allocation59_spill] sm:$0xff] %v4913_v27  ;;  %v4919_v35 = vsub.f32 %v6183_v43, %v1107_v29  ;;  %v4922_v15 = vsub.f32 %v6185_v14, %v1107_v29  ;;  %v1471_v21 = vadd.f32 %v1470_v51, %v1325_v58 }
 0x27f   : > { %6182 = vst [vmem:[#allocation58_spill] sm:$0xff] %v4916_v10  ;;  %v1326_v42 = vmul.f32 %v4910_v3, %v4910_v3  ;;  %1467 = vadd.xlane.f32.xlu0 %v1466_v38  ;;  %6188 = vst [vmem:[#allocation60_spill] sm:$0xff] %v4927_v13  ;;  %v1327_v45 = vmul.f32 %v4913_v27, %v4913_v27  ;;  %v4932_v36 = vsub.f32 %v6189_v62, %v1107_v29 }
 0x280   : > { %6184 = vst [vmem:[#allocation61_spill] sm:$0xff] %v4919_v35  ;;  %6186 = vst [vmem:[#allocation63_spill] sm:$0xff] %v4922_v15  ;;  %1472 = vadd.xlane.f32.xlu1 %v1471_v21  ;;  %v4935_v48 = vsub.f32 %v6191_v7, %v1107_v29  ;;  %v1330_v14 = vmul.f32 %v4919_v35, %v4919_v35  ;;  %v1331_v16 = vmul.f32 %v4922_v15, %v4922_v15  ;;  %v1760_v35 = vlaneseq }
 0x281   : > { %6190 = vst [vmem:[#allocation62_spill] sm:$0xff] %v4932_v36  ;;  %v1328_v60 = vmul.f32 %v4916_v10, %v4916_v10  ;;  %v1474_v6 = vadd.f32 %v1327_v45, %v1326_v42  ;;  %v1332_v58 = vmul.f32 %v4932_v36, %v4932_v36  ;;  %v1329_v38 = vmul.f32 %v4927_v13, %v4927_v13  ;;  %v1758_v45 = vld [vmem:[#allocation7] sm:$0xf] }
 0x282   : > { %6192 = vst [vmem:[#allocation64_spill] sm:$0xff] %v4935_v48  ;;  %v1479_v51 = vadd.f32 %v1331_v16, %v1330_v14  ;;  %v1333_v29 = vmul.f32 %v4935_v48, %v4935_v48  ;;  %v1761_v3 = vshrl.u32 %v1760_v35, 7  ;;  %v1908_v14 = vld [vmem:[#allocation8] sm:$0xf]  ;;  %v6193_v35 = vld [vmem:[#allocation65_spill] sm:$0xff] }
 0x283   : > { %v1475_v43 = vadd.f32 %v1474_v6, %v1328_v60 }
 0x284   : > { %v1480_v21 = vadd.f32 %v1479_v51, %v1332_v58  ;;  %v1766_v15 = vsub.s32 1, %v1761_v3  ;;  %v1774_v16 = vsub.s32 3, %v1761_v3  ;;  %v1762_v60 = vsub.s32 0, %v1761_v3 }
 0x285   : > { %v1476_v62 = vadd.f32 %v1475_v43, %v1329_v38  ;;  %v1770_v38 = vsub.s32 2, %v1761_v3 }
 0x286   : > { %v1481_v7 = vadd.f32 %v1480_v21, %v1333_v29  ;;  %v4949_v58 = vrot.slane %v1758_v45, %v1766_v15  ;;  %v4951_v51 = vrot.slane %v1908_v14, %v1766_v15  ;;  %v4967_v15 = vrot.slane %v1908_v14, %v1774_v16 }
 0x287   : > { %1477 = vadd.xlane.f32.xlu0 %v1476_v62  ;;  %v4959_v62 = vrot.slane %v1758_v45, %v1774_v16  ;;  %v4969_v3 = vrot.slane %v1758_v45, %v1762_v60  ;;  %v4975_v33 = vrot.slane %v1908_v14, %v1762_v60  ;;  %v4979_v26 = vrot.slane %v1908_v14, %v1770_v38  ;;  %v6201_v16 = vld [vmem:[#allocation69_spill] sm:$0xff]  ;;  %v6207_v14 = vld [vmem:[#allocation72_spill] sm:$0xff] }
 0x288   : > { %1482 = vadd.xlane.f32.xlu1 %v1481_v7 }
 0x2c3   : > { %v1378_v10 = vpop.xlane.xlu0 %1377 }
 0x2c4   : > { %v1534_v42 = vmul.f32 0.001953125, %v1378_v10  ;;  %v6195_v10 = vld [vmem:[#allocation67_spill] sm:$0xff] }
 0x2c6   : > { %v1566_v36 = vadd.f32 1e-05, %v1534_v42 }
 0x2c7   : > { %v1383_v27 = vpop.xlane.xlu1 %1382  ;;  %v1040_v13 = vpop.xlane.xlu0 %1039 }
 0x2c8   : > { %3473 = vrsqrt.f32 %v1566_v36  ;;  %v1535_v6 = vmul.f32 0.001953125, %v1383_v27  ;;  %v1108_v48 = vmul.f32 0.001953125, %v1040_v13  ;;  %v6199_v27 = vld [vmem:[#allocation68_spill] sm:$0xff] }
 0x2ca   : > { %v1567_v43 = vadd.f32 1e-05, %v1535_v6  ;;  %v4954_v29 = vsub.f32 %v6193_v35, %v1108_v48  ;;  %v4957_v21 = vsub.f32 %v6195_v10, %v1108_v48  ;;  %v4962_v36 = vsub.f32 %v6197_v2, %v1108_v48 }
 0x2cb   : > { %v1388_v7 = vpop.xlane.xlu0 %1387  ;;  %v1045_v42 = vpop.xlane.xlu1 %1044  ;;  %v4965_v13 = vsub.f32 %v6199_v27, %v1108_v48  ;;  %v4977_v2 = vrot.slane %v1758_v45, %v1770_v38 }
 0x2cc   : > { %6194 = vst [vmem:[#allocation65_spill] sm:$0xff] %v4954_v29  ;;  %6196 = vst [vmem:[#allocation67_spill] sm:$0xff] %v4957_v21  ;;  %3475 = vrsqrt.f32 %v1567_v43  ;;  %v1536_v6 = vmul.f32 0.001953125, %v1388_v7  ;;  %v1109_v35 = vmul.f32 0.001953125, %v1045_v42  ;;  %v1334_v10 = vmul.f32 %v4954_v29, %v4954_v29  ;;  %v6205_v7 = vld [vmem:[#allocation70_spill] sm:$0xff] }
 0x2cd   : > { %6198 = vst [vmem:[#allocation66_spill] sm:$0xff] %v4962_v36  ;;  %6200 = vst [vmem:[#allocation68_spill] sm:$0xff] %v4965_v13  ;;  %v1335_v12 = vmul.f32 %v4957_v21, %v4957_v21  ;;  %v1336_v21 = vmul.f32 %v4962_v36, %v4962_v36  ;;  %v1337_v45 = vmul.f32 %v4965_v13, %v4965_v13  ;;  %v6213_v13 = vld [vmem:[#allocation74_spill] sm:$0xff] }
 0x2ce   : > { %v1568_v48 = vadd.f32 1e-05, %v1536_v6  ;;  %v4982_v27 = vsub.f32 %v6201_v16, %v1109_v35  ;;  %v4985_v43 = vsub.f32 %v6203_v17, %v1109_v35  ;;  %v4988_v42 = vsub.f32 %v6205_v7, %v1109_v35 }
 0x2cf   : > { %v1050_v29 = vpop.xlane.xlu0 %1049  ;;  %v1484_v60 = vadd.f32 %v1335_v12, %v1334_v10  ;;  %v4995_v38 = vsub.f32 %v6207_v14, %v1109_v35  ;;  %v6209_v35 = vld [vmem:[#allocation73_spill] sm:$0xff] }
 0x2d0   : > { %6202 = vst [vmem:[#allocation69_spill] sm:$0xff] %v4982_v27  ;;  %6204 = vst [vmem:[#allocation71_spill] sm:$0xff] %v4985_v43  ;;  %3477 = vrsqrt.f32 %v1568_v48  ;;  %v1393_v6 = vpop.xlane.xlu1 %1392  ;;  %v1110_v16 = vmul.f32 0.001953125, %v1050_v29  ;;  %v1338_v17 = vmul.f32 %v4982_v27, %v4982_v27  ;;  %v1339_v7 = vmul.f32 %v4985_v43, %v4985_v43  ;;  %v6211_v29 = vld [vmem:[#allocation75_spill] sm:$0xff] }
 0x2d1   : > { %6206 = vst [vmem:[#allocation70_spill] sm:$0xff] %v4988_v42  ;;  %6208 = vst [vmem:[#allocation72_spill] sm:$0xff] %v4995_v38  ;;  %v1537_v4 = vmul.f32 0.001953125, %v1393_v6  ;;  %v1485_v61 = vadd.f32 %v1484_v60, %v1336_v21  ;;  %v1340_v36 = vmul.f32 %v4988_v42, %v4988_v42  ;;  %v1341_v12 = vmul.f32 %v4995_v38, %v4995_v38  ;;  %v6215_v60 = vld [vmem:[#allocation76_spill] sm:$0xff] }
 0x2d2   : > { %v5005_v10 = vpop.eup %3473  ;;  %v5008_v48 = vsub.f32 %v6209_v35, %v1110_v16  ;;  %v5011_v14 = vsub.f32 %v6211_v29, %v1110_v16  ;;  %v1489_v27 = vadd.f32 %v1339_v7, %v1338_v17  ;;  %v5014_v0 = vsub.f32 %v6213_v13, %v1110_v16 }
 0x2d3   : > { %v1569_v6 = vadd.f32 1e-05, %v1537_v4  ;;  %v1486_v21 = vadd.f32 %v1485_v61, %v1337_v45  ;;  %v5017_v43 = vsub.f32 %v6215_v60, %v1110_v16  ;;  %v1631_v42 = vmul.f32 %v5005_v10, %v4503_v32  ;;  %v6217_v60 = vld [vmem:[#allocation77_spill] sm:$0xff] }
 0x2d4   : > { %6210 = vst [vmem:[#allocation73_spill] sm:$0xff] %v5008_v48  ;;  %6212 = vst [vmem:[#allocation75_spill] sm:$0xff] %v5011_v14  ;;  %v1398_v38 = vpop.xlane.xlu0 %1397  ;;  %v1055_v9 = vpop.xlane.xlu1 %1054  ;;  %v1490_v8 = vadd.f32 %v1489_v27, %v1340_v36  ;;  %v1342_v35 = vmul.f32 %v5008_v48, %v5008_v48  ;;  %v1343_v17 = vmul.f32 %v5011_v14, %v5011_v14 }
 0x2d5   : > { %6214 = vst [vmem:[#allocation74_spill] sm:$0xff] %v5014_v0  ;;  %6216 = vst [vmem:[#allocation76_spill] sm:$0xff] %v5017_v43  ;;  %v1344_v13 = vmul.f32 %v5014_v0, %v5014_v0  ;;  %3479 = vrsqrt.f32 %v1569_v6  ;;  %v1538_v61 = vmul.f32 0.001953125, %v1398_v38  ;;  %v1111_v4 = vmul.f32 0.001953125, %v1055_v9  ;;  %1487 = vadd.xlane.f32.xlu0 %v1486_v21  ;;  %v6219_v6 = vld [vmem:[#allocation79_spill] sm:$0xff]  ;;  %v6221_v9 = vld [vmem:[#allocation78_spill] sm:$0xff] }
 0x2d6   : > { %v1345_v45 = vmul.f32 %v5017_v43, %v5017_v43  ;;  %v5029_v32 = vpop.eup %3475  ;;  %v1491_v16 = vadd.f32 %v1490_v8, %v1341_v12  ;;  %v1494_v36 = vadd.f32 %v1343_v17, %v1342_v35  ;;  %v1781_v27 = vmul.f32 %v4949_v58, %v1631_v42  ;;  %v6223_v12 = vld [vmem:[#allocation80_spill] sm:$0xff] }
 0x2d7   : > { %v1633_v7 = vmul.f32 %v5005_v10, %v4509_v41  ;;  %v1570_v29 = vadd.f32 1e-05, %v1538_v61  ;;  %v5035_v48 = vsub.f32 %v6217_v60, %v1111_v4  ;;  %v5038_v38 = vsub.f32 %v6219_v6, %v1111_v4 }
 0x2d8   : > { %v5041_v21 = vsub.f32 %v6221_v9, %v1111_v4  ;;  %v1403_v0 = vpop.xlane.xlu1 %1402  ;;  %v1060_v43 = vpop.xlane.xlu0 %1059  ;;  %1492 = vadd.xlane.f32.xlu1 %v1491_v16  ;;  %v1495_v8 = vadd.f32 %v1494_v36, %v1344_v13  ;;  %v5044_v35 = vsub.f32 %v6223_v12, %v1111_v4  ;;  %v1635_v41 = vmul.f32 %v5029_v32, %v4521_v19  ;;  %v6227_v36 = vld [vmem:[#allocation83_spill] sm:$0xff] }
 0x2d9   : > { %6218 = vst [vmem:[#allocation77_spill] sm:$0xff] %v5035_v48  ;;  %6220 = vst [vmem:[#allocation79_spill] sm:$0xff] %v5038_v38  ;;  %v1931_v42 = vadd.f32 %v4951_v51, %v1781_v27  ;;  %3481 = vrsqrt.f32 %v1570_v29  ;;  %v1539_v17 = vmul.f32 0.001953125, %v1403_v0  ;;  %v5049_v61 = vmul.f32 0.001953125, %v1060_v43  ;;  %v6225_v0 = vld [vmem:[#allocation81_spill] sm:$0xff] }
 0x2da   : > { %6222 = vst [vmem:[#allocation78_spill] sm:$0xff] %v5041_v21  ;;  %6224 = vst [vmem:[#allocation80_spill] sm:$0xff] %v5044_v35  ;;  %v1346_v60 = vmul.f32 %v5035_v48, %v5035_v48  ;;  %v5053_v6 = vpop.eup %3477  ;;  %v1496_v9 = vadd.f32 %v1495_v8, %v1345_v45  ;;  %v1347_v13 = vmul.f32 %v5038_v38, %v5038_v38 }
 0x2db   : > { %v1348_v4 = vmul.f32 %v5041_v21, %v5041_v21  ;;  %v1349_v19 = vmul.f32 %v5044_v35, %v5044_v35  ;;  %v1571_v16 = vadd.f32 1e-05, %v1539_v17  ;;  %v5063_v43 = vsub.f32 %v6225_v0, %v5049_v61 }
 0x2dc   : > { %v5067_v27 = vsub.f32 %v6227_v36, %v5049_v61  ;;  %v1785_v45 = vmul.f32 %v4949_v58, %v1635_v41  ;;  %v1408_v29 = vpop.xlane.xlu0 %1407  ;;  %v1065_v8 = vpop.xlane.xlu1 %1064  ;;  %1497 = vadd.xlane.f32.xlu0 %v1496_v9  ;;  %v1499_v12 = vadd.f32 %v1347_v13, %v1346_v60  ;;  %v2059_v48 = vmax.f32 %v1931_v42, 0.0  ;;  %v6231_v13 = vld [vmem:[#allocation87_spill] sm:$0xff] }
 0x2dd   : > { %6226 = vst [vmem:[#allocation81_spill] sm:$0xff] %v5063_v43  ;;  %v1637_v21 = vmul.f32 %v5029_v32, %v4529_v46  ;;  %v1783_v17 = vmul.f32 %v4959_v62, %v1633_v7  ;;  %3483 = vrsqrt.f32 %v1571_v16  ;;  %v1540_v35 = vmul.f32 0.001953125, %v1408_v29  ;;  %v6229_v46 = vld [vmem:[#allocation85_spill] sm:$0xff] }
 0x2de   : > { %6228 = vst [vmem:[#allocation83_spill] sm:$0xff] %v5067_v27  ;;  %v5073_v0 = vmul.f32 0.001953125, %v1065_v8  ;;  %v1935_v38 = vadd.f32 %v4951_v51, %v1785_v45  ;;  %v1500_v36 = vadd.f32 %v1499_v12, %v1348_v4  ;;  %v1630_v60 = vmul.f32 %v5005_v10, %v4500_v55 }
 0x2df   : > { %v1787_v14 = vmul.f32 %v4959_v62, %v1637_v21  ;;  %v1933_v41 = vadd.f32 %v4967_v15, %v1783_v17  ;;  %v5080_v42 = vpop.eup %3479  ;;  %v1572_v9 = vadd.f32 1e-05, %v1540_v35  ;;  %v1634_v55 = vmul.f32 %v5029_v32, %v4518_v20 }
 0x2e0   : > { %v5084_v7 = vsub.f32 %v6229_v46, %v5073_v0  ;;  %v5088_v16 = vsub.f32 %v6231_v13, %v5073_v0  ;;  %v2063_v45 = vmax.f32 %v1935_v38, 0.0  ;;  %v1413_v4 = vpop.xlane.xlu1 %1412  ;;  %v1070_v29 = vpop.xlane.xlu0 %1069  ;;  %v1501_v21 = vadd.f32 %v1500_v36, %v1349_v19 }
 0x2e1   : > { %v1937_v8 = vadd.f32 %v4967_v15, %v1787_v14  ;;  %v2061_v12 = vmax.f32 %v1933_v41, 0.0  ;;  %3485 = vrsqrt.f32 %v1572_v9  ;;  %v1541_v35 = vmul.f32 0.001953125, %v1413_v4  ;;  %v6232_v41 = vld [vmem:[#allocation89_spill] sm:$0xff]  ;;  %v6233_v9 = vld [vmem:[#allocation91_spill] sm:$0xff] }
 0x2e2   : > { %6230 = vst [vmem:[#allocation85_spill] sm:$0xff] %v5084_v7  ;;  %v5093_v17 = vmul.f32 0.001953125, %v1070_v29  ;;  %v2187_v46 = vpack.c.bf16 %v2063_v45, %v2059_v48  ;;  %1502 = vadd.xlane.f32.xlu1 %v1501_v21  ;;  %v1780_v13 = vmul.f32 %v4969_v3, %v1630_v60  ;;  %v1784_v38 = vmul.f32 %v4969_v3, %v1634_v55  ;;  %v6234_v48 = vld [vmem:[#allocation105_spill] sm:$0xff] }
 0x2e3   : > { %v2065_v59 = vmax.f32 %v1937_v8, 0.0  ;;  %v1632_v19 = vmul.f32 %v5005_v10, %v4506_v5  ;;  %v5099_v36 = vpop.eup %3481  ;;  %v1573_v14 = vadd.f32 1e-05, %v1541_v35  ;;  %v1636_v60 = vmul.f32 %v5029_v32, %v6234_v48 }
 0x2e4   : > { %v5103_v20 = vsub.f32 %v6232_v41, %v5093_v17  ;;  %v5107_v4 = vsub.f32 %v6233_v9, %v5093_v17  ;;  %2538 = vmatprep.mubr.bf16.mxu0 %v2187_v46  ;;  %v1930_v29 = vadd.f32 %v4975_v33, %v1780_v13  ;;  %v1934_v5 = vadd.f32 %v4975_v33, %v1784_v38  ;;  %v1418_v21 = vpop.xlane.xlu0 %1417  ;;  %v1075_v8 = vpop.xlane.xlu1 %1074 }
 0x2e5   : > { %v2189_v45 = vpack.c.bf16 %v2065_v59, %v2061_v12  ;;  %v1782_v10 = vmul.f32 %v4977_v2, %v1632_v19  ;;  %3487 = vrsqrt.f32 %v1573_v14  ;;  %v1786_v55 = vmul.f32 %v4977_v2, %v1636_v60  ;;  %v6235_v59 = vld [vmem:[#allocation82_spill] sm:$0xff]  ;;  %v6237_v14 = vld [vmem:[#allocation93_spill] sm:$0xff]  ;;  %v6238_v60 = vld [vmem:[#allocation95_spill] sm:$0xff] }
 0x2e6   : > { %v1542_v35 = vmul.f32 0.001953125, %v1418_v21  ;;  %v5115_v41 = vmul.f32 0.001953125, %v1075_v8  ;;  %v2058_v46 = vmax.f32 %v1930_v29, 0.0  ;;  %v2062_v9 = vmax.f32 %v1934_v5, 0.0 }
 0x2e7   : > { %2699 = vmatprep.mubr.bf16.mxu1 %v2189_v45  ;;  %v1932_v32 = vadd.f32 %v4979_v26, %v1782_v10  ;;  %v5120_v12 = vsub.f32 %v6235_v59, %v5049_v61  ;;  %v5122_v13 = vpop.eup %3483  ;;  %v1936_v38 = vadd.f32 %v4979_v26, %v1786_v55  ;;  %v6239_v10 = vld [vmem:[#allocation84_spill] sm:$0xff]  ;;  %v1350_v8 = vmul.f32 %v5063_v43, %v5063_v43 }
 0x2e8   : > { %v1574_v19 = vadd.f32 1e-05, %v1542_v35  ;;  %v5127_v48 = vsub.f32 %v6237_v14, %v5115_v41  ;;  %v5131_v45 = vsub.f32 %v6238_v60, %v5115_v41  ;;  %v2186_v29 = vpack.c.bf16 %v2062_v9, %v2058_v46  ;;  %v1423_v59 = vpop.xlane.xlu1 %1422  ;;  %v1080_v55 = vpop.xlane.xlu0 %1079 }
 0x2e9   : > { %6236 = vst [vmem:[#allocation87_spill] sm:$0xff] %v5120_v12  ;;  %v2060_v5 = vmax.f32 %v1932_v32, 0.0  ;;  %v5135_v21 = vsub.f32 %v6239_v10, %v5049_v61  ;;  %v2064_v35 = vmax.f32 %v1936_v38, 0.0  ;;  %v1351_v14 = vmul.f32 %v5067_v27, %v5067_v27  ;;  %v6241_v32 = vld [vmem:[#allocation86_spill] sm:$0xff]  ;;  %v6243_v27 = vld [vmem:[#allocation88_spill] sm:$0xff] }
 0x2ea   : > { %3489 = vrsqrt.f32 %v1574_v19  ;;  %v1352_v60 = vmul.f32 %v5120_v12, %v5120_v12  ;;  %2539 = vmatmul.mubr.bf16.vlgmr.msra.gmra.mrb[64].mxu0 %v2186_v29  ;;  %v1543_v9 = vmul.f32 0.001953125, %v1423_v59  ;;  %v5145_v61 = vmul.f32 0.001953125, %v1080_v55  ;;  %v6245_v59 = vld [vmem:[#allocation97_spill] sm:$0xff] }
 0x2eb   : > { %6240 = vst [vmem:[#allocation89_spill] sm:$0xff] %v5135_v21  ;;  %v1353_v46 = vmul.f32 %v5135_v21, %v5135_v21  ;;  %v5149_v10 = vsub.f32 %v6241_v32, %v5073_v0  ;;  %v5151_v43 = vpop.eup %3485  ;;  %v2188_v38 = vpack.c.bf16 %v2064_v35, %v2060_v5  ;;  %v1504_v19 = vadd.f32 %v1351_v14, %v1350_v8  ;;  %v6246_v21 = vld [vmem:[#allocation99_spill] sm:$0xff] }
 0x2ec   : > { %v5155_v1 = vsub.f32 %v6243_v27, %v5073_v0  ;;  %v1354_v29 = vmul.f32 %v5084_v7, %v5084_v7  ;;  %v1575_v12 = vadd.f32 1e-05, %v1543_v9  ;;  %v5161_v55 = vsub.f32 %v6245_v59, %v5145_v61 }
 0x2ed   : > { %6242 = vst [vmem:[#allocation91_spill] sm:$0xff] %v5149_v10  ;;  %v5165_v32 = vsub.f32 %v6246_v21, %v5145_v61  ;;  %v1355_v5 = vmul.f32 %v5088_v16, %v5088_v16  ;;  %2700 = vmatmul.mubr.bf16.vlgmr.msra.gmra.mrb[64].mxu1 %v2188_v38  ;;  %v1505_v8 = vadd.f32 %v1504_v19, %v1352_v60 }
 0x2ee   : > { %6244 = vst [vmem:[#allocation105_spill] sm:$0xff] %v5155_v1  ;;  %v1356_v27 = vmul.f32 %v5149_v10, %v5149_v10  ;;  %v1357_v0 = vmul.f32 %v5155_v1, %v5155_v1  ;;  %v1639_v35 = vmul.f32 %v5053_v6, %v4541_v54  ;;  %3491 = vrsqrt.f32 %v1575_v12 }
 0x2ef   : > { %v1509_v14 = vadd.f32 %v1355_v5, %v1354_v29  ;;  %v1643_v21 = vmul.f32 %v5080_v42, %v4561_v30  ;;  %v1641_v9 = vmul.f32 %v5053_v6, %v4549_v22  ;;  %v5179_v59 = vpop.eup %3487  ;;  %v1506_v60 = vadd.f32 %v1505_v8, %v1353_v46  ;;  %v1085_v8 = vpop.xlane.xlu1 %1084 }
 0x2f0   : > { %v1789_v38 = vmul.f32 %v4949_v58, %v1639_v35  ;;  %v1645_v19 = vmul.f32 %v5080_v42, %v4574_v40  ;;  %v1638_v10 = vmul.f32 %v5053_v6, %v4538_v24  ;;  %v1642_v30 = vmul.f32 %v5080_v42, %v4558_v49 }
 0x2f1   : > { %v1510_v54 = vadd.f32 %v1509_v14, %v1356_v27  ;;  %v1793_v12 = vmul.f32 %v4949_v58, %v1643_v21  ;;  %v1791_v29 = vmul.f32 %v4959_v62, %v1641_v9  ;;  %1507 = vadd.xlane.f32.xlu0 %v1506_v60  ;;  %v1640_v40 = vmul.f32 %v5053_v6, %v4546_v18  ;;  %v1428_v21 = vpop.xlane.xlu0 %1427 }
 0x2f2   : > { %v1939_v22 = vadd.f32 %v4951_v51, %v1789_v38  ;;  %v1795_v46 = vmul.f32 %v4959_v62, %v1645_v19  ;;  %v1788_v5 = vmul.f32 %v4969_v3, %v1638_v10  ;;  %v1792_v14 = vmul.f32 %v4969_v3, %v1642_v30 }
 0x2f3   : > { %v1511_v24 = vadd.f32 %v1510_v54, %v1357_v0  ;;  %v1943_v27 = vadd.f32 %v4951_v51, %v1793_v12  ;;  %v1941_v35 = vadd.f32 %v4967_v15, %v1791_v29  ;;  %v1644_v10 = vmul.f32 %v5080_v42, %v4566_v25 }
 0x2f4   : > { %v5198_v49 = vpop.eup %3489  ;;  %v2067_v9 = vmax.f32 %v1939_v22, 0.0  ;;  %v1945_v60 = vadd.f32 %v4967_v15, %v1795_v46  ;;  %v1938_v38 = vadd.f32 %v4975_v33, %v1788_v5  ;;  %v1942_v0 = vadd.f32 %v4975_v33, %v1792_v14 }
 0x2f5   : > { %1512 = vadd.xlane.f32.xlu1 %v1511_v24  ;;  %v2071_v18 = vmax.f32 %v1943_v27, 0.0  ;;  %v2069_v6 = vmax.f32 %v1941_v35, 0.0  ;;  %v1790_v19 = vmul.f32 %v4977_v2, %v1640_v40  ;;  %v1794_v29 = vmul.f32 %v4977_v2, %v1644_v10  ;;  %v6247_v24 = vld [vmem:[#allocation90_spill] sm:$0xff]  ;;  %v1433_v40 = vpop.xlane.xlu1 %1432 }
 0x2f6   : > { %v2073_v54 = vmax.f32 %v1945_v60, 0.0  ;;  %v2066_v12 = vmax.f32 %v1938_v38, 0.0  ;;  %v1544_v30 = vmul.f32 0.001953125, %v1428_v21  ;;  %v2070_v7 = vmax.f32 %v1942_v0, 0.0 }
 0x2f7   : > { %v2191_v22 = vpack.c.bf16 %v2071_v18, %v2067_v9  ;;  %v1940_v46 = vadd.f32 %v4979_v26, %v1790_v19  ;;  %v5208_v5 = vmul.f32 0.001953125, %v1085_v8  ;;  %v1944_v25 = vadd.f32 %v4979_v26, %v1794_v29  ;;  %v6248_v9 = vld [vmem:[#allocation101_spill] sm:$0xff]  ;;  %v6249_v8 = vld [vmem:[#allocation103_spill] sm:$0xff]  ;;  %v6250_v18 = vld [vmem:[#allocation92_spill] sm:$0xff] }
 0x2f8   : > { %v2193_v1 = vpack.c.bf16 %v2073_v54, %v2069_v6  ;;  %v1576_v42 = vadd.f32 1e-05, %v1544_v30  ;;  %v5213_v27 = vsub.f32 %v6247_v24, %v5093_v17  ;;  %v5215_v35 = vpop.eup %3491  ;;  %v2190_v14 = vpack.c.bf16 %v2070_v7, %v2066_v12  ;;  %v6251_v12 = vld [vmem:[#allocation94_spill] sm:$0xff]  ;;  %v6252_v30 = vld [vmem:[#allocation96_spill] sm:$0xff] }
 0x2f9   : > { %2546 = vmatprep.mubr.bf16.mxu0 %v2191_v22  ;;  %v2068_v21 = vmax.f32 %v1940_v46, 0.0  ;;  %v5219_v60 = vsub.f32 %v6248_v9, %v5208_v5  ;;  %v5223_v38 = vsub.f32 %v6249_v8, %v5208_v5  ;;  %v2072_v10 = vmax.f32 %v1944_v25, 0.0 }
 0x2fa   : > { %2707 = vmatprep.mubr.bf16.mxu1 %v2193_v1  ;;  %3493 = vrsqrt.f32 %v1576_v42  ;;  %v5227_v6 = vsub.f32 %v6250_v18, %v5093_v17  ;;  %v1358_v0 = vmul.f32 %v5103_v20, %v5103_v20  ;;  %2547 = vmatmul.mubr.bf16.gmra.mrb[68].mxu0 %v2190_v14  ;;  %v1359_v7 = vmul.f32 %v5107_v4, %v5107_v4 }
 0x2fb   : > { %v1360_v19 = vmul.f32 %v5213_v27, %v5213_v27  ;;  %v1545_v54 = vmul.f32 0.001953125, %v1433_v40  ;;  %v5237_v1 = vsub.f32 %v6251_v12, %v5115_v41  ;;  %v2192_v29 = vpack.c.bf16 %v2072_v10, %v2068_v21 }
 0x2fc   : > { %v1361_v17 = vmul.f32 %v5227_v6, %v5227_v6  ;;  %v5243_v22 = vsub.f32 %v6252_v30, %v5115_v41  ;;  %v1362_v46 = vmul.f32 %v5127_v48, %v5127_v48  ;;  %v1514_v25 = vadd.f32 %v1359_v7, %v1358_v0 }
 0x2fd   : > { %v1577_v42 = vadd.f32 1e-05, %v1545_v54  ;;  %v1363_v24 = vmul.f32 %v5131_v45, %v5131_v45  ;;  %v1364_v40 = vmul.f32 %v5237_v1, %v5237_v1  ;;  %2708 = vmatmul.mubr.bf16.gmra.mrb[68].mxu1 %v2192_v29  ;;  %v1647_v21 = vmul.f32 %v5099_v36, %v4580_v37 }
 0x2fe   : > { %v1365_v14 = vmul.f32 %v5243_v22, %v5243_v22  ;;  %v1651_v41 = vmul.f32 %v5122_v13, %v4591_v39  ;;  %v1649_v9 = vmul.f32 %v5099_v36, %v4599_v23  ;;  %v1515_v8 = vadd.f32 %v1514_v25, %v1360_v19 }
 0x2ff   : > { %3495 = vrsqrt.f32 %v1577_v42  ;;  %v1519_v10 = vadd.f32 %v1363_v24, %v1362_v46  ;;  %v1653_v18 = vmul.f32 %v5122_v13, %v4616_v63  ;;  %v1797_v0 = vmul.f32 %v4949_v58, %v1647_v21  ;;  %v1438_v24 = vpop.xlane.xlu0 %1437 }
 0x300   : > { %v1801_v7 = vmul.f32 %v4949_v58, %v1651_v41  ;;  %v1799_v54 = vmul.f32 %v4959_v62, %v1649_v9  ;;  %v1646_v37 = vmul.f32 %v5099_v36, %v4577_v57  ;;  %v1516_v12 = vadd.f32 %v1515_v8, %v1361_v17 }
 0x301   : > { %v1520_v39 = vadd.f32 %v1519_v10, %v1364_v40  ;;  %v1803_v29 = vmul.f32 %v4959_v62, %v1653_v18  ;;  %v1650_v23 = vmul.f32 %v5122_v13, %v4588_v56  ;;  %v1947_v19 = vadd.f32 %v4951_v51, %v1797_v0 }
 0x302   : > { %v1951_v63 = vadd.f32 %v4951_v51, %v1801_v7  ;;  %v1949_v30 = vadd.f32 %v4967_v15, %v1799_v54  ;;  %v1796_v46 = vmul.f32 %v4969_v3, %v1646_v37  ;;  %1517 = vadd.xlane.f32.xlu0 %v1516_v12  ;;  %v1648_v17 = vmul.f32 %v5099_v36, %v4585_v34  ;;  %v6253_v36 = vld [vmem:[#allocation98_spill] sm:$0xff] }
 0x303   : > { %v1521_v25 = vadd.f32 %v1520_v39, %v1365_v14  ;;  %v1953_v42 = vadd.f32 %v4967_v15, %v1803_v29  ;;  %v1800_v57 = vmul.f32 %v4969_v3, %v1650_v23  ;;  %v2075_v56 = vmax.f32 %v1947_v19, 0.0  ;;  %v1443_v23 = vpop.xlane.xlu1 %1442 }
 0x304   : > { %v5277_v40 = vpop.eup %3493  ;;  %v2079_v21 = vmax.f32 %v1951_v63, 0.0  ;;  %v2077_v41 = vmax.f32 %v1949_v30, 0.0  ;;  %v1946_v9 = vadd.f32 %v4975_v33, %v1796_v46  ;;  %v1652_v14 = vmul.f32 %v5122_v13, %v4604_v50  ;;  %v6254_v50 = vld [vmem:[#allocation100_spill] sm:$0xff] }
 0x305   : > { %1522 = vadd.xlane.f32.xlu1 %v1521_v25  ;;  %v2081_v8 = vmax.f32 %v1953_v42, 0.0  ;;  %v1950_v10 = vadd.f32 %v4975_v33, %v1800_v57  ;;  %v1798_v18 = vmul.f32 %v4977_v2, %v1648_v17  ;;  %v1546_v34 = vmul.f32 0.001953125, %v1438_v24 }
 0x306   : > { %v2195_v0 = vpack.c.bf16 %v2079_v21, %v2075_v56  ;;  %v2074_v7 = vmax.f32 %v1946_v9, 0.0  ;;  %v5286_v54 = vsub.f32 %v6253_v36, %v5145_v61  ;;  %v1802_v39 = vmul.f32 %v4977_v2, %v1652_v14 }
 0x307   : > { %v2197_v37 = vpack.c.bf16 %v2081_v8, %v2077_v41  ;;  %v2078_v12 = vmax.f32 %v1950_v10, 0.0  ;;  %v1948_v29 = vadd.f32 %v4979_v26, %v1798_v18  ;;  %v1578_v19 = vadd.f32 1e-05, %v1546_v34  ;;  %v6255_v41 = vld [vmem:[#allocation102_spill] sm:$0xff]  ;;  %v6256_v8 = vld [vmem:[#allocation104_spill] sm:$0xff] }
 0x308   : > { %2554 = vmatprep.mubr.bf16.mxu0 %v2195_v0  ;;  %v5292_v13 = vsub.f32 %v6254_v50, %v5145_v61  ;;  %v1366_v63 = vmul.f32 %v5161_v55, %v5161_v55  ;;  %v1367_v30 = vmul.f32 %v5165_v32, %v5165_v32  ;;  %v1952_v42 = vadd.f32 %v4979_v26, %v1802_v39 }
 0x309   : > { %v5298_v46 = vpop.eup %3495  ;;  %2715 = vmatprep.mubr.bf16.mxu1 %v2197_v37  ;;  %v2194_v25 = vpack.c.bf16 %v2078_v12, %v2074_v7  ;;  %v2076_v57 = vmax.f32 %v1948_v29, 0.0  ;;  %v1368_v17 = vmul.f32 %v5286_v54, %v5286_v54  ;;  %3497 = vrsqrt.f32 %v1578_v19 }
 0x30a   : > { %v1369_v61 = vmul.f32 %v5292_v13, %v5292_v13  ;;  %v1524_v24 = vadd.f32 %v1367_v30, %v1366_v63  ;;  %v1547_v56 = vmul.f32 0.001953125, %v1443_v23  ;;  %v2080_v21 = vmax.f32 %v1952_v42, 0.0 }
 0x30b   : > { %2555 = vmatmul.mubr.bf16.gmra.mrb[72].mxu0 %v2194_v25  ;;  %v5307_v9 = vsub.f32 %v6255_v41, %v5208_v5  ;;  %v5311_v10 = vsub.f32 %v6256_v8, %v5208_v5  ;;  %v1370_v14 = vmul.f32 %v5219_v60, %v5219_v60  ;;  %v1371_v7 = vmul.f32 %v5223_v38, %v5223_v38 }
 0x30c   : > { %v1525_v18 = vadd.f32 %v1524_v24, %v1368_v17  ;;  %v1579_v0 = vadd.f32 1e-05, %v1547_v56  ;;  %v1655_v34 = vmul.f32 %v5151_v43, %v4624_v44  ;;  %v2196_v36 = vpack.c.bf16 %v2080_v21, %v2076_v57  ;;  %v6257_v21 = vld [vmem:[#allocation106_spill] sm:$0xff] }
 0x30d   : > { %v1372_v37 = vmul.f32 %v5307_v9, %v5307_v9  ;;  %v1373_v12 = vmul.f32 %v5311_v10, %v5311_v10  ;;  %v1659_v5 = vmul.f32 %v5179_v59, %v4633_v53  ;;  %v1529_v29 = vadd.f32 %v1371_v7, %v1370_v14 }
 0x30e   : > { %v1526_v39 = vadd.f32 %v1525_v18, %v1369_v61  ;;  %3499 = vrsqrt.f32 %v1579_v0  ;;  %v1805_v23 = vmul.f32 %v4949_v58, %v1655_v34  ;;  %2716 = vmatmul.mubr.bf16.gmra.mrb[72].mxu1 %v2196_v36  ;;  %v1657_v44 = vmul.f32 %v5151_v43, %v4636_v31  ;;  %v1448_v61 = vpop.xlane.xlu0 %1447  ;;  %v1453_v36 = vpop.xlane.xlu1 %1452 }
 0x30f   : > { %v1809_v19 = vmul.f32 %v4949_v58, %v1659_v5  ;;  %v1661_v50 = vmul.f32 %v5179_v59, %v4658_v11  ;;  %v1654_v63 = vmul.f32 %v5151_v43, %v4621_v47  ;;  %v1530_v30 = vadd.f32 %v1529_v29, %v1372_v37 }
 0x310   : > { %1527 = vadd.xlane.f32.xlu0 %v1526_v39  ;;  %v1955_v53 = vadd.f32 %v4951_v51, %v1805_v23  ;;  %v1658_v25 = vmul.f32 %v5179_v59, %v4630_v28  ;;  %v1656_v42 = vmul.f32 %v5151_v43, %v4627_v52  ;;  %v1807_v31 = vmul.f32 %v4959_v62, %v1657_v44 }
 0x311   : > { %v1959_v57 = vadd.f32 %v4951_v51, %v1809_v19  ;;  %v1811_v17 = vmul.f32 %v4959_v62, %v1661_v50  ;;  %v1804_v11 = vmul.f32 %v4969_v3, %v1654_v63  ;;  %v1531_v47 = vadd.f32 %v1530_v30, %v1373_v12  ;;  %v6258_v63 = vld [vmem:[#allocation108_spill] sm:$0xff] }
 0x312   : > { %v2083_v24 = vmax.f32 %v1955_v53, 0.0  ;;  %v1808_v56 = vmul.f32 %v4969_v3, %v1658_v25  ;;  %v1660_v41 = vmul.f32 %v5179_v59, %v6257_v21  ;;  %v1957_v8 = vadd.f32 %v4967_v15, %v1807_v31  ;;  %v6259_v53 = vld [vmem:[#allocation111_spill] sm:$0xff] }
 0x313   : > { %v2087_v28 = vmax.f32 %v1959_v57, 0.0  ;;  %v1961_v52 = vadd.f32 %v4967_v15, %v1811_v17  ;;  %v1954_v43 = vadd.f32 %v4975_v33, %v1804_v11  ;;  %v5348_v14 = vpop.eup %3497  ;;  %1532 = vadd.xlane.f32.xlu1 %v1531_v47  ;;  %v1806_v0 = vmul.f32 %v4977_v2, %v1656_v42 }
 0x314   : > { %v1958_v18 = vadd.f32 %v4975_v33, %v1808_v56  ;;  %v1810_v7 = vmul.f32 %v4977_v2, %v1660_v41  ;;  %v1548_v34 = vmul.f32 0.001953125, %v1448_v61  ;;  %v2085_v59 = vmax.f32 %v1957_v8, 0.0  ;;  %v6261_v41 = vld [vmem:[#allocation16_spill] sm:$0xff]  ;;  %v6262_v8 = vld [vmem:[#allocation107_spill] sm:$0xff] }
 0x315   : > { %v2199_v37 = vpack.c.bf16 %v2087_v28, %v2083_v24  ;;  %v2089_v12 = vmax.f32 %v1961_v52, 0.0  ;;  %v2082_v5 = vmax.f32 %v1954_v43, 0.0  ;;  %v1956_v29 = vadd.f32 %v4979_v26, %v1806_v0  ;;  %v6260_v24 = vld [vmem:[#allocation112_spill] sm:$0xff]  ;;  %v6263_v43 = vld [vmem:[#allocation110_spill] sm:$0xff] }
 0x316   : > { %v2086_v39 = vmax.f32 %v1958_v18, 0.0  ;;  %v1960_v23 = vadd.f32 %v4979_v26, %v1810_v7  ;;  %v1580_v19 = vadd.f32 1e-05, %v1548_v34  ;;  %v1549_v50 = vmul.f32 0.001953125, %v1453_v36 }
 0x317   : > { %2562 = vmatprep.mubr.bf16.mxu0 %v2199_v37  ;;  %v2201_v44 = vpack.c.bf16 %v2089_v12, %v2085_v59  ;;  %v1663_v30 = vmul.f32 %v5198_v49, %v6258_v63  ;;  %v1667_v25 = vmul.f32 %v5215_v35, %v6259_v53  ;;  %v2084_v31 = vmax.f32 %v1956_v29, 0.0  ;;  %v6264_v12 = vld [vmem:[#allocation109_spill] sm:$0xff] }
 0x318   : > { %v5359_v42 = vpop.eup %3499  ;;  %v2198_v57 = vpack.c.bf16 %v2086_v39, %v2082_v5  ;;  %v2088_v17 = vmax.f32 %v1960_v23, 0.0  ;;  %3501 = vrsqrt.f32 %v1580_v19  ;;  %v1581_v11 = vadd.f32 1e-05, %v1549_v50  ;;  %v1458_v39 = vpop.xlane.xlu0 %1457 }
 0x319   : > { %2723 = vmatprep.mubr.bf16.mxu1 %v2201_v44  ;;  %v1813_v61 = vmul.f32 %v4949_v58, %v1663_v30  ;;  %v1817_v47 = vmul.f32 %v4949_v58, %v1667_v25  ;;  %v1665_v56 = vmul.f32 %v5198_v49, %v6260_v24  ;;  %v1669_v28 = vmul.f32 %v5215_v35, %v6261_v41  ;;  %v6265_v44 = vld [vmem:[#allocation113_spill] sm:$0xff] }
 0x31a   : > { %2563 = vmatmul.mubr.bf16.gmra.mrb[76].mxu0 %v2198_v57  ;;  %v2200_v21 = vpack.c.bf16 %v2088_v17, %v2084_v31  ;;  %v1662_v52 = vmul.f32 %v5198_v49, %v6262_v8  ;;  %v1666_v18 = vmul.f32 %v5215_v35, %v6263_v43  ;;  %3503 = vrsqrt.f32 %v1581_v11  ;;  %v1463_v57 = vpop.xlane.xlu1 %1462 }
 0x31b   : > { %v1963_v0 = vadd.f32 %v4951_v51, %v1813_v61  ;;  %v1967_v7 = vadd.f32 %v4951_v51, %v1817_v47  ;;  %v1815_v34 = vmul.f32 %v4959_v62, %v1665_v56  ;;  %v1819_v36 = vmul.f32 %v4959_v62, %v1669_v28  ;;  %v6266_v28 = vld [vmem:[#allocation19_spill] sm:$0xff] }
 0x31c   : > { %2724 = vmatmul.mubr.bf16.gmra.mrb[76].mxu1 %v2200_v21  ;;  %v1812_v37 = vmul.f32 %v4969_v3, %v1662_v52  ;;  %v1816_v59 = vmul.f32 %v4969_v3, %v1666_v18  ;;  %v1664_v5 = vmul.f32 %v5198_v49, %v6264_v12  ;;  %v1668_v50 = vmul.f32 %v5215_v35, %v6265_v44  ;;  %v1468_v52 = vpop.xlane.xlu0 %1467 }
 0x31d   : > { %v2091_v29 = vmax.f32 %v1963_v0, 0.0  ;;  %v2095_v23 = vmax.f32 %v1967_v7, 0.0  ;;  %v1965_v19 = vadd.f32 %v4967_v15, %v1815_v34  ;;  %v1969_v63 = vadd.f32 %v4967_v15, %v1819_v36  ;;  %v6267_v34 = vld [vmem:[#allocation23_spill] sm:$0xff] }
 0x31e   : > { %v1962_v30 = vadd.f32 %v4975_v33, %v1812_v37  ;;  %v1966_v53 = vadd.f32 %v4975_v33, %v1816_v59  ;;  %v1814_v25 = vmul.f32 %v4977_v2, %v1664_v5  ;;  %v1818_v49 = vmul.f32 %v4977_v2, %v1668_v50 }
 0x31f   : > { %v2203_v31 = vpack.c.bf16 %v2095_v23, %v2091_v29  ;;  %v2093_v17 = vmax.f32 %v1965_v19, 0.0  ;;  %v1550_v11 = vmul.f32 0.001953125, %v1458_v39  ;;  %v2097_v61 = vmax.f32 %v1969_v63, 0.0  ;;  %v6268_v39 = vld [vmem:[#allocation20_spill] sm:$0xff] }
 0x320   : > { %v2090_v47 = vmax.f32 %v1962_v30, 0.0  ;;  %v2094_v24 = vmax.f32 %v1966_v53, 0.0  ;;  %v1964_v56 = vadd.f32 %v4979_v26, %v1814_v25  ;;  %v1968_v35 = vadd.f32 %v4979_v26, %v1818_v49  ;;  %v6269_v23 = vld [vmem:[#allocation24_spill] sm:$0xff]  ;;  %v6270_v53 = vld [vmem:[#allocation17_spill] sm:$0xff] }
 0x321   : > { %2570 = vmatprep.mubr.bf16.mxu0 %v2203_v31  ;;  %v1582_v21 = vadd.f32 1e-05, %v1550_v11  ;;  %v1551_v41 = vmul.f32 0.001953125, %v1463_v57  ;;  %v1671_v8 = vmul.f32 %v5277_v40, %v6266_v28  ;;  %v2205_v18 = vpack.c.bf16 %v2097_v61, %v2093_v17  ;;  %v6271_v49 = vld [vmem:[#allocation21_spill] sm:$0xff] }
 0x322   : > { %v5391_v43 = vpop.eup %3501  ;;  %v2202_v0 = vpack.c.bf16 %v2094_v24, %v2090_v47  ;;  %v2092_v7 = vmax.f32 %v1964_v56, 0.0  ;;  %v1675_v36 = vmul.f32 %v5298_v46, %v6267_v34  ;;  %v2096_v37 = vmax.f32 %v1968_v35, 0.0  ;;  %v6272_v24 = vld [vmem:[#allocation18_spill] sm:$0xff] }
 0x323   : > { %3505 = vrsqrt.f32 %v1582_v21  ;;  %v1583_v59 = vadd.f32 1e-05, %v1551_v41  ;;  %v1821_v12 = vmul.f32 %v4949_v58, %v1671_v8  ;;  %2731 = vmatprep.mubr.bf16.mxu1 %v2205_v18  ;;  %v1673_v29 = vmul.f32 %v5277_v40, %v6268_v39  ;;  %v6273_v35 = vld [vmem:[#allocation22_spill] sm:$0xff] }
 0x324   : > { %2571 = vmatmul.mubr.bf16.gmra.mrb[80].mxu0 %v2202_v0  ;;  %v1825_v5 = vmul.f32 %v4949_v58, %v1675_v36  ;;  %v1677_v19 = vmul.f32 %v5298_v46, %v6269_v23  ;;  %v1552_v44 = vmul.f32 0.001953125, %v1468_v52  ;;  %v5401_v50 = vpop.eup %3503  ;;  %v2204_v63 = vpack.c.bf16 %v2096_v37, %v2092_v7  ;;  %v1473_v36 = vpop.xlane.xlu1 %1472 }
 0x325   : > { %3507 = vrsqrt.f32 %v1583_v59  ;;  %v1971_v30 = vadd.f32 %v4951_v51, %v1821_v12  ;;  %v1670_v25 = vmul.f32 %v5277_v40, %v6270_v53  ;;  %v1823_v31 = vmul.f32 %v4959_v62, %v1673_v29 }
 0x326   : > { %v1975_v57 = vadd.f32 %v4951_v51, %v1825_v5  ;;  %v1827_v17 = vmul.f32 %v4959_v62, %v1677_v19  ;;  %v1674_v11 = vmul.f32 %v5298_v46, %v6271_v49  ;;  %2732 = vmatmul.mubr.bf16.gmra.mrb[80].mxu1 %v2204_v63  ;;  %v1672_v56 = vmul.f32 %v5277_v40, %v6272_v24  ;;  %v6274_v63 = vld [vmem:[#allocation27_spill] sm:$0xff]  ;;  %v6277_v24 = vld [vmem:[#allocation32_spill] sm:$0xff] }
 0x327   : > { %v2099_v61 = vmax.f32 %v1971_v30, 0.0  ;;  %v1820_v47 = vmul.f32 %v4969_v3, %v1670_v25  ;;  %v1676_v21 = vmul.f32 %v5298_v46, %v6273_v35  ;;  %v1973_v28 = vadd.f32 %v4967_v15, %v1823_v31 }
 0x328   : > { %v2103_v41 = vmax.f32 %v1975_v57, 0.0  ;;  %v1977_v8 = vadd.f32 %v4967_v15, %v1827_v17  ;;  %v1824_v52 = vmul.f32 %v4969_v3, %v1674_v11  ;;  %v1822_v0 = vmul.f32 %v4977_v2, %v1672_v56  ;;  %v6275_v57 = vld [vmem:[#allocation31_spill] sm:$0xff]  ;;  %v6276_v17 = vld [vmem:[#allocation28_spill] sm:$0xff] }
 0x329   : > { %v1970_v18 = vadd.f32 %v4975_v33, %v1820_v47  ;;  %v1826_v7 = vmul.f32 %v4977_v2, %v1676_v21  ;;  %v1584_v34 = vadd.f32 1e-05, %v1552_v44  ;;  %v2101_v40 = vmax.f32 %v1973_v28, 0.0 }
 0x32a   : > { %v2207_v37 = vpack.c.bf16 %v2103_v41, %v2099_v61  ;;  %v2105_v59 = vmax.f32 %v1977_v8, 0.0  ;;  %v1974_v46 = vadd.f32 %v4975_v33, %v1824_v52  ;;  %v1972_v5 = vadd.f32 %v4979_v26, %v1822_v0  ;;  %v6278_v8 = vld [vmem:[#allocation25_spill] sm:$0xff] }
 0x32b   : > { %v2098_v12 = vmax.f32 %v1970_v18, 0.0  ;;  %v1976_v39 = vadd.f32 %v4979_v26, %v1826_v7  ;;  %3509 = vrsqrt.f32 %v1584_v34  ;;  %v1553_v19 = vmul.f32 0.001953125, %v1473_v36  ;;  %v6279_v7 = vld [vmem:[#allocation29_spill] sm:$0xff] }
 0x32c   : > { %2578 = vmatprep.mubr.bf16.mxu0 %v2207_v37  ;;  %v2209_v29 = vpack.c.bf16 %v2105_v59, %v2101_v40  ;;  %v2102_v23 = vmax.f32 %v1974_v46, 0.0  ;;  %v1679_v30 = vmul.f32 %v5348_v14, %v6274_v63  ;;  %v2100_v53 = vmax.f32 %v1972_v5, 0.0  ;;  %v6280_v59 = vld [vmem:[#allocation26_spill] sm:$0xff]  ;;  %v1483_v63 = vpop.xlane.xlu1 %1482 }
 0x32d   : > { %v5427_v44 = vpop.eup %3505  ;;  %v2104_v25 = vmax.f32 %v1976_v39, 0.0  ;;  %v1683_v31 = vmul.f32 %v5359_v42, %v6275_v57  ;;  %v1681_v49 = vmul.f32 %v5348_v14, %v6276_v17  ;;  %v1585_v61 = vadd.f32 1e-05, %v1553_v19 }
 0x32e   : > { %2739 = vmatprep.mubr.bf16.mxu1 %v2209_v29  ;;  %v2206_v11 = vpack.c.bf16 %v2102_v23, %v2098_v12  ;;  %v1829_v47 = vmul.f32 %v4949_v58, %v1679_v30  ;;  %v1685_v56 = vmul.f32 %v5359_v42, %v6277_v24  ;;  %v1678_v52 = vmul.f32 %v5348_v14, %v6278_v8  ;;  %v1478_v12 = vpop.xlane.xlu0 %1477  ;;  %v6281_v23 = vld [vmem:[#allocation30_spill] sm:$0xff] }
 0x32f   : > { %v5436_v35 = vpop.eup %3507  ;;  %v2208_v21 = vpack.c.bf16 %v2104_v25, %v2100_v53  ;;  %v1833_v41 = vmul.f32 %v4949_v58, %v1683_v31  ;;  %v1831_v28 = vmul.f32 %v4959_v62, %v1681_v49  ;;  %3511 = vrsqrt.f32 %v1585_v61 }
 0x330   : > { %2579 = vmatmul.mubr.bf16.gmra.mrb[84].mxu0 %v2206_v11  ;;  %v1979_v18 = vadd.f32 %v4951_v51, %v1829_v47  ;;  %v1835_v0 = vmul.f32 %v4959_v62, %v1685_v56  ;;  %v1682_v34 = vmul.f32 %v5359_v42, %v6279_v7  ;;  %v1828_v40 = vmul.f32 %v4969_v3, %v1678_v52  ;;  %v6283_v7 = vld [vmem:[#allocation39_spill] sm:$0xff] }
 0x331   : > { %2740 = vmatmul.mubr.bf16.gmra.mrb[84].mxu1 %v2208_v21  ;;  %v1983_v36 = vadd.f32 %v4951_v51, %v1833_v41  ;;  %v1981_v37 = vadd.f32 %v4967_v15, %v1831_v28  ;;  %v1680_v46 = vmul.f32 %v5348_v14, %v6280_v59  ;;  %v1684_v19 = vmul.f32 %v5359_v42, %v6281_v23 }
 0x332   : > { %v2107_v5 = vmax.f32 %v1979_v18, 0.0  ;;  %v1985_v39 = vadd.f32 %v4967_v15, %v1835_v0  ;;  %v1832_v29 = vmul.f32 %v4969_v3, %v1682_v34  ;;  %v1978_v25 = vadd.f32 %v4975_v33, %v1828_v40  ;;  %v6282_v18 = vld [vmem:[#allocation35_spill] sm:$0xff]  ;;  %v6284_v40 = vld [vmem:[#allocation36_spill] sm:$0xff] }
 0x333   : > { %v2111_v30 = vmax.f32 %v1983_v36, 0.0  ;;  %v2109_v53 = vmax.f32 %v1981_v37, 0.0  ;;  %v1830_v57 = vmul.f32 %v4977_v2, %v1680_v46  ;;  %v1834_v14 = vmul.f32 %v4977_v2, %v1684_v19 }
 0x334   : > { %v2113_v31 = vmax.f32 %v1985_v39, 0.0  ;;  %v1982_v17 = vadd.f32 %v4975_v33, %v1832_v29  ;;  %v1554_v49 = vmul.f32 0.001953125, %v1478_v12  ;;  %v2106_v47 = vmax.f32 %v1978_v25, 0.0 }
 0x335   : > { %v5459_v11 = vpop.eup %3509  ;;  %v2211_v61 = vpack.c.bf16 %v2111_v30, %v2107_v5  ;;  %v1980_v24 = vadd.f32 %v4979_v26, %v1830_v57  ;;  %v1555_v42 = vmul.f32 0.001953125, %v1483_v63  ;;  %v1984_v41 = vadd.f32 %v4979_v26, %v1834_v14  ;;  %v6285_v5 = vld [vmem:[#allocation40_spill] sm:$0xff]  ;;  %v6286_v63 = vld [vmem:[#allocation33_spill] sm:$0xff]  ;;  %v6288_v14 = vld [vmem:[#allocation34_spill] sm:$0xff] }
 0x336   : > { %v2213_v56 = vpack.c.bf16 %v2113_v31, %v2109_v53  ;;  %v2110_v21 = vmax.f32 %v1982_v17, 0.0  ;;  %v1586_v28 = vadd.f32 1e-05, %v1554_v49  ;;  %v1687_v0 = vmul.f32 %v5391_v43, %v6282_v18  ;;  %v6287_v53 = vld [vmem:[#allocation37_spill] sm:$0xff] }
 0x337   : > { %2586 = vmatprep.mubr.bf16.mxu0 %v2211_v61  ;;  %v2108_v8 = vmax.f32 %v1980_v24, 0.0  ;;  %v1587_v52 = vadd.f32 1e-05, %v1555_v42  ;;  %v1691_v34 = vmul.f32 %v5401_v50, %v6283_v7  ;;  %v2112_v37 = vmax.f32 %v1984_v41, 0.0  ;;  %v6289_v42 = vld [vmem:[#allocation38_spill] sm:$0xff] }
 0x338   : > { %2747 = vmatprep.mubr.bf16.mxu1 %v2213_v56  ;;  %v2210_v36 = vpack.c.bf16 %v2110_v21, %v2106_v47  ;;  %3513 = vrsqrt.f32 %v1586_v28  ;;  %v1689_v59 = vmul.f32 %v5391_v43, %v6284_v40  ;;  %v1837_v46 = vmul.f32 %v4949_v58, %v1687_v0 }
 0x339   : > { %3515 = vrsqrt.f32 %v1587_v52  ;;  %v1841_v12 = vmul.f32 %v4949_v58, %v1691_v34  ;;  %v1693_v39 = vmul.f32 %v5401_v50, %v6285_v5  ;;  %v5473_v29 = vpop.eup %3511  ;;  %v2212_v23 = vpack.c.bf16 %v2112_v37, %v2108_v8  ;;  %v6290_v37 = vld [vmem:[#allocation43_spill] sm:$0xff] }
 0x33a   : > { %2587 = vmatmul.mubr.bf16.gmra.mrb[88].mxu0 %v2210_v36  ;;  %v1839_v19 = vmul.f32 %v4959_v62, %v1689_v59  ;;  %v1686_v30 = vmul.f32 %v5391_v43, %v6286_v63  ;;  %v1690_v25 = vmul.f32 %v5401_v50, %v6287_v53  ;;  %v1987_v57 = vadd.f32 %v4951_v51, %v1837_v46  ;;  %v6292_v63 = vld [vmem:[#allocation44_spill] sm:$0xff] }
 0x33b   : > { %v1991_v31 = vadd.f32 %v4951_v51, %v1841_v12  ;;  %v1843_v17 = vmul.f32 %v4959_v62, %v1693_v39  ;;  %v1688_v49 = vmul.f32 %v5391_v43, %v6288_v14  ;;  %2748 = vmatmul.mubr.bf16.gmra.mrb[88].mxu1 %v2212_v23  ;;  %v1692_v56 = vmul.f32 %v5401_v50, %v6289_v42  ;;  %v6291_v12 = vld [vmem:[#allocation47_spill] sm:$0xff] }
 0x33c   : > { %v1989_v61 = vadd.f32 %v4967_v15, %v1839_v19  ;;  %v1836_v47 = vmul.f32 %v4969_v3, %v1686_v30  ;;  %v1840_v24 = vmul.f32 %v4969_v3, %v1690_v25  ;;  %v2115_v21 = vmax.f32 %v1987_v57, 0.0 }
 0x33d   : > { %v2119_v41 = vmax.f32 %v1991_v31, 0.0  ;;  %v1993_v28 = vadd.f32 %v4967_v15, %v1843_v17  ;;  %v1838_v8 = vmul.f32 %v4977_v2, %v1688_v49  ;;  %v1842_v0 = vmul.f32 %v4977_v2, %v1692_v56  ;;  %v6293_v17 = vld [vmem:[#allocation48_spill] sm:$0xff]  ;;  %v6295_v56 = vld [vmem:[#allocation45_spill] sm:$0xff] }
 0x33e   : > { %v2117_v52 = vmax.f32 %v1989_v61, 0.0  ;;  %v1986_v18 = vadd.f32 %v4975_v33, %v1836_v47  ;;  %v1990_v43 = vadd.f32 %v4975_v33, %v1840_v24  ;;  %v1695_v50 = vmul.f32 %v5427_v44, %v6290_v37  ;;  %v6294_v24 = vld [vmem:[#allocation41_spill] sm:$0xff] }
 0x33f   : > { %v2215_v7 = vpack.c.bf16 %v2119_v41, %v2115_v21  ;;  %v2121_v34 = vmax.f32 %v1993_v28, 0.0  ;;  %v1988_v36 = vadd.f32 %v4979_v26, %v1838_v8  ;;  %v1992_v46 = vadd.f32 %v4979_v26, %v1842_v0 }
 0x340   : > { %v2114_v40 = vmax.f32 %v1986_v18, 0.0  ;;  %v2118_v59 = vmax.f32 %v1990_v43, 0.0  ;;  %v1699_v5 = vmul.f32 %v5436_v35, %v6291_v12  ;;  %v1845_v19 = vmul.f32 %v4949_v58, %v1695_v50  ;;  %v6297_v50 = vld [vmem:[#allocation46_spill] sm:$0xff] }
 0x341   : > { %2594 = vmatprep.mubr.bf16.mxu0 %v2215_v7  ;;  %v2217_v39 = vpack.c.bf16 %v2121_v34, %v2117_v52  ;;  %v2116_v23 = vmax.f32 %v1988_v36, 0.0  ;;  %v1697_v30 = vmul.f32 %v5427_v44, %v6292_v63  ;;  %v2120_v57 = vmax.f32 %v1992_v46, 0.0  ;;  %v6296_v52 = vld [vmem:[#allocation42_spill] sm:$0xff] }
 0x342   : > { %v5504_v53 = vpop.eup %3513  ;;  %v2214_v25 = vpack.c.bf16 %v2118_v59, %v2114_v40  ;;  %v1849_v31 = vmul.f32 %v4949_v58, %v1699_v5  ;;  %v1701_v14 = vmul.f32 %v5436_v35, %v6293_v17  ;;  %v1995_v61 = vadd.f32 %v4951_v51, %v1845_v19  ;;  %v6298_v5 = vld [vmem:[#allocation51_spill] sm:$0xff] }
 0x343   : > { %v5509_v49 = vpop.eup %3515  ;;  %2755 = vmatprep.mubr.bf16.mxu1 %v2217_v39  ;;  %v1847_v47 = vmul.f32 %v4959_v62, %v1697_v30  ;;  %v1694_v42 = vmul.f32 %v5427_v44, %v6294_v24  ;;  %v1698_v21 = vmul.f32 %v5436_v35, %v6295_v56  ;;  %v2216_v41 = vpack.c.bf16 %v2120_v57, %v2116_v23  ;;  %v6300_v24 = vld [vmem:[#allocation52_spill] sm:$0xff] }
 0x344   : > { %2595 = vmatmul.mubr.bf16.gmra.mrb[92].mxu0 %v2214_v25  ;;  %v1999_v28 = vadd.f32 %v4951_v51, %v1849_v31  ;;  %v1851_v8 = vmul.f32 %v4959_v62, %v1701_v14  ;;  %v1696_v18 = vmul.f32 %v5427_v44, %v6296_v52  ;;  %v2123_v43 = vmax.f32 %v1995_v61, 0.0  ;;  %v6299_v31 = vld [vmem:[#allocation55_spill] sm:$0xff] }
 0x345   : > { %v1997_v0 = vadd.f32 %v4967_v15, %v1847_v47  ;;  %v1844_v7 = vmul.f32 %v4969_v3, %v1694_v42  ;;  %v1848_v34 = vmul.f32 %v4969_v3, %v1698_v21  ;;  %2756 = vmatmul.mubr.bf16.gmra.mrb[92].mxu1 %v2216_v41  ;;  %v1700_v40 = vmul.f32 %v5436_v35, %v6297_v50 }
 0x346   : > { %v2127_v36 = vmax.f32 %v1999_v28, 0.0  ;;  %v2001_v37 = vadd.f32 %v4967_v15, %v1851_v8  ;;  %v1846_v59 = vmul.f32 %v4977_v2, %v1696_v18  ;;  %v1703_v39 = vmul.f32 %v5459_v11, %v6298_v5  ;;  %v6301_v28 = vld [vmem:[#allocation56_spill] sm:$0xff] }
 0x347   : > { %v2125_v46 = vmax.f32 %v1997_v0, 0.0  ;;  %v1994_v12 = vadd.f32 %v4975_v33, %v1844_v7  ;;  %v1998_v44 = vadd.f32 %v4975_v33, %v1848_v34  ;;  %v1850_v63 = vmul.f32 %v4977_v2, %v1700_v40  ;;  %v6303_v7 = vld [vmem:[#allocation53_spill] sm:$0xff]  ;;  %v6304_v40 = vld [vmem:[#allocation50_spill] sm:$0xff] }
 0x348   : > { %v2219_v23 = vpack.c.bf16 %v2127_v36, %v2123_v43  ;;  %v2129_v19 = vmax.f32 %v2001_v37, 0.0  ;;  %v1996_v30 = vadd.f32 %v4979_v26, %v1846_v59  ;;  %v1707_v35 = vmul.f32 %v5473_v29, %v6299_v31  ;;  %v6302_v43 = vld [vmem:[#allocation49_spill] sm:$0xff]  ;;  %v6306_v31 = vld [vmem:[#allocation59_spill] sm:$0xff] }
 0x349   : > { %v2122_v25 = vmax.f32 %v1994_v12, 0.0  ;;  %v2126_v57 = vmax.f32 %v1998_v44, 0.0  ;;  %v1853_v17 = vmul.f32 %v4949_v58, %v1703_v39  ;;  %v2000_v61 = vadd.f32 %v4979_v26, %v1850_v63 }
 0x34a   : > { %2602 = vmatprep.mubr.bf16.mxu0 %v2219_v23  ;;  %v2221_v14 = vpack.c.bf16 %v2129_v19, %v2125_v46  ;;  %v2124_v47 = vmax.f32 %v1996_v30, 0.0  ;;  %v1705_v42 = vmul.f32 %v5459_v11, %v6300_v24  ;;  %v1857_v21 = vmul.f32 %v4949_v58, %v1707_v35  ;;  %v6305_v19 = vld [vmem:[#allocation54_spill] sm:$0xff] }
 0x34b   : > { %v2218_v56 = vpack.c.bf16 %v2126_v57, %v2122_v25  ;;  %v2003_v41 = vadd.f32 %v4951_v51, %v1853_v17  ;;  %v1709_v8 = vmul.f32 %v5473_v29, %v6301_v28  ;;  %v2128_v52 = vmax.f32 %v2000_v61, 0.0 }
 0x34c   : > { %2763 = vmatprep.mubr.bf16.mxu1 %v2221_v14  ;;  %v1855_v18 = vmul.f32 %v4959_v62, %v1705_v42  ;;  %v1702_v0 = vmul.f32 %v5459_v11, %v6302_v43  ;;  %v1706_v34 = vmul.f32 %v5473_v29, %v6303_v7  ;;  %v2007_v36 = vadd.f32 %v4951_v51, %v1857_v21 }
 0x34d   : > { %2603 = vmatmul.mubr.bf16.gmra.mrb[96].mxu0 %v2218_v56  ;;  %v2131_v37 = vmax.f32 %v2003_v41, 0.0  ;;  %v1859_v50 = vmul.f32 %v4959_v62, %v1709_v8  ;;  %v1704_v59 = vmul.f32 %v5459_v11, %v6304_v40  ;;  %v2220_v46 = vpack.c.bf16 %v2128_v52, %v2124_v47  ;;  %v6308_v52 = vld [vmem:[#allocation60_spill] sm:$0xff]  ;;  %v6310_v40 = vld [vmem:[#allocation57_spill] sm:$0xff] }
 0x34e   : > { %v2005_v12 = vadd.f32 %v4967_v15, %v1855_v18  ;;  %v1852_v44 = vmul.f32 %v4969_v3, %v1702_v0  ;;  %v1856_v5 = vmul.f32 %v4969_v3, %v1706_v34  ;;  %v2135_v39 = vmax.f32 %v2007_v36, 0.0  ;;  %v6309_v34 = vld [vmem:[#allocation64_spill] sm:$0xff] }
 0x34f   : > { %v2009_v23 = vadd.f32 %v4967_v15, %v1859_v50  ;;  %v1708_v63 = vmul.f32 %v5473_v29, %v6305_v19  ;;  %v1854_v30 = vmul.f32 %v4977_v2, %v1704_v59  ;;  %2764 = vmatmul.mubr.bf16.gmra.mrb[96].mxu1 %v2220_v46  ;;  %v1711_v35 = vmul.f32 %v5504_v53, %v6306_v31  ;;  %v6307_v29 = vld [vmem:[#allocation63_spill] sm:$0xff]  ;;  %v6311_v46 = vld [vmem:[#allocation61_spill] sm:$0xff] }
 0x350   : > { %v2133_v25 = vmax.f32 %v2005_v12, 0.0  ;;  %v2002_v57 = vadd.f32 %v4975_v33, %v1852_v44  ;;  %v2006_v11 = vadd.f32 %v4975_v33, %v1856_v5  ;;  %v2223_v17 = vpack.c.bf16 %v2135_v39, %v2131_v37 }
 0x351   : > { %v2137_v14 = vmax.f32 %v2009_v23, 0.0  ;;  %v1858_v61 = vmul.f32 %v4977_v2, %v1708_v63  ;;  %v2004_v47 = vadd.f32 %v4979_v26, %v1854_v30  ;;  %v1715_v56 = vmul.f32 %v5509_v49, %v6307_v29  ;;  %v6312_v23 = vld [vmem:[#allocation58_spill] sm:$0xff] }
 0x352   : > { %v2130_v24 = vmax.f32 %v2002_v57, 0.0  ;;  %v2134_v42 = vmax.f32 %v2006_v11, 0.0  ;;  %v1861_v21 = vmul.f32 %v4949_v58, %v1711_v35  ;;  %2610 = vmatprep.mubr.bf16.mxu0 %v2223_v17  ;;  %v1713_v18 = vmul.f32 %v5504_v53, %v6308_v52  ;;  %v6313_v35 = vld [vmem:[#allocation62_spill] sm:$0xff] }
 0x353   : > { %v2225_v41 = vpack.c.bf16 %v2137_v14, %v2133_v25  ;;  %v2008_v28 = vadd.f32 %v4979_v26, %v1858_v61  ;;  %v2132_v8 = vmax.f32 %v2004_v47, 0.0  ;;  %v1865_v0 = vmul.f32 %v4949_v58, %v1715_v56 }
 0x354   : > { %v2222_v43 = vpack.c.bf16 %v2134_v42, %v2130_v24  ;;  %v2011_v7 = vadd.f32 %v4951_v51, %v1861_v21  ;;  %v1717_v36 = vmul.f32 %v5509_v49, %v6309_v34  ;;  %v1863_v50 = vmul.f32 %v4959_v62, %v1713_v18 }
 0x355   : > { %2771 = vmatprep.mubr.bf16.mxu1 %v2225_v41  ;;  %v2136_v37 = vmax.f32 %v2008_v28, 0.0  ;;  %v1710_v59 = vmul.f32 %v5504_v53, %v6310_v40  ;;  %v1714_v12 = vmul.f32 %v5509_v49, %v6311_v46  ;;  %v2015_v44 = vadd.f32 %v4951_v51, %v1865_v0 }
 0x356   : > { %2611 = vmatmul.mubr.bf16.gmra.mrb[100].mxu0 %v2222_v43  ;;  %v2139_v5 = vmax.f32 %v2011_v7, 0.0  ;;  %v1867_v39 = vmul.f32 %v4959_v62, %v1717_v36  ;;  %v1712_v19 = vmul.f32 %v5504_v53, %v6312_v23  ;;  %v2013_v30 = vadd.f32 %v4967_v15, %v1863_v50  ;;  %v6314_v23 = vld [vmem:[#allocation67_spill] sm:$0xff] }
 0x357   : > { %v2224_v63 = vpack.c.bf16 %v2136_v37, %v2132_v8  ;;  %v1860_v25 = vmul.f32 %v4969_v3, %v1710_v59  ;;  %v1864_v57 = vmul.f32 %v4969_v3, %v1714_v12  ;;  %v2143_v11 = vmax.f32 %v2015_v44, 0.0 }
 0x358   : > { %v2017_v31 = vadd.f32 %v4967_v15, %v1867_v39  ;;  %v1716_v17 = vmul.f32 %v5509_v49, %v6313_v35  ;;  %v1862_v14 = vmul.f32 %v4977_v2, %v1712_v19  ;;  %v2141_v61 = vmax.f32 %v2013_v30, 0.0 }
 0x359   : > { %2772 = vmatmul.mubr.bf16.gmra.mrb[100].mxu1 %v2224_v63  ;;  %v2010_v47 = vadd.f32 %v4975_v33, %v1860_v25  ;;  %v2014_v53 = vadd.f32 %v4975_v33, %v1864_v57  ;;  %v2227_v24 = vpack.c.bf16 %v2143_v11, %v2139_v5  ;;  %v6315_v63 = vld [vmem:[#allocation68_spill] sm:$0xff]  ;;  %v6316_v25 = vld [vmem:[#allocation65_spill] sm:$0xff]  ;;  %v6317_v11 = vld [vmem:[#allocation66_spill] sm:$0xff] }
 0x35a   : > { %v2145_v42 = vmax.f32 %v2017_v31, 0.0  ;;  %v1866_v29 = vmul.f32 %v4977_v2, %v1716_v17  ;;  %v2012_v56 = vadd.f32 %v4979_v26, %v1862_v14 }
 0x35b   : > { %v2138_v21 = vmax.f32 %v2010_v47, 0.0  ;;  %v2142_v41 = vmax.f32 %v2014_v53, 0.0  ;;  %2618 = vmatprep.mubr.bf16.mxu0 %v2227_v24  ;;  %v6318_v47 = vld [vmem:[#allocation71_spill] sm:$0xff]  ;;  %v6319_v24 = vld [vmem:[#allocation72_spill] sm:$0xff] }
 0x35c   : > { %v2229_v28 = vpack.c.bf16 %v2145_v42, %v2141_v61  ;;  %v2016_v49 = vadd.f32 %v4979_v26, %v1866_v29  ;;  %v2140_v52 = vmax.f32 %v2012_v56, 0.0  ;;  %v6320_v29 = vld [vmem:[#allocation69_spill] sm:$0xff] }
 0x35d   : > { %v2226_v8 = vpack.c.bf16 %v2142_v41, %v2138_v21  ;;  %v6321_v21 = vld [vmem:[#allocation70_spill] sm:$0xff] }
 0x35e   : > { %2779 = vmatprep.mubr.bf16.mxu1 %v2229_v28  ;;  %v2144_v18 = vmax.f32 %v2016_v49, 0.0 }
 0x35f   : > { %2619 = vmatmul.mubr.bf16.gmra.mrb[104].mxu0 %v2226_v8 }
 0x360   : > { %v2228_v43 = vpack.c.bf16 %v2144_v18, %v2140_v52 }
 0x362   : > { %2780 = vmatmul.mubr.bf16.gmra.mrb[104].mxu1 %v2228_v43  ;;  %v1488_v0 = vpop.xlane.xlu0 %1487 }
 0x363   : > { %v1556_v7 = vmul.f32 0.001953125, %v1488_v0 }
 0x365   : > { %v1588_v34 = vadd.f32 1e-05, %v1556_v7  ;;  %v1493_v36 = vpop.xlane.xlu1 %1492 }
 0x366   : > { %v1557_v37 = vmul.f32 0.001953125, %v1493_v36 }
 0x367   : > { %3517 = vrsqrt.f32 %v1588_v34 }
 0x368   : > { %v1589_v50 = vadd.f32 1e-05, %v1557_v37 }
 0x369   : > { %v1498_v40 = vpop.xlane.xlu0 %1497 }
 0x36a   : > { %3519 = vrsqrt.f32 %v1589_v50  ;;  %v1558_v59 = vmul.f32 0.001953125, %v1498_v40 }
 0x36c   : > { %v1590_v46 = vadd.f32 1e-05, %v1558_v59 }
 0x36e   : > { %3521 = vrsqrt.f32 %v1590_v46 }
 0x36f   : > { %v1503_v12 = vpop.xlane.xlu1 %1502 }
 0x370   : > { %v1559_v44 = vmul.f32 0.001953125, %v1503_v12 }
 0x371   : > { %v3518_v5 = vpop.eup %3517 }
 0x372   : > { %v1591_v39 = vadd.f32 1e-05, %v1559_v44  ;;  %v1719_v19 = vmul.f32 %v3518_v5, %v6314_v23  ;;  %v1721_v30 = vmul.f32 %v3518_v5, %v6315_v63  ;;  %v1718_v57 = vmul.f32 %v3518_v5, %v6316_v25 }
 0x373   : > { %v1720_v31 = vmul.f32 %v3518_v5, %v6317_v11 }
 0x374   : > { %v3520_v35 = vpop.eup %3519  ;;  %3523 = vrsqrt.f32 %v1591_v39  ;;  %v1869_v17 = vmul.f32 %v4949_v58, %v1719_v19  ;;  %v1871_v14 = vmul.f32 %v4959_v62, %v1721_v30  ;;  %v1868_v61 = vmul.f32 %v4969_v3, %v1718_v57  ;;  %v6322_v39 = vld [vmem:[#allocation75_spill] sm:$0xff]  ;;  %v6323_v19 = vld [vmem:[#allocation76_spill] sm:$0xff]  ;;  %v6324_v30 = vld [vmem:[#allocation73_spill] sm:$0xff] }
 0x375   : > { %v1723_v53 = vmul.f32 %v3520_v35, %v6318_v47  ;;  %v1725_v42 = vmul.f32 %v3520_v35, %v6319_v24  ;;  %v1722_v56 = vmul.f32 %v3520_v35, %v6320_v29  ;;  %v1724_v41 = vmul.f32 %v3520_v35, %v6321_v21  ;;  %v6325_v47 = vld [vmem:[#allocation74_spill] sm:$0xff] }
 0x376   : > { %v2019_v28 = vadd.f32 %v4951_v51, %v1869_v17  ;;  %v2021_v49 = vadd.f32 %v4967_v15, %v1871_v14  ;;  %v2018_v8 = vadd.f32 %v4975_v33, %v1868_v61  ;;  %v1870_v52 = vmul.f32 %v4977_v2, %v1720_v31 }
 0x377   : > { %v1873_v18 = vmul.f32 %v4949_v58, %v1723_v53  ;;  %v1875_v43 = vmul.f32 %v4959_v62, %v1725_v42  ;;  %v1872_v0 = vmul.f32 %v4969_v3, %v1722_v56  ;;  %v1874_v7 = vmul.f32 %v4977_v2, %v1724_v41 }
 0x378   : > { %v3522_v34 = vpop.eup %3521  ;;  %v2147_v36 = vmax.f32 %v2019_v28, 0.0  ;;  %v2149_v37 = vmax.f32 %v2021_v49, 0.0  ;;  %v2146_v50 = vmax.f32 %v2018_v8, 0.0  ;;  %v2020_v40 = vadd.f32 %v4979_v26, %v1870_v52  ;;  %v6326_v52 = vld [vmem:[#allocation79_spill] sm:$0xff] }
 0x379   : > { %v2023_v59 = vadd.f32 %v4951_v51, %v1873_v18  ;;  %v2025_v46 = vadd.f32 %v4967_v15, %v1875_v43  ;;  %v2022_v12 = vadd.f32 %v4975_v33, %v1872_v0  ;;  %v2024_v44 = vadd.f32 %v4979_v26, %v1874_v7  ;;  %v6327_v43 = vld [vmem:[#allocation80_spill] sm:$0xff]  ;;  %v6328_v7 = vld [vmem:[#allocation77_spill] sm:$0xff] }
 0x37a   : > { %v2148_v5 = vmax.f32 %v2020_v40, 0.0  ;;  %v1727_v23 = vmul.f32 %v3522_v34, %v6322_v39  ;;  %v1729_v63 = vmul.f32 %v3522_v34, %v6323_v19  ;;  %v1726_v25 = vmul.f32 %v3522_v34, %v6324_v30 }
 0x37b   : > { %v2151_v57 = vmax.f32 %v2023_v59, 0.0  ;;  %v2153_v11 = vmax.f32 %v2025_v46, 0.0  ;;  %v2150_v31 = vmax.f32 %v2022_v12, 0.0  ;;  %v2152_v35 = vmax.f32 %v2024_v44, 0.0 }
 0x37c   : > { %v1877_v17 = vmul.f32 %v4949_v58, %v1727_v23  ;;  %v1879_v14 = vmul.f32 %v4959_v62, %v1729_v63  ;;  %v1876_v61 = vmul.f32 %v4969_v3, %v1726_v25  ;;  %v1728_v53 = vmul.f32 %v3522_v34, %v6325_v47 }
 0x37d   : > { %v2231_v24 = vpack.c.bf16 %v2151_v57, %v2147_v36  ;;  %v2233_v42 = vpack.c.bf16 %v2153_v11, %v2149_v37  ;;  %v2230_v29 = vpack.c.bf16 %v2150_v31, %v2146_v50  ;;  %v2232_v56 = vpack.c.bf16 %v2152_v35, %v2148_v5  ;;  %v6329_v37 = vld [vmem:[#allocation78_spill] sm:$0xff] }
 0x37e   : > { %v3524_v21 = vpop.eup %3523  ;;  %v1508_v41 = vpop.xlane.xlu0 %1507  ;;  %v2027_v28 = vadd.f32 %v4951_v51, %v1877_v17  ;;  %v1878_v49 = vmul.f32 %v4977_v2, %v1728_v53  ;;  %v2029_v34 = vadd.f32 %v4967_v15, %v1879_v14  ;;  %v2026_v36 = vadd.f32 %v4975_v33, %v1876_v61 }
 0x37f   : > { %v1560_v8 = vmul.f32 0.001953125, %v1508_v41  ;;  %2626 = vmatprep.mubr.bf16.mxu0 %v2231_v24  ;;  %2787 = vmatprep.mubr.bf16.mxu1 %v2233_v42  ;;  %v1731_v18 = vmul.f32 %v3524_v21, %v6326_v52  ;;  %v1733_v0 = vmul.f32 %v3524_v21, %v6327_v43  ;;  %v1730_v40 = vmul.f32 %v3524_v21, %v6328_v7  ;;  %v6333_v7 = vld [vmem:[#allocation87_spill] sm:$0xff] }
 0x380   : > { %2627 = vmatmul.mubr.bf16.gmra.mrb[108].mxu0 %v2230_v29  ;;  %2788 = vmatmul.mubr.bf16.gmra.mrb[108].mxu1 %v2232_v56  ;;  %v1732_v50 = vmul.f32 %v3524_v21, %v6329_v37  ;;  %v2028_v19 = vadd.f32 %v4979_v26, %v1878_v49  ;;  %v2155_v11 = vmax.f32 %v2027_v28, 0.0  ;;  %v2157_v31 = vmax.f32 %v2029_v34, 0.0  ;;  %v6330_v28 = vld [vmem:[#allocation83_spill] sm:$0xff] }
 0x381   : > { %v1592_v59 = vadd.f32 1e-05, %v1560_v8  ;;  %v1881_v12 = vmul.f32 %v4949_v58, %v1731_v18  ;;  %v1883_v44 = vmul.f32 %v4959_v62, %v1733_v0  ;;  %v1880_v5 = vmul.f32 %v4969_v3, %v1730_v40  ;;  %v6331_v8 = vld [vmem:[#allocation89_spill] sm:$0xff] }
 0x382   : > { %v1513_v46 = vpop.xlane.xlu1 %1512  ;;  %v1882_v23 = vmul.f32 %v4977_v2, %v1732_v50  ;;  %v2154_v61 = vmax.f32 %v2026_v36, 0.0  ;;  %v2156_v53 = vmax.f32 %v2028_v19, 0.0  ;;  %v6332_v18 = vld [vmem:[#allocation81_spill] sm:$0xff]  ;;  %v6336_v19 = vld [vmem:[#allocation91_spill] sm:$0xff] }
 0x383   : > { %v1561_v39 = vmul.f32 0.001953125, %v1513_v46  ;;  %3525 = vrsqrt.f32 %v1592_v59  ;;  %v2031_v63 = vadd.f32 %v4951_v51, %v1881_v12  ;;  %v2033_v30 = vadd.f32 %v4967_v15, %v1883_v44  ;;  %v6334_v44 = vld [vmem:[#allocation105_spill] sm:$0xff] }
 0x384   : > { %v2030_v25 = vadd.f32 %v4975_v33, %v1880_v5  ;;  %v2032_v35 = vadd.f32 %v4979_v26, %v1882_v23 }
 0x385   : > { %v1593_v57 = vadd.f32 1e-05, %v1561_v39  ;;  %v2159_v17 = vmax.f32 %v2031_v63, 0.0  ;;  %v2161_v14 = vmax.f32 %v2033_v30, 0.0  ;;  %v6335_v39 = vld [vmem:[#allocation85_spill] sm:$0xff] }
 0x386   : > { %v2158_v47 = vmax.f32 %v2030_v25, 0.0  ;;  %v2160_v24 = vmax.f32 %v2032_v35, 0.0 }
 0x387   : > { %3527 = vrsqrt.f32 %v1593_v57  ;;  %v2235_v42 = vpack.c.bf16 %v2159_v17, %v2155_v11  ;;  %v2237_v29 = vpack.c.bf16 %v2161_v14, %v2157_v31 }
 0x388   : > { %v2234_v56 = vpack.c.bf16 %v2158_v47, %v2154_v61  ;;  %v2236_v21 = vpack.c.bf16 %v2160_v24, %v2156_v53 }
 0x389   : > { %2634 = vmatprep.mubr.bf16.mxu0 %v2235_v42  ;;  %2795 = vmatprep.mubr.bf16.mxu1 %v2237_v29 }
 0x38a   : > { %2635 = vmatmul.mubr.bf16.gmra.mrb[112].mxu0 %v2234_v56  ;;  %2796 = vmatmul.mubr.bf16.gmra.mrb[112].mxu1 %v2236_v21 }
 0x38d   : > { %v3526_v41 = vpop.eup %3525 }
 0x38e   : > { %v1735_v49 = vmul.f32 %v3526_v41, %v6330_v28  ;;  %v1737_v52 = vmul.f32 %v3526_v41, %v6331_v8  ;;  %v1734_v43 = vmul.f32 %v3526_v41, %v6332_v18  ;;  %v1736_v40 = vmul.f32 %v3526_v41, %v6333_v7 }
 0x38f   : > { %v1518_v0 = vpop.xlane.xlu0 %1517 }
 0x390   : > { %v1562_v36 = vmul.f32 0.001953125, %v1518_v0  ;;  %v1885_v37 = vmul.f32 %v4949_v58, %v1735_v49  ;;  %v1887_v50 = vmul.f32 %v4959_v62, %v1737_v52  ;;  %v1884_v59 = vmul.f32 %v4969_v3, %v1734_v43 }
 0x391   : > { %v3528_v34 = vpop.eup %3527  ;;  %v1886_v29 = vmul.f32 %v4977_v2, %v1736_v40 }
 0x392   : > { %v1523_v46 = vpop.xlane.xlu1 %1522  ;;  %v1739_v12 = vmul.f32 %v3528_v34, %v5088_v16  ;;  %v1741_v5 = vmul.f32 %v3528_v34, %v6334_v44  ;;  %v1738_v23 = vmul.f32 %v3528_v34, %v6335_v39  ;;  %v1740_v63 = vmul.f32 %v3528_v34, %v6336_v19 }
 0x393   : > { %v1594_v30 = vadd.f32 1e-05, %v1562_v36  ;;  %v1563_v25 = vmul.f32 0.001953125, %v1523_v46  ;;  %v2035_v57 = vadd.f32 %v4951_v51, %v1885_v37  ;;  %v2037_v11 = vadd.f32 %v4967_v15, %v1887_v50 }
 0x394   : > { %v1889_v31 = vmul.f32 %v4949_v58, %v1739_v12  ;;  %v1891_v35 = vmul.f32 %v4959_v62, %v1741_v5  ;;  %v1888_v17 = vmul.f32 %v4969_v3, %v1738_v23  ;;  %v2034_v16 = vadd.f32 %v4975_v33, %v1884_v59 }
 0x395   : > { %3529 = vrsqrt.f32 %v1594_v30  ;;  %v1595_v14 = vadd.f32 1e-05, %v1563_v25  ;;  %v2163_v47 = vmax.f32 %v2035_v57, 0.0  ;;  %v2165_v42 = vmax.f32 %v2037_v11, 0.0 }
 0x396   : > { %v2039_v61 = vadd.f32 %v4951_v51, %v1889_v31  ;;  %v2041_v53 = vadd.f32 %v4967_v15, %v1891_v35  ;;  %v2038_v24 = vadd.f32 %v4975_v33, %v1888_v17  ;;  %v1890_v56 = vmul.f32 %v4977_v2, %v1740_v63 }
 0x397   : > { %3531 = vrsqrt.f32 %v1595_v14  ;;  %v2162_v28 = vmax.f32 %v2034_v16, 0.0  ;;  %v2036_v8 = vadd.f32 %v4979_v26, %v1886_v29 }
 0x398   : > { %v2167_v21 = vmax.f32 %v2039_v61, 0.0  ;;  %v2169_v41 = vmax.f32 %v2041_v53, 0.0  ;;  %v2166_v49 = vmax.f32 %v2038_v24, 0.0  ;;  %v2040_v52 = vadd.f32 %v4979_v26, %v1890_v56 }
 0x399   : > { %v2164_v7 = vmax.f32 %v2036_v8, 0.0 }
 0x39a   : > { %v2239_v18 = vpack.c.bf16 %v2167_v21, %v2163_v47  ;;  %v2241_v43 = vpack.c.bf16 %v2169_v41, %v2165_v42  ;;  %v2238_v0 = vpack.c.bf16 %v2166_v49, %v2162_v28  ;;  %v2168_v34 = vmax.f32 %v2040_v52, 0.0 }
 0x39c   : > { %2642 = vmatprep.mubr.bf16.mxu0 %v2239_v18  ;;  %2803 = vmatprep.mubr.bf16.mxu1 %v2241_v43  ;;  %v2240_v40 = vpack.c.bf16 %v2168_v34, %v2164_v7 }
 0x39d   : > { %v1528_v36 = vpop.xlane.xlu0 %1527  ;;  %2643 = vmatmul.mubr.bf16.gmra.mrb[116].mxu0 %v2238_v0 }
 0x39e   : > { %v1564_v37 = vmul.f32 0.001953125, %v1528_v36  ;;  %2804 = vmatmul.mubr.bf16.gmra.mrb[116].mxu1 %v2240_v40 }
 0x39f   : > { %v3530_v50 = vpop.eup %3529 }
 0x3a0   : > { %v1596_v59 = vadd.f32 1e-05, %v1564_v37  ;;  %v1743_v46 = vmul.f32 %v3530_v50, %v5107_v4  ;;  %v1745_v12 = vmul.f32 %v3530_v50, %v5227_v6  ;;  %v1742_v44 = vmul.f32 %v3530_v50, %v5103_v20  ;;  %v1533_v39 = vpop.xlane.xlu1 %1532 }
 0x3a1   : > { %v3532_v5 = vpop.eup %3531  ;;  %v1744_v23 = vmul.f32 %v3530_v50, %v5213_v27  ;;  %v1565_v19 = vmul.f32 0.001953125, %v1533_v39 }
 0x3a2   : > { %3533 = vrsqrt.f32 %v1596_v59  ;;  %v1747_v63 = vmul.f32 %v3532_v5, %v5131_v45  ;;  %v1893_v30 = vmul.f32 %v4949_v58, %v1743_v46  ;;  %v1749_v25 = vmul.f32 %v3532_v5, %v5243_v22 }
 0x3a3   : > { %v1895_v57 = vmul.f32 %v4959_v62, %v1745_v12  ;;  %v1746_v4 = vmul.f32 %v3532_v5, %v5127_v48  ;;  %v1892_v6 = vmul.f32 %v4969_v3, %v1742_v44  ;;  %v1597_v11 = vadd.f32 1e-05, %v1565_v19 }
 0x3a4   : > { %v1897_v20 = vmul.f32 %v4949_v58, %v1747_v63  ;;  %v2043_v31 = vadd.f32 %v4951_v51, %v1893_v30  ;;  %v1748_v27 = vmul.f32 %v3532_v5, %v5237_v1  ;;  %v1899_v35 = vmul.f32 %v4959_v62, %v1749_v25 }
 0x3a5   : > { %v2045_v45 = vadd.f32 %v4967_v15, %v1895_v57  ;;  %v1896_v17 = vmul.f32 %v4969_v3, %v1746_v4  ;;  %v2042_v22 = vadd.f32 %v4975_v33, %v1892_v6  ;;  %3535 = vrsqrt.f32 %v1597_v11 }
 0x3a6   : > { %v2047_v48 = vadd.f32 %v4951_v51, %v1897_v20  ;;  %v1894_v16 = vmul.f32 %v4977_v2, %v1744_v23  ;;  %v2049_v14 = vadd.f32 %v4967_v15, %v1899_v35  ;;  %v2171_v47 = vmax.f32 %v2043_v31, 0.0 }
 0x3a7   : > { %v2046_v61 = vadd.f32 %v4975_v33, %v1896_v17  ;;  %v1898_v1 = vmul.f32 %v4977_v2, %v1748_v27  ;;  %v2173_v42 = vmax.f32 %v2045_v45, 0.0  ;;  %v2170_v56 = vmax.f32 %v2042_v22, 0.0 }
 0x3a8   : > { %v2175_v53 = vmax.f32 %v2047_v48, 0.0  ;;  %v2044_v24 = vadd.f32 %v4979_v26, %v1894_v16  ;;  %v2177_v29 = vmax.f32 %v2049_v14, 0.0 }
 0x3a9   : > { %v2174_v21 = vmax.f32 %v2046_v61, 0.0  ;;  %v2048_v28 = vadd.f32 %v4979_v26, %v1898_v1 }
 0x3aa   : > { %v2243_v41 = vpack.c.bf16 %v2175_v53, %v2171_v47  ;;  %v2245_v49 = vpack.c.bf16 %v2177_v29, %v2173_v42  ;;  %v2172_v18 = vmax.f32 %v2044_v24, 0.0 }
 0x3ab   : > { %v2242_v8 = vpack.c.bf16 %v2174_v21, %v2170_v56  ;;  %v2176_v43 = vmax.f32 %v2048_v28, 0.0 }
 0x3ac   : > { %v3534_v52 = vpop.eup %3533  ;;  %2650 = vmatprep.mubr.bf16.mxu0 %v2243_v41  ;;  %2811 = vmatprep.mubr.bf16.mxu1 %v2245_v49 }
 0x3ad   : > { %2651 = vmatmul.mubr.bf16.gmra.mrb[120].mxu0 %v2242_v8  ;;  %v1751_v0 = vmul.f32 %v3534_v52, %v5165_v32  ;;  %v1753_v7 = vmul.f32 %v3534_v52, %v5292_v13  ;;  %v1750_v34 = vmul.f32 %v3534_v52, %v5161_v55  ;;  %v2244_v36 = vpack.c.bf16 %v2176_v43, %v2172_v18 }
 0x3ae   : > { %v1752_v40 = vmul.f32 %v3534_v52, %v5286_v54 }
 0x3af   : > { %v1901_v37 = vmul.f32 %v4949_v58, %v1751_v0  ;;  %v1903_v50 = vmul.f32 %v4959_v62, %v1753_v7  ;;  %v3536_v59 = vpop.eup %3535  ;;  %2812 = vmatmul.mubr.bf16.gmra.mrb[120].mxu1 %v2244_v36  ;;  %v1900_v46 = vmul.f32 %v4969_v3, %v1750_v34 }
 0x3b0   : > { %v1902_v12 = vmul.f32 %v4977_v2, %v1752_v40  ;;  %v1755_v44 = vmul.f32 %v3536_v59, %v5223_v38  ;;  %v1757_v32 = vmul.f32 %v3536_v59, %v5311_v10  ;;  %v1754_v13 = vmul.f32 %v3536_v59, %v5219_v60 }
 0x3b1   : > { %v1756_v55 = vmul.f32 %v3536_v59, %v5307_v9  ;;  %v2051_v5 = vadd.f32 %v4951_v51, %v1901_v37  ;;  %v2053_v23 = vadd.f32 %v4967_v15, %v1903_v50  ;;  %v2050_v63 = vadd.f32 %v4975_v33, %v1900_v46 }
 0x3b2   : > { %v1905_v54 = vmul.f32 %v4949_v58, %v1755_v44  ;;  %v1907_v39 = vmul.f32 %v4959_v62, %v1757_v32  ;;  %v1904_v19 = vmul.f32 %v4969_v3, %v1754_v13  ;;  %v2052_v10 = vadd.f32 %v4979_v26, %v1902_v12 }
 0x3b3   : > { %v1906_v38 = vmul.f32 %v4977_v2, %v1756_v55  ;;  %v2179_v25 = vmax.f32 %v2051_v5, 0.0  ;;  %v2181_v57 = vmax.f32 %v2053_v23, 0.0  ;;  %v2178_v6 = vmax.f32 %v2050_v63, 0.0 }
 0x3b4   : > { %v2055_v60 = vadd.f32 %v4951_v51, %v1905_v54  ;;  %v2057_v9 = vadd.f32 %v4967_v15, %v1907_v39  ;;  %v2054_v58 = vadd.f32 %v4975_v33, %v1904_v19  ;;  %v2180_v11 = vmax.f32 %v2052_v10, 0.0 }
 0x3b5   : > { %v2056_v30 = vadd.f32 %v4979_v26, %v1906_v38 }
 0x3b6   : > { %v2183_v62 = vmax.f32 %v2055_v60, 0.0  ;;  %v2185_v4 = vmax.f32 %v2057_v9, 0.0  ;;  %v2182_v3 = vmax.f32 %v2054_v58, 0.0 }
 0x3b7   : > { %v2184_v20 = vmax.f32 %v2056_v30, 0.0 }
 0x3b8   : > { %v2247_v31 = vpack.c.bf16 %v2183_v62, %v2179_v25  ;;  %v2249_v2 = vpack.c.bf16 %v2185_v4, %v2181_v57  ;;  %v2246_v27 = vpack.c.bf16 %v2182_v3, %v2178_v6 }
 0x3b9   : > { %v2248_v35 = vpack.c.bf16 %v2184_v20, %v2180_v11 }
 0x3ba   : > { %2658 = vmatprep.mubr.bf16.mxu0 %v2247_v31  ;;  %2819 = vmatprep.mubr.bf16.mxu1 %v2249_v2 }
 0x3bb   : > { %2659 = vmatmul.mubr.bf16.gmra.mrb[124].mxu0 %v2246_v27  ;;  %2820 = vmatmul.mubr.bf16.gmra.mrb[124].mxu1 %v2248_v35 }
 0x3bd   : > { %v3089_v33 = vpop.f32.mrb[64].mxu0 }
 0x3be   : > { %v3090_v51 = vpop.f32.mrb[65].mxu0 }
 0x3bf   : > { %v3091_v26 = vadd.f32 %v3090_v51, %v3089_v33  ;;  %v3092_v15 = vpop.f32.mrb[66].mxu0 }
 0x3c0   : > { %v3201_v45 = vpop.f32.mrb[64].mxu1  ;;  %v3093_v17 = vpop.f32.mrb[67].mxu0 }
 0x3c1   : > { %v3202_v22 = vpop.f32.mrb[65].mxu1  ;;  %v3094_v48 = vadd.f32 %v3093_v17, %v3092_v15 }
 0x3c2   : > { %v3203_v16 = vadd.f32 %v3202_v22, %v3201_v45  ;;  %v3204_v14 = vpop.f32.mrb[66].mxu1 }
 0x3c3   : > { %v3205_v61 = vpop.f32.mrb[67].mxu1 }
 0x3c4   : > { %v2702_v47 = vadd.f32 %v3203_v16, %v3091_v26  ;;  %v3206_v53 = vadd.f32 %v3205_v61, %v3204_v14 }
 0x3c6   : > { %2828 = vst [vmem:[%s5719_s24] sm:$0xff] %v2702_v47  ;;  %v2705_v1 = vadd.f32 %v3206_v53, %v3094_v48 }
 0x3c8   : > { %2829 = vst [vmem:[%s5719_s24 + $0x8] sm:$0xff] %v2705_v1 }
 0x3cd   : > { %v3095_v24 = vpop.f32.mrb[68].mxu0 }
 0x3ce   : > { %v3096_v42 = vpop.f32.mrb[69].mxu0 }
 0x3cf   : > { %v3097_v29 = vadd.f32 %v3096_v42, %v3095_v24  ;;  %v3098_v56 = vpop.f32.mrb[70].mxu0 }
 0x3d0   : > { %v3207_v21 = vpop.f32.mrb[68].mxu1  ;;  %v3099_v41 = vpop.f32.mrb[71].mxu0 }
 0x3d1   : > { %v3208_v28 = vpop.f32.mrb[69].mxu1  ;;  %v3100_v49 = vadd.f32 %v3099_v41, %v3098_v56 }
 0x3d2   : > { %v3209_v8 = vadd.f32 %v3208_v28, %v3207_v21  ;;  %v3210_v52 = vpop.f32.mrb[70].mxu1 }
 0x3d3   : > { %v3211_v18 = vpop.f32.mrb[71].mxu1 }
 0x3d4   : > { %v2710_v43 = vadd.f32 %v3209_v8, %v3097_v29  ;;  %v3212_v0 = vadd.f32 %v3211_v18, %v3210_v52 }
 0x3d6   : > { %2830 = vst [vmem:[%s5719_s24 + $0x10] sm:$0xff] %v2710_v43  ;;  %v2713_v7 = vadd.f32 %v3212_v0, %v3100_v49 }
 0x3d8   : > { %2831 = vst [vmem:[%s5719_s24 + $0x18] sm:$0xff] %v2713_v7 }
 0x3de   : > { %v3101_v34 = vpop.f32.mrb[72].mxu0 }
 0x3df   : > { %v3102_v36 = vpop.f32.mrb[73].mxu0 }
 0x3e0   : > { %v3103_v40 = vadd.f32 %v3102_v36, %v3101_v34  ;;  %v3104_v37 = vpop.f32.mrb[74].mxu0 }
 0x3e1   : > { %v3105_v50 = vpop.f32.mrb[75].mxu0  ;;  %v3213_v59 = vpop.f32.mrb[72].mxu1 }
 0x3e2   : > { %v3106_v46 = vadd.f32 %v3105_v50, %v3104_v37  ;;  %v3214_v12 = vpop.f32.mrb[73].mxu1 }
 0x3e3   : > { %v3215_v44 = vadd.f32 %v3214_v12, %v3213_v59  ;;  %v3216_v32 = vpop.f32.mrb[74].mxu1 }
 0x3e4   : > { %v3217_v13 = vpop.f32.mrb[75].mxu1 }
 0x3e5   : > { %v2718_v55 = vadd.f32 %v3215_v44, %v3103_v40  ;;  %v3218_v54 = vadd.f32 %v3217_v13, %v3216_v32 }
 0x3e7   : > { %2832 = vst [vmem:[%s5719_s24 + $0x20] sm:$0xff] %v2718_v55  ;;  %v2721_v5 = vadd.f32 %v3218_v54, %v3106_v46 }
 0x3e9   : > { %2833 = vst [vmem:[%s5719_s24 + $0x28] sm:$0xff] %v2721_v5 }
 0x3ed   : > { %v3107_v39 = vpop.f32.mrb[76].mxu0 }
 0x3ee   : > { %v3108_v23 = vpop.f32.mrb[77].mxu0 }
 0x3ef   : > { %v3219_v19 = vpop.f32.mrb[76].mxu1  ;;  %v3109_v63 = vadd.f32 %v3108_v23, %v3107_v39  ;;  %v3110_v38 = vpop.f32.mrb[78].mxu0 }
 0x3f0   : > { %v3220_v10 = vpop.f32.mrb[77].mxu1  ;;  %v3111_v60 = vpop.f32.mrb[79].mxu0 }
 0x3f1   : > { %v3221_v9 = vadd.f32 %v3220_v10, %v3219_v19  ;;  %v3222_v58 = vpop.f32.mrb[78].mxu1  ;;  %v3112_v30 = vadd.f32 %v3111_v60, %v3110_v38 }
 0x3f2   : > { %v3223_v25 = vpop.f32.mrb[79].mxu1 }
 0x3f3   : > { %v2726_v62 = vadd.f32 %v3221_v9, %v3109_v63  ;;  %v3224_v57 = vadd.f32 %v3223_v25, %v3222_v58 }
 0x3f5   : > { %2834 = vst [vmem:[%s5719_s24 + $0x30] sm:$0xff] %v2726_v62  ;;  %v2729_v4 = vadd.f32 %v3224_v57, %v3112_v30 }
 0x3f7   : > { %2835 = vst [vmem:[%s5719_s24 + $0x38] sm:$0xff] %v2729_v4  ;;  %v3113_v6 = vpop.f32.mrb[80].mxu0 }
 0x3f8   : > { %v3114_v3 = vpop.f32.mrb[81].mxu0 }
 0x3f9   : > { %v3115_v11 = vadd.f32 %v3114_v3, %v3113_v6  ;;  %v3116_v20 = vpop.f32.mrb[82].mxu0  ;;  %v3225_v31 = vpop.f32.mrb[80].mxu1 }
 0x3fa   : > { %v3117_v2 = vpop.f32.mrb[83].mxu0  ;;  %v3226_v27 = vpop.f32.mrb[81].mxu1 }
 0x3fb   : > { %v3118_v35 = vadd.f32 %v3117_v2, %v3116_v20  ;;  %v3227_v33 = vadd.f32 %v3226_v27, %v3225_v31  ;;  %v3228_v51 = vpop.f32.mrb[82].mxu1 }
 0x3fc   : > { %v3229_v26 = vpop.f32.mrb[83].mxu1 }
 0x3fd   : > { %v2734_v15 = vadd.f32 %v3227_v33, %v3115_v11  ;;  %v3230_v45 = vadd.f32 %v3229_v26, %v3228_v51 }
 0x3ff   : > { %2836 = vst [vmem:[%s5719_s24 + $0x40] sm:$0xff] %v2734_v15  ;;  %v2737_v17 = vadd.f32 %v3230_v45, %v3118_v35 }
 0x401   : > { %2837 = vst [vmem:[%s5719_s24 + $0x48] sm:$0xff] %v2737_v17 }
 0x403   : > { %v3119_v22 = vpop.f32.mrb[84].mxu0 }
 0x404   : > { %v3231_v48 = vpop.f32.mrb[84].mxu1  ;;  %v3120_v16 = vpop.f32.mrb[85].mxu0 }
 0x405   : > { %v3121_v14 = vadd.f32 %v3120_v16, %v3119_v22  ;;  %v3232_v61 = vpop.f32.mrb[85].mxu1  ;;  %v3122_v47 = vpop.f32.mrb[86].mxu0 }
 0x406   : > { %v3233_v53 = vadd.f32 %v3232_v61, %v3231_v48  ;;  %v3234_v1 = vpop.f32.mrb[86].mxu1  ;;  %v3123_v24 = vpop.f32.mrb[87].mxu0 }
 0x407   : > { %v3124_v42 = vadd.f32 %v3123_v24, %v3122_v47  ;;  %v3235_v29 = vpop.f32.mrb[87].mxu1 }
 0x408   : > { %v2742_v56 = vadd.f32 %v3233_v53, %v3121_v14  ;;  %v3236_v21 = vadd.f32 %v3235_v29, %v3234_v1 }
 0x40a   : > { %2838 = vst [vmem:[%s5719_s24 + $0x50] sm:$0xff] %v2742_v56  ;;  %v2745_v41 = vadd.f32 %v3236_v21, %v3124_v42 }
 0x40c   : > { %2839 = vst [vmem:[%s5719_s24 + $0x58] sm:$0xff] %v2745_v41 }
 0x40d   : > { %v3125_v28 = vpop.f32.mrb[88].mxu0 }
 0x40e   : > { %v3126_v49 = vpop.f32.mrb[89].mxu0  ;;  %v3237_v8 = vpop.f32.mrb[88].mxu1 }
 0x40f   : > { %v3127_v52 = vadd.f32 %v3126_v49, %v3125_v28  ;;  %v3128_v18 = vpop.f32.mrb[90].mxu0  ;;  %v3238_v43 = vpop.f32.mrb[89].mxu1 }
 0x410   : > { %v3129_v0 = vpop.f32.mrb[91].mxu0  ;;  %v3239_v7 = vadd.f32 %v3238_v43, %v3237_v8  ;;  %v3240_v34 = vpop.f32.mrb[90].mxu1 }
 0x411   : > { %v3130_v36 = vadd.f32 %v3129_v0, %v3128_v18  ;;  %v3241_v40 = vpop.f32.mrb[91].mxu1 }
 0x412   : > { %v2750_v37 = vadd.f32 %v3239_v7, %v3127_v52  ;;  %v3242_v50 = vadd.f32 %v3241_v40, %v3240_v34 }
 0x414   : > { %2840 = vst [vmem:[%s5719_s24 + $0x60] sm:$0xff] %v2750_v37  ;;  %v2753_v59 = vadd.f32 %v3242_v50, %v3130_v36 }
 0x416   : > { %2841 = vst [vmem:[%s5719_s24 + $0x68] sm:$0xff] %v2753_v59 }
 0x417   : > { %v3131_v46 = vpop.f32.mrb[92].mxu0 }
 0x418   : > { %v3132_v12 = vpop.f32.mrb[93].mxu0  ;;  %v3243_v44 = vpop.f32.mrb[92].mxu1 }
 0x419   : > { %v3133_v32 = vadd.f32 %v3132_v12, %v3131_v46  ;;  %v3134_v13 = vpop.f32.mrb[94].mxu0  ;;  %v3244_v55 = vpop.f32.mrb[93].mxu1 }
 0x41a   : > { %v3135_v54 = vpop.f32.mrb[95].mxu0  ;;  %v3245_v5 = vadd.f32 %v3244_v55, %v3243_v44  ;;  %v3246_v39 = vpop.f32.mrb[94].mxu1 }
 0x41b   : > { %v3136_v23 = vadd.f32 %v3135_v54, %v3134_v13  ;;  %v3247_v19 = vpop.f32.mrb[95].mxu1 }
 0x41c   : > { %v2758_v63 = vadd.f32 %v3245_v5, %v3133_v32  ;;  %v3248_v38 = vadd.f32 %v3247_v19, %v3246_v39 }
 0x41e   : > { %2842 = vst [vmem:[%s5719_s24 + $0x70] sm:$0xff] %v2758_v63  ;;  %v2761_v10 = vadd.f32 %v3248_v38, %v3136_v23 }
 0x420   : > { %v3137_v60 = vpop.f32.mrb[96].mxu0  ;;  %2843 = vst [vmem:[%s5719_s24 + $0x78] sm:$0xff] %v2761_v10 }
 0x421   : > { %v3138_v9 = vpop.f32.mrb[97].mxu0 }
 0x422   : > { %v3139_v58 = vadd.f32 %v3138_v9, %v3137_v60  ;;  %v3140_v30 = vpop.f32.mrb[98].mxu0  ;;  %v3249_v25 = vpop.f32.mrb[96].mxu1 }
 0x423   : > { %v3141_v62 = vpop.f32.mrb[99].mxu0  ;;  %v3250_v57 = vpop.f32.mrb[97].mxu1 }
 0x424   : > { %v3142_v4 = vadd.f32 %v3141_v62, %v3140_v30  ;;  %v3251_v6 = vadd.f32 %v3250_v57, %v3249_v25  ;;  %v3252_v3 = vpop.f32.mrb[98].mxu1 }
 0x425   : > { %v3253_v11 = vpop.f32.mrb[99].mxu1 }
 0x426   : > { %v2766_v20 = vadd.f32 %v3251_v6, %v3139_v58  ;;  %v3254_v31 = vadd.f32 %v3253_v11, %v3252_v3 }
 0x428   : > { %2844 = vst [vmem:[%s5719_s24 + $0x80] sm:$0xff] %v2766_v20  ;;  %v2769_v2 = vadd.f32 %v3254_v31, %v3142_v4 }
 0x429   : > { %v3143_v27 = vpop.f32.mrb[100].mxu0 }
 0x42a   : > { %v3144_v35 = vpop.f32.mrb[101].mxu0  ;;  %2845 = vst [vmem:[%s5719_s24 + $0x88] sm:$0xff] %v2769_v2 }
 0x42b   : > { %v3145_v33 = vadd.f32 %v3144_v35, %v3143_v27  ;;  %v3146_v51 = vpop.f32.mrb[102].mxu0 }
 0x42c   : > { %v3255_v26 = vpop.f32.mrb[100].mxu1  ;;  %v3147_v15 = vpop.f32.mrb[103].mxu0 }
 0x42d   : > { %v3256_v45 = vpop.f32.mrb[101].mxu1  ;;  %v3148_v17 = vadd.f32 %v3147_v15, %v3146_v51 }
 0x42e   : > { %v3257_v22 = vadd.f32 %v3256_v45, %v3255_v26  ;;  %v3258_v48 = vpop.f32.mrb[102].mxu1 }
 0x42f   : > { %v3259_v16 = vpop.f32.mrb[103].mxu1 }
 0x430   : > { %v2774_v14 = vadd.f32 %v3257_v22, %v3145_v33  ;;  %v3260_v61 = vadd.f32 %v3259_v16, %v3258_v48 }
 0x432   : > { %2846 = vst [vmem:[%s5719_s24 + $0x90] sm:$0xff] %v2774_v14  ;;  %v2777_v47 = vadd.f32 %v3260_v61, %v3148_v17  ;;  %v3149_v53 = vpop.f32.mrb[104].mxu0 }
 0x433   : > { %v3150_v1 = vpop.f32.mrb[105].mxu0 }
 0x434   : > { %2847 = vst [vmem:[%s5719_s24 + $0x98] sm:$0xff] %v2777_v47  ;;  %v3151_v24 = vadd.f32 %v3150_v1, %v3149_v53  ;;  %v3152_v42 = vpop.f32.mrb[106].mxu0 }
 0x435   : > { %v3261_v29 = vpop.f32.mrb[104].mxu1  ;;  %v3153_v56 = vpop.f32.mrb[107].mxu0 }
 0x436   : > { %v3262_v21 = vpop.f32.mrb[105].mxu1  ;;  %v3154_v41 = vadd.f32 %v3153_v56, %v3152_v42 }
 0x437   : > { %v3263_v28 = vadd.f32 %v3262_v21, %v3261_v29  ;;  %v3264_v49 = vpop.f32.mrb[106].mxu1 }
 0x438   : > { %v3265_v8 = vpop.f32.mrb[107].mxu1 }
 0x439   : > { %v2782_v52 = vadd.f32 %v3263_v28, %v3151_v24  ;;  %v3266_v18 = vadd.f32 %v3265_v8, %v3264_v49 }
 0x43b   : > { %2848 = vst [vmem:[%s5719_s24 + $0xa0] sm:$0xff] %v2782_v52  ;;  %v2785_v43 = vadd.f32 %v3266_v18, %v3154_v41 }
 0x43d   : > { %2849 = vst [vmem:[%s5719_s24 + $0xa8] sm:$0xff] %v2785_v43 }
 0x453   : > { %v3155_v0 = vpop.f32.mrb[108].mxu0  ;;  %v3267_v7 = vpop.f32.mrb[108].mxu1 }
 0x454   : > { %v3156_v34 = vpop.f32.mrb[109].mxu0  ;;  %v3268_v36 = vpop.f32.mrb[109].mxu1 }
 0x455   : > { %v3157_v40 = vadd.f32 %v3156_v34, %v3155_v0  ;;  %v3269_v37 = vadd.f32 %v3268_v36, %v3267_v7  ;;  %v3158_v50 = vpop.f32.mrb[110].mxu0  ;;  %v3270_v59 = vpop.f32.mrb[110].mxu1 }
 0x456   : > { %v3159_v46 = vpop.f32.mrb[111].mxu0  ;;  %v3271_v12 = vpop.f32.mrb[111].mxu1 }
 0x457   : > { %v2790_v44 = vadd.f32 %v3269_v37, %v3157_v40  ;;  %v3160_v32 = vadd.f32 %v3159_v46, %v3158_v50  ;;  %v3272_v13 = vadd.f32 %v3271_v12, %v3270_v59 }
 0x459   : > { %2850 = vst [vmem:[%s5719_s24 + $0xb0] sm:$0xff] %v2790_v44  ;;  %v2793_v55 = vadd.f32 %v3272_v13, %v3160_v32 }
 0x45b   : > { %2851 = vst [vmem:[%s5719_s24 + $0xb8] sm:$0xff] %v2793_v55 }
 0x45d   : > { %v3161_v54 = vpop.f32.mrb[112].mxu0  ;;  %v3273_v5 = vpop.f32.mrb[112].mxu1 }
 0x45e   : > { %v3162_v39 = vpop.f32.mrb[113].mxu0  ;;  %v3274_v23 = vpop.f32.mrb[113].mxu1 }
 0x45f   : > { %v3163_v19 = vadd.f32 %v3162_v39, %v3161_v54  ;;  %v3275_v63 = vadd.f32 %v3274_v23, %v3273_v5  ;;  %v3164_v38 = vpop.f32.mrb[114].mxu0  ;;  %v3276_v10 = vpop.f32.mrb[114].mxu1 }
 0x460   : > { %v3165_v60 = vpop.f32.mrb[115].mxu0  ;;  %v3277_v9 = vpop.f32.mrb[115].mxu1 }
 0x461   : > { %v2798_v58 = vadd.f32 %v3275_v63, %v3163_v19  ;;  %v3166_v30 = vadd.f32 %v3165_v60, %v3164_v38  ;;  %v3278_v25 = vadd.f32 %v3277_v9, %v3276_v10 }
 0x463   : > { %2852 = vst [vmem:[%s5719_s24 + $0xc0] sm:$0xff] %v2798_v58  ;;  %v2801_v62 = vadd.f32 %v3278_v25, %v3166_v30 }
 0x465   : > { %2853 = vst [vmem:[%s5719_s24 + $0xc8] sm:$0xff] %v2801_v62 }
 0x470   : > { %v3167_v57 = vpop.f32.mrb[116].mxu0 }
 0x471   : > { %v3168_v4 = vpop.f32.mrb[117].mxu0  ;;  %v3279_v6 = vpop.f32.mrb[116].mxu1 }
 0x472   : > { %v3169_v3 = vadd.f32 %v3168_v4, %v3167_v57  ;;  %v3170_v11 = vpop.f32.mrb[118].mxu0  ;;  %v3280_v20 = vpop.f32.mrb[117].mxu1 }
 0x473   : > { %v3171_v31 = vpop.f32.mrb[119].mxu0  ;;  %v3281_v2 = vadd.f32 %v3280_v20, %v3279_v6  ;;  %v3282_v27 = vpop.f32.mrb[118].mxu1 }
 0x474   : > { %v3172_v35 = vadd.f32 %v3171_v31, %v3170_v11  ;;  %v3283_v33 = vpop.f32.mrb[119].mxu1 }
 0x475   : > { %v2806_v51 = vadd.f32 %v3281_v2, %v3169_v3  ;;  %v3284_v26 = vadd.f32 %v3283_v33, %v3282_v27 }
 0x477   : > { %2854 = vst [vmem:[%s5719_s24 + $0xd0] sm:$0xff] %v2806_v51  ;;  %v2809_v15 = vadd.f32 %v3284_v26, %v3172_v35 }
 0x479   : > { %2855 = vst [vmem:[%s5719_s24 + $0xd8] sm:$0xff] %v2809_v15 }
 0x480   : > { %v3173_v45 = vpop.f32.mrb[120].mxu0 }
 0x481   : > { %v3174_v17 = vpop.f32.mrb[121].mxu0 }
 0x482   : > { %v3175_v22 = vadd.f32 %v3174_v17, %v3173_v45  ;;  %v3176_v48 = vpop.f32.mrb[122].mxu0  ;;  %v3285_v16 = vpop.f32.mrb[120].mxu1 }
 0x483   : > { %v3177_v14 = vpop.f32.mrb[123].mxu0  ;;  %v3286_v61 = vpop.f32.mrb[121].mxu1 }
 0x484   : > { %v3178_v47 = vadd.f32 %v3177_v14, %v3176_v48  ;;  %v3287_v53 = vadd.f32 %v3286_v61, %v3285_v16  ;;  %v3288_v1 = vpop.f32.mrb[122].mxu1 }
 0x485   : > { %v3289_v24 = vpop.f32.mrb[123].mxu1 }
 0x486   : > { %v2814_v42 = vadd.f32 %v3287_v53, %v3175_v22  ;;  %v3290_v29 = vadd.f32 %v3289_v24, %v3288_v1 }
 0x488   : > { %2856 = vst [vmem:[%s5719_s24 + $0xe0] sm:$0xff] %v2814_v42  ;;  %v2817_v56 = vadd.f32 %v3290_v29, %v3178_v47 }
 0x48a   : > { %2857 = vst [vmem:[%s5719_s24 + $0xe8] sm:$0xff] %v2817_v56 }
 0x48e   : > { %v3179_v21 = vpop.f32.mrb[124].mxu0  ;;  %v3291_v41 = vpop.f32.mrb[124].mxu1 }
 0x48f   : > { %v3180_v28 = vpop.f32.mrb[125].mxu0  ;;  %v3292_v49 = vpop.f32.mrb[125].mxu1 }
 0x490   : > { %v3181_v8 = vadd.f32 %v3180_v28, %v3179_v21  ;;  %v3293_v52 = vadd.f32 %v3292_v49, %v3291_v41  ;;  %v3182_v18 = vpop.f32.mrb[126].mxu0  ;;  %v3294_v43 = vpop.f32.mrb[126].mxu1 }
 0x491   : > { %v3183_v0 = vpop.f32.mrb[127].mxu0  ;;  %v3295_v7 = vpop.f32.mrb[127].mxu1 }
 0x492   : > { %v2822_v34 = vadd.f32 %v3293_v52, %v3181_v8  ;;  %v3184_v36 = vadd.f32 %v3183_v0, %v3182_v18  ;;  %v3296_v40 = vadd.f32 %v3295_v7, %v3294_v43 }
 0x494   : > { %2858 = vst [vmem:[%s5719_s24 + $0xf0] sm:$0xff] %v2822_v34  ;;  %v2825_v37 = vadd.f32 %v3296_v40, %v3184_v36 }
 0x496   : > { %2859 = vst [vmem:[%s5719_s24 + $0xf8] sm:$0xff] %v2825_v37 }
 0x497   : > { %3692 = shalt.err (!%p3689_p13)
}
 0x498   : > { %s3693_s12 = scalar_lea.hbm %s5756_s14, 4096  ;;  %s3697_s27 = scalar_lea.hbm %s5809_s5, 8192 }
 0x499   : > { %p3694_p9 = scmp.ne.s32.totalorder %s5756_s14, %s3693_s12  ;;  %p3698_p6 = scmp.lt.u32.totalorder %s5756_s14, %s5809_s5 }
 0x49a   : > { %p3699_p4 = scmp.lt.u32.totalorder %s3697_s27, %s3693_s12  ;;  %p3701_p10 = scmp.lt.u32.totalorder %s3693_s12, %s5756_s14 }
 0x49b   : > { %p3695_p0 = pnand %p3694_p9, %p3962_p3 }
 0x49c   : > { %p3700_p8 = por %p3699_p4, %p3698_p6 }
 0x49d   : > { %p3696_p11 = pneg %p3695_p0 }
 0x49e   : > { %p3702_p5 = por %p3701_p10, %p3700_p8 }
 0x4a0   : > { %p3703_p7 = pnand %p3702_p5, %p3696_p11 }
 0x4a2   : > { %3706 = shalt.err (!%p3703_p7)
}
 0x4a3   : > { %s3768_s26 = smov 128   ;;  %s3769_s8 = smov 8  }
 0x4a4   : > { %3315 = dma.vmem_to_hbm [thread:$0]  (%p3962_p3), %s5758_s9, 4096, %s5756_s14, %s2861_s22, %s3768_s26, %s3768_s26, %s3769_s8  }
 0x4a5 PF: > { %s2889_s11 = sand.u32 1, %s3741_s18   ;;  %p6337_p12 = scmp.ne.s32.totalorder %s5984_s25, 0 }
 0x4a6   : > { %p6338_p2 = scmp.ge.s32.totalorder %s3753_s21, 2  ;;  %s2890_s29 = scalar_lea.sflag [#allocation4], %s2889_s11 }
 0x4a8   : > { %p3335_p1 = pnand %p6338_p2, %p6337_p12 }
 0x4aa   : > { %3736 = dma.done.wait (!%p3335_p1), %s2890_s29, 4096  }
 0x4ab   : > { %3738 = vsyncadd (!%p3335_p1), %s2890_s29, 4294963200  ;;  %p20_p13 = scmp.ge.s32.totalorder %s3949_s6, 4   ;;  %s6339_s18 = smov %s3745_s19 }
 0x4ac   : > { %s6340_s19 = smov %s3749_s20  ;;  %s6341_s20 = smov %s3958_s17 }
 0x4ad   : > { %s6342_s21 = smov %s3949_s6  ;;  %22 = sbr.rel (!%p20_p13) target bundleno = 7 (0x7), region = 101 }
 0x4b4   :  { %2895 = vsyncpa [#allocation3], 1 }
 0x4b5   :  { %2897 = vsyncpa [#allocation3 + $0x1], 1 }
 0x4b6   :  { %2898 = vsyncpa [#allocation6], 1 }
 0x4b7   :  { %2899 = vsyncpa [#allocation9], 1 }
 0x4b8   :  { %2900 = vsyncpa [#allocation4], 1 }
 0x4b9   :  { %2902 = vsyncpa [#allocation4 + $0x1], 1 }

</bundles_post_ra>
